<compile_context>
chip_gen: v7x
topology: tpu7x:2x2x1
jax: 0.10.0
libtpu: 0.0.40
codegen_flags: <defaults>
</compile_context>

<pallas_src>
import jax
import jax.numpy as jnp
from jax import lax
from jax.experimental import pallas as pl
from jax.experimental.pallas import tpu as pltpu


def _phase_cfg(K, s, p, Din, Oout):
    """Static polyphase structure for one spatial dim.

    Returns ([(residue, base, ntaps)] per output phase, outputs-per-phase,
    left edge pad, right edge pad)."""
    phases = []
    for f in range(s):
        r = (f + p) % s
        b = (f + p) // s
        ntaps = (K - 1 - r) // s + 1 if r < K else 0
        phases.append((r, b, ntaps))
    Oq = -(-Oout // s)                                        # outputs per phase
    L = max([0] + [nt - 1 - b for (_, b, nt) in phases])      # left edge pad
    R = max(0, Oq + max(b for (_, b, _) in phases) - Din)     # right edge pad
    return phases, Oq, L, R


def _make_kernel(Cin_g, Cout_g, sw, ODq, OHq, OWq, co_blk,
                 phase_info, w_order, starts_needed):
    """phase_info[p] = (ntd, d0, nth, h0, weight_base, per_co) — all Python ints.
       w_order      = static list of (fw, padded-input W start) in packing order."""
    PDH = len(phase_info)

    def kernel(w_ref, b_ref, x_ref, o_ref):
        # w_ref : (n_weights,)  SMEM f32   compactly packed weights (zero taps dropped)
        # b_ref : (G*Cout_g,)   SMEM f32
        # x_ref : (Cin_g, Dp, Hp, Wp)        VMEM f32  edge-padded input for one (n, g)
        # o_ref : (Cout_g, ODq, OHq, sw*OWq) VMEM f32  one (n, g, phase) block
        g = pl.program_id(1)
        pdh = pl.program_id(2)
        gco = g * Cout_g

        # One fully static body per (fd, fh) phase; pl.when picks exactly one per step,
        # so the untaken bodies cost nothing at runtime.
        for p in range(PDH):
            ntd, d0, nth, h0, wbase, per_co = phase_info[p]

            @pl.when(pdh == p)
            def _(ntd=ntd, d0=d0, nth=nth, h0=h0, wbase=wbase, per_co=per_co):
                wg_base = wbase + g * (Cout_g * per_co)

                def odq_body(odq, c0):
                    def co_body(cb, c1):
                        co0 = cb * co_blk
                        wbs = [wg_base + (co0 + u) * per_co for u in range(co_blk)]
                        accs = [[jnp.zeros((OHq, OWq), jnp.float32)
                                 for _ in range(sw)] for _ in range(co_blk)]
                        off = 0
                        for jd in range(ntd):                    # static depth taps
                            d_idx = odq + (d0 - jd)
                            for jh in range(nth):                # static height taps
                                hs = h0 - jh                     # static sublane start
                                for ci in range(Cin_g):          # static channel unroll
                                    row = x_ref[ci, d_idx, pl.ds(hs, OHq), :]
                                    slabs = {s: row[:, s:s + OWq]
                                             for s in starts_needed}
                                    for (fw, s) in w_order:      # static W phases/taps
                                        for u in range(co_blk):  # share slabs over co
                                            wv = w_ref[wbs[u] + off]
                                            accs[u][fw] = accs[u][fw] + wv * slabs[s]
                                        off += 1
                        # single lane-dense writeback per row, bias folded in once
                        for u in range(co_blk):
                            if sw > 1:
                                acc = jnp.concatenate(accs[u], axis=-1)
                            else:
                                acc = accs[u][0]
                            o_ref[co0 + u, odq] = acc + b_ref[gco + co0 + u]
                        return c1

                    lax.fori_loop(0, Cout_g // co_blk, co_body, 0)
                    return c0

                lax.fori_loop(0, ODq, odq_body, 0)

    return kernel


def conv_transpose3d(x, weight, bias, stride, padding, output_padding, groups):
    """Matches torch.nn.ConvTranspose3d forward (NCDHW in / NCDHW out)."""
    N, C_in, D, H, W = x.shape
    G = groups
    Cin_g = C_in // G
    Cout_g = weight.shape[1]
    C_out = Cout_g * G
    KD, KH, KW = weight.shape[2:]
    sd, sh, sw = stride
    pd, ph, pw = padding
    opd, oph, opw = output_padding
    assert opd < sd and oph < sh and opw < sw, "torch requires output_padding < stride"

    OD = (D - 1) * sd - 2 * pd + KD + opd
    OH = (H - 1) * sh - 2 * ph + KH + oph
    OW = (W - 1) * sw - 2 * pw + KW + opw

    dphases, ODq, Ld, Rd = _phase_cfg(KD, sd, pd, D, OD)
    hphases, OHq, Lh, Rh = _phase_cfg(KH, sh, ph, H, OH)
    wphases, OWq, Lw, Rw = _phase_cfg(KW, sw, pw, W, OW)
    PDH = sd * sh
    OWL = sw * OWq

    # W-phase tap table (shared by all (fd, fh) phases): emission order plus the
    # static padded-input column each valid tap reads; zero taps never appear.
    w_order, kw_idx = [], []
    for fw in range(sw):
        rw, bw, ntw = wphases[fw]
        for jw in range(ntw):
            w_order.append((fw, bw + Lw - jw))
            kw_idx.append(jw * sw + rw)
    starts_needed = sorted({s for _, s in w_order})
    nW = len(w_order)

    # Pack weights phase-major, layout per phase = (g, co, jd, jh, ci, w-tap)
    # flattened — exactly the kernel's static emission order, so every SMEM read
    # is a live (generally non-zero) weight.
    wg = weight.astype(jnp.float32).reshape(G, Cin_g, Cout_g, KD, KH, KW)
    kw_gather = jnp.array(kw_idx, jnp.int32)
    blocks, phase_info, base = [], [], 0
    for fd in range(sd):
        rd, bd, ntd = dphases[fd]
        for fh in range(sh):
            rh, bh, nth = hphases[fh]
            per_co = ntd * nth * Cin_g * nW
            phase_info.append((ntd, bd + Ld, nth, bh + Lh, base, per_co))
            if per_co:
                sub = wg[:, :, :, rd::sd, rh::sh, :]           # (G,Ci,Co,ntd,nth,KW)
                sub = jnp.take(sub, kw_gather, axis=5)         # (G,Ci,Co,ntd,nth,nW)
                sub = jnp.transpose(sub, (0, 2, 3, 4, 1, 5))   # (G,Co,ntd,nth,Ci,nW)
                blocks.append(sub.reshape(-1))
                base += G * Cout_g * per_co
    w_flat = jnp.concatenate(blocks) if blocks else jnp.zeros((1,), jnp.float32)

    if bias is None:
        b_flat = jnp.zeros((G * Cout_g,), jnp.float32)
    else:
        b_flat = bias.astype(jnp.float32).reshape(G * Cout_g)

    # Edge-pad the RAW input by a few elements per side (never the dilated input).
    xg = x.astype(jnp.float32).reshape(N, G, Cin_g, D, H, W)
    xg = jnp.pad(xg, ((0, 0), (0, 0), (0, 0), (Ld, Rd), (Lh, Rh), (Lw, Rw)))
    Dp, Hp, Wp = xg.shape[3:]

    # Register-budget-aware out-channel blocking: input slabs loaded once are
    # shared by co_blk output channels when the accumulators still fit in vregs.
    acc_vregs = sw * (-(-OHq // 8)) * (-(-OWq // 128))
    co_blk = 2 if (Cout_g % 2 == 0 and 2 * acc_vregs <= 40) else 1

    kernel = _make_kernel(Cin_g, Cout_g, sw, ODq, OHq, OWq, co_blk,
                          phase_info, w_order, starts_needed)

    out = pl.pallas_call(
        kernel,
        out_shape=jax.ShapeDtypeStruct((N, G, PDH, Cout_g, ODq, OHq, OWL),
                                       jnp.float32),
        grid=(N, G, PDH),
        in_specs=[
            pl.BlockSpec(memory_space=pltpu.MemorySpace.SMEM),   # packed weights
            pl.BlockSpec(memory_space=pltpu.MemorySpace.SMEM),   # bias
            pl.BlockSpec((None, None, Cin_g, Dp, Hp, Wp),
                         lambda n, g, p: (n, g, 0, 0, 0, 0)),    # input (reused over p)
        ],
        out_specs=pl.BlockSpec((None, None, None, Cout_g, ODq, OHq, OWL),
                               lambda n, g, p: (n, g, p, 0, 0, 0, 0)),
        compiler_params=pltpu.CompilerParams(
            dimension_semantics=("parallel", "parallel", "arbitrary"),
            vmem_limit_bytes=48 * 1024 * 1024),
    )(w_flat, b_flat, xg)

    # Interleave phases back into dense NCDHW, crop the ceil-rounding pad.
    y = out.reshape(N, G, sd, sh, Cout_g, ODq, OHq, sw, OWq)
    y = jnp.transpose(y, (0, 1, 4, 5, 2, 6, 3, 8, 7))
    y = y.reshape(N, C_out, ODq * sd, OHq * sh, OWq * sw)
    return y[:, :, :OD, :OH, :OW]


if __name__ == "__main__":
    # small config consistent with the benchmark's asymmetric/strided/grouped setup
    N = 2
    in_channels, out_channels, groups = 4, 4, 2
    kernel_size = (3, 5, 7)
    stride = (2, 3, 4)
    padding = (1, 2, 3)
    output_padding = (1, 1, 1)
    use_bias = False               # matches the benchmark config (bias=False)
    D, H, W = 4, 5, 6

    key = jax.random.PRNGKey(0)
    kx, kw_key = jax.random.split(key)
    x = jax.random.normal(kx, (N, in_channels, D, H, W), jnp.float32)
    # torch ConvTranspose3d weight shape: (in_channels, out_channels // groups, kD, kH, kW)
    weight = 0.05 * jax.random.normal(
        kw_key, (in_channels, out_channels // groups) + kernel_size, jnp.float32)
    bias = None if not use_bias else jnp.zeros((out_channels,), jnp.float32)

    y = conv_transpose3d(x, weight, bias, stride, padding, output_padding, groups)
    y = jax.block_until_ready(y)

    # independent reference via lax.conv_general_dilated (grouped transposed conv)
    Cin_g = in_channels // groups
    Cout_g = out_channels // groups
    rhs = weight.reshape(groups, Cin_g, Cout_g, *kernel_size)
    rhs = jnp.transpose(rhs, (0, 2, 1, 3, 4, 5))[..., ::-1, ::-1, ::-1]
    rhs = rhs.reshape(out_channels, Cin_g, *kernel_size)
    pads = [(k - 1 - p, k - 1 - p + op)
            for k, p, op in zip(kernel_size, padding, output_padding)]
    y_ref = lax.conv_general_dilated(
        x, rhs, window_strides=(1, 1, 1), padding=pads,
        lhs_dilation=stride, rhs_dilation=(1, 1, 1),
        dimension_numbers=("NCDHW", "OIDHW", "NCDHW"),
        feature_group_count=groups)
    if use_bias:
        y_ref = y_ref + bias[None, :, None, None, None]

    assert y.shape == y_ref.shape, (y.shape, y_ref.shape)
    max_err = float(jnp.max(jnp.abs(y - y_ref)))
    if max_err > 1e-4:
        raise AssertionError(f"mismatch vs reference: max_err={max_err}")
    print("KERNEL_OK")
</pallas_src>

<mosaic_0001>
module attributes {stable_mosaic.version = 11 : i64} {
  func.func @kernel(%arg0: i32, %arg1: i32, %arg2: i32, %arg3: memref<840xf32, #tpu.memory_space<smem>>, %arg4: memref<4xf32, #tpu.memory_space<smem>>, %arg5: memref<1x1x2x5x6x7xf32, #tpu.memory_space<vmem>>, %arg6: memref<1x1x1x2x4x5x24xf32, #tpu.memory_space<vmem>>) attributes {dimension_semantics = [#tpu.dimension_semantics<parallel>, #tpu.dimension_semantics<parallel>, #tpu.dimension_semantics<arbitrary>], iteration_bounds = array<i64: 2, 2, 6>, scalar_prefetch = 0 : i64, scratch_operands = 0 : i64, tpu.core_type = #tpu.core_type<tc>, window_params = [{transform_indices = @transform_0, window_bounds = array<i64: 840>}, {transform_indices = @transform_1, window_bounds = array<i64: 4>}, {transform_indices = @transform_2, window_bounds = array<i64: 1, 1, 2, 5, 6, 7>}, {transform_indices = @transform_3, window_bounds = array<i64: 1, 1, 1, 2, 4, 5, 24>}]} {
    %c2_i32 = arith.constant 2 : i32
    %0 = arith.muli %arg1, %c2_i32 : i32
    %c0_i32 = arith.constant 0 : i32
    %1 = arith.cmpi eq, %arg2, %c0_i32 : i32
    %2 = arith.extui %1 : i1 to i32
    %c0_i32_0 = arith.constant 0 : i32
    %3 = arith.cmpi ne, %2, %c0_i32_0 : i32
    scf.if %3 {
      %c28_i32 = arith.constant 28 : i32
      %19 = arith.muli %arg1, %c28_i32 : i32
      %c0_i32_7 = arith.constant 0 : i32
      %20 = arith.addi %c0_i32_7, %19 : i32
      %c0_i32_8 = arith.constant 0 : i32
      %c4_i32_9 = arith.constant 4 : i32
      %21 = arith.addi %c0_i32_8, %c4_i32_9 : i32
      %c1_i32_10 = arith.constant 1 : i32
      scf.for %arg7 = %c0_i32_8 to %21 step %c1_i32_10  : i32 {
        %c0_i32_12 = arith.constant 0 : i32
        %c2_i32_13 = arith.constant 2 : i32
        %22 = arith.muli %c0_i32_12, %c2_i32_13 : i32
        %c0_i32_14 = arith.constant 0 : i32
        %23 = arith.addi %22, %c0_i32_14 : i32
        %c14_i32 = arith.constant 14 : i32
        %24 = arith.muli %23, %c14_i32 : i32
        %25 = arith.addi %20, %24 : i32
        %c1_i32_15 = arith.constant 1 : i32
        %26 = arith.addi %22, %c1_i32_15 : i32
        %c14_i32_16 = arith.constant 14 : i32
        %27 = arith.muli %26, %c14_i32_16 : i32
        %28 = arith.addi %20, %27 : i32
        %cst = arith.constant 0.000000e+00 : f32
        %29 = vector.broadcast %cst : f32 to vector<5x6xf32>
        %cst_17 = arith.constant 0.000000e+00 : f32
        %30 = vector.broadcast %cst_17 : f32 to vector<5x6xf32>
        %cst_18 = arith.constant 0.000000e+00 : f32
        %31 = vector.broadcast %cst_18 : f32 to vector<5x6xf32>
        %cst_19 = arith.constant 0.000000e+00 : f32
        %32 = vector.broadcast %cst_19 : f32 to vector<5x6xf32>
        %cst_20 = arith.constant 0.000000e+00 : f32
        %33 = vector.broadcast %cst_20 : f32 to vector<5x6xf32>
        %cst_21 = arith.constant 0.000000e+00 : f32
        %34 = vector.broadcast %cst_21 : f32 to vector<5x6xf32>
        %cst_22 = arith.constant 0.000000e+00 : f32
        %35 = vector.broadcast %cst_22 : f32 to vector<5x6xf32>
        %cst_23 = arith.constant 0.000000e+00 : f32
        %36 = vector.broadcast %cst_23 : f32 to vector<5x6xf32>
        %c0_i32_24 = arith.constant 0 : i32
        %37 = arith.addi %arg7, %c0_i32_24 : i32
        %c0 = arith.constant 0 : index
        %c0_25 = arith.constant 0 : index
        %c0_26 = arith.constant 0 : index
        %38 = arith.index_cast %37 : i32 to index
        %c0_27 = arith.constant 0 : index
        %c0_28 = arith.constant 0 : index
        %39 = vector.load %arg5[%c0, %c0_25, %c0_26, %38, %c0_27, %c0_28] : memref<1x1x2x5x6x7xf32, #tpu.memory_space<vmem>>, vector<1x1x1x1x5x7xf32>
        %40 = vector.shape_cast %39 : vector<1x1x1x1x5x7xf32> to vector<5x7xf32>
        %41 = vector.extract_strided_slice %40 {offsets = [0, 0], sizes = [5, 6], strides = [1, 1]} : vector<5x7xf32> to vector<5x6xf32>
        %42 = vector.extract_strided_slice %40 {offsets = [0, 1], sizes = [5, 6], strides = [1, 1]} : vector<5x7xf32> to vector<5x6xf32>
        %c0_i32_29 = arith.constant 0 : i32
        %43 = arith.addi %25, %c0_i32_29 : i32
        %44 = arith.index_cast %43 : i32 to index
        %45 = memref.load %arg3[%44] : memref<840xf32, #tpu.memory_space<smem>>
        %46 = vector.broadcast %45 : f32 to vector<5x6xf32>
        %47 = arith.mulf %46, %41 : vector<5x6xf32>
        %48 = arith.addf %29, %47 : vector<5x6xf32>
        %c0_i32_30 = arith.constant 0 : i32
        %49 = arith.addi %28, %c0_i32_30 : i32
        %50 = arith.index_cast %49 : i32 to index
        %51 = memref.load %arg3[%50] : memref<840xf32, #tpu.memory_space<smem>>
        %52 = vector.broadcast %51 : f32 to vector<5x6xf32>
        %53 = arith.mulf %52, %41 : vector<5x6xf32>
        %54 = arith.addf %33, %53 : vector<5x6xf32>
        %c1_i32_31 = arith.constant 1 : i32
        %55 = arith.addi %25, %c1_i32_31 : i32
        %56 = arith.index_cast %55 : i32 to index
        %57 = memref.load %arg3[%56] : memref<840xf32, #tpu.memory_space<smem>>
        %58 = vector.broadcast %57 : f32 to vector<5x6xf32>
        %59 = arith.mulf %58, %42 : vector<5x6xf32>
        %60 = arith.addf %30, %59 : vector<5x6xf32>
        %c1_i32_32 = arith.constant 1 : i32
        %61 = arith.addi %28, %c1_i32_32 : i32
        %62 = arith.index_cast %61 : i32 to index
        %63 = memref.load %arg3[%62] : memref<840xf32, #tpu.memory_space<smem>>
        %64 = vector.broadcast %63 : f32 to vector<5x6xf32>
        %65 = arith.mulf %64, %42 : vector<5x6xf32>
        %66 = arith.addf %34, %65 : vector<5x6xf32>
        %c2_i32_33 = arith.constant 2 : i32
        %67 = arith.addi %25, %c2_i32_33 : i32
        %68 = arith.index_cast %67 : i32 to index
        %69 = memref.load %arg3[%68] : memref<840xf32, #tpu.memory_space<smem>>
        %70 = vector.broadcast %69 : f32 to vector<5x6xf32>
        %71 = arith.mulf %70, %41 : vector<5x6xf32>
        %72 = arith.addf %60, %71 : vector<5x6xf32>
        %c2_i32_34 = arith.constant 2 : i32
        %73 = arith.addi %28, %c2_i32_34 : i32
        %74 = arith.index_cast %73 : i32 to index
        %75 = memref.load %arg3[%74] : memref<840xf32, #tpu.memory_space<smem>>
        %76 = vector.broadcast %75 : f32 to vector<5x6xf32>
        %77 = arith.mulf %76, %41 : vector<5x6xf32>
        %78 = arith.addf %66, %77 : vector<5x6xf32>
        %c3_i32_35 = arith.constant 3 : i32
        %79 = arith.addi %25, %c3_i32_35 : i32
        %80 = arith.index_cast %79 : i32 to index
        %81 = memref.load %arg3[%80] : memref<840xf32, #tpu.memory_space<smem>>
        %82 = vector.broadcast %81 : f32 to vector<5x6xf32>
        %83 = arith.mulf %82, %42 : vector<5x6xf32>
        %84 = arith.addf %31, %83 : vector<5x6xf32>
        %c3_i32_36 = arith.constant 3 : i32
        %85 = arith.addi %28, %c3_i32_36 : i32
        %86 = arith.index_cast %85 : i32 to index
        %87 = memref.load %arg3[%86] : memref<840xf32, #tpu.memory_space<smem>>
        %88 = vector.broadcast %87 : f32 to vector<5x6xf32>
        %89 = arith.mulf %88, %42 : vector<5x6xf32>
        %90 = arith.addf %35, %89 : vector<5x6xf32>
        %c4_i32_37 = arith.constant 4 : i32
        %91 = arith.addi %25, %c4_i32_37 : i32
        %92 = arith.index_cast %91 : i32 to index
        %93 = memref.load %arg3[%92] : memref<840xf32, #tpu.memory_space<smem>>
        %94 = vector.broadcast %93 : f32 to vector<5x6xf32>
        %95 = arith.mulf %94, %41 : vector<5x6xf32>
        %96 = arith.addf %84, %95 : vector<5x6xf32>
        %c4_i32_38 = arith.constant 4 : i32
        %97 = arith.addi %28, %c4_i32_38 : i32
        %98 = arith.index_cast %97 : i32 to index
        %99 = memref.load %arg3[%98] : memref<840xf32, #tpu.memory_space<smem>>
        %100 = vector.broadcast %99 : f32 to vector<5x6xf32>
        %101 = arith.mulf %100, %41 : vector<5x6xf32>
        %102 = arith.addf %90, %101 : vector<5x6xf32>
        %c5_i32_39 = arith.constant 5 : i32
        %103 = arith.addi %25, %c5_i32_39 : i32
        %104 = arith.index_cast %103 : i32 to index
        %105 = memref.load %arg3[%104] : memref<840xf32, #tpu.memory_space<smem>>
        %106 = vector.broadcast %105 : f32 to vector<5x6xf32>
        %107 = arith.mulf %106, %42 : vector<5x6xf32>
        %108 = arith.addf %32, %107 : vector<5x6xf32>
        %c5_i32_40 = arith.constant 5 : i32
        %109 = arith.addi %28, %c5_i32_40 : i32
        %110 = arith.index_cast %109 : i32 to index
        %111 = memref.load %arg3[%110] : memref<840xf32, #tpu.memory_space<smem>>
        %112 = vector.broadcast %111 : f32 to vector<5x6xf32>
        %113 = arith.mulf %112, %42 : vector<5x6xf32>
        %114 = arith.addf %36, %113 : vector<5x6xf32>
        %c6_i32 = arith.constant 6 : i32
        %115 = arith.addi %25, %c6_i32 : i32
        %116 = arith.index_cast %115 : i32 to index
        %117 = memref.load %arg3[%116] : memref<840xf32, #tpu.memory_space<smem>>
        %118 = vector.broadcast %117 : f32 to vector<5x6xf32>
        %119 = arith.mulf %118, %41 : vector<5x6xf32>
        %120 = arith.addf %108, %119 : vector<5x6xf32>
        %c6_i32_41 = arith.constant 6 : i32
        %121 = arith.addi %28, %c6_i32_41 : i32
        %122 = arith.index_cast %121 : i32 to index
        %123 = memref.load %arg3[%122] : memref<840xf32, #tpu.memory_space<smem>>
        %124 = vector.broadcast %123 : f32 to vector<5x6xf32>
        %125 = arith.mulf %124, %41 : vector<5x6xf32>
        %126 = arith.addf %114, %125 : vector<5x6xf32>
        %c0_42 = arith.constant 0 : index
        %c0_43 = arith.constant 0 : index
        %c1 = arith.constant 1 : index
        %127 = arith.index_cast %37 : i32 to index
        %c0_44 = arith.constant 0 : index
        %c0_45 = arith.constant 0 : index
        %128 = vector.load %arg5[%c0_42, %c0_43, %c1, %127, %c0_44, %c0_45] : memref<1x1x2x5x6x7xf32, #tpu.memory_space<vmem>>, vector<1x1x1x1x5x7xf32>
        %129 = vector.shape_cast %128 : vector<1x1x1x1x5x7xf32> to vector<5x7xf32>
        %130 = vector.extract_strided_slice %129 {offsets = [0, 0], sizes = [5, 6], strides = [1, 1]} : vector<5x7xf32> to vector<5x6xf32>
        %131 = vector.extract_strided_slice %129 {offsets = [0, 1], sizes = [5, 6], strides = [1, 1]} : vector<5x7xf32> to vector<5x6xf32>
        %c7_i32 = arith.constant 7 : i32
        %132 = arith.addi %25, %c7_i32 : i32
        %133 = arith.index_cast %132 : i32 to index
        %134 = memref.load %arg3[%133] : memref<840xf32, #tpu.memory_space<smem>>
        %135 = vector.broadcast %134 : f32 to vector<5x6xf32>
        %136 = arith.mulf %135, %130 : vector<5x6xf32>
        %137 = arith.addf %48, %136 : vector<5x6xf32>
        %c7_i32_46 = arith.constant 7 : i32
        %138 = arith.addi %28, %c7_i32_46 : i32
        %139 = arith.index_cast %138 : i32 to index
        %140 = memref.load %arg3[%139] : memref<840xf32, #tpu.memory_space<smem>>
        %141 = vector.broadcast %140 : f32 to vector<5x6xf32>
        %142 = arith.mulf %141, %130 : vector<5x6xf32>
        %143 = arith.addf %54, %142 : vector<5x6xf32>
        %c8_i32 = arith.constant 8 : i32
        %144 = arith.addi %25, %c8_i32 : i32
        %145 = arith.index_cast %144 : i32 to index
        %146 = memref.load %arg3[%145] : memref<840xf32, #tpu.memory_space<smem>>
        %147 = vector.broadcast %146 : f32 to vector<5x6xf32>
        %148 = arith.mulf %147, %131 : vector<5x6xf32>
        %149 = arith.addf %72, %148 : vector<5x6xf32>
        %c8_i32_47 = arith.constant 8 : i32
        %150 = arith.addi %28, %c8_i32_47 : i32
        %151 = arith.index_cast %150 : i32 to index
        %152 = memref.load %arg3[%151] : memref<840xf32, #tpu.memory_space<smem>>
        %153 = vector.broadcast %152 : f32 to vector<5x6xf32>
        %154 = arith.mulf %153, %131 : vector<5x6xf32>
        %155 = arith.addf %78, %154 : vector<5x6xf32>
        %c9_i32 = arith.constant 9 : i32
        %156 = arith.addi %25, %c9_i32 : i32
        %157 = arith.index_cast %156 : i32 to index
        %158 = memref.load %arg3[%157] : memref<840xf32, #tpu.memory_space<smem>>
        %159 = vector.broadcast %158 : f32 to vector<5x6xf32>
        %160 = arith.mulf %159, %130 : vector<5x6xf32>
        %161 = arith.addf %149, %160 : vector<5x6xf32>
        %c9_i32_48 = arith.constant 9 : i32
        %162 = arith.addi %28, %c9_i32_48 : i32
        %163 = arith.index_cast %162 : i32 to index
        %164 = memref.load %arg3[%163] : memref<840xf32, #tpu.memory_space<smem>>
        %165 = vector.broadcast %164 : f32 to vector<5x6xf32>
        %166 = arith.mulf %165, %130 : vector<5x6xf32>
        %167 = arith.addf %155, %166 : vector<5x6xf32>
        %c10_i32 = arith.constant 10 : i32
        %168 = arith.addi %25, %c10_i32 : i32
        %169 = arith.index_cast %168 : i32 to index
        %170 = memref.load %arg3[%169] : memref<840xf32, #tpu.memory_space<smem>>
        %171 = vector.broadcast %170 : f32 to vector<5x6xf32>
        %172 = arith.mulf %171, %131 : vector<5x6xf32>
        %173 = arith.addf %96, %172 : vector<5x6xf32>
        %c10_i32_49 = arith.constant 10 : i32
        %174 = arith.addi %28, %c10_i32_49 : i32
        %175 = arith.index_cast %174 : i32 to index
        %176 = memref.load %arg3[%175] : memref<840xf32, #tpu.memory_space<smem>>
        %177 = vector.broadcast %176 : f32 to vector<5x6xf32>
        %178 = arith.mulf %177, %131 : vector<5x6xf32>
        %179 = arith.addf %102, %178 : vector<5x6xf32>
        %c11_i32 = arith.constant 11 : i32
        %180 = arith.addi %25, %c11_i32 : i32
        %181 = arith.index_cast %180 : i32 to index
        %182 = memref.load %arg3[%181] : memref<840xf32, #tpu.memory_space<smem>>
        %183 = vector.broadcast %182 : f32 to vector<5x6xf32>
        %184 = arith.mulf %183, %130 : vector<5x6xf32>
        %185 = arith.addf %173, %184 : vector<5x6xf32>
        %c11_i32_50 = arith.constant 11 : i32
        %186 = arith.addi %28, %c11_i32_50 : i32
        %187 = arith.index_cast %186 : i32 to index
        %188 = memref.load %arg3[%187] : memref<840xf32, #tpu.memory_space<smem>>
        %189 = vector.broadcast %188 : f32 to vector<5x6xf32>
        %190 = arith.mulf %189, %130 : vector<5x6xf32>
        %191 = arith.addf %179, %190 : vector<5x6xf32>
        %c12_i32 = arith.constant 12 : i32
        %192 = arith.addi %25, %c12_i32 : i32
        %193 = arith.index_cast %192 : i32 to index
        %194 = memref.load %arg3[%193] : memref<840xf32, #tpu.memory_space<smem>>
        %195 = vector.broadcast %194 : f32 to vector<5x6xf32>
        %196 = arith.mulf %195, %131 : vector<5x6xf32>
        %197 = arith.addf %120, %196 : vector<5x6xf32>
        %c12_i32_51 = arith.constant 12 : i32
        %198 = arith.addi %28, %c12_i32_51 : i32
        %199 = arith.index_cast %198 : i32 to index
        %200 = memref.load %arg3[%199] : memref<840xf32, #tpu.memory_space<smem>>
        %201 = vector.broadcast %200 : f32 to vector<5x6xf32>
        %202 = arith.mulf %201, %131 : vector<5x6xf32>
        %203 = arith.addf %126, %202 : vector<5x6xf32>
        %c13_i32 = arith.constant 13 : i32
        %204 = arith.addi %25, %c13_i32 : i32
        %205 = arith.index_cast %204 : i32 to index
        %206 = memref.load %arg3[%205] : memref<840xf32, #tpu.memory_space<smem>>
        %207 = vector.broadcast %206 : f32 to vector<5x6xf32>
        %208 = arith.mulf %207, %130 : vector<5x6xf32>
        %209 = arith.addf %197, %208 : vector<5x6xf32>
        %c13_i32_52 = arith.constant 13 : i32
        %210 = arith.addi %28, %c13_i32_52 : i32
        %211 = arith.index_cast %210 : i32 to index
        %212 = memref.load %arg3[%211] : memref<840xf32, #tpu.memory_space<smem>>
        %213 = vector.broadcast %212 : f32 to vector<5x6xf32>
        %214 = arith.mulf %213, %130 : vector<5x6xf32>
        %215 = arith.addf %203, %214 : vector<5x6xf32>
        %216 = tpu.concatenate %137, %161, %185, %209 in 1 : vector<5x6xf32>, vector<5x6xf32>, vector<5x6xf32>, vector<5x6xf32> -> vector<5x24xf32>
        %217 = arith.addi %0, %22 : i32
        %c0_i32_53 = arith.constant 0 : i32
        %218 = arith.addi %217, %c0_i32_53 : i32
        %219 = arith.index_cast %218 : i32 to index
        %220 = memref.load %arg4[%219] : memref<4xf32, #tpu.memory_space<smem>>
        %221 = vector.broadcast %220 : f32 to vector<5x24xf32>
        %222 = arith.addf %216, %221 : vector<5x24xf32>
        %c0_i32_54 = arith.constant 0 : i32
        %223 = arith.addi %22, %c0_i32_54 : i32
        %c0_55 = arith.constant 0 : index
        %c0_56 = arith.constant 0 : index
        %c0_57 = arith.constant 0 : index
        %224 = arith.index_cast %223 : i32 to index
        %225 = arith.index_cast %arg7 : i32 to index
        %c0_58 = arith.constant 0 : index
        %c0_59 = arith.constant 0 : index
        %226 = vector.load %arg6[%c0_55, %c0_56, %c0_57, %224, %225, %c0_58, %c0_59] : memref<1x1x1x2x4x5x24xf32, #tpu.memory_space<vmem>>, vector<1x1x1x1x1x5x24xf32>
        %227 = vector.shape_cast %226 : vector<1x1x1x1x1x5x24xf32> to vector<5x24xf32>
        %228 = vector.shape_cast %222 : vector<5x24xf32> to vector<1x1x1x1x1x5x24xf32>
        tpu.vector_store %arg6[%c0_55, %c0_56, %c0_57, %224, %225, %c0_58, %c0_59], %228 {strides = array<i32>} : memref<1x1x1x2x4x5x24xf32, #tpu.memory_space<vmem>>, vector<1x1x1x1x1x5x24xf32>,
        %229 = tpu.concatenate %143, %167, %191, %215 in 1 : vector<5x6xf32>, vector<5x6xf32>, vector<5x6xf32>, vector<5x6xf32> -> vector<5x24xf32>
        %230 = arith.addi %0, %22 : i32
        %c1_i32_60 = arith.constant 1 : i32
        %231 = arith.addi %230, %c1_i32_60 : i32
        %232 = arith.index_cast %231 : i32 to index
        %233 = memref.load %arg4[%232] : memref<4xf32, #tpu.memory_space<smem>>
        %234 = vector.broadcast %233 : f32 to vector<5x24xf32>
        %235 = arith.addf %229, %234 : vector<5x24xf32>
        %c1_i32_61 = arith.constant 1 : i32
        %236 = arith.addi %22, %c1_i32_61 : i32
        %c0_62 = arith.constant 0 : index
        %c0_63 = arith.constant 0 : index
        %c0_64 = arith.constant 0 : index
        %237 = arith.index_cast %236 : i32 to index
        %238 = arith.index_cast %arg7 : i32 to index
        %c0_65 = arith.constant 0 : index
        %c0_66 = arith.constant 0 : index
        %239 = vector.load %arg6[%c0_62, %c0_63, %c0_64, %237, %238, %c0_65, %c0_66] : memref<1x1x1x2x4x5x24xf32, #tpu.memory_space<vmem>>, vector<1x1x1x1x1x5x24xf32>
        %240 = vector.shape_cast %239 : vector<1x1x1x1x1x5x24xf32> to vector<5x24xf32>
        %241 = vector.shape_cast %235 : vector<5x24xf32> to vector<1x1x1x1x1x5x24xf32>
        tpu.vector_store %arg6[%c0_62, %c0_63, %c0_64, %237, %238, %c0_65, %c0_66], %241 {strides = array<i32>} : memref<1x1x1x2x4x5x24xf32, #tpu.memory_space<vmem>>, vector<1x1x1x1x1x5x24xf32>,
        %c1_i32_67 = arith.constant 1 : i32
      }
      %c4_i32_11 = arith.constant 4 : i32
    } else {
    }
    %c1_i32 = arith.constant 1 : i32
    %4 = arith.cmpi eq, %arg2, %c1_i32 : i32
    %5 = arith.extui %4 : i1 to i32
    %c0_i32_1 = arith.constant 0 : i32
    %6 = arith.cmpi ne, %5, %c0_i32_1 : i32
    scf.if %6 {
      %c56_i32 = arith.constant 56 : i32
      %19 = arith.muli %arg1, %c56_i32 : i32
      %c56_i32_7 = arith.constant 56 : i32
      %20 = arith.addi %c56_i32_7, %19 : i32
      %c0_i32_8 = arith.constant 0 : i32
      %c4_i32_9 = arith.constant 4 : i32
      %21 = arith.addi %c0_i32_8, %c4_i32_9 : i32
      %c1_i32_10 = arith.constant 1 : i32
      scf.for %arg7 = %c0_i32_8 to %21 step %c1_i32_10  : i32 {
        %c0_i32_12 = arith.constant 0 : i32
        %c2_i32_13 = arith.constant 2 : i32
        %22 = arith.muli %c0_i32_12, %c2_i32_13 : i32
        %c0_i32_14 = arith.constant 0 : i32
        %23 = arith.addi %22, %c0_i32_14 : i32
        %c28_i32 = arith.constant 28 : i32
        %24 = arith.muli %23, %c28_i32 : i32
        %25 = arith.addi %20, %24 : i32
        %c1_i32_15 = arith.constant 1 : i32
        %26 = arith.addi %22, %c1_i32_15 : i32
        %c28_i32_16 = arith.constant 28 : i32
        %27 = arith.muli %26, %c28_i32_16 : i32
        %28 = arith.addi %20, %27 : i32
        %cst = arith.constant 0.000000e+00 : f32
        %29 = vector.broadcast %cst : f32 to vector<5x6xf32>
        %cst_17 = arith.constant 0.000000e+00 : f32
        %30 = vector.broadcast %cst_17 : f32 to vector<5x6xf32>
        %cst_18 = arith.constant 0.000000e+00 : f32
        %31 = vector.broadcast %cst_18 : f32 to vector<5x6xf32>
        %cst_19 = arith.constant 0.000000e+00 : f32
        %32 = vector.broadcast %cst_19 : f32 to vector<5x6xf32>
        %cst_20 = arith.constant 0.000000e+00 : f32
        %33 = vector.broadcast %cst_20 : f32 to vector<5x6xf32>
        %cst_21 = arith.constant 0.000000e+00 : f32
        %34 = vector.broadcast %cst_21 : f32 to vector<5x6xf32>
        %cst_22 = arith.constant 0.000000e+00 : f32
        %35 = vector.broadcast %cst_22 : f32 to vector<5x6xf32>
        %cst_23 = arith.constant 0.000000e+00 : f32
        %36 = vector.broadcast %cst_23 : f32 to vector<5x6xf32>
        %c0_i32_24 = arith.constant 0 : i32
        %37 = arith.addi %arg7, %c0_i32_24 : i32
        %c0 = arith.constant 0 : index
        %c0_25 = arith.constant 0 : index
        %c0_26 = arith.constant 0 : index
        %38 = arith.index_cast %37 : i32 to index
        %c1 = arith.constant 1 : index
        %c0_27 = arith.constant 0 : index
        %39 = vector.load %arg5[%c0, %c0_25, %c0_26, %38, %c1, %c0_27] : memref<1x1x2x5x6x7xf32, #tpu.memory_space<vmem>>, vector<1x1x1x1x5x7xf32>
        %40 = vector.shape_cast %39 : vector<1x1x1x1x5x7xf32> to vector<5x7xf32>
        %41 = vector.extract_strided_slice %40 {offsets = [0, 0], sizes = [5, 6], strides = [1, 1]} : vector<5x7xf32> to vector<5x6xf32>
        %42 = vector.extract_strided_slice %40 {offsets = [0, 1], sizes = [5, 6], strides = [1, 1]} : vector<5x7xf32> to vector<5x6xf32>
        %c0_i32_28 = arith.constant 0 : i32
        %43 = arith.addi %25, %c0_i32_28 : i32
        %44 = arith.index_cast %43 : i32 to index
        %45 = memref.load %arg3[%44] : memref<840xf32, #tpu.memory_space<smem>>
        %46 = vector.broadcast %45 : f32 to vector<5x6xf32>
        %47 = arith.mulf %46, %41 : vector<5x6xf32>
        %48 = arith.addf %29, %47 : vector<5x6xf32>
        %c0_i32_29 = arith.constant 0 : i32
        %49 = arith.addi %28, %c0_i32_29 : i32
        %50 = arith.index_cast %49 : i32 to index
        %51 = memref.load %arg3[%50] : memref<840xf32, #tpu.memory_space<smem>>
        %52 = vector.broadcast %51 : f32 to vector<5x6xf32>
        %53 = arith.mulf %52, %41 : vector<5x6xf32>
        %54 = arith.addf %33, %53 : vector<5x6xf32>
        %c1_i32_30 = arith.constant 1 : i32
        %55 = arith.addi %25, %c1_i32_30 : i32
        %56 = arith.index_cast %55 : i32 to index
        %57 = memref.load %arg3[%56] : memref<840xf32, #tpu.memory_space<smem>>
        %58 = vector.broadcast %57 : f32 to vector<5x6xf32>
        %59 = arith.mulf %58, %42 : vector<5x6xf32>
        %60 = arith.addf %30, %59 : vector<5x6xf32>
        %c1_i32_31 = arith.constant 1 : i32
        %61 = arith.addi %28, %c1_i32_31 : i32
        %62 = arith.index_cast %61 : i32 to index
        %63 = memref.load %arg3[%62] : memref<840xf32, #tpu.memory_space<smem>>
        %64 = vector.broadcast %63 : f32 to vector<5x6xf32>
        %65 = arith.mulf %64, %42 : vector<5x6xf32>
        %66 = arith.addf %34, %65 : vector<5x6xf32>
        %c2_i32_32 = arith.constant 2 : i32
        %67 = arith.addi %25, %c2_i32_32 : i32
        %68 = arith.index_cast %67 : i32 to index
        %69 = memref.load %arg3[%68] : memref<840xf32, #tpu.memory_space<smem>>
        %70 = vector.broadcast %69 : f32 to vector<5x6xf32>
        %71 = arith.mulf %70, %41 : vector<5x6xf32>
        %72 = arith.addf %60, %71 : vector<5x6xf32>
        %c2_i32_33 = arith.constant 2 : i32
        %73 = arith.addi %28, %c2_i32_33 : i32
        %74 = arith.index_cast %73 : i32 to index
        %75 = memref.load %arg3[%74] : memref<840xf32, #tpu.memory_space<smem>>
        %76 = vector.broadcast %75 : f32 to vector<5x6xf32>
        %77 = arith.mulf %76, %41 : vector<5x6xf32>
        %78 = arith.addf %66, %77 : vector<5x6xf32>
        %c3_i32_34 = arith.constant 3 : i32
        %79 = arith.addi %25, %c3_i32_34 : i32
        %80 = arith.index_cast %79 : i32 to index
        %81 = memref.load %arg3[%80] : memref<840xf32, #tpu.memory_space<smem>>
        %82 = vector.broadcast %81 : f32 to vector<5x6xf32>
        %83 = arith.mulf %82, %42 : vector<5x6xf32>
        %84 = arith.addf %31, %83 : vector<5x6xf32>
        %c3_i32_35 = arith.constant 3 : i32
        %85 = arith.addi %28, %c3_i32_35 : i32
        %86 = arith.index_cast %85 : i32 to index
        %87 = memref.load %arg3[%86] : memref<840xf32, #tpu.memory_space<smem>>
        %88 = vector.broadcast %87 : f32 to vector<5x6xf32>
        %89 = arith.mulf %88, %42 : vector<5x6xf32>
        %90 = arith.addf %35, %89 : vector<5x6xf32>
        %c4_i32_36 = arith.constant 4 : i32
        %91 = arith.addi %25, %c4_i32_36 : i32
        %92 = arith.index_cast %91 : i32 to index
        %93 = memref.load %arg3[%92] : memref<840xf32, #tpu.memory_space<smem>>
        %94 = vector.broadcast %93 : f32 to vector<5x6xf32>
        %95 = arith.mulf %94, %41 : vector<5x6xf32>
        %96 = arith.addf %84, %95 : vector<5x6xf32>
        %c4_i32_37 = arith.constant 4 : i32
        %97 = arith.addi %28, %c4_i32_37 : i32
        %98 = arith.index_cast %97 : i32 to index
        %99 = memref.load %arg3[%98] : memref<840xf32, #tpu.memory_space<smem>>
        %100 = vector.broadcast %99 : f32 to vector<5x6xf32>
        %101 = arith.mulf %100, %41 : vector<5x6xf32>
        %102 = arith.addf %90, %101 : vector<5x6xf32>
        %c5_i32_38 = arith.constant 5 : i32
        %103 = arith.addi %25, %c5_i32_38 : i32
        %104 = arith.index_cast %103 : i32 to index
        %105 = memref.load %arg3[%104] : memref<840xf32, #tpu.memory_space<smem>>
        %106 = vector.broadcast %105 : f32 to vector<5x6xf32>
        %107 = arith.mulf %106, %42 : vector<5x6xf32>
        %108 = arith.addf %32, %107 : vector<5x6xf32>
        %c5_i32_39 = arith.constant 5 : i32
        %109 = arith.addi %28, %c5_i32_39 : i32
        %110 = arith.index_cast %109 : i32 to index
        %111 = memref.load %arg3[%110] : memref<840xf32, #tpu.memory_space<smem>>
        %112 = vector.broadcast %111 : f32 to vector<5x6xf32>
        %113 = arith.mulf %112, %42 : vector<5x6xf32>
        %114 = arith.addf %36, %113 : vector<5x6xf32>
        %c6_i32 = arith.constant 6 : i32
        %115 = arith.addi %25, %c6_i32 : i32
        %116 = arith.index_cast %115 : i32 to index
        %117 = memref.load %arg3[%116] : memref<840xf32, #tpu.memory_space<smem>>
        %118 = vector.broadcast %117 : f32 to vector<5x6xf32>
        %119 = arith.mulf %118, %41 : vector<5x6xf32>
        %120 = arith.addf %108, %119 : vector<5x6xf32>
        %c6_i32_40 = arith.constant 6 : i32
        %121 = arith.addi %28, %c6_i32_40 : i32
        %122 = arith.index_cast %121 : i32 to index
        %123 = memref.load %arg3[%122] : memref<840xf32, #tpu.memory_space<smem>>
        %124 = vector.broadcast %123 : f32 to vector<5x6xf32>
        %125 = arith.mulf %124, %41 : vector<5x6xf32>
        %126 = arith.addf %114, %125 : vector<5x6xf32>
        %c0_41 = arith.constant 0 : index
        %c0_42 = arith.constant 0 : index
        %c1_43 = arith.constant 1 : index
        %127 = arith.index_cast %37 : i32 to index
        %c1_44 = arith.constant 1 : index
        %c0_45 = arith.constant 0 : index
        %128 = vector.load %arg5[%c0_41, %c0_42, %c1_43, %127, %c1_44, %c0_45] : memref<1x1x2x5x6x7xf32, #tpu.memory_space<vmem>>, vector<1x1x1x1x5x7xf32>
        %129 = vector.shape_cast %128 : vector<1x1x1x1x5x7xf32> to vector<5x7xf32>
        %130 = vector.extract_strided_slice %129 {offsets = [0, 0], sizes = [5, 6], strides = [1, 1]} : vector<5x7xf32> to vector<5x6xf32>
        %131 = vector.extract_strided_slice %129 {offsets = [0, 1], sizes = [5, 6], strides = [1, 1]} : vector<5x7xf32> to vector<5x6xf32>
        %c7_i32 = arith.constant 7 : i32
        %132 = arith.addi %25, %c7_i32 : i32
        %133 = arith.index_cast %132 : i32 to index
        %134 = memref.load %arg3[%133] : memref<840xf32, #tpu.memory_space<smem>>
        %135 = vector.broadcast %134 : f32 to vector<5x6xf32>
        %136 = arith.mulf %135, %130 : vector<5x6xf32>
        %137 = arith.addf %48, %136 : vector<5x6xf32>
        %c7_i32_46 = arith.constant 7 : i32
        %138 = arith.addi %28, %c7_i32_46 : i32
        %139 = arith.index_cast %138 : i32 to index
        %140 = memref.load %arg3[%139] : memref<840xf32, #tpu.memory_space<smem>>
        %141 = vector.broadcast %140 : f32 to vector<5x6xf32>
        %142 = arith.mulf %141, %130 : vector<5x6xf32>
        %143 = arith.addf %54, %142 : vector<5x6xf32>
        %c8_i32 = arith.constant 8 : i32
        %144 = arith.addi %25, %c8_i32 : i32
        %145 = arith.index_cast %144 : i32 to index
        %146 = memref.load %arg3[%145] : memref<840xf32, #tpu.memory_space<smem>>
        %147 = vector.broadcast %146 : f32 to vector<5x6xf32>
        %148 = arith.mulf %147, %131 : vector<5x6xf32>
        %149 = arith.addf %72, %148 : vector<5x6xf32>
        %c8_i32_47 = arith.constant 8 : i32
        %150 = arith.addi %28, %c8_i32_47 : i32
        %151 = arith.index_cast %150 : i32 to index
        %152 = memref.load %arg3[%151] : memref<840xf32, #tpu.memory_space<smem>>
        %153 = vector.broadcast %152 : f32 to vector<5x6xf32>
        %154 = arith.mulf %153, %131 : vector<5x6xf32>
        %155 = arith.addf %78, %154 : vector<5x6xf32>
        %c9_i32 = arith.constant 9 : i32
        %156 = arith.addi %25, %c9_i32 : i32
        %157 = arith.index_cast %156 : i32 to index
        %158 = memref.load %arg3[%157] : memref<840xf32, #tpu.memory_space<smem>>
        %159 = vector.broadcast %158 : f32 to vector<5x6xf32>
        %160 = arith.mulf %159, %130 : vector<5x6xf32>
        %161 = arith.addf %149, %160 : vector<5x6xf32>
        %c9_i32_48 = arith.constant 9 : i32
        %162 = arith.addi %28, %c9_i32_48 : i32
        %163 = arith.index_cast %162 : i32 to index
        %164 = memref.load %arg3[%163] : memref<840xf32, #tpu.memory_space<smem>>
        %165 = vector.broadcast %164 : f32 to vector<5x6xf32>
        %166 = arith.mulf %165, %130 : vector<5x6xf32>
        %167 = arith.addf %155, %166 : vector<5x6xf32>
        %c10_i32 = arith.constant 10 : i32
        %168 = arith.addi %25, %c10_i32 : i32
        %169 = arith.index_cast %168 : i32 to index
        %170 = memref.load %arg3[%169] : memref<840xf32, #tpu.memory_space<smem>>
        %171 = vector.broadcast %170 : f32 to vector<5x6xf32>
        %172 = arith.mulf %171, %131 : vector<5x6xf32>
        %173 = arith.addf %96, %172 : vector<5x6xf32>
        %c10_i32_49 = arith.constant 10 : i32
        %174 = arith.addi %28, %c10_i32_49 : i32
        %175 = arith.index_cast %174 : i32 to index
        %176 = memref.load %arg3[%175] : memref<840xf32, #tpu.memory_space<smem>>
        %177 = vector.broadcast %176 : f32 to vector<5x6xf32>
        %178 = arith.mulf %177, %131 : vector<5x6xf32>
        %179 = arith.addf %102, %178 : vector<5x6xf32>
        %c11_i32 = arith.constant 11 : i32
        %180 = arith.addi %25, %c11_i32 : i32
        %181 = arith.index_cast %180 : i32 to index
        %182 = memref.load %arg3[%181] : memref<840xf32, #tpu.memory_space<smem>>
        %183 = vector.broadcast %182 : f32 to vector<5x6xf32>
        %184 = arith.mulf %183, %130 : vector<5x6xf32>
        %185 = arith.addf %173, %184 : vector<5x6xf32>
        %c11_i32_50 = arith.constant 11 : i32
        %186 = arith.addi %28, %c11_i32_50 : i32
        %187 = arith.index_cast %186 : i32 to index
        %188 = memref.load %arg3[%187] : memref<840xf32, #tpu.memory_space<smem>>
        %189 = vector.broadcast %188 : f32 to vector<5x6xf32>
        %190 = arith.mulf %189, %130 : vector<5x6xf32>
        %191 = arith.addf %179, %190 : vector<5x6xf32>
        %c12_i32 = arith.constant 12 : i32
        %192 = arith.addi %25, %c12_i32 : i32
        %193 = arith.index_cast %192 : i32 to index
        %194 = memref.load %arg3[%193] : memref<840xf32, #tpu.memory_space<smem>>
        %195 = vector.broadcast %194 : f32 to vector<5x6xf32>
        %196 = arith.mulf %195, %131 : vector<5x6xf32>
        %197 = arith.addf %120, %196 : vector<5x6xf32>
        %c12_i32_51 = arith.constant 12 : i32
        %198 = arith.addi %28, %c12_i32_51 : i32
        %199 = arith.index_cast %198 : i32 to index
        %200 = memref.load %arg3[%199] : memref<840xf32, #tpu.memory_space<smem>>
        %201 = vector.broadcast %200 : f32 to vector<5x6xf32>
        %202 = arith.mulf %201, %131 : vector<5x6xf32>
        %203 = arith.addf %126, %202 : vector<5x6xf32>
        %c13_i32 = arith.constant 13 : i32
        %204 = arith.addi %25, %c13_i32 : i32
        %205 = arith.index_cast %204 : i32 to index
        %206 = memref.load %arg3[%205] : memref<840xf32, #tpu.memory_space<smem>>
        %207 = vector.broadcast %206 : f32 to vector<5x6xf32>
        %208 = arith.mulf %207, %130 : vector<5x6xf32>
        %209 = arith.addf %197, %208 : vector<5x6xf32>
        %c13_i32_52 = arith.constant 13 : i32
        %210 = arith.addi %28, %c13_i32_52 : i32
        %211 = arith.index_cast %210 : i32 to index
        %212 = memref.load %arg3[%211] : memref<840xf32, #tpu.memory_space<smem>>
        %213 = vector.broadcast %212 : f32 to vector<5x6xf32>
        %214 = arith.mulf %213, %130 : vector<5x6xf32>
        %215 = arith.addf %203, %214 : vector<5x6xf32>
        %c0_53 = arith.constant 0 : index
        %c0_54 = arith.constant 0 : index
        %c0_55 = arith.constant 0 : index
        %216 = arith.index_cast %37 : i32 to index
        %c0_56 = arith.constant 0 : index
        %c0_57 = arith.constant 0 : index
        %217 = vector.load %arg5[%c0_53, %c0_54, %c0_55, %216, %c0_56, %c0_57] : memref<1x1x2x5x6x7xf32, #tpu.memory_space<vmem>>, vector<1x1x1x1x5x7xf32>
        %218 = vector.shape_cast %217 : vector<1x1x1x1x5x7xf32> to vector<5x7xf32>
        %219 = vector.extract_strided_slice %218 {offsets = [0, 0], sizes = [5, 6], strides = [1, 1]} : vector<5x7xf32> to vector<5x6xf32>
        %220 = vector.extract_strided_slice %218 {offsets = [0, 1], sizes = [5, 6], strides = [1, 1]} : vector<5x7xf32> to vector<5x6xf32>
        %c14_i32 = arith.constant 14 : i32
        %221 = arith.addi %25, %c14_i32 : i32
        %222 = arith.index_cast %221 : i32 to index
        %223 = memref.load %arg3[%222] : memref<840xf32, #tpu.memory_space<smem>>
        %224 = vector.broadcast %223 : f32 to vector<5x6xf32>
        %225 = arith.mulf %224, %219 : vector<5x6xf32>
        %226 = arith.addf %137, %225 : vector<5x6xf32>
        %c14_i32_58 = arith.constant 14 : i32
        %227 = arith.addi %28, %c14_i32_58 : i32
        %228 = arith.index_cast %227 : i32 to index
        %229 = memref.load %arg3[%228] : memref<840xf32, #tpu.memory_space<smem>>
        %230 = vector.broadcast %229 : f32 to vector<5x6xf32>
        %231 = arith.mulf %230, %219 : vector<5x6xf32>
        %232 = arith.addf %143, %231 : vector<5x6xf32>
        %c15_i32 = arith.constant 15 : i32
        %233 = arith.addi %25, %c15_i32 : i32
        %234 = arith.index_cast %233 : i32 to index
        %235 = memref.load %arg3[%234] : memref<840xf32, #tpu.memory_space<smem>>
        %236 = vector.broadcast %235 : f32 to vector<5x6xf32>
        %237 = arith.mulf %236, %220 : vector<5x6xf32>
        %238 = arith.addf %161, %237 : vector<5x6xf32>
        %c15_i32_59 = arith.constant 15 : i32
        %239 = arith.addi %28, %c15_i32_59 : i32
        %240 = arith.index_cast %239 : i32 to index
        %241 = memref.load %arg3[%240] : memref<840xf32, #tpu.memory_space<smem>>
        %242 = vector.broadcast %241 : f32 to vector<5x6xf32>
        %243 = arith.mulf %242, %220 : vector<5x6xf32>
        %244 = arith.addf %167, %243 : vector<5x6xf32>
        %c16_i32 = arith.constant 16 : i32
        %245 = arith.addi %25, %c16_i32 : i32
        %246 = arith.index_cast %245 : i32 to index
        %247 = memref.load %arg3[%246] : memref<840xf32, #tpu.memory_space<smem>>
        %248 = vector.broadcast %247 : f32 to vector<5x6xf32>
        %249 = arith.mulf %248, %219 : vector<5x6xf32>
        %250 = arith.addf %238, %249 : vector<5x6xf32>
        %c16_i32_60 = arith.constant 16 : i32
        %251 = arith.addi %28, %c16_i32_60 : i32
        %252 = arith.index_cast %251 : i32 to index
        %253 = memref.load %arg3[%252] : memref<840xf32, #tpu.memory_space<smem>>
        %254 = vector.broadcast %253 : f32 to vector<5x6xf32>
        %255 = arith.mulf %254, %219 : vector<5x6xf32>
        %256 = arith.addf %244, %255 : vector<5x6xf32>
        %c17_i32 = arith.constant 17 : i32
        %257 = arith.addi %25, %c17_i32 : i32
        %258 = arith.index_cast %257 : i32 to index
        %259 = memref.load %arg3[%258] : memref<840xf32, #tpu.memory_space<smem>>
        %260 = vector.broadcast %259 : f32 to vector<5x6xf32>
        %261 = arith.mulf %260, %220 : vector<5x6xf32>
        %262 = arith.addf %185, %261 : vector<5x6xf32>
        %c17_i32_61 = arith.constant 17 : i32
        %263 = arith.addi %28, %c17_i32_61 : i32
        %264 = arith.index_cast %263 : i32 to index
        %265 = memref.load %arg3[%264] : memref<840xf32, #tpu.memory_space<smem>>
        %266 = vector.broadcast %265 : f32 to vector<5x6xf32>
        %267 = arith.mulf %266, %220 : vector<5x6xf32>
        %268 = arith.addf %191, %267 : vector<5x6xf32>
        %c18_i32 = arith.constant 18 : i32
        %269 = arith.addi %25, %c18_i32 : i32
        %270 = arith.index_cast %269 : i32 to index
        %271 = memref.load %arg3[%270] : memref<840xf32, #tpu.memory_space<smem>>
        %272 = vector.broadcast %271 : f32 to vector<5x6xf32>
        %273 = arith.mulf %272, %219 : vector<5x6xf32>
        %274 = arith.addf %262, %273 : vector<5x6xf32>
        %c18_i32_62 = arith.constant 18 : i32
        %275 = arith.addi %28, %c18_i32_62 : i32
        %276 = arith.index_cast %275 : i32 to index
        %277 = memref.load %arg3[%276] : memref<840xf32, #tpu.memory_space<smem>>
        %278 = vector.broadcast %277 : f32 to vector<5x6xf32>
        %279 = arith.mulf %278, %219 : vector<5x6xf32>
        %280 = arith.addf %268, %279 : vector<5x6xf32>
        %c19_i32 = arith.constant 19 : i32
        %281 = arith.addi %25, %c19_i32 : i32
        %282 = arith.index_cast %281 : i32 to index
        %283 = memref.load %arg3[%282] : memref<840xf32, #tpu.memory_space<smem>>
        %284 = vector.broadcast %283 : f32 to vector<5x6xf32>
        %285 = arith.mulf %284, %220 : vector<5x6xf32>
        %286 = arith.addf %209, %285 : vector<5x6xf32>
        %c19_i32_63 = arith.constant 19 : i32
        %287 = arith.addi %28, %c19_i32_63 : i32
        %288 = arith.index_cast %287 : i32 to index
        %289 = memref.load %arg3[%288] : memref<840xf32, #tpu.memory_space<smem>>
        %290 = vector.broadcast %289 : f32 to vector<5x6xf32>
        %291 = arith.mulf %290, %220 : vector<5x6xf32>
        %292 = arith.addf %215, %291 : vector<5x6xf32>
        %c20_i32 = arith.constant 20 : i32
        %293 = arith.addi %25, %c20_i32 : i32
        %294 = arith.index_cast %293 : i32 to index
        %295 = memref.load %arg3[%294] : memref<840xf32, #tpu.memory_space<smem>>
        %296 = vector.broadcast %295 : f32 to vector<5x6xf32>
        %297 = arith.mulf %296, %219 : vector<5x6xf32>
        %298 = arith.addf %286, %297 : vector<5x6xf32>
        %c20_i32_64 = arith.constant 20 : i32
        %299 = arith.addi %28, %c20_i32_64 : i32
        %300 = arith.index_cast %299 : i32 to index
        %301 = memref.load %arg3[%300] : memref<840xf32, #tpu.memory_space<smem>>
        %302 = vector.broadcast %301 : f32 to vector<5x6xf32>
        %303 = arith.mulf %302, %219 : vector<5x6xf32>
        %304 = arith.addf %292, %303 : vector<5x6xf32>
        %c0_65 = arith.constant 0 : index
        %c0_66 = arith.constant 0 : index
        %c1_67 = arith.constant 1 : index
        %305 = arith.index_cast %37 : i32 to index
        %c0_68 = arith.constant 0 : index
        %c0_69 = arith.constant 0 : index
        %306 = vector.load %arg5[%c0_65, %c0_66, %c1_67, %305, %c0_68, %c0_69] : memref<1x1x2x5x6x7xf32, #tpu.memory_space<vmem>>, vector<1x1x1x1x5x7xf32>
        %307 = vector.shape_cast %306 : vector<1x1x1x1x5x7xf32> to vector<5x7xf32>
        %308 = vector.extract_strided_slice %307 {offsets = [0, 0], sizes = [5, 6], strides = [1, 1]} : vector<5x7xf32> to vector<5x6xf32>
        %309 = vector.extract_strided_slice %307 {offsets = [0, 1], sizes = [5, 6], strides = [1, 1]} : vector<5x7xf32> to vector<5x6xf32>
        %c21_i32 = arith.constant 21 : i32
        %310 = arith.addi %25, %c21_i32 : i32
        %311 = arith.index_cast %310 : i32 to index
        %312 = memref.load %arg3[%311] : memref<840xf32, #tpu.memory_space<smem>>
        %313 = vector.broadcast %312 : f32 to vector<5x6xf32>
        %314 = arith.mulf %313, %308 : vector<5x6xf32>
        %315 = arith.addf %226, %314 : vector<5x6xf32>
        %c21_i32_70 = arith.constant 21 : i32
        %316 = arith.addi %28, %c21_i32_70 : i32
        %317 = arith.index_cast %316 : i32 to index
        %318 = memref.load %arg3[%317] : memref<840xf32, #tpu.memory_space<smem>>
        %319 = vector.broadcast %318 : f32 to vector<5x6xf32>
        %320 = arith.mulf %319, %308 : vector<5x6xf32>
        %321 = arith.addf %232, %320 : vector<5x6xf32>
        %c22_i32 = arith.constant 22 : i32
        %322 = arith.addi %25, %c22_i32 : i32
        %323 = arith.index_cast %322 : i32 to index
        %324 = memref.load %arg3[%323] : memref<840xf32, #tpu.memory_space<smem>>
        %325 = vector.broadcast %324 : f32 to vector<5x6xf32>
        %326 = arith.mulf %325, %309 : vector<5x6xf32>
        %327 = arith.addf %250, %326 : vector<5x6xf32>
        %c22_i32_71 = arith.constant 22 : i32
        %328 = arith.addi %28, %c22_i32_71 : i32
        %329 = arith.index_cast %328 : i32 to index
        %330 = memref.load %arg3[%329] : memref<840xf32, #tpu.memory_space<smem>>
        %331 = vector.broadcast %330 : f32 to vector<5x6xf32>
        %332 = arith.mulf %331, %309 : vector<5x6xf32>
        %333 = arith.addf %256, %332 : vector<5x6xf32>
        %c23_i32 = arith.constant 23 : i32
        %334 = arith.addi %25, %c23_i32 : i32
        %335 = arith.index_cast %334 : i32 to index
        %336 = memref.load %arg3[%335] : memref<840xf32, #tpu.memory_space<smem>>
        %337 = vector.broadcast %336 : f32 to vector<5x6xf32>
        %338 = arith.mulf %337, %308 : vector<5x6xf32>
        %339 = arith.addf %327, %338 : vector<5x6xf32>
        %c23_i32_72 = arith.constant 23 : i32
        %340 = arith.addi %28, %c23_i32_72 : i32
        %341 = arith.index_cast %340 : i32 to index
        %342 = memref.load %arg3[%341] : memref<840xf32, #tpu.memory_space<smem>>
        %343 = vector.broadcast %342 : f32 to vector<5x6xf32>
        %344 = arith.mulf %343, %308 : vector<5x6xf32>
        %345 = arith.addf %333, %344 : vector<5x6xf32>
        %c24_i32 = arith.constant 24 : i32
        %346 = arith.addi %25, %c24_i32 : i32
        %347 = arith.index_cast %346 : i32 to index
        %348 = memref.load %arg3[%347] : memref<840xf32, #tpu.memory_space<smem>>
        %349 = vector.broadcast %348 : f32 to vector<5x6xf32>
        %350 = arith.mulf %349, %309 : vector<5x6xf32>
        %351 = arith.addf %274, %350 : vector<5x6xf32>
        %c24_i32_73 = arith.constant 24 : i32
        %352 = arith.addi %28, %c24_i32_73 : i32
        %353 = arith.index_cast %352 : i32 to index
        %354 = memref.load %arg3[%353] : memref<840xf32, #tpu.memory_space<smem>>
        %355 = vector.broadcast %354 : f32 to vector<5x6xf32>
        %356 = arith.mulf %355, %309 : vector<5x6xf32>
        %357 = arith.addf %280, %356 : vector<5x6xf32>
        %c25_i32 = arith.constant 25 : i32
        %358 = arith.addi %25, %c25_i32 : i32
        %359 = arith.index_cast %358 : i32 to index
        %360 = memref.load %arg3[%359] : memref<840xf32, #tpu.memory_space<smem>>
        %361 = vector.broadcast %360 : f32 to vector<5x6xf32>
        %362 = arith.mulf %361, %308 : vector<5x6xf32>
        %363 = arith.addf %351, %362 : vector<5x6xf32>
        %c25_i32_74 = arith.constant 25 : i32
        %364 = arith.addi %28, %c25_i32_74 : i32
        %365 = arith.index_cast %364 : i32 to index
        %366 = memref.load %arg3[%365] : memref<840xf32, #tpu.memory_space<smem>>
        %367 = vector.broadcast %366 : f32 to vector<5x6xf32>
        %368 = arith.mulf %367, %308 : vector<5x6xf32>
        %369 = arith.addf %357, %368 : vector<5x6xf32>
        %c26_i32 = arith.constant 26 : i32
        %370 = arith.addi %25, %c26_i32 : i32
        %371 = arith.index_cast %370 : i32 to index
        %372 = memref.load %arg3[%371] : memref<840xf32, #tpu.memory_space<smem>>
        %373 = vector.broadcast %372 : f32 to vector<5x6xf32>
        %374 = arith.mulf %373, %309 : vector<5x6xf32>
        %375 = arith.addf %298, %374 : vector<5x6xf32>
        %c26_i32_75 = arith.constant 26 : i32
        %376 = arith.addi %28, %c26_i32_75 : i32
        %377 = arith.index_cast %376 : i32 to index
        %378 = memref.load %arg3[%377] : memref<840xf32, #tpu.memory_space<smem>>
        %379 = vector.broadcast %378 : f32 to vector<5x6xf32>
        %380 = arith.mulf %379, %309 : vector<5x6xf32>
        %381 = arith.addf %304, %380 : vector<5x6xf32>
        %c27_i32 = arith.constant 27 : i32
        %382 = arith.addi %25, %c27_i32 : i32
        %383 = arith.index_cast %382 : i32 to index
        %384 = memref.load %arg3[%383] : memref<840xf32, #tpu.memory_space<smem>>
        %385 = vector.broadcast %384 : f32 to vector<5x6xf32>
        %386 = arith.mulf %385, %308 : vector<5x6xf32>
        %387 = arith.addf %375, %386 : vector<5x6xf32>
        %c27_i32_76 = arith.constant 27 : i32
        %388 = arith.addi %28, %c27_i32_76 : i32
        %389 = arith.index_cast %388 : i32 to index
        %390 = memref.load %arg3[%389] : memref<840xf32, #tpu.memory_space<smem>>
        %391 = vector.broadcast %390 : f32 to vector<5x6xf32>
        %392 = arith.mulf %391, %308 : vector<5x6xf32>
        %393 = arith.addf %381, %392 : vector<5x6xf32>
        %394 = tpu.concatenate %315, %339, %363, %387 in 1 : vector<5x6xf32>, vector<5x6xf32>, vector<5x6xf32>, vector<5x6xf32> -> vector<5x24xf32>
        %395 = arith.addi %0, %22 : i32
        %c0_i32_77 = arith.constant 0 : i32
        %396 = arith.addi %395, %c0_i32_77 : i32
        %397 = arith.index_cast %396 : i32 to index
        %398 = memref.load %arg4[%397] : memref<4xf32, #tpu.memory_space<smem>>
        %399 = vector.broadcast %398 : f32 to vector<5x24xf32>
        %400 = arith.addf %394, %399 : vector<5x24xf32>
        %c0_i32_78 = arith.constant 0 : i32
        %401 = arith.addi %22, %c0_i32_78 : i32
        %c0_79 = arith.constant 0 : index
        %c0_80 = arith.constant 0 : index
        %c0_81 = arith.constant 0 : index
        %402 = arith.index_cast %401 : i32 to index
        %403 = arith.index_cast %arg7 : i32 to index
        %c0_82 = arith.constant 0 : index
        %c0_83 = arith.constant 0 : index
        %404 = vector.load %arg6[%c0_79, %c0_80, %c0_81, %402, %403, %c0_82, %c0_83] : memref<1x1x1x2x4x5x24xf32, #tpu.memory_space<vmem>>, vector<1x1x1x1x1x5x24xf32>
        %405 = vector.shape_cast %404 : vector<1x1x1x1x1x5x24xf32> to vector<5x24xf32>
        %406 = vector.shape_cast %400 : vector<5x24xf32> to vector<1x1x1x1x1x5x24xf32>
        tpu.vector_store %arg6[%c0_79, %c0_80, %c0_81, %402, %403, %c0_82, %c0_83], %406 {strides = array<i32>} : memref<1x1x1x2x4x5x24xf32, #tpu.memory_space<vmem>>, vector<1x1x1x1x1x5x24xf32>,
        %407 = tpu.concatenate %321, %345, %369, %393 in 1 : vector<5x6xf32>, vector<5x6xf32>, vector<5x6xf32>, vector<5x6xf32> -> vector<5x24xf32>
        %408 = arith.addi %0, %22 : i32
        %c1_i32_84 = arith.constant 1 : i32
        %409 = arith.addi %408, %c1_i32_84 : i32
        %410 = arith.index_cast %409 : i32 to index
        %411 = memref.load %arg4[%410] : memref<4xf32, #tpu.memory_space<smem>>
        %412 = vector.broadcast %411 : f32 to vector<5x24xf32>
        %413 = arith.addf %407, %412 : vector<5x24xf32>
        %c1_i32_85 = arith.constant 1 : i32
        %414 = arith.addi %22, %c1_i32_85 : i32
        %c0_86 = arith.constant 0 : index
        %c0_87 = arith.constant 0 : index
        %c0_88 = arith.constant 0 : index
        %415 = arith.index_cast %414 : i32 to index
        %416 = arith.index_cast %arg7 : i32 to index
        %c0_89 = arith.constant 0 : index
        %c0_90 = arith.constant 0 : index
        %417 = vector.load %arg6[%c0_86, %c0_87, %c0_88, %415, %416, %c0_89, %c0_90] : memref<1x1x1x2x4x5x24xf32, #tpu.memory_space<vmem>>, vector<1x1x1x1x1x5x24xf32>
        %418 = vector.shape_cast %417 : vector<1x1x1x1x1x5x24xf32> to vector<5x24xf32>
        %419 = vector.shape_cast %413 : vector<5x24xf32> to vector<1x1x1x1x1x5x24xf32>
        tpu.vector_store %arg6[%c0_86, %c0_87, %c0_88, %415, %416, %c0_89, %c0_90], %419 {strides = array<i32>} : memref<1x1x1x2x4x5x24xf32, #tpu.memory_space<vmem>>, vector<1x1x1x1x1x5x24xf32>,
        %c1_i32_91 = arith.constant 1 : i32
      }
      %c4_i32_11 = arith.constant 4 : i32
    } else {
    }
    %c2_i32_2 = arith.constant 2 : i32
    %7 = arith.cmpi eq, %arg2, %c2_i32_2 : i32
    %8 = arith.extui %7 : i1 to i32
    %c0_i32_3 = arith.constant 0 : i32
    %9 = arith.cmpi ne, %8, %c0_i32_3 : i32
    scf.if %9 {
      %c56_i32 = arith.constant 56 : i32
      %19 = arith.muli %arg1, %c56_i32 : i32
      %c168_i32 = arith.constant 168 : i32
      %20 = arith.addi %c168_i32, %19 : i32
      %c0_i32_7 = arith.constant 0 : i32
      %c4_i32_8 = arith.constant 4 : i32
      %21 = arith.addi %c0_i32_7, %c4_i32_8 : i32
      %c1_i32_9 = arith.constant 1 : i32
      scf.for %arg7 = %c0_i32_7 to %21 step %c1_i32_9  : i32 {
        %c0_i32_11 = arith.constant 0 : i32
        %c2_i32_12 = arith.constant 2 : i32
        %22 = arith.muli %c0_i32_11, %c2_i32_12 : i32
        %c0_i32_13 = arith.constant 0 : i32
        %23 = arith.addi %22, %c0_i32_13 : i32
        %c28_i32 = arith.constant 28 : i32
        %24 = arith.muli %23, %c28_i32 : i32
        %25 = arith.addi %20, %24 : i32
        %c1_i32_14 = arith.constant 1 : i32
        %26 = arith.addi %22, %c1_i32_14 : i32
        %c28_i32_15 = arith.constant 28 : i32
        %27 = arith.muli %26, %c28_i32_15 : i32
        %28 = arith.addi %20, %27 : i32
        %cst = arith.constant 0.000000e+00 : f32
        %29 = vector.broadcast %cst : f32 to vector<5x6xf32>
        %cst_16 = arith.constant 0.000000e+00 : f32
        %30 = vector.broadcast %cst_16 : f32 to vector<5x6xf32>
        %cst_17 = arith.constant 0.000000e+00 : f32
        %31 = vector.broadcast %cst_17 : f32 to vector<5x6xf32>
        %cst_18 = arith.constant 0.000000e+00 : f32
        %32 = vector.broadcast %cst_18 : f32 to vector<5x6xf32>
        %cst_19 = arith.constant 0.000000e+00 : f32
        %33 = vector.broadcast %cst_19 : f32 to vector<5x6xf32>
        %cst_20 = arith.constant 0.000000e+00 : f32
        %34 = vector.broadcast %cst_20 : f32 to vector<5x6xf32>
        %cst_21 = arith.constant 0.000000e+00 : f32
        %35 = vector.broadcast %cst_21 : f32 to vector<5x6xf32>
        %cst_22 = arith.constant 0.000000e+00 : f32
        %36 = vector.broadcast %cst_22 : f32 to vector<5x6xf32>
        %c0_i32_23 = arith.constant 0 : i32
        %37 = arith.addi %arg7, %c0_i32_23 : i32
        %c0 = arith.constant 0 : index
        %c0_24 = arith.constant 0 : index
        %c0_25 = arith.constant 0 : index
        %38 = arith.index_cast %37 : i32 to index
        %c1 = arith.constant 1 : index
        %c0_26 = arith.constant 0 : index
        %39 = vector.load %arg5[%c0, %c0_24, %c0_25, %38, %c1, %c0_26] : memref<1x1x2x5x6x7xf32, #tpu.memory_space<vmem>>, vector<1x1x1x1x5x7xf32>
        %40 = vector.shape_cast %39 : vector<1x1x1x1x5x7xf32> to vector<5x7xf32>
        %41 = vector.extract_strided_slice %40 {offsets = [0, 0], sizes = [5, 6], strides = [1, 1]} : vector<5x7xf32> to vector<5x6xf32>
        %42 = vector.extract_strided_slice %40 {offsets = [0, 1], sizes = [5, 6], strides = [1, 1]} : vector<5x7xf32> to vector<5x6xf32>
        %c0_i32_27 = arith.constant 0 : i32
        %43 = arith.addi %25, %c0_i32_27 : i32
        %44 = arith.index_cast %43 : i32 to index
        %45 = memref.load %arg3[%44] : memref<840xf32, #tpu.memory_space<smem>>
        %46 = vector.broadcast %45 : f32 to vector<5x6xf32>
        %47 = arith.mulf %46, %41 : vector<5x6xf32>
        %48 = arith.addf %29, %47 : vector<5x6xf32>
        %c0_i32_28 = arith.constant 0 : i32
        %49 = arith.addi %28, %c0_i32_28 : i32
        %50 = arith.index_cast %49 : i32 to index
        %51 = memref.load %arg3[%50] : memref<840xf32, #tpu.memory_space<smem>>
        %52 = vector.broadcast %51 : f32 to vector<5x6xf32>
        %53 = arith.mulf %52, %41 : vector<5x6xf32>
        %54 = arith.addf %33, %53 : vector<5x6xf32>
        %c1_i32_29 = arith.constant 1 : i32
        %55 = arith.addi %25, %c1_i32_29 : i32
        %56 = arith.index_cast %55 : i32 to index
        %57 = memref.load %arg3[%56] : memref<840xf32, #tpu.memory_space<smem>>
        %58 = vector.broadcast %57 : f32 to vector<5x6xf32>
        %59 = arith.mulf %58, %42 : vector<5x6xf32>
        %60 = arith.addf %30, %59 : vector<5x6xf32>
        %c1_i32_30 = arith.constant 1 : i32
        %61 = arith.addi %28, %c1_i32_30 : i32
        %62 = arith.index_cast %61 : i32 to index
        %63 = memref.load %arg3[%62] : memref<840xf32, #tpu.memory_space<smem>>
        %64 = vector.broadcast %63 : f32 to vector<5x6xf32>
        %65 = arith.mulf %64, %42 : vector<5x6xf32>
        %66 = arith.addf %34, %65 : vector<5x6xf32>
        %c2_i32_31 = arith.constant 2 : i32
        %67 = arith.addi %25, %c2_i32_31 : i32
        %68 = arith.index_cast %67 : i32 to index
        %69 = memref.load %arg3[%68] : memref<840xf32, #tpu.memory_space<smem>>
        %70 = vector.broadcast %69 : f32 to vector<5x6xf32>
        %71 = arith.mulf %70, %41 : vector<5x6xf32>
        %72 = arith.addf %60, %71 : vector<5x6xf32>
        %c2_i32_32 = arith.constant 2 : i32
        %73 = arith.addi %28, %c2_i32_32 : i32
        %74 = arith.index_cast %73 : i32 to index
        %75 = memref.load %arg3[%74] : memref<840xf32, #tpu.memory_space<smem>>
        %76 = vector.broadcast %75 : f32 to vector<5x6xf32>
        %77 = arith.mulf %76, %41 : vector<5x6xf32>
        %78 = arith.addf %66, %77 : vector<5x6xf32>
        %c3_i32_33 = arith.constant 3 : i32
        %79 = arith.addi %25, %c3_i32_33 : i32
        %80 = arith.index_cast %79 : i32 to index
        %81 = memref.load %arg3[%80] : memref<840xf32, #tpu.memory_space<smem>>
        %82 = vector.broadcast %81 : f32 to vector<5x6xf32>
        %83 = arith.mulf %82, %42 : vector<5x6xf32>
        %84 = arith.addf %31, %83 : vector<5x6xf32>
        %c3_i32_34 = arith.constant 3 : i32
        %85 = arith.addi %28, %c3_i32_34 : i32
        %86 = arith.index_cast %85 : i32 to index
        %87 = memref.load %arg3[%86] : memref<840xf32, #tpu.memory_space<smem>>
        %88 = vector.broadcast %87 : f32 to vector<5x6xf32>
        %89 = arith.mulf %88, %42 : vector<5x6xf32>
        %90 = arith.addf %35, %89 : vector<5x6xf32>
        %c4_i32_35 = arith.constant 4 : i32
        %91 = arith.addi %25, %c4_i32_35 : i32
        %92 = arith.index_cast %91 : i32 to index
        %93 = memref.load %arg3[%92] : memref<840xf32, #tpu.memory_space<smem>>
        %94 = vector.broadcast %93 : f32 to vector<5x6xf32>
        %95 = arith.mulf %94, %41 : vector<5x6xf32>
        %96 = arith.addf %84, %95 : vector<5x6xf32>
        %c4_i32_36 = arith.constant 4 : i32
        %97 = arith.addi %28, %c4_i32_36 : i32
        %98 = arith.index_cast %97 : i32 to index
        %99 = memref.load %arg3[%98] : memref<840xf32, #tpu.memory_space<smem>>
        %100 = vector.broadcast %99 : f32 to vector<5x6xf32>
        %101 = arith.mulf %100, %41 : vector<5x6xf32>
        %102 = arith.addf %90, %101 : vector<5x6xf32>
        %c5_i32_37 = arith.constant 5 : i32
        %103 = arith.addi %25, %c5_i32_37 : i32
        %104 = arith.index_cast %103 : i32 to index
        %105 = memref.load %arg3[%104] : memref<840xf32, #tpu.memory_space<smem>>
        %106 = vector.broadcast %105 : f32 to vector<5x6xf32>
        %107 = arith.mulf %106, %42 : vector<5x6xf32>
        %108 = arith.addf %32, %107 : vector<5x6xf32>
        %c5_i32_38 = arith.constant 5 : i32
        %109 = arith.addi %28, %c5_i32_38 : i32
        %110 = arith.index_cast %109 : i32 to index
        %111 = memref.load %arg3[%110] : memref<840xf32, #tpu.memory_space<smem>>
        %112 = vector.broadcast %111 : f32 to vector<5x6xf32>
        %113 = arith.mulf %112, %42 : vector<5x6xf32>
        %114 = arith.addf %36, %113 : vector<5x6xf32>
        %c6_i32 = arith.constant 6 : i32
        %115 = arith.addi %25, %c6_i32 : i32
        %116 = arith.index_cast %115 : i32 to index
        %117 = memref.load %arg3[%116] : memref<840xf32, #tpu.memory_space<smem>>
        %118 = vector.broadcast %117 : f32 to vector<5x6xf32>
        %119 = arith.mulf %118, %41 : vector<5x6xf32>
        %120 = arith.addf %108, %119 : vector<5x6xf32>
        %c6_i32_39 = arith.constant 6 : i32
        %121 = arith.addi %28, %c6_i32_39 : i32
        %122 = arith.index_cast %121 : i32 to index
        %123 = memref.load %arg3[%122] : memref<840xf32, #tpu.memory_space<smem>>
        %124 = vector.broadcast %123 : f32 to vector<5x6xf32>
        %125 = arith.mulf %124, %41 : vector<5x6xf32>
        %126 = arith.addf %114, %125 : vector<5x6xf32>
        %c0_40 = arith.constant 0 : index
        %c0_41 = arith.constant 0 : index
        %c1_42 = arith.constant 1 : index
        %127 = arith.index_cast %37 : i32 to index
        %c1_43 = arith.constant 1 : index
        %c0_44 = arith.constant 0 : index
        %128 = vector.load %arg5[%c0_40, %c0_41, %c1_42, %127, %c1_43, %c0_44] : memref<1x1x2x5x6x7xf32, #tpu.memory_space<vmem>>, vector<1x1x1x1x5x7xf32>
        %129 = vector.shape_cast %128 : vector<1x1x1x1x5x7xf32> to vector<5x7xf32>
        %130 = vector.extract_strided_slice %129 {offsets = [0, 0], sizes = [5, 6], strides = [1, 1]} : vector<5x7xf32> to vector<5x6xf32>
        %131 = vector.extract_strided_slice %129 {offsets = [0, 1], sizes = [5, 6], strides = [1, 1]} : vector<5x7xf32> to vector<5x6xf32>
        %c7_i32 = arith.constant 7 : i32
        %132 = arith.addi %25, %c7_i32 : i32
        %133 = arith.index_cast %132 : i32 to index
        %134 = memref.load %arg3[%133] : memref<840xf32, #tpu.memory_space<smem>>
        %135 = vector.broadcast %134 : f32 to vector<5x6xf32>
        %136 = arith.mulf %135, %130 : vector<5x6xf32>
        %137 = arith.addf %48, %136 : vector<5x6xf32>
        %c7_i32_45 = arith.constant 7 : i32
        %138 = arith.addi %28, %c7_i32_45 : i32
        %139 = arith.index_cast %138 : i32 to index
        %140 = memref.load %arg3[%139] : memref<840xf32, #tpu.memory_space<smem>>
        %141 = vector.broadcast %140 : f32 to vector<5x6xf32>
        %142 = arith.mulf %141, %130 : vector<5x6xf32>
        %143 = arith.addf %54, %142 : vector<5x6xf32>
        %c8_i32 = arith.constant 8 : i32
        %144 = arith.addi %25, %c8_i32 : i32
        %145 = arith.index_cast %144 : i32 to index
        %146 = memref.load %arg3[%145] : memref<840xf32, #tpu.memory_space<smem>>
        %147 = vector.broadcast %146 : f32 to vector<5x6xf32>
        %148 = arith.mulf %147, %131 : vector<5x6xf32>
        %149 = arith.addf %72, %148 : vector<5x6xf32>
        %c8_i32_46 = arith.constant 8 : i32
        %150 = arith.addi %28, %c8_i32_46 : i32
        %151 = arith.index_cast %150 : i32 to index
        %152 = memref.load %arg3[%151] : memref<840xf32, #tpu.memory_space<smem>>
        %153 = vector.broadcast %152 : f32 to vector<5x6xf32>
        %154 = arith.mulf %153, %131 : vector<5x6xf32>
        %155 = arith.addf %78, %154 : vector<5x6xf32>
        %c9_i32 = arith.constant 9 : i32
        %156 = arith.addi %25, %c9_i32 : i32
        %157 = arith.index_cast %156 : i32 to index
        %158 = memref.load %arg3[%157] : memref<840xf32, #tpu.memory_space<smem>>
        %159 = vector.broadcast %158 : f32 to vector<5x6xf32>
        %160 = arith.mulf %159, %130 : vector<5x6xf32>
        %161 = arith.addf %149, %160 : vector<5x6xf32>
        %c9_i32_47 = arith.constant 9 : i32
        %162 = arith.addi %28, %c9_i32_47 : i32
        %163 = arith.index_cast %162 : i32 to index
        %164 = memref.load %arg3[%163] : memref<840xf32, #tpu.memory_space<smem>>
        %165 = vector.broadcast %164 : f32 to vector<5x6xf32>
        %166 = arith.mulf %165, %130 : vector<5x6xf32>
        %167 = arith.addf %155, %166 : vector<5x6xf32>
        %c10_i32 = arith.constant 10 : i32
        %168 = arith.addi %25, %c10_i32 : i32
        %169 = arith.index_cast %168 : i32 to index
        %170 = memref.load %arg3[%169] : memref<840xf32, #tpu.memory_space<smem>>
        %171 = vector.broadcast %170 : f32 to vector<5x6xf32>
        %172 = arith.mulf %171, %131 : vector<5x6xf32>
        %173 = arith.addf %96, %172 : vector<5x6xf32>
        %c10_i32_48 = arith.constant 10 : i32
        %174 = arith.addi %28, %c10_i32_48 : i32
        %175 = arith.index_cast %174 : i32 to index
        %176 = memref.load %arg3[%175] : memref<840xf32, #tpu.memory_space<smem>>
        %177 = vector.broadcast %176 : f32 to vector<5x6xf32>
        %178 = arith.mulf %177, %131 : vector<5x6xf32>
        %179 = arith.addf %102, %178 : vector<5x6xf32>
        %c11_i32 = arith.constant 11 : i32
        %180 = arith.addi %25, %c11_i32 : i32
        %181 = arith.index_cast %180 : i32 to index
        %182 = memref.load %arg3[%181] : memref<840xf32, #tpu.memory_space<smem>>
        %183 = vector.broadcast %182 : f32 to vector<5x6xf32>
        %184 = arith.mulf %183, %130 : vector<5x6xf32>
        %185 = arith.addf %173, %184 : vector<5x6xf32>
        %c11_i32_49 = arith.constant 11 : i32
        %186 = arith.addi %28, %c11_i32_49 : i32
        %187 = arith.index_cast %186 : i32 to index
        %188 = memref.load %arg3[%187] : memref<840xf32, #tpu.memory_space<smem>>
        %189 = vector.broadcast %188 : f32 to vector<5x6xf32>
        %190 = arith.mulf %189, %130 : vector<5x6xf32>
        %191 = arith.addf %179, %190 : vector<5x6xf32>
        %c12_i32 = arith.constant 12 : i32
        %192 = arith.addi %25, %c12_i32 : i32
        %193 = arith.index_cast %192 : i32 to index
        %194 = memref.load %arg3[%193] : memref<840xf32, #tpu.memory_space<smem>>
        %195 = vector.broadcast %194 : f32 to vector<5x6xf32>
        %196 = arith.mulf %195, %131 : vector<5x6xf32>
        %197 = arith.addf %120, %196 : vector<5x6xf32>
        %c12_i32_50 = arith.constant 12 : i32
        %198 = arith.addi %28, %c12_i32_50 : i32
        %199 = arith.index_cast %198 : i32 to index
        %200 = memref.load %arg3[%199] : memref<840xf32, #tpu.memory_space<smem>>
        %201 = vector.broadcast %200 : f32 to vector<5x6xf32>
        %202 = arith.mulf %201, %131 : vector<5x6xf32>
        %203 = arith.addf %126, %202 : vector<5x6xf32>
        %c13_i32 = arith.constant 13 : i32
        %204 = arith.addi %25, %c13_i32 : i32
        %205 = arith.index_cast %204 : i32 to index
        %206 = memref.load %arg3[%205] : memref<840xf32, #tpu.memory_space<smem>>
        %207 = vector.broadcast %206 : f32 to vector<5x6xf32>
        %208 = arith.mulf %207, %130 : vector<5x6xf32>
        %209 = arith.addf %197, %208 : vector<5x6xf32>
        %c13_i32_51 = arith.constant 13 : i32
        %210 = arith.addi %28, %c13_i32_51 : i32
        %211 = arith.index_cast %210 : i32 to index
        %212 = memref.load %arg3[%211] : memref<840xf32, #tpu.memory_space<smem>>
        %213 = vector.broadcast %212 : f32 to vector<5x6xf32>
        %214 = arith.mulf %213, %130 : vector<5x6xf32>
        %215 = arith.addf %203, %214 : vector<5x6xf32>
        %c0_52 = arith.constant 0 : index
        %c0_53 = arith.constant 0 : index
        %c0_54 = arith.constant 0 : index
        %216 = arith.index_cast %37 : i32 to index
        %c0_55 = arith.constant 0 : index
        %c0_56 = arith.constant 0 : index
        %217 = vector.load %arg5[%c0_52, %c0_53, %c0_54, %216, %c0_55, %c0_56] : memref<1x1x2x5x6x7xf32, #tpu.memory_space<vmem>>, vector<1x1x1x1x5x7xf32>
        %218 = vector.shape_cast %217 : vector<1x1x1x1x5x7xf32> to vector<5x7xf32>
        %219 = vector.extract_strided_slice %218 {offsets = [0, 0], sizes = [5, 6], strides = [1, 1]} : vector<5x7xf32> to vector<5x6xf32>
        %220 = vector.extract_strided_slice %218 {offsets = [0, 1], sizes = [5, 6], strides = [1, 1]} : vector<5x7xf32> to vector<5x6xf32>
        %c14_i32 = arith.constant 14 : i32
        %221 = arith.addi %25, %c14_i32 : i32
        %222 = arith.index_cast %221 : i32 to index
        %223 = memref.load %arg3[%222] : memref<840xf32, #tpu.memory_space<smem>>
        %224 = vector.broadcast %223 : f32 to vector<5x6xf32>
        %225 = arith.mulf %224, %219 : vector<5x6xf32>
        %226 = arith.addf %137, %225 : vector<5x6xf32>
        %c14_i32_57 = arith.constant 14 : i32
        %227 = arith.addi %28, %c14_i32_57 : i32
        %228 = arith.index_cast %227 : i32 to index
        %229 = memref.load %arg3[%228] : memref<840xf32, #tpu.memory_space<smem>>
        %230 = vector.broadcast %229 : f32 to vector<5x6xf32>
        %231 = arith.mulf %230, %219 : vector<5x6xf32>
        %232 = arith.addf %143, %231 : vector<5x6xf32>
        %c15_i32 = arith.constant 15 : i32
        %233 = arith.addi %25, %c15_i32 : i32
        %234 = arith.index_cast %233 : i32 to index
        %235 = memref.load %arg3[%234] : memref<840xf32, #tpu.memory_space<smem>>
        %236 = vector.broadcast %235 : f32 to vector<5x6xf32>
        %237 = arith.mulf %236, %220 : vector<5x6xf32>
        %238 = arith.addf %161, %237 : vector<5x6xf32>
        %c15_i32_58 = arith.constant 15 : i32
        %239 = arith.addi %28, %c15_i32_58 : i32
        %240 = arith.index_cast %239 : i32 to index
        %241 = memref.load %arg3[%240] : memref<840xf32, #tpu.memory_space<smem>>
        %242 = vector.broadcast %241 : f32 to vector<5x6xf32>
        %243 = arith.mulf %242, %220 : vector<5x6xf32>
        %244 = arith.addf %167, %243 : vector<5x6xf32>
        %c16_i32 = arith.constant 16 : i32
        %245 = arith.addi %25, %c16_i32 : i32
        %246 = arith.index_cast %245 : i32 to index
        %247 = memref.load %arg3[%246] : memref<840xf32, #tpu.memory_space<smem>>
        %248 = vector.broadcast %247 : f32 to vector<5x6xf32>
        %249 = arith.mulf %248, %219 : vector<5x6xf32>
        %250 = arith.addf %238, %249 : vector<5x6xf32>
        %c16_i32_59 = arith.constant 16 : i32
        %251 = arith.addi %28, %c16_i32_59 : i32
        %252 = arith.index_cast %251 : i32 to index
        %253 = memref.load %arg3[%252] : memref<840xf32, #tpu.memory_space<smem>>
        %254 = vector.broadcast %253 : f32 to vector<5x6xf32>
        %255 = arith.mulf %254, %219 : vector<5x6xf32>
        %256 = arith.addf %244, %255 : vector<5x6xf32>
        %c17_i32 = arith.constant 17 : i32
        %257 = arith.addi %25, %c17_i32 : i32
        %258 = arith.index_cast %257 : i32 to index
        %259 = memref.load %arg3[%258] : memref<840xf32, #tpu.memory_space<smem>>
        %260 = vector.broadcast %259 : f32 to vector<5x6xf32>
        %261 = arith.mulf %260, %220 : vector<5x6xf32>
        %262 = arith.addf %185, %261 : vector<5x6xf32>
        %c17_i32_60 = arith.constant 17 : i32
        %263 = arith.addi %28, %c17_i32_60 : i32
        %264 = arith.index_cast %263 : i32 to index
        %265 = memref.load %arg3[%264] : memref<840xf32, #tpu.memory_space<smem>>
        %266 = vector.broadcast %265 : f32 to vector<5x6xf32>
        %267 = arith.mulf %266, %220 : vector<5x6xf32>
        %268 = arith.addf %191, %267 : vector<5x6xf32>
        %c18_i32 = arith.constant 18 : i32
        %269 = arith.addi %25, %c18_i32 : i32
        %270 = arith.index_cast %269 : i32 to index
        %271 = memref.load %arg3[%270] : memref<840xf32, #tpu.memory_space<smem>>
        %272 = vector.broadcast %271 : f32 to vector<5x6xf32>
        %273 = arith.mulf %272, %219 : vector<5x6xf32>
        %274 = arith.addf %262, %273 : vector<5x6xf32>
        %c18_i32_61 = arith.constant 18 : i32
        %275 = arith.addi %28, %c18_i32_61 : i32
        %276 = arith.index_cast %275 : i32 to index
        %277 = memref.load %arg3[%276] : memref<840xf32, #tpu.memory_space<smem>>
        %278 = vector.broadcast %277 : f32 to vector<5x6xf32>
        %279 = arith.mulf %278, %219 : vector<5x6xf32>
        %280 = arith.addf %268, %279 : vector<5x6xf32>
        %c19_i32 = arith.constant 19 : i32
        %281 = arith.addi %25, %c19_i32 : i32
        %282 = arith.index_cast %281 : i32 to index
        %283 = memref.load %arg3[%282] : memref<840xf32, #tpu.memory_space<smem>>
        %284 = vector.broadcast %283 : f32 to vector<5x6xf32>
        %285 = arith.mulf %284, %220 : vector<5x6xf32>
        %286 = arith.addf %209, %285 : vector<5x6xf32>
        %c19_i32_62 = arith.constant 19 : i32
        %287 = arith.addi %28, %c19_i32_62 : i32
        %288 = arith.index_cast %287 : i32 to index
        %289 = memref.load %arg3[%288] : memref<840xf32, #tpu.memory_space<smem>>
        %290 = vector.broadcast %289 : f32 to vector<5x6xf32>
        %291 = arith.mulf %290, %220 : vector<5x6xf32>
        %292 = arith.addf %215, %291 : vector<5x6xf32>
        %c20_i32 = arith.constant 20 : i32
        %293 = arith.addi %25, %c20_i32 : i32
        %294 = arith.index_cast %293 : i32 to index
        %295 = memref.load %arg3[%294] : memref<840xf32, #tpu.memory_space<smem>>
        %296 = vector.broadcast %295 : f32 to vector<5x6xf32>
        %297 = arith.mulf %296, %219 : vector<5x6xf32>
        %298 = arith.addf %286, %297 : vector<5x6xf32>
        %c20_i32_63 = arith.constant 20 : i32
        %299 = arith.addi %28, %c20_i32_63 : i32
        %300 = arith.index_cast %299 : i32 to index
        %301 = memref.load %arg3[%300] : memref<840xf32, #tpu.memory_space<smem>>
        %302 = vector.broadcast %301 : f32 to vector<5x6xf32>
        %303 = arith.mulf %302, %219 : vector<5x6xf32>
        %304 = arith.addf %292, %303 : vector<5x6xf32>
        %c0_64 = arith.constant 0 : index
        %c0_65 = arith.constant 0 : index
        %c1_66 = arith.constant 1 : index
        %305 = arith.index_cast %37 : i32 to index
        %c0_67 = arith.constant 0 : index
        %c0_68 = arith.constant 0 : index
        %306 = vector.load %arg5[%c0_64, %c0_65, %c1_66, %305, %c0_67, %c0_68] : memref<1x1x2x5x6x7xf32, #tpu.memory_space<vmem>>, vector<1x1x1x1x5x7xf32>
        %307 = vector.shape_cast %306 : vector<1x1x1x1x5x7xf32> to vector<5x7xf32>
        %308 = vector.extract_strided_slice %307 {offsets = [0, 0], sizes = [5, 6], strides = [1, 1]} : vector<5x7xf32> to vector<5x6xf32>
        %309 = vector.extract_strided_slice %307 {offsets = [0, 1], sizes = [5, 6], strides = [1, 1]} : vector<5x7xf32> to vector<5x6xf32>
        %c21_i32 = arith.constant 21 : i32
        %310 = arith.addi %25, %c21_i32 : i32
        %311 = arith.index_cast %310 : i32 to index
        %312 = memref.load %arg3[%311] : memref<840xf32, #tpu.memory_space<smem>>
        %313 = vector.broadcast %312 : f32 to vector<5x6xf32>
        %314 = arith.mulf %313, %308 : vector<5x6xf32>
        %315 = arith.addf %226, %314 : vector<5x6xf32>
        %c21_i32_69 = arith.constant 21 : i32
        %316 = arith.addi %28, %c21_i32_69 : i32
        %317 = arith.index_cast %316 : i32 to index
        %318 = memref.load %arg3[%317] : memref<840xf32, #tpu.memory_space<smem>>
        %319 = vector.broadcast %318 : f32 to vector<5x6xf32>
        %320 = arith.mulf %319, %308 : vector<5x6xf32>
        %321 = arith.addf %232, %320 : vector<5x6xf32>
        %c22_i32 = arith.constant 22 : i32
        %322 = arith.addi %25, %c22_i32 : i32
        %323 = arith.index_cast %322 : i32 to index
        %324 = memref.load %arg3[%323] : memref<840xf32, #tpu.memory_space<smem>>
        %325 = vector.broadcast %324 : f32 to vector<5x6xf32>
        %326 = arith.mulf %325, %309 : vector<5x6xf32>
        %327 = arith.addf %250, %326 : vector<5x6xf32>
        %c22_i32_70 = arith.constant 22 : i32
        %328 = arith.addi %28, %c22_i32_70 : i32
        %329 = arith.index_cast %328 : i32 to index
        %330 = memref.load %arg3[%329] : memref<840xf32, #tpu.memory_space<smem>>
        %331 = vector.broadcast %330 : f32 to vector<5x6xf32>
        %332 = arith.mulf %331, %309 : vector<5x6xf32>
        %333 = arith.addf %256, %332 : vector<5x6xf32>
        %c23_i32 = arith.constant 23 : i32
        %334 = arith.addi %25, %c23_i32 : i32
        %335 = arith.index_cast %334 : i32 to index
        %336 = memref.load %arg3[%335] : memref<840xf32, #tpu.memory_space<smem>>
        %337 = vector.broadcast %336 : f32 to vector<5x6xf32>
        %338 = arith.mulf %337, %308 : vector<5x6xf32>
        %339 = arith.addf %327, %338 : vector<5x6xf32>
        %c23_i32_71 = arith.constant 23 : i32
        %340 = arith.addi %28, %c23_i32_71 : i32
        %341 = arith.index_cast %340 : i32 to index
        %342 = memref.load %arg3[%341] : memref<840xf32, #tpu.memory_space<smem>>
        %343 = vector.broadcast %342 : f32 to vector<5x6xf32>
        %344 = arith.mulf %343, %308 : vector<5x6xf32>
        %345 = arith.addf %333, %344 : vector<5x6xf32>
        %c24_i32 = arith.constant 24 : i32
        %346 = arith.addi %25, %c24_i32 : i32
        %347 = arith.index_cast %346 : i32 to index
        %348 = memref.load %arg3[%347] : memref<840xf32, #tpu.memory_space<smem>>
        %349 = vector.broadcast %348 : f32 to vector<5x6xf32>
        %350 = arith.mulf %349, %309 : vector<5x6xf32>
        %351 = arith.addf %274, %350 : vector<5x6xf32>
        %c24_i32_72 = arith.constant 24 : i32
        %352 = arith.addi %28, %c24_i32_72 : i32
        %353 = arith.index_cast %352 : i32 to index
        %354 = memref.load %arg3[%353] : memref<840xf32, #tpu.memory_space<smem>>
        %355 = vector.broadcast %354 : f32 to vector<5x6xf32>
        %356 = arith.mulf %355, %309 : vector<5x6xf32>
        %357 = arith.addf %280, %356 : vector<5x6xf32>
        %c25_i32 = arith.constant 25 : i32
        %358 = arith.addi %25, %c25_i32 : i32
        %359 = arith.index_cast %358 : i32 to index
        %360 = memref.load %arg3[%359] : memref<840xf32, #tpu.memory_space<smem>>
        %361 = vector.broadcast %360 : f32 to vector<5x6xf32>
        %362 = arith.mulf %361, %308 : vector<5x6xf32>
        %363 = arith.addf %351, %362 : vector<5x6xf32>
        %c25_i32_73 = arith.constant 25 : i32
        %364 = arith.addi %28, %c25_i32_73 : i32
        %365 = arith.index_cast %364 : i32 to index
        %366 = memref.load %arg3[%365] : memref<840xf32, #tpu.memory_space<smem>>
        %367 = vector.broadcast %366 : f32 to vector<5x6xf32>
        %368 = arith.mulf %367, %308 : vector<5x6xf32>
        %369 = arith.addf %357, %368 : vector<5x6xf32>
        %c26_i32 = arith.constant 26 : i32
        %370 = arith.addi %25, %c26_i32 : i32
        %371 = arith.index_cast %370 : i32 to index
        %372 = memref.load %arg3[%371] : memref<840xf32, #tpu.memory_space<smem>>
        %373 = vector.broadcast %372 : f32 to vector<5x6xf32>
        %374 = arith.mulf %373, %309 : vector<5x6xf32>
        %375 = arith.addf %298, %374 : vector<5x6xf32>
        %c26_i32_74 = arith.constant 26 : i32
        %376 = arith.addi %28, %c26_i32_74 : i32
        %377 = arith.index_cast %376 : i32 to index
        %378 = memref.load %arg3[%377] : memref<840xf32, #tpu.memory_space<smem>>
        %379 = vector.broadcast %378 : f32 to vector<5x6xf32>
        %380 = arith.mulf %379, %309 : vector<5x6xf32>
        %381 = arith.addf %304, %380 : vector<5x6xf32>
        %c27_i32 = arith.constant 27 : i32
        %382 = arith.addi %25, %c27_i32 : i32
        %383 = arith.index_cast %382 : i32 to index
        %384 = memref.load %arg3[%383] : memref<840xf32, #tpu.memory_space<smem>>
        %385 = vector.broadcast %384 : f32 to vector<5x6xf32>
        %386 = arith.mulf %385, %308 : vector<5x6xf32>
        %387 = arith.addf %375, %386 : vector<5x6xf32>
        %c27_i32_75 = arith.constant 27 : i32
        %388 = arith.addi %28, %c27_i32_75 : i32
        %389 = arith.index_cast %388 : i32 to index
        %390 = memref.load %arg3[%389] : memref<840xf32, #tpu.memory_space<smem>>
        %391 = vector.broadcast %390 : f32 to vector<5x6xf32>
        %392 = arith.mulf %391, %308 : vector<5x6xf32>
        %393 = arith.addf %381, %392 : vector<5x6xf32>
        %394 = tpu.concatenate %315, %339, %363, %387 in 1 : vector<5x6xf32>, vector<5x6xf32>, vector<5x6xf32>, vector<5x6xf32> -> vector<5x24xf32>
        %395 = arith.addi %0, %22 : i32
        %c0_i32_76 = arith.constant 0 : i32
        %396 = arith.addi %395, %c0_i32_76 : i32
        %397 = arith.index_cast %396 : i32 to index
        %398 = memref.load %arg4[%397] : memref<4xf32, #tpu.memory_space<smem>>
        %399 = vector.broadcast %398 : f32 to vector<5x24xf32>
        %400 = arith.addf %394, %399 : vector<5x24xf32>
        %c0_i32_77 = arith.constant 0 : i32
        %401 = arith.addi %22, %c0_i32_77 : i32
        %c0_78 = arith.constant 0 : index
        %c0_79 = arith.constant 0 : index
        %c0_80 = arith.constant 0 : index
        %402 = arith.index_cast %401 : i32 to index
        %403 = arith.index_cast %arg7 : i32 to index
        %c0_81 = arith.constant 0 : index
        %c0_82 = arith.constant 0 : index
        %404 = vector.load %arg6[%c0_78, %c0_79, %c0_80, %402, %403, %c0_81, %c0_82] : memref<1x1x1x2x4x5x24xf32, #tpu.memory_space<vmem>>, vector<1x1x1x1x1x5x24xf32>
        %405 = vector.shape_cast %404 : vector<1x1x1x1x1x5x24xf32> to vector<5x24xf32>
        %406 = vector.shape_cast %400 : vector<5x24xf32> to vector<1x1x1x1x1x5x24xf32>
        tpu.vector_store %arg6[%c0_78, %c0_79, %c0_80, %402, %403, %c0_81, %c0_82], %406 {strides = array<i32>} : memref<1x1x1x2x4x5x24xf32, #tpu.memory_space<vmem>>, vector<1x1x1x1x1x5x24xf32>,
        %407 = tpu.concatenate %321, %345, %369, %393 in 1 : vector<5x6xf32>, vector<5x6xf32>, vector<5x6xf32>, vector<5x6xf32> -> vector<5x24xf32>
        %408 = arith.addi %0, %22 : i32
        %c1_i32_83 = arith.constant 1 : i32
        %409 = arith.addi %408, %c1_i32_83 : i32
        %410 = arith.index_cast %409 : i32 to index
        %411 = memref.load %arg4[%410] : memref<4xf32, #tpu.memory_space<smem>>
        %412 = vector.broadcast %411 : f32 to vector<5x24xf32>
        %413 = arith.addf %407, %412 : vector<5x24xf32>
        %c1_i32_84 = arith.constant 1 : i32
        %414 = arith.addi %22, %c1_i32_84 : i32
        %c0_85 = arith.constant 0 : index
        %c0_86 = arith.constant 0 : index
        %c0_87 = arith.constant 0 : index
        %415 = arith.index_cast %414 : i32 to index
        %416 = arith.index_cast %arg7 : i32 to index
        %c0_88 = arith.constant 0 : index
        %c0_89 = arith.constant 0 : index
        %417 = vector.load %arg6[%c0_85, %c0_86, %c0_87, %415, %416, %c0_88, %c0_89] : memref<1x1x1x2x4x5x24xf32, #tpu.memory_space<vmem>>, vector<1x1x1x1x1x5x24xf32>
        %418 = vector.shape_cast %417 : vector<1x1x1x1x1x5x24xf32> to vector<5x24xf32>
        %419 = vector.shape_cast %413 : vector<5x24xf32> to vector<1x1x1x1x1x5x24xf32>
        tpu.vector_store %arg6[%c0_85, %c0_86, %c0_87, %415, %416, %c0_88, %c0_89], %419 {strides = array<i32>} : memref<1x1x1x2x4x5x24xf32, #tpu.memory_space<vmem>>, vector<1x1x1x1x1x5x24xf32>,
        %c1_i32_90 = arith.constant 1 : i32
      }
      %c4_i32_10 = arith.constant 4 : i32
    } else {
    }
    %c3_i32 = arith.constant 3 : i32
    %10 = arith.cmpi eq, %arg2, %c3_i32 : i32
    %11 = arith.extui %10 : i1 to i32
    %c0_i32_4 = arith.constant 0 : i32
    %12 = arith.cmpi ne, %11, %c0_i32_4 : i32
    scf.if %12 {
      %c56_i32 = arith.constant 56 : i32
      %19 = arith.muli %arg1, %c56_i32 : i32
      %c280_i32 = arith.constant 280 : i32
      %20 = arith.addi %c280_i32, %19 : i32
      %c0_i32_7 = arith.constant 0 : i32
      %c4_i32_8 = arith.constant 4 : i32
      %21 = arith.addi %c0_i32_7, %c4_i32_8 : i32
      %c1_i32_9 = arith.constant 1 : i32
      scf.for %arg7 = %c0_i32_7 to %21 step %c1_i32_9  : i32 {
        %c0_i32_11 = arith.constant 0 : i32
        %c2_i32_12 = arith.constant 2 : i32
        %22 = arith.muli %c0_i32_11, %c2_i32_12 : i32
        %c0_i32_13 = arith.constant 0 : i32
        %23 = arith.addi %22, %c0_i32_13 : i32
        %c28_i32 = arith.constant 28 : i32
        %24 = arith.muli %23, %c28_i32 : i32
        %25 = arith.addi %20, %24 : i32
        %c1_i32_14 = arith.constant 1 : i32
        %26 = arith.addi %22, %c1_i32_14 : i32
        %c28_i32_15 = arith.constant 28 : i32
        %27 = arith.muli %26, %c28_i32_15 : i32
        %28 = arith.addi %20, %27 : i32
        %cst = arith.constant 0.000000e+00 : f32
        %29 = vector.broadcast %cst : f32 to vector<5x6xf32>
        %cst_16 = arith.constant 0.000000e+00 : f32
        %30 = vector.broadcast %cst_16 : f32 to vector<5x6xf32>
        %cst_17 = arith.constant 0.000000e+00 : f32
        %31 = vector.broadcast %cst_17 : f32 to vector<5x6xf32>
        %cst_18 = arith.constant 0.000000e+00 : f32
        %32 = vector.broadcast %cst_18 : f32 to vector<5x6xf32>
        %cst_19 = arith.constant 0.000000e+00 : f32
        %33 = vector.broadcast %cst_19 : f32 to vector<5x6xf32>
        %cst_20 = arith.constant 0.000000e+00 : f32
        %34 = vector.broadcast %cst_20 : f32 to vector<5x6xf32>
        %cst_21 = arith.constant 0.000000e+00 : f32
        %35 = vector.broadcast %cst_21 : f32 to vector<5x6xf32>
        %cst_22 = arith.constant 0.000000e+00 : f32
        %36 = vector.broadcast %cst_22 : f32 to vector<5x6xf32>
        %c1_i32_23 = arith.constant 1 : i32
        %37 = arith.addi %arg7, %c1_i32_23 : i32
        %c0 = arith.constant 0 : index
        %c0_24 = arith.constant 0 : index
        %c0_25 = arith.constant 0 : index
        %38 = arith.index_cast %37 : i32 to index
        %c0_26 = arith.constant 0 : index
        %c0_27 = arith.constant 0 : index
        %39 = vector.load %arg5[%c0, %c0_24, %c0_25, %38, %c0_26, %c0_27] : memref<1x1x2x5x6x7xf32, #tpu.memory_space<vmem>>, vector<1x1x1x1x5x7xf32>
        %40 = vector.shape_cast %39 : vector<1x1x1x1x5x7xf32> to vector<5x7xf32>
        %41 = vector.extract_strided_slice %40 {offsets = [0, 0], sizes = [5, 6], strides = [1, 1]} : vector<5x7xf32> to vector<5x6xf32>
        %42 = vector.extract_strided_slice %40 {offsets = [0, 1], sizes = [5, 6], strides = [1, 1]} : vector<5x7xf32> to vector<5x6xf32>
        %c0_i32_28 = arith.constant 0 : i32
        %43 = arith.addi %25, %c0_i32_28 : i32
        %44 = arith.index_cast %43 : i32 to index
        %45 = memref.load %arg3[%44] : memref<840xf32, #tpu.memory_space<smem>>
        %46 = vector.broadcast %45 : f32 to vector<5x6xf32>
        %47 = arith.mulf %46, %41 : vector<5x6xf32>
        %48 = arith.addf %29, %47 : vector<5x6xf32>
        %c0_i32_29 = arith.constant 0 : i32
        %49 = arith.addi %28, %c0_i32_29 : i32
        %50 = arith.index_cast %49 : i32 to index
        %51 = memref.load %arg3[%50] : memref<840xf32, #tpu.memory_space<smem>>
        %52 = vector.broadcast %51 : f32 to vector<5x6xf32>
        %53 = arith.mulf %52, %41 : vector<5x6xf32>
        %54 = arith.addf %33, %53 : vector<5x6xf32>
        %c1_i32_30 = arith.constant 1 : i32
        %55 = arith.addi %25, %c1_i32_30 : i32
        %56 = arith.index_cast %55 : i32 to index
        %57 = memref.load %arg3[%56] : memref<840xf32, #tpu.memory_space<smem>>
        %58 = vector.broadcast %57 : f32 to vector<5x6xf32>
        %59 = arith.mulf %58, %42 : vector<5x6xf32>
        %60 = arith.addf %30, %59 : vector<5x6xf32>
        %c1_i32_31 = arith.constant 1 : i32
        %61 = arith.addi %28, %c1_i32_31 : i32
        %62 = arith.index_cast %61 : i32 to index
        %63 = memref.load %arg3[%62] : memref<840xf32, #tpu.memory_space<smem>>
        %64 = vector.broadcast %63 : f32 to vector<5x6xf32>
        %65 = arith.mulf %64, %42 : vector<5x6xf32>
        %66 = arith.addf %34, %65 : vector<5x6xf32>
        %c2_i32_32 = arith.constant 2 : i32
        %67 = arith.addi %25, %c2_i32_32 : i32
        %68 = arith.index_cast %67 : i32 to index
        %69 = memref.load %arg3[%68] : memref<840xf32, #tpu.memory_space<smem>>
        %70 = vector.broadcast %69 : f32 to vector<5x6xf32>
        %71 = arith.mulf %70, %41 : vector<5x6xf32>
        %72 = arith.addf %60, %71 : vector<5x6xf32>
        %c2_i32_33 = arith.constant 2 : i32
        %73 = arith.addi %28, %c2_i32_33 : i32
        %74 = arith.index_cast %73 : i32 to index
        %75 = memref.load %arg3[%74] : memref<840xf32, #tpu.memory_space<smem>>
        %76 = vector.broadcast %75 : f32 to vector<5x6xf32>
        %77 = arith.mulf %76, %41 : vector<5x6xf32>
        %78 = arith.addf %66, %77 : vector<5x6xf32>
        %c3_i32_34 = arith.constant 3 : i32
        %79 = arith.addi %25, %c3_i32_34 : i32
        %80 = arith.index_cast %79 : i32 to index
        %81 = memref.load %arg3[%80] : memref<840xf32, #tpu.memory_space<smem>>
        %82 = vector.broadcast %81 : f32 to vector<5x6xf32>
        %83 = arith.mulf %82, %42 : vector<5x6xf32>
        %84 = arith.addf %31, %83 : vector<5x6xf32>
        %c3_i32_35 = arith.constant 3 : i32
        %85 = arith.addi %28, %c3_i32_35 : i32
        %86 = arith.index_cast %85 : i32 to index
        %87 = memref.load %arg3[%86] : memref<840xf32, #tpu.memory_space<smem>>
        %88 = vector.broadcast %87 : f32 to vector<5x6xf32>
        %89 = arith.mulf %88, %42 : vector<5x6xf32>
        %90 = arith.addf %35, %89 : vector<5x6xf32>
        %c4_i32_36 = arith.constant 4 : i32
        %91 = arith.addi %25, %c4_i32_36 : i32
        %92 = arith.index_cast %91 : i32 to index
        %93 = memref.load %arg3[%92] : memref<840xf32, #tpu.memory_space<smem>>
        %94 = vector.broadcast %93 : f32 to vector<5x6xf32>
        %95 = arith.mulf %94, %41 : vector<5x6xf32>
        %96 = arith.addf %84, %95 : vector<5x6xf32>
        %c4_i32_37 = arith.constant 4 : i32
        %97 = arith.addi %28, %c4_i32_37 : i32
        %98 = arith.index_cast %97 : i32 to index
        %99 = memref.load %arg3[%98] : memref<840xf32, #tpu.memory_space<smem>>
        %100 = vector.broadcast %99 : f32 to vector<5x6xf32>
        %101 = arith.mulf %100, %41 : vector<5x6xf32>
        %102 = arith.addf %90, %101 : vector<5x6xf32>
        %c5_i32_38 = arith.constant 5 : i32
        %103 = arith.addi %25, %c5_i32_38 : i32
        %104 = arith.index_cast %103 : i32 to index
        %105 = memref.load %arg3[%104] : memref<840xf32, #tpu.memory_space<smem>>
        %106 = vector.broadcast %105 : f32 to vector<5x6xf32>
        %107 = arith.mulf %106, %42 : vector<5x6xf32>
        %108 = arith.addf %32, %107 : vector<5x6xf32>
        %c5_i32_39 = arith.constant 5 : i32
        %109 = arith.addi %28, %c5_i32_39 : i32
        %110 = arith.index_cast %109 : i32 to index
        %111 = memref.load %arg3[%110] : memref<840xf32, #tpu.memory_space<smem>>
        %112 = vector.broadcast %111 : f32 to vector<5x6xf32>
        %113 = arith.mulf %112, %42 : vector<5x6xf32>
        %114 = arith.addf %36, %113 : vector<5x6xf32>
        %c6_i32 = arith.constant 6 : i32
        %115 = arith.addi %25, %c6_i32 : i32
        %116 = arith.index_cast %115 : i32 to index
        %117 = memref.load %arg3[%116] : memref<840xf32, #tpu.memory_space<smem>>
        %118 = vector.broadcast %117 : f32 to vector<5x6xf32>
        %119 = arith.mulf %118, %41 : vector<5x6xf32>
        %120 = arith.addf %108, %119 : vector<5x6xf32>
        %c6_i32_40 = arith.constant 6 : i32
        %121 = arith.addi %28, %c6_i32_40 : i32
        %122 = arith.index_cast %121 : i32 to index
        %123 = memref.load %arg3[%122] : memref<840xf32, #tpu.memory_space<smem>>
        %124 = vector.broadcast %123 : f32 to vector<5x6xf32>
        %125 = arith.mulf %124, %41 : vector<5x6xf32>
        %126 = arith.addf %114, %125 : vector<5x6xf32>
        %c0_41 = arith.constant 0 : index
        %c0_42 = arith.constant 0 : index
        %c1 = arith.constant 1 : index
        %127 = arith.index_cast %37 : i32 to index
        %c0_43 = arith.constant 0 : index
        %c0_44 = arith.constant 0 : index
        %128 = vector.load %arg5[%c0_41, %c0_42, %c1, %127, %c0_43, %c0_44] : memref<1x1x2x5x6x7xf32, #tpu.memory_space<vmem>>, vector<1x1x1x1x5x7xf32>
        %129 = vector.shape_cast %128 : vector<1x1x1x1x5x7xf32> to vector<5x7xf32>
        %130 = vector.extract_strided_slice %129 {offsets = [0, 0], sizes = [5, 6], strides = [1, 1]} : vector<5x7xf32> to vector<5x6xf32>
        %131 = vector.extract_strided_slice %129 {offsets = [0, 1], sizes = [5, 6], strides = [1, 1]} : vector<5x7xf32> to vector<5x6xf32>
        %c7_i32 = arith.constant 7 : i32
        %132 = arith.addi %25, %c7_i32 : i32
        %133 = arith.index_cast %132 : i32 to index
        %134 = memref.load %arg3[%133] : memref<840xf32, #tpu.memory_space<smem>>
        %135 = vector.broadcast %134 : f32 to vector<5x6xf32>
        %136 = arith.mulf %135, %130 : vector<5x6xf32>
        %137 = arith.addf %48, %136 : vector<5x6xf32>
        %c7_i32_45 = arith.constant 7 : i32
        %138 = arith.addi %28, %c7_i32_45 : i32
        %139 = arith.index_cast %138 : i32 to index
        %140 = memref.load %arg3[%139] : memref<840xf32, #tpu.memory_space<smem>>
        %141 = vector.broadcast %140 : f32 to vector<5x6xf32>
        %142 = arith.mulf %141, %130 : vector<5x6xf32>
        %143 = arith.addf %54, %142 : vector<5x6xf32>
        %c8_i32 = arith.constant 8 : i32
        %144 = arith.addi %25, %c8_i32 : i32
        %145 = arith.index_cast %144 : i32 to index
        %146 = memref.load %arg3[%145] : memref<840xf32, #tpu.memory_space<smem>>
        %147 = vector.broadcast %146 : f32 to vector<5x6xf32>
        %148 = arith.mulf %147, %131 : vector<5x6xf32>
        %149 = arith.addf %72, %148 : vector<5x6xf32>
        %c8_i32_46 = arith.constant 8 : i32
        %150 = arith.addi %28, %c8_i32_46 : i32
        %151 = arith.index_cast %150 : i32 to index
        %152 = memref.load %arg3[%151] : memref<840xf32, #tpu.memory_space<smem>>
        %153 = vector.broadcast %152 : f32 to vector<5x6xf32>
        %154 = arith.mulf %153, %131 : vector<5x6xf32>
        %155 = arith.addf %78, %154 : vector<5x6xf32>
        %c9_i32 = arith.constant 9 : i32
        %156 = arith.addi %25, %c9_i32 : i32
        %157 = arith.index_cast %156 : i32 to index
        %158 = memref.load %arg3[%157] : memref<840xf32, #tpu.memory_space<smem>>
        %159 = vector.broadcast %158 : f32 to vector<5x6xf32>
        %160 = arith.mulf %159, %130 : vector<5x6xf32>
        %161 = arith.addf %149, %160 : vector<5x6xf32>
        %c9_i32_47 = arith.constant 9 : i32
        %162 = arith.addi %28, %c9_i32_47 : i32
        %163 = arith.index_cast %162 : i32 to index
        %164 = memref.load %arg3[%163] : memref<840xf32, #tpu.memory_space<smem>>
        %165 = vector.broadcast %164 : f32 to vector<5x6xf32>
        %166 = arith.mulf %165, %130 : vector<5x6xf32>
        %167 = arith.addf %155, %166 : vector<5x6xf32>
        %c10_i32 = arith.constant 10 : i32
        %168 = arith.addi %25, %c10_i32 : i32
        %169 = arith.index_cast %168 : i32 to index
        %170 = memref.load %arg3[%169] : memref<840xf32, #tpu.memory_space<smem>>
        %171 = vector.broadcast %170 : f32 to vector<5x6xf32>
        %172 = arith.mulf %171, %131 : vector<5x6xf32>
        %173 = arith.addf %96, %172 : vector<5x6xf32>
        %c10_i32_48 = arith.constant 10 : i32
        %174 = arith.addi %28, %c10_i32_48 : i32
        %175 = arith.index_cast %174 : i32 to index
        %176 = memref.load %arg3[%175] : memref<840xf32, #tpu.memory_space<smem>>
        %177 = vector.broadcast %176 : f32 to vector<5x6xf32>
        %178 = arith.mulf %177, %131 : vector<5x6xf32>
        %179 = arith.addf %102, %178 : vector<5x6xf32>
        %c11_i32 = arith.constant 11 : i32
        %180 = arith.addi %25, %c11_i32 : i32
        %181 = arith.index_cast %180 : i32 to index
        %182 = memref.load %arg3[%181] : memref<840xf32, #tpu.memory_space<smem>>
        %183 = vector.broadcast %182 : f32 to vector<5x6xf32>
        %184 = arith.mulf %183, %130 : vector<5x6xf32>
        %185 = arith.addf %173, %184 : vector<5x6xf32>
        %c11_i32_49 = arith.constant 11 : i32
        %186 = arith.addi %28, %c11_i32_49 : i32
        %187 = arith.index_cast %186 : i32 to index
        %188 = memref.load %arg3[%187] : memref<840xf32, #tpu.memory_space<smem>>
        %189 = vector.broadcast %188 : f32 to vector<5x6xf32>
        %190 = arith.mulf %189, %130 : vector<5x6xf32>
        %191 = arith.addf %179, %190 : vector<5x6xf32>
        %c12_i32 = arith.constant 12 : i32
        %192 = arith.addi %25, %c12_i32 : i32
        %193 = arith.index_cast %192 : i32 to index
        %194 = memref.load %arg3[%193] : memref<840xf32, #tpu.memory_space<smem>>
        %195 = vector.broadcast %194 : f32 to vector<5x6xf32>
        %196 = arith.mulf %195, %131 : vector<5x6xf32>
        %197 = arith.addf %120, %196 : vector<5x6xf32>
        %c12_i32_50 = arith.constant 12 : i32
        %198 = arith.addi %28, %c12_i32_50 : i32
        %199 = arith.index_cast %198 : i32 to index
        %200 = memref.load %arg3[%199] : memref<840xf32, #tpu.memory_space<smem>>
        %201 = vector.broadcast %200 : f32 to vector<5x6xf32>
        %202 = arith.mulf %201, %131 : vector<5x6xf32>
        %203 = arith.addf %126, %202 : vector<5x6xf32>
        %c13_i32 = arith.constant 13 : i32
        %204 = arith.addi %25, %c13_i32 : i32
        %205 = arith.index_cast %204 : i32 to index
        %206 = memref.load %arg3[%205] : memref<840xf32, #tpu.memory_space<smem>>
        %207 = vector.broadcast %206 : f32 to vector<5x6xf32>
        %208 = arith.mulf %207, %130 : vector<5x6xf32>
        %209 = arith.addf %197, %208 : vector<5x6xf32>
        %c13_i32_51 = arith.constant 13 : i32
        %210 = arith.addi %28, %c13_i32_51 : i32
        %211 = arith.index_cast %210 : i32 to index
        %212 = memref.load %arg3[%211] : memref<840xf32, #tpu.memory_space<smem>>
        %213 = vector.broadcast %212 : f32 to vector<5x6xf32>
        %214 = arith.mulf %213, %130 : vector<5x6xf32>
        %215 = arith.addf %203, %214 : vector<5x6xf32>
        %c0_i32_52 = arith.constant 0 : i32
        %216 = arith.addi %arg7, %c0_i32_52 : i32
        %c0_53 = arith.constant 0 : index
        %c0_54 = arith.constant 0 : index
        %c0_55 = arith.constant 0 : index
        %217 = arith.index_cast %216 : i32 to index
        %c0_56 = arith.constant 0 : index
        %c0_57 = arith.constant 0 : index
        %218 = vector.load %arg5[%c0_53, %c0_54, %c0_55, %217, %c0_56, %c0_57] : memref<1x1x2x5x6x7xf32, #tpu.memory_space<vmem>>, vector<1x1x1x1x5x7xf32>
        %219 = vector.shape_cast %218 : vector<1x1x1x1x5x7xf32> to vector<5x7xf32>
        %220 = vector.extract_strided_slice %219 {offsets = [0, 0], sizes = [5, 6], strides = [1, 1]} : vector<5x7xf32> to vector<5x6xf32>
        %221 = vector.extract_strided_slice %219 {offsets = [0, 1], sizes = [5, 6], strides = [1, 1]} : vector<5x7xf32> to vector<5x6xf32>
        %c14_i32 = arith.constant 14 : i32
        %222 = arith.addi %25, %c14_i32 : i32
        %223 = arith.index_cast %222 : i32 to index
        %224 = memref.load %arg3[%223] : memref<840xf32, #tpu.memory_space<smem>>
        %225 = vector.broadcast %224 : f32 to vector<5x6xf32>
        %226 = arith.mulf %225, %220 : vector<5x6xf32>
        %227 = arith.addf %137, %226 : vector<5x6xf32>
        %c14_i32_58 = arith.constant 14 : i32
        %228 = arith.addi %28, %c14_i32_58 : i32
        %229 = arith.index_cast %228 : i32 to index
        %230 = memref.load %arg3[%229] : memref<840xf32, #tpu.memory_space<smem>>
        %231 = vector.broadcast %230 : f32 to vector<5x6xf32>
        %232 = arith.mulf %231, %220 : vector<5x6xf32>
        %233 = arith.addf %143, %232 : vector<5x6xf32>
        %c15_i32 = arith.constant 15 : i32
        %234 = arith.addi %25, %c15_i32 : i32
        %235 = arith.index_cast %234 : i32 to index
        %236 = memref.load %arg3[%235] : memref<840xf32, #tpu.memory_space<smem>>
        %237 = vector.broadcast %236 : f32 to vector<5x6xf32>
        %238 = arith.mulf %237, %221 : vector<5x6xf32>
        %239 = arith.addf %161, %238 : vector<5x6xf32>
        %c15_i32_59 = arith.constant 15 : i32
        %240 = arith.addi %28, %c15_i32_59 : i32
        %241 = arith.index_cast %240 : i32 to index
        %242 = memref.load %arg3[%241] : memref<840xf32, #tpu.memory_space<smem>>
        %243 = vector.broadcast %242 : f32 to vector<5x6xf32>
        %244 = arith.mulf %243, %221 : vector<5x6xf32>
        %245 = arith.addf %167, %244 : vector<5x6xf32>
        %c16_i32 = arith.constant 16 : i32
        %246 = arith.addi %25, %c16_i32 : i32
        %247 = arith.index_cast %246 : i32 to index
        %248 = memref.load %arg3[%247] : memref<840xf32, #tpu.memory_space<smem>>
        %249 = vector.broadcast %248 : f32 to vector<5x6xf32>
        %250 = arith.mulf %249, %220 : vector<5x6xf32>
        %251 = arith.addf %239, %250 : vector<5x6xf32>
        %c16_i32_60 = arith.constant 16 : i32
        %252 = arith.addi %28, %c16_i32_60 : i32
        %253 = arith.index_cast %252 : i32 to index
        %254 = memref.load %arg3[%253] : memref<840xf32, #tpu.memory_space<smem>>
        %255 = vector.broadcast %254 : f32 to vector<5x6xf32>
        %256 = arith.mulf %255, %220 : vector<5x6xf32>
        %257 = arith.addf %245, %256 : vector<5x6xf32>
        %c17_i32 = arith.constant 17 : i32
        %258 = arith.addi %25, %c17_i32 : i32
        %259 = arith.index_cast %258 : i32 to index
        %260 = memref.load %arg3[%259] : memref<840xf32, #tpu.memory_space<smem>>
        %261 = vector.broadcast %260 : f32 to vector<5x6xf32>
        %262 = arith.mulf %261, %221 : vector<5x6xf32>
        %263 = arith.addf %185, %262 : vector<5x6xf32>
        %c17_i32_61 = arith.constant 17 : i32
        %264 = arith.addi %28, %c17_i32_61 : i32
        %265 = arith.index_cast %264 : i32 to index
        %266 = memref.load %arg3[%265] : memref<840xf32, #tpu.memory_space<smem>>
        %267 = vector.broadcast %266 : f32 to vector<5x6xf32>
        %268 = arith.mulf %267, %221 : vector<5x6xf32>
        %269 = arith.addf %191, %268 : vector<5x6xf32>
        %c18_i32 = arith.constant 18 : i32
        %270 = arith.addi %25, %c18_i32 : i32
        %271 = arith.index_cast %270 : i32 to index
        %272 = memref.load %arg3[%271] : memref<840xf32, #tpu.memory_space<smem>>
        %273 = vector.broadcast %272 : f32 to vector<5x6xf32>
        %274 = arith.mulf %273, %220 : vector<5x6xf32>
        %275 = arith.addf %263, %274 : vector<5x6xf32>
        %c18_i32_62 = arith.constant 18 : i32
        %276 = arith.addi %28, %c18_i32_62 : i32
        %277 = arith.index_cast %276 : i32 to index
        %278 = memref.load %arg3[%277] : memref<840xf32, #tpu.memory_space<smem>>
        %279 = vector.broadcast %278 : f32 to vector<5x6xf32>
        %280 = arith.mulf %279, %220 : vector<5x6xf32>
        %281 = arith.addf %269, %280 : vector<5x6xf32>
        %c19_i32 = arith.constant 19 : i32
        %282 = arith.addi %25, %c19_i32 : i32
        %283 = arith.index_cast %282 : i32 to index
        %284 = memref.load %arg3[%283] : memref<840xf32, #tpu.memory_space<smem>>
        %285 = vector.broadcast %284 : f32 to vector<5x6xf32>
        %286 = arith.mulf %285, %221 : vector<5x6xf32>
        %287 = arith.addf %209, %286 : vector<5x6xf32>
        %c19_i32_63 = arith.constant 19 : i32
        %288 = arith.addi %28, %c19_i32_63 : i32
        %289 = arith.index_cast %288 : i32 to index
        %290 = memref.load %arg3[%289] : memref<840xf32, #tpu.memory_space<smem>>
        %291 = vector.broadcast %290 : f32 to vector<5x6xf32>
        %292 = arith.mulf %291, %221 : vector<5x6xf32>
        %293 = arith.addf %215, %292 : vector<5x6xf32>
        %c20_i32 = arith.constant 20 : i32
        %294 = arith.addi %25, %c20_i32 : i32
        %295 = arith.index_cast %294 : i32 to index
        %296 = memref.load %arg3[%295] : memref<840xf32, #tpu.memory_space<smem>>
        %297 = vector.broadcast %296 : f32 to vector<5x6xf32>
        %298 = arith.mulf %297, %220 : vector<5x6xf32>
        %299 = arith.addf %287, %298 : vector<5x6xf32>
        %c20_i32_64 = arith.constant 20 : i32
        %300 = arith.addi %28, %c20_i32_64 : i32
        %301 = arith.index_cast %300 : i32 to index
        %302 = memref.load %arg3[%301] : memref<840xf32, #tpu.memory_space<smem>>
        %303 = vector.broadcast %302 : f32 to vector<5x6xf32>
        %304 = arith.mulf %303, %220 : vector<5x6xf32>
        %305 = arith.addf %293, %304 : vector<5x6xf32>
        %c0_65 = arith.constant 0 : index
        %c0_66 = arith.constant 0 : index
        %c1_67 = arith.constant 1 : index
        %306 = arith.index_cast %216 : i32 to index
        %c0_68 = arith.constant 0 : index
        %c0_69 = arith.constant 0 : index
        %307 = vector.load %arg5[%c0_65, %c0_66, %c1_67, %306, %c0_68, %c0_69] : memref<1x1x2x5x6x7xf32, #tpu.memory_space<vmem>>, vector<1x1x1x1x5x7xf32>
        %308 = vector.shape_cast %307 : vector<1x1x1x1x5x7xf32> to vector<5x7xf32>
        %309 = vector.extract_strided_slice %308 {offsets = [0, 0], sizes = [5, 6], strides = [1, 1]} : vector<5x7xf32> to vector<5x6xf32>
        %310 = vector.extract_strided_slice %308 {offsets = [0, 1], sizes = [5, 6], strides = [1, 1]} : vector<5x7xf32> to vector<5x6xf32>
        %c21_i32 = arith.constant 21 : i32
        %311 = arith.addi %25, %c21_i32 : i32
        %312 = arith.index_cast %311 : i32 to index
        %313 = memref.load %arg3[%312] : memref<840xf32, #tpu.memory_space<smem>>
        %314 = vector.broadcast %313 : f32 to vector<5x6xf32>
        %315 = arith.mulf %314, %309 : vector<5x6xf32>
        %316 = arith.addf %227, %315 : vector<5x6xf32>
        %c21_i32_70 = arith.constant 21 : i32
        %317 = arith.addi %28, %c21_i32_70 : i32
        %318 = arith.index_cast %317 : i32 to index
        %319 = memref.load %arg3[%318] : memref<840xf32, #tpu.memory_space<smem>>
        %320 = vector.broadcast %319 : f32 to vector<5x6xf32>
        %321 = arith.mulf %320, %309 : vector<5x6xf32>
        %322 = arith.addf %233, %321 : vector<5x6xf32>
        %c22_i32 = arith.constant 22 : i32
        %323 = arith.addi %25, %c22_i32 : i32
        %324 = arith.index_cast %323 : i32 to index
        %325 = memref.load %arg3[%324] : memref<840xf32, #tpu.memory_space<smem>>
        %326 = vector.broadcast %325 : f32 to vector<5x6xf32>
        %327 = arith.mulf %326, %310 : vector<5x6xf32>
        %328 = arith.addf %251, %327 : vector<5x6xf32>
        %c22_i32_71 = arith.constant 22 : i32
        %329 = arith.addi %28, %c22_i32_71 : i32
        %330 = arith.index_cast %329 : i32 to index
        %331 = memref.load %arg3[%330] : memref<840xf32, #tpu.memory_space<smem>>
        %332 = vector.broadcast %331 : f32 to vector<5x6xf32>
        %333 = arith.mulf %332, %310 : vector<5x6xf32>
        %334 = arith.addf %257, %333 : vector<5x6xf32>
        %c23_i32 = arith.constant 23 : i32
        %335 = arith.addi %25, %c23_i32 : i32
        %336 = arith.index_cast %335 : i32 to index
        %337 = memref.load %arg3[%336] : memref<840xf32, #tpu.memory_space<smem>>
        %338 = vector.broadcast %337 : f32 to vector<5x6xf32>
        %339 = arith.mulf %338, %309 : vector<5x6xf32>
        %340 = arith.addf %328, %339 : vector<5x6xf32>
        %c23_i32_72 = arith.constant 23 : i32
        %341 = arith.addi %28, %c23_i32_72 : i32
        %342 = arith.index_cast %341 : i32 to index
        %343 = memref.load %arg3[%342] : memref<840xf32, #tpu.memory_space<smem>>
        %344 = vector.broadcast %343 : f32 to vector<5x6xf32>
        %345 = arith.mulf %344, %309 : vector<5x6xf32>
        %346 = arith.addf %334, %345 : vector<5x6xf32>
        %c24_i32 = arith.constant 24 : i32
        %347 = arith.addi %25, %c24_i32 : i32
        %348 = arith.index_cast %347 : i32 to index
        %349 = memref.load %arg3[%348] : memref<840xf32, #tpu.memory_space<smem>>
        %350 = vector.broadcast %349 : f32 to vector<5x6xf32>
        %351 = arith.mulf %350, %310 : vector<5x6xf32>
        %352 = arith.addf %275, %351 : vector<5x6xf32>
        %c24_i32_73 = arith.constant 24 : i32
        %353 = arith.addi %28, %c24_i32_73 : i32
        %354 = arith.index_cast %353 : i32 to index
        %355 = memref.load %arg3[%354] : memref<840xf32, #tpu.memory_space<smem>>
        %356 = vector.broadcast %355 : f32 to vector<5x6xf32>
        %357 = arith.mulf %356, %310 : vector<5x6xf32>
        %358 = arith.addf %281, %357 : vector<5x6xf32>
        %c25_i32 = arith.constant 25 : i32
        %359 = arith.addi %25, %c25_i32 : i32
        %360 = arith.index_cast %359 : i32 to index
        %361 = memref.load %arg3[%360] : memref<840xf32, #tpu.memory_space<smem>>
        %362 = vector.broadcast %361 : f32 to vector<5x6xf32>
        %363 = arith.mulf %362, %309 : vector<5x6xf32>
        %364 = arith.addf %352, %363 : vector<5x6xf32>
        %c25_i32_74 = arith.constant 25 : i32
        %365 = arith.addi %28, %c25_i32_74 : i32
        %366 = arith.index_cast %365 : i32 to index
        %367 = memref.load %arg3[%366] : memref<840xf32, #tpu.memory_space<smem>>
        %368 = vector.broadcast %367 : f32 to vector<5x6xf32>
        %369 = arith.mulf %368, %309 : vector<5x6xf32>
        %370 = arith.addf %358, %369 : vector<5x6xf32>
        %c26_i32 = arith.constant 26 : i32
        %371 = arith.addi %25, %c26_i32 : i32
        %372 = arith.index_cast %371 : i32 to index
        %373 = memref.load %arg3[%372] : memref<840xf32, #tpu.memory_space<smem>>
        %374 = vector.broadcast %373 : f32 to vector<5x6xf32>
        %375 = arith.mulf %374, %310 : vector<5x6xf32>
        %376 = arith.addf %299, %375 : vector<5x6xf32>
        %c26_i32_75 = arith.constant 26 : i32
        %377 = arith.addi %28, %c26_i32_75 : i32
        %378 = arith.index_cast %377 : i32 to index
        %379 = memref.load %arg3[%378] : memref<840xf32, #tpu.memory_space<smem>>
        %380 = vector.broadcast %379 : f32 to vector<5x6xf32>
        %381 = arith.mulf %380, %310 : vector<5x6xf32>
        %382 = arith.addf %305, %381 : vector<5x6xf32>
        %c27_i32 = arith.constant 27 : i32
        %383 = arith.addi %25, %c27_i32 : i32
        %384 = arith.index_cast %383 : i32 to index
        %385 = memref.load %arg3[%384] : memref<840xf32, #tpu.memory_space<smem>>
        %386 = vector.broadcast %385 : f32 to vector<5x6xf32>
        %387 = arith.mulf %386, %309 : vector<5x6xf32>
        %388 = arith.addf %376, %387 : vector<5x6xf32>
        %c27_i32_76 = arith.constant 27 : i32
        %389 = arith.addi %28, %c27_i32_76 : i32
        %390 = arith.index_cast %389 : i32 to index
        %391 = memref.load %arg3[%390] : memref<840xf32, #tpu.memory_space<smem>>
        %392 = vector.broadcast %391 : f32 to vector<5x6xf32>
        %393 = arith.mulf %392, %309 : vector<5x6xf32>
        %394 = arith.addf %382, %393 : vector<5x6xf32>
        %395 = tpu.concatenate %316, %340, %364, %388 in 1 : vector<5x6xf32>, vector<5x6xf32>, vector<5x6xf32>, vector<5x6xf32> -> vector<5x24xf32>
        %396 = arith.addi %0, %22 : i32
        %c0_i32_77 = arith.constant 0 : i32
        %397 = arith.addi %396, %c0_i32_77 : i32
        %398 = arith.index_cast %397 : i32 to index
        %399 = memref.load %arg4[%398] : memref<4xf32, #tpu.memory_space<smem>>
        %400 = vector.broadcast %399 : f32 to vector<5x24xf32>
        %401 = arith.addf %395, %400 : vector<5x24xf32>
        %c0_i32_78 = arith.constant 0 : i32
        %402 = arith.addi %22, %c0_i32_78 : i32
        %c0_79 = arith.constant 0 : index
        %c0_80 = arith.constant 0 : index
        %c0_81 = arith.constant 0 : index
        %403 = arith.index_cast %402 : i32 to index
        %404 = arith.index_cast %arg7 : i32 to index
        %c0_82 = arith.constant 0 : index
        %c0_83 = arith.constant 0 : index
        %405 = vector.load %arg6[%c0_79, %c0_80, %c0_81, %403, %404, %c0_82, %c0_83] : memref<1x1x1x2x4x5x24xf32, #tpu.memory_space<vmem>>, vector<1x1x1x1x1x5x24xf32>
        %406 = vector.shape_cast %405 : vector<1x1x1x1x1x5x24xf32> to vector<5x24xf32>
        %407 = vector.shape_cast %401 : vector<5x24xf32> to vector<1x1x1x1x1x5x24xf32>
        tpu.vector_store %arg6[%c0_79, %c0_80, %c0_81, %403, %404, %c0_82, %c0_83], %407 {strides = array<i32>} : memref<1x1x1x2x4x5x24xf32, #tpu.memory_space<vmem>>, vector<1x1x1x1x1x5x24xf32>,
        %408 = tpu.concatenate %322, %346, %370, %394 in 1 : vector<5x6xf32>, vector<5x6xf32>, vector<5x6xf32>, vector<5x6xf32> -> vector<5x24xf32>
        %409 = arith.addi %0, %22 : i32
        %c1_i32_84 = arith.constant 1 : i32
        %410 = arith.addi %409, %c1_i32_84 : i32
        %411 = arith.index_cast %410 : i32 to index
        %412 = memref.load %arg4[%411] : memref<4xf32, #tpu.memory_space<smem>>
        %413 = vector.broadcast %412 : f32 to vector<5x24xf32>
        %414 = arith.addf %408, %413 : vector<5x24xf32>
        %c1_i32_85 = arith.constant 1 : i32
        %415 = arith.addi %22, %c1_i32_85 : i32
        %c0_86 = arith.constant 0 : index
        %c0_87 = arith.constant 0 : index
        %c0_88 = arith.constant 0 : index
        %416 = arith.index_cast %415 : i32 to index
        %417 = arith.index_cast %arg7 : i32 to index
        %c0_89 = arith.constant 0 : index
        %c0_90 = arith.constant 0 : index
        %418 = vector.load %arg6[%c0_86, %c0_87, %c0_88, %416, %417, %c0_89, %c0_90] : memref<1x1x1x2x4x5x24xf32, #tpu.memory_space<vmem>>, vector<1x1x1x1x1x5x24xf32>
        %419 = vector.shape_cast %418 : vector<1x1x1x1x1x5x24xf32> to vector<5x24xf32>
        %420 = vector.shape_cast %414 : vector<5x24xf32> to vector<1x1x1x1x1x5x24xf32>
        tpu.vector_store %arg6[%c0_86, %c0_87, %c0_88, %416, %417, %c0_89, %c0_90], %420 {strides = array<i32>} : memref<1x1x1x2x4x5x24xf32, #tpu.memory_space<vmem>>, vector<1x1x1x1x1x5x24xf32>,
        %c1_i32_91 = arith.constant 1 : i32
      }
      %c4_i32_10 = arith.constant 4 : i32
    } else {
    }
    %c4_i32 = arith.constant 4 : i32
    %13 = arith.cmpi eq, %arg2, %c4_i32 : i32
    %14 = arith.extui %13 : i1 to i32
    %c0_i32_5 = arith.constant 0 : i32
    %15 = arith.cmpi ne, %14, %c0_i32_5 : i32
    scf.if %15 {
      %c112_i32 = arith.constant 112 : i32
      %19 = arith.muli %arg1, %c112_i32 : i32
      %c392_i32 = arith.constant 392 : i32
      %20 = arith.addi %c392_i32, %19 : i32
      %c0_i32_7 = arith.constant 0 : i32
      %c4_i32_8 = arith.constant 4 : i32
      %21 = arith.addi %c0_i32_7, %c4_i32_8 : i32
      %c1_i32_9 = arith.constant 1 : i32
      scf.for %arg7 = %c0_i32_7 to %21 step %c1_i32_9  : i32 {
        %c0_i32_11 = arith.constant 0 : i32
        %c2_i32_12 = arith.constant 2 : i32
        %22 = arith.muli %c0_i32_11, %c2_i32_12 : i32
        %c0_i32_13 = arith.constant 0 : i32
        %23 = arith.addi %22, %c0_i32_13 : i32
        %c56_i32 = arith.constant 56 : i32
        %24 = arith.muli %23, %c56_i32 : i32
        %25 = arith.addi %20, %24 : i32
        %c1_i32_14 = arith.constant 1 : i32
        %26 = arith.addi %22, %c1_i32_14 : i32
        %c56_i32_15 = arith.constant 56 : i32
        %27 = arith.muli %26, %c56_i32_15 : i32
        %28 = arith.addi %20, %27 : i32
        %cst = arith.constant 0.000000e+00 : f32
        %29 = vector.broadcast %cst : f32 to vector<5x6xf32>
        %cst_16 = arith.constant 0.000000e+00 : f32
        %30 = vector.broadcast %cst_16 : f32 to vector<5x6xf32>
        %cst_17 = arith.constant 0.000000e+00 : f32
        %31 = vector.broadcast %cst_17 : f32 to vector<5x6xf32>
        %cst_18 = arith.constant 0.000000e+00 : f32
        %32 = vector.broadcast %cst_18 : f32 to vector<5x6xf32>
        %cst_19 = arith.constant 0.000000e+00 : f32
        %33 = vector.broadcast %cst_19 : f32 to vector<5x6xf32>
        %cst_20 = arith.constant 0.000000e+00 : f32
        %34 = vector.broadcast %cst_20 : f32 to vector<5x6xf32>
        %cst_21 = arith.constant 0.000000e+00 : f32
        %35 = vector.broadcast %cst_21 : f32 to vector<5x6xf32>
        %cst_22 = arith.constant 0.000000e+00 : f32
        %36 = vector.broadcast %cst_22 : f32 to vector<5x6xf32>
        %c1_i32_23 = arith.constant 1 : i32
        %37 = arith.addi %arg7, %c1_i32_23 : i32
        %c0 = arith.constant 0 : index
        %c0_24 = arith.constant 0 : index
        %c0_25 = arith.constant 0 : index
        %38 = arith.index_cast %37 : i32 to index
        %c1 = arith.constant 1 : index
        %c0_26 = arith.constant 0 : index
        %39 = vector.load %arg5[%c0, %c0_24, %c0_25, %38, %c1, %c0_26] : memref<1x1x2x5x6x7xf32, #tpu.memory_space<vmem>>, vector<1x1x1x1x5x7xf32>
        %40 = vector.shape_cast %39 : vector<1x1x1x1x5x7xf32> to vector<5x7xf32>
        %41 = vector.extract_strided_slice %40 {offsets = [0, 0], sizes = [5, 6], strides = [1, 1]} : vector<5x7xf32> to vector<5x6xf32>
        %42 = vector.extract_strided_slice %40 {offsets = [0, 1], sizes = [5, 6], strides = [1, 1]} : vector<5x7xf32> to vector<5x6xf32>
        %c0_i32_27 = arith.constant 0 : i32
        %43 = arith.addi %25, %c0_i32_27 : i32
        %44 = arith.index_cast %43 : i32 to index
        %45 = memref.load %arg3[%44] : memref<840xf32, #tpu.memory_space<smem>>
        %46 = vector.broadcast %45 : f32 to vector<5x6xf32>
        %47 = arith.mulf %46, %41 : vector<5x6xf32>
        %48 = arith.addf %29, %47 : vector<5x6xf32>
        %c0_i32_28 = arith.constant 0 : i32
        %49 = arith.addi %28, %c0_i32_28 : i32
        %50 = arith.index_cast %49 : i32 to index
        %51 = memref.load %arg3[%50] : memref<840xf32, #tpu.memory_space<smem>>
        %52 = vector.broadcast %51 : f32 to vector<5x6xf32>
        %53 = arith.mulf %52, %41 : vector<5x6xf32>
        %54 = arith.addf %33, %53 : vector<5x6xf32>
        %c1_i32_29 = arith.constant 1 : i32
        %55 = arith.addi %25, %c1_i32_29 : i32
        %56 = arith.index_cast %55 : i32 to index
        %57 = memref.load %arg3[%56] : memref<840xf32, #tpu.memory_space<smem>>
        %58 = vector.broadcast %57 : f32 to vector<5x6xf32>
        %59 = arith.mulf %58, %42 : vector<5x6xf32>
        %60 = arith.addf %30, %59 : vector<5x6xf32>
        %c1_i32_30 = arith.constant 1 : i32
        %61 = arith.addi %28, %c1_i32_30 : i32
        %62 = arith.index_cast %61 : i32 to index
        %63 = memref.load %arg3[%62] : memref<840xf32, #tpu.memory_space<smem>>
        %64 = vector.broadcast %63 : f32 to vector<5x6xf32>
        %65 = arith.mulf %64, %42 : vector<5x6xf32>
        %66 = arith.addf %34, %65 : vector<5x6xf32>
        %c2_i32_31 = arith.constant 2 : i32
        %67 = arith.addi %25, %c2_i32_31 : i32
        %68 = arith.index_cast %67 : i32 to index
        %69 = memref.load %arg3[%68] : memref<840xf32, #tpu.memory_space<smem>>
        %70 = vector.broadcast %69 : f32 to vector<5x6xf32>
        %71 = arith.mulf %70, %41 : vector<5x6xf32>
        %72 = arith.addf %60, %71 : vector<5x6xf32>
        %c2_i32_32 = arith.constant 2 : i32
        %73 = arith.addi %28, %c2_i32_32 : i32
        %74 = arith.index_cast %73 : i32 to index
        %75 = memref.load %arg3[%74] : memref<840xf32, #tpu.memory_space<smem>>
        %76 = vector.broadcast %75 : f32 to vector<5x6xf32>
        %77 = arith.mulf %76, %41 : vector<5x6xf32>
        %78 = arith.addf %66, %77 : vector<5x6xf32>
        %c3_i32_33 = arith.constant 3 : i32
        %79 = arith.addi %25, %c3_i32_33 : i32
        %80 = arith.index_cast %79 : i32 to index
        %81 = memref.load %arg3[%80] : memref<840xf32, #tpu.memory_space<smem>>
        %82 = vector.broadcast %81 : f32 to vector<5x6xf32>
        %83 = arith.mulf %82, %42 : vector<5x6xf32>
        %84 = arith.addf %31, %83 : vector<5x6xf32>
        %c3_i32_34 = arith.constant 3 : i32
        %85 = arith.addi %28, %c3_i32_34 : i32
        %86 = arith.index_cast %85 : i32 to index
        %87 = memref.load %arg3[%86] : memref<840xf32, #tpu.memory_space<smem>>
        %88 = vector.broadcast %87 : f32 to vector<5x6xf32>
        %89 = arith.mulf %88, %42 : vector<5x6xf32>
        %90 = arith.addf %35, %89 : vector<5x6xf32>
        %c4_i32_35 = arith.constant 4 : i32
        %91 = arith.addi %25, %c4_i32_35 : i32
        %92 = arith.index_cast %91 : i32 to index
        %93 = memref.load %arg3[%92] : memref<840xf32, #tpu.memory_space<smem>>
        %94 = vector.broadcast %93 : f32 to vector<5x6xf32>
        %95 = arith.mulf %94, %41 : vector<5x6xf32>
        %96 = arith.addf %84, %95 : vector<5x6xf32>
        %c4_i32_36 = arith.constant 4 : i32
        %97 = arith.addi %28, %c4_i32_36 : i32
        %98 = arith.index_cast %97 : i32 to index
        %99 = memref.load %arg3[%98] : memref<840xf32, #tpu.memory_space<smem>>
        %100 = vector.broadcast %99 : f32 to vector<5x6xf32>
        %101 = arith.mulf %100, %41 : vector<5x6xf32>
        %102 = arith.addf %90, %101 : vector<5x6xf32>
        %c5_i32_37 = arith.constant 5 : i32
        %103 = arith.addi %25, %c5_i32_37 : i32
        %104 = arith.index_cast %103 : i32 to index
        %105 = memref.load %arg3[%104] : memref<840xf32, #tpu.memory_space<smem>>
        %106 = vector.broadcast %105 : f32 to vector<5x6xf32>
        %107 = arith.mulf %106, %42 : vector<5x6xf32>
        %108 = arith.addf %32, %107 : vector<5x6xf32>
        %c5_i32_38 = arith.constant 5 : i32
        %109 = arith.addi %28, %c5_i32_38 : i32
        %110 = arith.index_cast %109 : i32 to index
        %111 = memref.load %arg3[%110] : memref<840xf32, #tpu.memory_space<smem>>
        %112 = vector.broadcast %111 : f32 to vector<5x6xf32>
        %113 = arith.mulf %112, %42 : vector<5x6xf32>
        %114 = arith.addf %36, %113 : vector<5x6xf32>
        %c6_i32 = arith.constant 6 : i32
        %115 = arith.addi %25, %c6_i32 : i32
        %116 = arith.index_cast %115 : i32 to index
        %117 = memref.load %arg3[%116] : memref<840xf32, #tpu.memory_space<smem>>
        %118 = vector.broadcast %117 : f32 to vector<5x6xf32>
        %119 = arith.mulf %118, %41 : vector<5x6xf32>
        %120 = arith.addf %108, %119 : vector<5x6xf32>
        %c6_i32_39 = arith.constant 6 : i32
        %121 = arith.addi %28, %c6_i32_39 : i32
        %122 = arith.index_cast %121 : i32 to index
        %123 = memref.load %arg3[%122] : memref<840xf32, #tpu.memory_space<smem>>
        %124 = vector.broadcast %123 : f32 to vector<5x6xf32>
        %125 = arith.mulf %124, %41 : vector<5x6xf32>
        %126 = arith.addf %114, %125 : vector<5x6xf32>
        %c0_40 = arith.constant 0 : index
        %c0_41 = arith.constant 0 : index
        %c1_42 = arith.constant 1 : index
        %127 = arith.index_cast %37 : i32 to index
        %c1_43 = arith.constant 1 : index
        %c0_44 = arith.constant 0 : index
        %128 = vector.load %arg5[%c0_40, %c0_41, %c1_42, %127, %c1_43, %c0_44] : memref<1x1x2x5x6x7xf32, #tpu.memory_space<vmem>>, vector<1x1x1x1x5x7xf32>
        %129 = vector.shape_cast %128 : vector<1x1x1x1x5x7xf32> to vector<5x7xf32>
        %130 = vector.extract_strided_slice %129 {offsets = [0, 0], sizes = [5, 6], strides = [1, 1]} : vector<5x7xf32> to vector<5x6xf32>
        %131 = vector.extract_strided_slice %129 {offsets = [0, 1], sizes = [5, 6], strides = [1, 1]} : vector<5x7xf32> to vector<5x6xf32>
        %c7_i32 = arith.constant 7 : i32
        %132 = arith.addi %25, %c7_i32 : i32
        %133 = arith.index_cast %132 : i32 to index
        %134 = memref.load %arg3[%133] : memref<840xf32, #tpu.memory_space<smem>>
        %135 = vector.broadcast %134 : f32 to vector<5x6xf32>
        %136 = arith.mulf %135, %130 : vector<5x6xf32>
        %137 = arith.addf %48, %136 : vector<5x6xf32>
        %c7_i32_45 = arith.constant 7 : i32
        %138 = arith.addi %28, %c7_i32_45 : i32
        %139 = arith.index_cast %138 : i32 to index
        %140 = memref.load %arg3[%139] : memref<840xf32, #tpu.memory_space<smem>>
        %141 = vector.broadcast %140 : f32 to vector<5x6xf32>
        %142 = arith.mulf %141, %130 : vector<5x6xf32>
        %143 = arith.addf %54, %142 : vector<5x6xf32>
        %c8_i32 = arith.constant 8 : i32
        %144 = arith.addi %25, %c8_i32 : i32
        %145 = arith.index_cast %144 : i32 to index
        %146 = memref.load %arg3[%145] : memref<840xf32, #tpu.memory_space<smem>>
        %147 = vector.broadcast %146 : f32 to vector<5x6xf32>
        %148 = arith.mulf %147, %131 : vector<5x6xf32>
        %149 = arith.addf %72, %148 : vector<5x6xf32>
        %c8_i32_46 = arith.constant 8 : i32
        %150 = arith.addi %28, %c8_i32_46 : i32
        %151 = arith.index_cast %150 : i32 to index
        %152 = memref.load %arg3[%151] : memref<840xf32, #tpu.memory_space<smem>>
        %153 = vector.broadcast %152 : f32 to vector<5x6xf32>
        %154 = arith.mulf %153, %131 : vector<5x6xf32>
        %155 = arith.addf %78, %154 : vector<5x6xf32>
        %c9_i32 = arith.constant 9 : i32
        %156 = arith.addi %25, %c9_i32 : i32
        %157 = arith.index_cast %156 : i32 to index
        %158 = memref.load %arg3[%157] : memref<840xf32, #tpu.memory_space<smem>>
        %159 = vector.broadcast %158 : f32 to vector<5x6xf32>
        %160 = arith.mulf %159, %130 : vector<5x6xf32>
        %161 = arith.addf %149, %160 : vector<5x6xf32>
        %c9_i32_47 = arith.constant 9 : i32
        %162 = arith.addi %28, %c9_i32_47 : i32
        %163 = arith.index_cast %162 : i32 to index
        %164 = memref.load %arg3[%163] : memref<840xf32, #tpu.memory_space<smem>>
        %165 = vector.broadcast %164 : f32 to vector<5x6xf32>
        %166 = arith.mulf %165, %130 : vector<5x6xf32>
        %167 = arith.addf %155, %166 : vector<5x6xf32>
        %c10_i32 = arith.constant 10 : i32
        %168 = arith.addi %25, %c10_i32 : i32
        %169 = arith.index_cast %168 : i32 to index
        %170 = memref.load %arg3[%169] : memref<840xf32, #tpu.memory_space<smem>>
        %171 = vector.broadcast %170 : f32 to vector<5x6xf32>
        %172 = arith.mulf %171, %131 : vector<5x6xf32>
        %173 = arith.addf %96, %172 : vector<5x6xf32>
        %c10_i32_48 = arith.constant 10 : i32
        %174 = arith.addi %28, %c10_i32_48 : i32
        %175 = arith.index_cast %174 : i32 to index
        %176 = memref.load %arg3[%175] : memref<840xf32, #tpu.memory_space<smem>>
        %177 = vector.broadcast %176 : f32 to vector<5x6xf32>
        %178 = arith.mulf %177, %131 : vector<5x6xf32>
        %179 = arith.addf %102, %178 : vector<5x6xf32>
        %c11_i32 = arith.constant 11 : i32
        %180 = arith.addi %25, %c11_i32 : i32
        %181 = arith.index_cast %180 : i32 to index
        %182 = memref.load %arg3[%181] : memref<840xf32, #tpu.memory_space<smem>>
        %183 = vector.broadcast %182 : f32 to vector<5x6xf32>
        %184 = arith.mulf %183, %130 : vector<5x6xf32>
        %185 = arith.addf %173, %184 : vector<5x6xf32>
        %c11_i32_49 = arith.constant 11 : i32
        %186 = arith.addi %28, %c11_i32_49 : i32
        %187 = arith.index_cast %186 : i32 to index
        %188 = memref.load %arg3[%187] : memref<840xf32, #tpu.memory_space<smem>>
        %189 = vector.broadcast %188 : f32 to vector<5x6xf32>
        %190 = arith.mulf %189, %130 : vector<5x6xf32>
        %191 = arith.addf %179, %190 : vector<5x6xf32>
        %c12_i32 = arith.constant 12 : i32
        %192 = arith.addi %25, %c12_i32 : i32
        %193 = arith.index_cast %192 : i32 to index
        %194 = memref.load %arg3[%193] : memref<840xf32, #tpu.memory_space<smem>>
        %195 = vector.broadcast %194 : f32 to vector<5x6xf32>
        %196 = arith.mulf %195, %131 : vector<5x6xf32>
        %197 = arith.addf %120, %196 : vector<5x6xf32>
        %c12_i32_50 = arith.constant 12 : i32
        %198 = arith.addi %28, %c12_i32_50 : i32
        %199 = arith.index_cast %198 : i32 to index
        %200 = memref.load %arg3[%199] : memref<840xf32, #tpu.memory_space<smem>>
        %201 = vector.broadcast %200 : f32 to vector<5x6xf32>
        %202 = arith.mulf %201, %131 : vector<5x6xf32>
        %203 = arith.addf %126, %202 : vector<5x6xf32>
        %c13_i32 = arith.constant 13 : i32
        %204 = arith.addi %25, %c13_i32 : i32
        %205 = arith.index_cast %204 : i32 to index
        %206 = memref.load %arg3[%205] : memref<840xf32, #tpu.memory_space<smem>>
        %207 = vector.broadcast %206 : f32 to vector<5x6xf32>
        %208 = arith.mulf %207, %130 : vector<5x6xf32>
        %209 = arith.addf %197, %208 : vector<5x6xf32>
        %c13_i32_51 = arith.constant 13 : i32
        %210 = arith.addi %28, %c13_i32_51 : i32
        %211 = arith.index_cast %210 : i32 to index
        %212 = memref.load %arg3[%211] : memref<840xf32, #tpu.memory_space<smem>>
        %213 = vector.broadcast %212 : f32 to vector<5x6xf32>
        %214 = arith.mulf %213, %130 : vector<5x6xf32>
        %215 = arith.addf %203, %214 : vector<5x6xf32>
        %c0_52 = arith.constant 0 : index
        %c0_53 = arith.constant 0 : index
        %c0_54 = arith.constant 0 : index
        %216 = arith.index_cast %37 : i32 to index
        %c0_55 = arith.constant 0 : index
        %c0_56 = arith.constant 0 : index
        %217 = vector.load %arg5[%c0_52, %c0_53, %c0_54, %216, %c0_55, %c0_56] : memref<1x1x2x5x6x7xf32, #tpu.memory_space<vmem>>, vector<1x1x1x1x5x7xf32>
        %218 = vector.shape_cast %217 : vector<1x1x1x1x5x7xf32> to vector<5x7xf32>
        %219 = vector.extract_strided_slice %218 {offsets = [0, 0], sizes = [5, 6], strides = [1, 1]} : vector<5x7xf32> to vector<5x6xf32>
        %220 = vector.extract_strided_slice %218 {offsets = [0, 1], sizes = [5, 6], strides = [1, 1]} : vector<5x7xf32> to vector<5x6xf32>
        %c14_i32 = arith.constant 14 : i32
        %221 = arith.addi %25, %c14_i32 : i32
        %222 = arith.index_cast %221 : i32 to index
        %223 = memref.load %arg3[%222] : memref<840xf32, #tpu.memory_space<smem>>
        %224 = vector.broadcast %223 : f32 to vector<5x6xf32>
        %225 = arith.mulf %224, %219 : vector<5x6xf32>
        %226 = arith.addf %137, %225 : vector<5x6xf32>
        %c14_i32_57 = arith.constant 14 : i32
        %227 = arith.addi %28, %c14_i32_57 : i32
        %228 = arith.index_cast %227 : i32 to index
        %229 = memref.load %arg3[%228] : memref<840xf32, #tpu.memory_space<smem>>
        %230 = vector.broadcast %229 : f32 to vector<5x6xf32>
        %231 = arith.mulf %230, %219 : vector<5x6xf32>
        %232 = arith.addf %143, %231 : vector<5x6xf32>
        %c15_i32 = arith.constant 15 : i32
        %233 = arith.addi %25, %c15_i32 : i32
        %234 = arith.index_cast %233 : i32 to index
        %235 = memref.load %arg3[%234] : memref<840xf32, #tpu.memory_space<smem>>
        %236 = vector.broadcast %235 : f32 to vector<5x6xf32>
        %237 = arith.mulf %236, %220 : vector<5x6xf32>
        %238 = arith.addf %161, %237 : vector<5x6xf32>
        %c15_i32_58 = arith.constant 15 : i32
        %239 = arith.addi %28, %c15_i32_58 : i32
        %240 = arith.index_cast %239 : i32 to index
        %241 = memref.load %arg3[%240] : memref<840xf32, #tpu.memory_space<smem>>
        %242 = vector.broadcast %241 : f32 to vector<5x6xf32>
        %243 = arith.mulf %242, %220 : vector<5x6xf32>
        %244 = arith.addf %167, %243 : vector<5x6xf32>
        %c16_i32 = arith.constant 16 : i32
        %245 = arith.addi %25, %c16_i32 : i32
        %246 = arith.index_cast %245 : i32 to index
        %247 = memref.load %arg3[%246] : memref<840xf32, #tpu.memory_space<smem>>
        %248 = vector.broadcast %247 : f32 to vector<5x6xf32>
        %249 = arith.mulf %248, %219 : vector<5x6xf32>
        %250 = arith.addf %238, %249 : vector<5x6xf32>
        %c16_i32_59 = arith.constant 16 : i32
        %251 = arith.addi %28, %c16_i32_59 : i32
        %252 = arith.index_cast %251 : i32 to index
        %253 = memref.load %arg3[%252] : memref<840xf32, #tpu.memory_space<smem>>
        %254 = vector.broadcast %253 : f32 to vector<5x6xf32>
        %255 = arith.mulf %254, %219 : vector<5x6xf32>
        %256 = arith.addf %244, %255 : vector<5x6xf32>
        %c17_i32 = arith.constant 17 : i32
        %257 = arith.addi %25, %c17_i32 : i32
        %258 = arith.index_cast %257 : i32 to index
        %259 = memref.load %arg3[%258] : memref<840xf32, #tpu.memory_space<smem>>
        %260 = vector.broadcast %259 : f32 to vector<5x6xf32>
        %261 = arith.mulf %260, %220 : vector<5x6xf32>
        %262 = arith.addf %185, %261 : vector<5x6xf32>
        %c17_i32_60 = arith.constant 17 : i32
        %263 = arith.addi %28, %c17_i32_60 : i32
        %264 = arith.index_cast %263 : i32 to index
        %265 = memref.load %arg3[%264] : memref<840xf32, #tpu.memory_space<smem>>
        %266 = vector.broadcast %265 : f32 to vector<5x6xf32>
        %267 = arith.mulf %266, %220 : vector<5x6xf32>
        %268 = arith.addf %191, %267 : vector<5x6xf32>
        %c18_i32 = arith.constant 18 : i32
        %269 = arith.addi %25, %c18_i32 : i32
        %270 = arith.index_cast %269 : i32 to index
        %271 = memref.load %arg3[%270] : memref<840xf32, #tpu.memory_space<smem>>
        %272 = vector.broadcast %271 : f32 to vector<5x6xf32>
        %273 = arith.mulf %272, %219 : vector<5x6xf32>
        %274 = arith.addf %262, %273 : vector<5x6xf32>
        %c18_i32_61 = arith.constant 18 : i32
        %275 = arith.addi %28, %c18_i32_61 : i32
        %276 = arith.index_cast %275 : i32 to index
        %277 = memref.load %arg3[%276] : memref<840xf32, #tpu.memory_space<smem>>
        %278 = vector.broadcast %277 : f32 to vector<5x6xf32>
        %279 = arith.mulf %278, %219 : vector<5x6xf32>
        %280 = arith.addf %268, %279 : vector<5x6xf32>
        %c19_i32 = arith.constant 19 : i32
        %281 = arith.addi %25, %c19_i32 : i32
        %282 = arith.index_cast %281 : i32 to index
        %283 = memref.load %arg3[%282] : memref<840xf32, #tpu.memory_space<smem>>
        %284 = vector.broadcast %283 : f32 to vector<5x6xf32>
        %285 = arith.mulf %284, %220 : vector<5x6xf32>
        %286 = arith.addf %209, %285 : vector<5x6xf32>
        %c19_i32_62 = arith.constant 19 : i32
        %287 = arith.addi %28, %c19_i32_62 : i32
        %288 = arith.index_cast %287 : i32 to index
        %289 = memref.load %arg3[%288] : memref<840xf32, #tpu.memory_space<smem>>
        %290 = vector.broadcast %289 : f32 to vector<5x6xf32>
        %291 = arith.mulf %290, %220 : vector<5x6xf32>
        %292 = arith.addf %215, %291 : vector<5x6xf32>
        %c20_i32 = arith.constant 20 : i32
        %293 = arith.addi %25, %c20_i32 : i32
        %294 = arith.index_cast %293 : i32 to index
        %295 = memref.load %arg3[%294] : memref<840xf32, #tpu.memory_space<smem>>
        %296 = vector.broadcast %295 : f32 to vector<5x6xf32>
        %297 = arith.mulf %296, %219 : vector<5x6xf32>
        %298 = arith.addf %286, %297 : vector<5x6xf32>
        %c20_i32_63 = arith.constant 20 : i32
        %299 = arith.addi %28, %c20_i32_63 : i32
        %300 = arith.index_cast %299 : i32 to index
        %301 = memref.load %arg3[%300] : memref<840xf32, #tpu.memory_space<smem>>
        %302 = vector.broadcast %301 : f32 to vector<5x6xf32>
        %303 = arith.mulf %302, %219 : vector<5x6xf32>
        %304 = arith.addf %292, %303 : vector<5x6xf32>
        %c0_64 = arith.constant 0 : index
        %c0_65 = arith.constant 0 : index
        %c1_66 = arith.constant 1 : index
        %305 = arith.index_cast %37 : i32 to index
        %c0_67 = arith.constant 0 : index
        %c0_68 = arith.constant 0 : index
        %306 = vector.load %arg5[%c0_64, %c0_65, %c1_66, %305, %c0_67, %c0_68] : memref<1x1x2x5x6x7xf32, #tpu.memory_space<vmem>>, vector<1x1x1x1x5x7xf32>
        %307 = vector.shape_cast %306 : vector<1x1x1x1x5x7xf32> to vector<5x7xf32>
        %308 = vector.extract_strided_slice %307 {offsets = [0, 0], sizes = [5, 6], strides = [1, 1]} : vector<5x7xf32> to vector<5x6xf32>
        %309 = vector.extract_strided_slice %307 {offsets = [0, 1], sizes = [5, 6], strides = [1, 1]} : vector<5x7xf32> to vector<5x6xf32>
        %c21_i32 = arith.constant 21 : i32
        %310 = arith.addi %25, %c21_i32 : i32
        %311 = arith.index_cast %310 : i32 to index
        %312 = memref.load %arg3[%311] : memref<840xf32, #tpu.memory_space<smem>>
        %313 = vector.broadcast %312 : f32 to vector<5x6xf32>
        %314 = arith.mulf %313, %308 : vector<5x6xf32>
        %315 = arith.addf %226, %314 : vector<5x6xf32>
        %c21_i32_69 = arith.constant 21 : i32
        %316 = arith.addi %28, %c21_i32_69 : i32
        %317 = arith.index_cast %316 : i32 to index
        %318 = memref.load %arg3[%317] : memref<840xf32, #tpu.memory_space<smem>>
        %319 = vector.broadcast %318 : f32 to vector<5x6xf32>
        %320 = arith.mulf %319, %308 : vector<5x6xf32>
        %321 = arith.addf %232, %320 : vector<5x6xf32>
        %c22_i32 = arith.constant 22 : i32
        %322 = arith.addi %25, %c22_i32 : i32
        %323 = arith.index_cast %322 : i32 to index
        %324 = memref.load %arg3[%323] : memref<840xf32, #tpu.memory_space<smem>>
        %325 = vector.broadcast %324 : f32 to vector<5x6xf32>
        %326 = arith.mulf %325, %309 : vector<5x6xf32>
        %327 = arith.addf %250, %326 : vector<5x6xf32>
        %c22_i32_70 = arith.constant 22 : i32
        %328 = arith.addi %28, %c22_i32_70 : i32
        %329 = arith.index_cast %328 : i32 to index
        %330 = memref.load %arg3[%329] : memref<840xf32, #tpu.memory_space<smem>>
        %331 = vector.broadcast %330 : f32 to vector<5x6xf32>
        %332 = arith.mulf %331, %309 : vector<5x6xf32>
        %333 = arith.addf %256, %332 : vector<5x6xf32>
        %c23_i32 = arith.constant 23 : i32
        %334 = arith.addi %25, %c23_i32 : i32
        %335 = arith.index_cast %334 : i32 to index
        %336 = memref.load %arg3[%335] : memref<840xf32, #tpu.memory_space<smem>>
        %337 = vector.broadcast %336 : f32 to vector<5x6xf32>
        %338 = arith.mulf %337, %308 : vector<5x6xf32>
        %339 = arith.addf %327, %338 : vector<5x6xf32>
        %c23_i32_71 = arith.constant 23 : i32
        %340 = arith.addi %28, %c23_i32_71 : i32
        %341 = arith.index_cast %340 : i32 to index
        %342 = memref.load %arg3[%341] : memref<840xf32, #tpu.memory_space<smem>>
        %343 = vector.broadcast %342 : f32 to vector<5x6xf32>
        %344 = arith.mulf %343, %308 : vector<5x6xf32>
        %345 = arith.addf %333, %344 : vector<5x6xf32>
        %c24_i32 = arith.constant 24 : i32
        %346 = arith.addi %25, %c24_i32 : i32
        %347 = arith.index_cast %346 : i32 to index
        %348 = memref.load %arg3[%347] : memref<840xf32, #tpu.memory_space<smem>>
        %349 = vector.broadcast %348 : f32 to vector<5x6xf32>
        %350 = arith.mulf %349, %309 : vector<5x6xf32>
        %351 = arith.addf %274, %350 : vector<5x6xf32>
        %c24_i32_72 = arith.constant 24 : i32
        %352 = arith.addi %28, %c24_i32_72 : i32
        %353 = arith.index_cast %352 : i32 to index
        %354 = memref.load %arg3[%353] : memref<840xf32, #tpu.memory_space<smem>>
        %355 = vector.broadcast %354 : f32 to vector<5x6xf32>
        %356 = arith.mulf %355, %309 : vector<5x6xf32>
        %357 = arith.addf %280, %356 : vector<5x6xf32>
        %c25_i32 = arith.constant 25 : i32
        %358 = arith.addi %25, %c25_i32 : i32
        %359 = arith.index_cast %358 : i32 to index
        %360 = memref.load %arg3[%359] : memref<840xf32, #tpu.memory_space<smem>>
        %361 = vector.broadcast %360 : f32 to vector<5x6xf32>
        %362 = arith.mulf %361, %308 : vector<5x6xf32>
        %363 = arith.addf %351, %362 : vector<5x6xf32>
        %c25_i32_73 = arith.constant 25 : i32
        %364 = arith.addi %28, %c25_i32_73 : i32
        %365 = arith.index_cast %364 : i32 to index
        %366 = memref.load %arg3[%365] : memref<840xf32, #tpu.memory_space<smem>>
        %367 = vector.broadcast %366 : f32 to vector<5x6xf32>
        %368 = arith.mulf %367, %308 : vector<5x6xf32>
        %369 = arith.addf %357, %368 : vector<5x6xf32>
        %c26_i32 = arith.constant 26 : i32
        %370 = arith.addi %25, %c26_i32 : i32
        %371 = arith.index_cast %370 : i32 to index
        %372 = memref.load %arg3[%371] : memref<840xf32, #tpu.memory_space<smem>>
        %373 = vector.broadcast %372 : f32 to vector<5x6xf32>
        %374 = arith.mulf %373, %309 : vector<5x6xf32>
        %375 = arith.addf %298, %374 : vector<5x6xf32>
        %c26_i32_74 = arith.constant 26 : i32
        %376 = arith.addi %28, %c26_i32_74 : i32
        %377 = arith.index_cast %376 : i32 to index
        %378 = memref.load %arg3[%377] : memref<840xf32, #tpu.memory_space<smem>>
        %379 = vector.broadcast %378 : f32 to vector<5x6xf32>
        %380 = arith.mulf %379, %309 : vector<5x6xf32>
        %381 = arith.addf %304, %380 : vector<5x6xf32>
        %c27_i32 = arith.constant 27 : i32
        %382 = arith.addi %25, %c27_i32 : i32
        %383 = arith.index_cast %382 : i32 to index
        %384 = memref.load %arg3[%383] : memref<840xf32, #tpu.memory_space<smem>>
        %385 = vector.broadcast %384 : f32 to vector<5x6xf32>
        %386 = arith.mulf %385, %308 : vector<5x6xf32>
        %387 = arith.addf %375, %386 : vector<5x6xf32>
        %c27_i32_75 = arith.constant 27 : i32
        %388 = arith.addi %28, %c27_i32_75 : i32
        %389 = arith.index_cast %388 : i32 to index
        %390 = memref.load %arg3[%389] : memref<840xf32, #tpu.memory_space<smem>>
        %391 = vector.broadcast %390 : f32 to vector<5x6xf32>
        %392 = arith.mulf %391, %308 : vector<5x6xf32>
        %393 = arith.addf %381, %392 : vector<5x6xf32>
        %c0_i32_76 = arith.constant 0 : i32
        %394 = arith.addi %arg7, %c0_i32_76 : i32
        %c0_77 = arith.constant 0 : index
        %c0_78 = arith.constant 0 : index
        %c0_79 = arith.constant 0 : index
        %395 = arith.index_cast %394 : i32 to index
        %c1_80 = arith.constant 1 : index
        %c0_81 = arith.constant 0 : index
        %396 = vector.load %arg5[%c0_77, %c0_78, %c0_79, %395, %c1_80, %c0_81] : memref<1x1x2x5x6x7xf32, #tpu.memory_space<vmem>>, vector<1x1x1x1x5x7xf32>
        %397 = vector.shape_cast %396 : vector<1x1x1x1x5x7xf32> to vector<5x7xf32>
        %398 = vector.extract_strided_slice %397 {offsets = [0, 0], sizes = [5, 6], strides = [1, 1]} : vector<5x7xf32> to vector<5x6xf32>
        %399 = vector.extract_strided_slice %397 {offsets = [0, 1], sizes = [5, 6], strides = [1, 1]} : vector<5x7xf32> to vector<5x6xf32>
        %c28_i32 = arith.constant 28 : i32
        %400 = arith.addi %25, %c28_i32 : i32
        %401 = arith.index_cast %400 : i32 to index
        %402 = memref.load %arg3[%401] : memref<840xf32, #tpu.memory_space<smem>>
        %403 = vector.broadcast %402 : f32 to vector<5x6xf32>
        %404 = arith.mulf %403, %398 : vector<5x6xf32>
        %405 = arith.addf %315, %404 : vector<5x6xf32>
        %c28_i32_82 = arith.constant 28 : i32
        %406 = arith.addi %28, %c28_i32_82 : i32
        %407 = arith.index_cast %406 : i32 to index
        %408 = memref.load %arg3[%407] : memref<840xf32, #tpu.memory_space<smem>>
        %409 = vector.broadcast %408 : f32 to vector<5x6xf32>
        %410 = arith.mulf %409, %398 : vector<5x6xf32>
        %411 = arith.addf %321, %410 : vector<5x6xf32>
        %c29_i32 = arith.constant 29 : i32
        %412 = arith.addi %25, %c29_i32 : i32
        %413 = arith.index_cast %412 : i32 to index
        %414 = memref.load %arg3[%413] : memref<840xf32, #tpu.memory_space<smem>>
        %415 = vector.broadcast %414 : f32 to vector<5x6xf32>
        %416 = arith.mulf %415, %399 : vector<5x6xf32>
        %417 = arith.addf %339, %416 : vector<5x6xf32>
        %c29_i32_83 = arith.constant 29 : i32
        %418 = arith.addi %28, %c29_i32_83 : i32
        %419 = arith.index_cast %418 : i32 to index
        %420 = memref.load %arg3[%419] : memref<840xf32, #tpu.memory_space<smem>>
        %421 = vector.broadcast %420 : f32 to vector<5x6xf32>
        %422 = arith.mulf %421, %399 : vector<5x6xf32>
        %423 = arith.addf %345, %422 : vector<5x6xf32>
        %c30_i32 = arith.constant 30 : i32
        %424 = arith.addi %25, %c30_i32 : i32
        %425 = arith.index_cast %424 : i32 to index
        %426 = memref.load %arg3[%425] : memref<840xf32, #tpu.memory_space<smem>>
        %427 = vector.broadcast %426 : f32 to vector<5x6xf32>
        %428 = arith.mulf %427, %398 : vector<5x6xf32>
        %429 = arith.addf %417, %428 : vector<5x6xf32>
        %c30_i32_84 = arith.constant 30 : i32
        %430 = arith.addi %28, %c30_i32_84 : i32
        %431 = arith.index_cast %430 : i32 to index
        %432 = memref.load %arg3[%431] : memref<840xf32, #tpu.memory_space<smem>>
        %433 = vector.broadcast %432 : f32 to vector<5x6xf32>
        %434 = arith.mulf %433, %398 : vector<5x6xf32>
        %435 = arith.addf %423, %434 : vector<5x6xf32>
        %c31_i32 = arith.constant 31 : i32
        %436 = arith.addi %25, %c31_i32 : i32
        %437 = arith.index_cast %436 : i32 to index
        %438 = memref.load %arg3[%437] : memref<840xf32, #tpu.memory_space<smem>>
        %439 = vector.broadcast %438 : f32 to vector<5x6xf32>
        %440 = arith.mulf %439, %399 : vector<5x6xf32>
        %441 = arith.addf %363, %440 : vector<5x6xf32>
        %c31_i32_85 = arith.constant 31 : i32
        %442 = arith.addi %28, %c31_i32_85 : i32
        %443 = arith.index_cast %442 : i32 to index
        %444 = memref.load %arg3[%443] : memref<840xf32, #tpu.memory_space<smem>>
        %445 = vector.broadcast %444 : f32 to vector<5x6xf32>
        %446 = arith.mulf %445, %399 : vector<5x6xf32>
        %447 = arith.addf %369, %446 : vector<5x6xf32>
        %c32_i32 = arith.constant 32 : i32
        %448 = arith.addi %25, %c32_i32 : i32
        %449 = arith.index_cast %448 : i32 to index
        %450 = memref.load %arg3[%449] : memref<840xf32, #tpu.memory_space<smem>>
        %451 = vector.broadcast %450 : f32 to vector<5x6xf32>
        %452 = arith.mulf %451, %398 : vector<5x6xf32>
        %453 = arith.addf %441, %452 : vector<5x6xf32>
        %c32_i32_86 = arith.constant 32 : i32
        %454 = arith.addi %28, %c32_i32_86 : i32
        %455 = arith.index_cast %454 : i32 to index
        %456 = memref.load %arg3[%455] : memref<840xf32, #tpu.memory_space<smem>>
        %457 = vector.broadcast %456 : f32 to vector<5x6xf32>
        %458 = arith.mulf %457, %398 : vector<5x6xf32>
        %459 = arith.addf %447, %458 : vector<5x6xf32>
        %c33_i32 = arith.constant 33 : i32
        %460 = arith.addi %25, %c33_i32 : i32
        %461 = arith.index_cast %460 : i32 to index
        %462 = memref.load %arg3[%461] : memref<840xf32, #tpu.memory_space<smem>>
        %463 = vector.broadcast %462 : f32 to vector<5x6xf32>
        %464 = arith.mulf %463, %399 : vector<5x6xf32>
        %465 = arith.addf %387, %464 : vector<5x6xf32>
        %c33_i32_87 = arith.constant 33 : i32
        %466 = arith.addi %28, %c33_i32_87 : i32
        %467 = arith.index_cast %466 : i32 to index
        %468 = memref.load %arg3[%467] : memref<840xf32, #tpu.memory_space<smem>>
        %469 = vector.broadcast %468 : f32 to vector<5x6xf32>
        %470 = arith.mulf %469, %399 : vector<5x6xf32>
        %471 = arith.addf %393, %470 : vector<5x6xf32>
        %c34_i32 = arith.constant 34 : i32
        %472 = arith.addi %25, %c34_i32 : i32
        %473 = arith.index_cast %472 : i32 to index
        %474 = memref.load %arg3[%473] : memref<840xf32, #tpu.memory_space<smem>>
        %475 = vector.broadcast %474 : f32 to vector<5x6xf32>
        %476 = arith.mulf %475, %398 : vector<5x6xf32>
        %477 = arith.addf %465, %476 : vector<5x6xf32>
        %c34_i32_88 = arith.constant 34 : i32
        %478 = arith.addi %28, %c34_i32_88 : i32
        %479 = arith.index_cast %478 : i32 to index
        %480 = memref.load %arg3[%479] : memref<840xf32, #tpu.memory_space<smem>>
        %481 = vector.broadcast %480 : f32 to vector<5x6xf32>
        %482 = arith.mulf %481, %398 : vector<5x6xf32>
        %483 = arith.addf %471, %482 : vector<5x6xf32>
        %c0_89 = arith.constant 0 : index
        %c0_90 = arith.constant 0 : index
        %c1_91 = arith.constant 1 : index
        %484 = arith.index_cast %394 : i32 to index
        %c1_92 = arith.constant 1 : index
        %c0_93 = arith.constant 0 : index
        %485 = vector.load %arg5[%c0_89, %c0_90, %c1_91, %484, %c1_92, %c0_93] : memref<1x1x2x5x6x7xf32, #tpu.memory_space<vmem>>, vector<1x1x1x1x5x7xf32>
        %486 = vector.shape_cast %485 : vector<1x1x1x1x5x7xf32> to vector<5x7xf32>
        %487 = vector.extract_strided_slice %486 {offsets = [0, 0], sizes = [5, 6], strides = [1, 1]} : vector<5x7xf32> to vector<5x6xf32>
        %488 = vector.extract_strided_slice %486 {offsets = [0, 1], sizes = [5, 6], strides = [1, 1]} : vector<5x7xf32> to vector<5x6xf32>
        %c35_i32 = arith.constant 35 : i32
        %489 = arith.addi %25, %c35_i32 : i32
        %490 = arith.index_cast %489 : i32 to index
        %491 = memref.load %arg3[%490] : memref<840xf32, #tpu.memory_space<smem>>
        %492 = vector.broadcast %491 : f32 to vector<5x6xf32>
        %493 = arith.mulf %492, %487 : vector<5x6xf32>
        %494 = arith.addf %405, %493 : vector<5x6xf32>
        %c35_i32_94 = arith.constant 35 : i32
        %495 = arith.addi %28, %c35_i32_94 : i32
        %496 = arith.index_cast %495 : i32 to index
        %497 = memref.load %arg3[%496] : memref<840xf32, #tpu.memory_space<smem>>
        %498 = vector.broadcast %497 : f32 to vector<5x6xf32>
        %499 = arith.mulf %498, %487 : vector<5x6xf32>
        %500 = arith.addf %411, %499 : vector<5x6xf32>
        %c36_i32 = arith.constant 36 : i32
        %501 = arith.addi %25, %c36_i32 : i32
        %502 = arith.index_cast %501 : i32 to index
        %503 = memref.load %arg3[%502] : memref<840xf32, #tpu.memory_space<smem>>
        %504 = vector.broadcast %503 : f32 to vector<5x6xf32>
        %505 = arith.mulf %504, %488 : vector<5x6xf32>
        %506 = arith.addf %429, %505 : vector<5x6xf32>
        %c36_i32_95 = arith.constant 36 : i32
        %507 = arith.addi %28, %c36_i32_95 : i32
        %508 = arith.index_cast %507 : i32 to index
        %509 = memref.load %arg3[%508] : memref<840xf32, #tpu.memory_space<smem>>
        %510 = vector.broadcast %509 : f32 to vector<5x6xf32>
        %511 = arith.mulf %510, %488 : vector<5x6xf32>
        %512 = arith.addf %435, %511 : vector<5x6xf32>
        %c37_i32 = arith.constant 37 : i32
        %513 = arith.addi %25, %c37_i32 : i32
        %514 = arith.index_cast %513 : i32 to index
        %515 = memref.load %arg3[%514] : memref<840xf32, #tpu.memory_space<smem>>
        %516 = vector.broadcast %515 : f32 to vector<5x6xf32>
        %517 = arith.mulf %516, %487 : vector<5x6xf32>
        %518 = arith.addf %506, %517 : vector<5x6xf32>
        %c37_i32_96 = arith.constant 37 : i32
        %519 = arith.addi %28, %c37_i32_96 : i32
        %520 = arith.index_cast %519 : i32 to index
        %521 = memref.load %arg3[%520] : memref<840xf32, #tpu.memory_space<smem>>
        %522 = vector.broadcast %521 : f32 to vector<5x6xf32>
        %523 = arith.mulf %522, %487 : vector<5x6xf32>
        %524 = arith.addf %512, %523 : vector<5x6xf32>
        %c38_i32 = arith.constant 38 : i32
        %525 = arith.addi %25, %c38_i32 : i32
        %526 = arith.index_cast %525 : i32 to index
        %527 = memref.load %arg3[%526] : memref<840xf32, #tpu.memory_space<smem>>
        %528 = vector.broadcast %527 : f32 to vector<5x6xf32>
        %529 = arith.mulf %528, %488 : vector<5x6xf32>
        %530 = arith.addf %453, %529 : vector<5x6xf32>
        %c38_i32_97 = arith.constant 38 : i32
        %531 = arith.addi %28, %c38_i32_97 : i32
        %532 = arith.index_cast %531 : i32 to index
        %533 = memref.load %arg3[%532] : memref<840xf32, #tpu.memory_space<smem>>
        %534 = vector.broadcast %533 : f32 to vector<5x6xf32>
        %535 = arith.mulf %534, %488 : vector<5x6xf32>
        %536 = arith.addf %459, %535 : vector<5x6xf32>
        %c39_i32 = arith.constant 39 : i32
        %537 = arith.addi %25, %c39_i32 : i32
        %538 = arith.index_cast %537 : i32 to index
        %539 = memref.load %arg3[%538] : memref<840xf32, #tpu.memory_space<smem>>
        %540 = vector.broadcast %539 : f32 to vector<5x6xf32>
        %541 = arith.mulf %540, %487 : vector<5x6xf32>
        %542 = arith.addf %530, %541 : vector<5x6xf32>
        %c39_i32_98 = arith.constant 39 : i32
        %543 = arith.addi %28, %c39_i32_98 : i32
        %544 = arith.index_cast %543 : i32 to index
        %545 = memref.load %arg3[%544] : memref<840xf32, #tpu.memory_space<smem>>
        %546 = vector.broadcast %545 : f32 to vector<5x6xf32>
        %547 = arith.mulf %546, %487 : vector<5x6xf32>
        %548 = arith.addf %536, %547 : vector<5x6xf32>
        %c40_i32 = arith.constant 40 : i32
        %549 = arith.addi %25, %c40_i32 : i32
        %550 = arith.index_cast %549 : i32 to index
        %551 = memref.load %arg3[%550] : memref<840xf32, #tpu.memory_space<smem>>
        %552 = vector.broadcast %551 : f32 to vector<5x6xf32>
        %553 = arith.mulf %552, %488 : vector<5x6xf32>
        %554 = arith.addf %477, %553 : vector<5x6xf32>
        %c40_i32_99 = arith.constant 40 : i32
        %555 = arith.addi %28, %c40_i32_99 : i32
        %556 = arith.index_cast %555 : i32 to index
        %557 = memref.load %arg3[%556] : memref<840xf32, #tpu.memory_space<smem>>
        %558 = vector.broadcast %557 : f32 to vector<5x6xf32>
        %559 = arith.mulf %558, %488 : vector<5x6xf32>
        %560 = arith.addf %483, %559 : vector<5x6xf32>
        %c41_i32 = arith.constant 41 : i32
        %561 = arith.addi %25, %c41_i32 : i32
        %562 = arith.index_cast %561 : i32 to index
        %563 = memref.load %arg3[%562] : memref<840xf32, #tpu.memory_space<smem>>
        %564 = vector.broadcast %563 : f32 to vector<5x6xf32>
        %565 = arith.mulf %564, %487 : vector<5x6xf32>
        %566 = arith.addf %554, %565 : vector<5x6xf32>
        %c41_i32_100 = arith.constant 41 : i32
        %567 = arith.addi %28, %c41_i32_100 : i32
        %568 = arith.index_cast %567 : i32 to index
        %569 = memref.load %arg3[%568] : memref<840xf32, #tpu.memory_space<smem>>
        %570 = vector.broadcast %569 : f32 to vector<5x6xf32>
        %571 = arith.mulf %570, %487 : vector<5x6xf32>
        %572 = arith.addf %560, %571 : vector<5x6xf32>
        %c0_101 = arith.constant 0 : index
        %c0_102 = arith.constant 0 : index
        %c0_103 = arith.constant 0 : index
        %573 = arith.index_cast %394 : i32 to index
        %c0_104 = arith.constant 0 : index
        %c0_105 = arith.constant 0 : index
        %574 = vector.load %arg5[%c0_101, %c0_102, %c0_103, %573, %c0_104, %c0_105] : memref<1x1x2x5x6x7xf32, #tpu.memory_space<vmem>>, vector<1x1x1x1x5x7xf32>
        %575 = vector.shape_cast %574 : vector<1x1x1x1x5x7xf32> to vector<5x7xf32>
        %576 = vector.extract_strided_slice %575 {offsets = [0, 0], sizes = [5, 6], strides = [1, 1]} : vector<5x7xf32> to vector<5x6xf32>
        %577 = vector.extract_strided_slice %575 {offsets = [0, 1], sizes = [5, 6], strides = [1, 1]} : vector<5x7xf32> to vector<5x6xf32>
        %c42_i32 = arith.constant 42 : i32
        %578 = arith.addi %25, %c42_i32 : i32
        %579 = arith.index_cast %578 : i32 to index
        %580 = memref.load %arg3[%579] : memref<840xf32, #tpu.memory_space<smem>>
        %581 = vector.broadcast %580 : f32 to vector<5x6xf32>
        %582 = arith.mulf %581, %576 : vector<5x6xf32>
        %583 = arith.addf %494, %582 : vector<5x6xf32>
        %c42_i32_106 = arith.constant 42 : i32
        %584 = arith.addi %28, %c42_i32_106 : i32
        %585 = arith.index_cast %584 : i32 to index
        %586 = memref.load %arg3[%585] : memref<840xf32, #tpu.memory_space<smem>>
        %587 = vector.broadcast %586 : f32 to vector<5x6xf32>
        %588 = arith.mulf %587, %576 : vector<5x6xf32>
        %589 = arith.addf %500, %588 : vector<5x6xf32>
        %c43_i32 = arith.constant 43 : i32
        %590 = arith.addi %25, %c43_i32 : i32
        %591 = arith.index_cast %590 : i32 to index
        %592 = memref.load %arg3[%591] : memref<840xf32, #tpu.memory_space<smem>>
        %593 = vector.broadcast %592 : f32 to vector<5x6xf32>
        %594 = arith.mulf %593, %577 : vector<5x6xf32>
        %595 = arith.addf %518, %594 : vector<5x6xf32>
        %c43_i32_107 = arith.constant 43 : i32
        %596 = arith.addi %28, %c43_i32_107 : i32
        %597 = arith.index_cast %596 : i32 to index
        %598 = memref.load %arg3[%597] : memref<840xf32, #tpu.memory_space<smem>>
        %599 = vector.broadcast %598 : f32 to vector<5x6xf32>
        %600 = arith.mulf %599, %577 : vector<5x6xf32>
        %601 = arith.addf %524, %600 : vector<5x6xf32>
        %c44_i32 = arith.constant 44 : i32
        %602 = arith.addi %25, %c44_i32 : i32
        %603 = arith.index_cast %602 : i32 to index
        %604 = memref.load %arg3[%603] : memref<840xf32, #tpu.memory_space<smem>>
        %605 = vector.broadcast %604 : f32 to vector<5x6xf32>
        %606 = arith.mulf %605, %576 : vector<5x6xf32>
        %607 = arith.addf %595, %606 : vector<5x6xf32>
        %c44_i32_108 = arith.constant 44 : i32
        %608 = arith.addi %28, %c44_i32_108 : i32
        %609 = arith.index_cast %608 : i32 to index
        %610 = memref.load %arg3[%609] : memref<840xf32, #tpu.memory_space<smem>>
        %611 = vector.broadcast %610 : f32 to vector<5x6xf32>
        %612 = arith.mulf %611, %576 : vector<5x6xf32>
        %613 = arith.addf %601, %612 : vector<5x6xf32>
        %c45_i32 = arith.constant 45 : i32
        %614 = arith.addi %25, %c45_i32 : i32
        %615 = arith.index_cast %614 : i32 to index
        %616 = memref.load %arg3[%615] : memref<840xf32, #tpu.memory_space<smem>>
        %617 = vector.broadcast %616 : f32 to vector<5x6xf32>
        %618 = arith.mulf %617, %577 : vector<5x6xf32>
        %619 = arith.addf %542, %618 : vector<5x6xf32>
        %c45_i32_109 = arith.constant 45 : i32
        %620 = arith.addi %28, %c45_i32_109 : i32
        %621 = arith.index_cast %620 : i32 to index
        %622 = memref.load %arg3[%621] : memref<840xf32, #tpu.memory_space<smem>>
        %623 = vector.broadcast %622 : f32 to vector<5x6xf32>
        %624 = arith.mulf %623, %577 : vector<5x6xf32>
        %625 = arith.addf %548, %624 : vector<5x6xf32>
        %c46_i32 = arith.constant 46 : i32
        %626 = arith.addi %25, %c46_i32 : i32
        %627 = arith.index_cast %626 : i32 to index
        %628 = memref.load %arg3[%627] : memref<840xf32, #tpu.memory_space<smem>>
        %629 = vector.broadcast %628 : f32 to vector<5x6xf32>
        %630 = arith.mulf %629, %576 : vector<5x6xf32>
        %631 = arith.addf %619, %630 : vector<5x6xf32>
        %c46_i32_110 = arith.constant 46 : i32
        %632 = arith.addi %28, %c46_i32_110 : i32
        %633 = arith.index_cast %632 : i32 to index
        %634 = memref.load %arg3[%633] : memref<840xf32, #tpu.memory_space<smem>>
        %635 = vector.broadcast %634 : f32 to vector<5x6xf32>
        %636 = arith.mulf %635, %576 : vector<5x6xf32>
        %637 = arith.addf %625, %636 : vector<5x6xf32>
        %c47_i32 = arith.constant 47 : i32
        %638 = arith.addi %25, %c47_i32 : i32
        %639 = arith.index_cast %638 : i32 to index
        %640 = memref.load %arg3[%639] : memref<840xf32, #tpu.memory_space<smem>>
        %641 = vector.broadcast %640 : f32 to vector<5x6xf32>
        %642 = arith.mulf %641, %577 : vector<5x6xf32>
        %643 = arith.addf %566, %642 : vector<5x6xf32>
        %c47_i32_111 = arith.constant 47 : i32
        %644 = arith.addi %28, %c47_i32_111 : i32
        %645 = arith.index_cast %644 : i32 to index
        %646 = memref.load %arg3[%645] : memref<840xf32, #tpu.memory_space<smem>>
        %647 = vector.broadcast %646 : f32 to vector<5x6xf32>
        %648 = arith.mulf %647, %577 : vector<5x6xf32>
        %649 = arith.addf %572, %648 : vector<5x6xf32>
        %c48_i32 = arith.constant 48 : i32
        %650 = arith.addi %25, %c48_i32 : i32
        %651 = arith.index_cast %650 : i32 to index
        %652 = memref.load %arg3[%651] : memref<840xf32, #tpu.memory_space<smem>>
        %653 = vector.broadcast %652 : f32 to vector<5x6xf32>
        %654 = arith.mulf %653, %576 : vector<5x6xf32>
        %655 = arith.addf %643, %654 : vector<5x6xf32>
        %c48_i32_112 = arith.constant 48 : i32
        %656 = arith.addi %28, %c48_i32_112 : i32
        %657 = arith.index_cast %656 : i32 to index
        %658 = memref.load %arg3[%657] : memref<840xf32, #tpu.memory_space<smem>>
        %659 = vector.broadcast %658 : f32 to vector<5x6xf32>
        %660 = arith.mulf %659, %576 : vector<5x6xf32>
        %661 = arith.addf %649, %660 : vector<5x6xf32>
        %c0_113 = arith.constant 0 : index
        %c0_114 = arith.constant 0 : index
        %c1_115 = arith.constant 1 : index
        %662 = arith.index_cast %394 : i32 to index
        %c0_116 = arith.constant 0 : index
        %c0_117 = arith.constant 0 : index
        %663 = vector.load %arg5[%c0_113, %c0_114, %c1_115, %662, %c0_116, %c0_117] : memref<1x1x2x5x6x7xf32, #tpu.memory_space<vmem>>, vector<1x1x1x1x5x7xf32>
        %664 = vector.shape_cast %663 : vector<1x1x1x1x5x7xf32> to vector<5x7xf32>
        %665 = vector.extract_strided_slice %664 {offsets = [0, 0], sizes = [5, 6], strides = [1, 1]} : vector<5x7xf32> to vector<5x6xf32>
        %666 = vector.extract_strided_slice %664 {offsets = [0, 1], sizes = [5, 6], strides = [1, 1]} : vector<5x7xf32> to vector<5x6xf32>
        %c49_i32 = arith.constant 49 : i32
        %667 = arith.addi %25, %c49_i32 : i32
        %668 = arith.index_cast %667 : i32 to index
        %669 = memref.load %arg3[%668] : memref<840xf32, #tpu.memory_space<smem>>
        %670 = vector.broadcast %669 : f32 to vector<5x6xf32>
        %671 = arith.mulf %670, %665 : vector<5x6xf32>
        %672 = arith.addf %583, %671 : vector<5x6xf32>
        %c49_i32_118 = arith.constant 49 : i32
        %673 = arith.addi %28, %c49_i32_118 : i32
        %674 = arith.index_cast %673 : i32 to index
        %675 = memref.load %arg3[%674] : memref<840xf32, #tpu.memory_space<smem>>
        %676 = vector.broadcast %675 : f32 to vector<5x6xf32>
        %677 = arith.mulf %676, %665 : vector<5x6xf32>
        %678 = arith.addf %589, %677 : vector<5x6xf32>
        %c50_i32 = arith.constant 50 : i32
        %679 = arith.addi %25, %c50_i32 : i32
        %680 = arith.index_cast %679 : i32 to index
        %681 = memref.load %arg3[%680] : memref<840xf32, #tpu.memory_space<smem>>
        %682 = vector.broadcast %681 : f32 to vector<5x6xf32>
        %683 = arith.mulf %682, %666 : vector<5x6xf32>
        %684 = arith.addf %607, %683 : vector<5x6xf32>
        %c50_i32_119 = arith.constant 50 : i32
        %685 = arith.addi %28, %c50_i32_119 : i32
        %686 = arith.index_cast %685 : i32 to index
        %687 = memref.load %arg3[%686] : memref<840xf32, #tpu.memory_space<smem>>
        %688 = vector.broadcast %687 : f32 to vector<5x6xf32>
        %689 = arith.mulf %688, %666 : vector<5x6xf32>
        %690 = arith.addf %613, %689 : vector<5x6xf32>
        %c51_i32 = arith.constant 51 : i32
        %691 = arith.addi %25, %c51_i32 : i32
        %692 = arith.index_cast %691 : i32 to index
        %693 = memref.load %arg3[%692] : memref<840xf32, #tpu.memory_space<smem>>
        %694 = vector.broadcast %693 : f32 to vector<5x6xf32>
        %695 = arith.mulf %694, %665 : vector<5x6xf32>
        %696 = arith.addf %684, %695 : vector<5x6xf32>
        %c51_i32_120 = arith.constant 51 : i32
        %697 = arith.addi %28, %c51_i32_120 : i32
        %698 = arith.index_cast %697 : i32 to index
        %699 = memref.load %arg3[%698] : memref<840xf32, #tpu.memory_space<smem>>
        %700 = vector.broadcast %699 : f32 to vector<5x6xf32>
        %701 = arith.mulf %700, %665 : vector<5x6xf32>
        %702 = arith.addf %690, %701 : vector<5x6xf32>
        %c52_i32 = arith.constant 52 : i32
        %703 = arith.addi %25, %c52_i32 : i32
        %704 = arith.index_cast %703 : i32 to index
        %705 = memref.load %arg3[%704] : memref<840xf32, #tpu.memory_space<smem>>
        %706 = vector.broadcast %705 : f32 to vector<5x6xf32>
        %707 = arith.mulf %706, %666 : vector<5x6xf32>
        %708 = arith.addf %631, %707 : vector<5x6xf32>
        %c52_i32_121 = arith.constant 52 : i32
        %709 = arith.addi %28, %c52_i32_121 : i32
        %710 = arith.index_cast %709 : i32 to index
        %711 = memref.load %arg3[%710] : memref<840xf32, #tpu.memory_space<smem>>
        %712 = vector.broadcast %711 : f32 to vector<5x6xf32>
        %713 = arith.mulf %712, %666 : vector<5x6xf32>
        %714 = arith.addf %637, %713 : vector<5x6xf32>
        %c53_i32 = arith.constant 53 : i32
        %715 = arith.addi %25, %c53_i32 : i32
        %716 = arith.index_cast %715 : i32 to index
        %717 = memref.load %arg3[%716] : memref<840xf32, #tpu.memory_space<smem>>
        %718 = vector.broadcast %717 : f32 to vector<5x6xf32>
        %719 = arith.mulf %718, %665 : vector<5x6xf32>
        %720 = arith.addf %708, %719 : vector<5x6xf32>
        %c53_i32_122 = arith.constant 53 : i32
        %721 = arith.addi %28, %c53_i32_122 : i32
        %722 = arith.index_cast %721 : i32 to index
        %723 = memref.load %arg3[%722] : memref<840xf32, #tpu.memory_space<smem>>
        %724 = vector.broadcast %723 : f32 to vector<5x6xf32>
        %725 = arith.mulf %724, %665 : vector<5x6xf32>
        %726 = arith.addf %714, %725 : vector<5x6xf32>
        %c54_i32 = arith.constant 54 : i32
        %727 = arith.addi %25, %c54_i32 : i32
        %728 = arith.index_cast %727 : i32 to index
        %729 = memref.load %arg3[%728] : memref<840xf32, #tpu.memory_space<smem>>
        %730 = vector.broadcast %729 : f32 to vector<5x6xf32>
        %731 = arith.mulf %730, %666 : vector<5x6xf32>
        %732 = arith.addf %655, %731 : vector<5x6xf32>
        %c54_i32_123 = arith.constant 54 : i32
        %733 = arith.addi %28, %c54_i32_123 : i32
        %734 = arith.index_cast %733 : i32 to index
        %735 = memref.load %arg3[%734] : memref<840xf32, #tpu.memory_space<smem>>
        %736 = vector.broadcast %735 : f32 to vector<5x6xf32>
        %737 = arith.mulf %736, %666 : vector<5x6xf32>
        %738 = arith.addf %661, %737 : vector<5x6xf32>
        %c55_i32 = arith.constant 55 : i32
        %739 = arith.addi %25, %c55_i32 : i32
        %740 = arith.index_cast %739 : i32 to index
        %741 = memref.load %arg3[%740] : memref<840xf32, #tpu.memory_space<smem>>
        %742 = vector.broadcast %741 : f32 to vector<5x6xf32>
        %743 = arith.mulf %742, %665 : vector<5x6xf32>
        %744 = arith.addf %732, %743 : vector<5x6xf32>
        %c55_i32_124 = arith.constant 55 : i32
        %745 = arith.addi %28, %c55_i32_124 : i32
        %746 = arith.index_cast %745 : i32 to index
        %747 = memref.load %arg3[%746] : memref<840xf32, #tpu.memory_space<smem>>
        %748 = vector.broadcast %747 : f32 to vector<5x6xf32>
        %749 = arith.mulf %748, %665 : vector<5x6xf32>
        %750 = arith.addf %738, %749 : vector<5x6xf32>
        %751 = tpu.concatenate %672, %696, %720, %744 in 1 : vector<5x6xf32>, vector<5x6xf32>, vector<5x6xf32>, vector<5x6xf32> -> vector<5x24xf32>
        %752 = arith.addi %0, %22 : i32
        %c0_i32_125 = arith.constant 0 : i32
        %753 = arith.addi %752, %c0_i32_125 : i32
        %754 = arith.index_cast %753 : i32 to index
        %755 = memref.load %arg4[%754] : memref<4xf32, #tpu.memory_space<smem>>
        %756 = vector.broadcast %755 : f32 to vector<5x24xf32>
        %757 = arith.addf %751, %756 : vector<5x24xf32>
        %c0_i32_126 = arith.constant 0 : i32
        %758 = arith.addi %22, %c0_i32_126 : i32
        %c0_127 = arith.constant 0 : index
        %c0_128 = arith.constant 0 : index
        %c0_129 = arith.constant 0 : index
        %759 = arith.index_cast %758 : i32 to index
        %760 = arith.index_cast %arg7 : i32 to index
        %c0_130 = arith.constant 0 : index
        %c0_131 = arith.constant 0 : index
        %761 = vector.load %arg6[%c0_127, %c0_128, %c0_129, %759, %760, %c0_130, %c0_131] : memref<1x1x1x2x4x5x24xf32, #tpu.memory_space<vmem>>, vector<1x1x1x1x1x5x24xf32>
        %762 = vector.shape_cast %761 : vector<1x1x1x1x1x5x24xf32> to vector<5x24xf32>
        %763 = vector.shape_cast %757 : vector<5x24xf32> to vector<1x1x1x1x1x5x24xf32>
        tpu.vector_store %arg6[%c0_127, %c0_128, %c0_129, %759, %760, %c0_130, %c0_131], %763 {strides = array<i32>} : memref<1x1x1x2x4x5x24xf32, #tpu.memory_space<vmem>>, vector<1x1x1x1x1x5x24xf32>,
        %764 = tpu.concatenate %678, %702, %726, %750 in 1 : vector<5x6xf32>, vector<5x6xf32>, vector<5x6xf32>, vector<5x6xf32> -> vector<5x24xf32>
        %765 = arith.addi %0, %22 : i32
        %c1_i32_132 = arith.constant 1 : i32
        %766 = arith.addi %765, %c1_i32_132 : i32
        %767 = arith.index_cast %766 : i32 to index
        %768 = memref.load %arg4[%767] : memref<4xf32, #tpu.memory_space<smem>>
        %769 = vector.broadcast %768 : f32 to vector<5x24xf32>
        %770 = arith.addf %764, %769 : vector<5x24xf32>
        %c1_i32_133 = arith.constant 1 : i32
        %771 = arith.addi %22, %c1_i32_133 : i32
        %c0_134 = arith.constant 0 : index
        %c0_135 = arith.constant 0 : index
        %c0_136 = arith.constant 0 : index
        %772 = arith.index_cast %771 : i32 to index
        %773 = arith.index_cast %arg7 : i32 to index
        %c0_137 = arith.constant 0 : index
        %c0_138 = arith.constant 0 : index
        %774 = vector.load %arg6[%c0_134, %c0_135, %c0_136, %772, %773, %c0_137, %c0_138] : memref<1x1x1x2x4x5x24xf32, #tpu.memory_space<vmem>>, vector<1x1x1x1x1x5x24xf32>
        %775 = vector.shape_cast %774 : vector<1x1x1x1x1x5x24xf32> to vector<5x24xf32>
        %776 = vector.shape_cast %770 : vector<5x24xf32> to vector<1x1x1x1x1x5x24xf32>
        tpu.vector_store %arg6[%c0_134, %c0_135, %c0_136, %772, %773, %c0_137, %c0_138], %776 {strides = array<i32>} : memref<1x1x1x2x4x5x24xf32, #tpu.memory_space<vmem>>, vector<1x1x1x1x1x5x24xf32>,
        %c1_i32_139 = arith.constant 1 : i32
      }
      %c4_i32_10 = arith.constant 4 : i32
    } else {
    }
    %c5_i32 = arith.constant 5 : i32
    %16 = arith.cmpi eq, %arg2, %c5_i32 : i32
    %17 = arith.extui %16 : i1 to i32
    %c0_i32_6 = arith.constant 0 : i32
    %18 = arith.cmpi ne, %17, %c0_i32_6 : i32
    scf.if %18 {
      %c112_i32 = arith.constant 112 : i32
      %19 = arith.muli %arg1, %c112_i32 : i32
      %c616_i32 = arith.constant 616 : i32
      %20 = arith.addi %c616_i32, %19 : i32
      %c0_i32_7 = arith.constant 0 : i32
      %c4_i32_8 = arith.constant 4 : i32
      %21 = arith.addi %c0_i32_7, %c4_i32_8 : i32
      %c1_i32_9 = arith.constant 1 : i32
      scf.for %arg7 = %c0_i32_7 to %21 step %c1_i32_9  : i32 {
        %c0_i32_11 = arith.constant 0 : i32
        %c2_i32_12 = arith.constant 2 : i32
        %22 = arith.muli %c0_i32_11, %c2_i32_12 : i32
        %c0_i32_13 = arith.constant 0 : i32
        %23 = arith.addi %22, %c0_i32_13 : i32
        %c56_i32 = arith.constant 56 : i32
        %24 = arith.muli %23, %c56_i32 : i32
        %25 = arith.addi %20, %24 : i32
        %c1_i32_14 = arith.constant 1 : i32
        %26 = arith.addi %22, %c1_i32_14 : i32
        %c56_i32_15 = arith.constant 56 : i32
        %27 = arith.muli %26, %c56_i32_15 : i32
        %28 = arith.addi %20, %27 : i32
        %cst = arith.constant 0.000000e+00 : f32
        %29 = vector.broadcast %cst : f32 to vector<5x6xf32>
        %cst_16 = arith.constant 0.000000e+00 : f32
        %30 = vector.broadcast %cst_16 : f32 to vector<5x6xf32>
        %cst_17 = arith.constant 0.000000e+00 : f32
        %31 = vector.broadcast %cst_17 : f32 to vector<5x6xf32>
        %cst_18 = arith.constant 0.000000e+00 : f32
        %32 = vector.broadcast %cst_18 : f32 to vector<5x6xf32>
        %cst_19 = arith.constant 0.000000e+00 : f32
        %33 = vector.broadcast %cst_19 : f32 to vector<5x6xf32>
        %cst_20 = arith.constant 0.000000e+00 : f32
        %34 = vector.broadcast %cst_20 : f32 to vector<5x6xf32>
        %cst_21 = arith.constant 0.000000e+00 : f32
        %35 = vector.broadcast %cst_21 : f32 to vector<5x6xf32>
        %cst_22 = arith.constant 0.000000e+00 : f32
        %36 = vector.broadcast %cst_22 : f32 to vector<5x6xf32>
        %c1_i32_23 = arith.constant 1 : i32
        %37 = arith.addi %arg7, %c1_i32_23 : i32
        %c0 = arith.constant 0 : index
        %c0_24 = arith.constant 0 : index
        %c0_25 = arith.constant 0 : index
        %38 = arith.index_cast %37 : i32 to index
        %c1 = arith.constant 1 : index
        %c0_26 = arith.constant 0 : index
        %39 = vector.load %arg5[%c0, %c0_24, %c0_25, %38, %c1, %c0_26] : memref<1x1x2x5x6x7xf32, #tpu.memory_space<vmem>>, vector<1x1x1x1x5x7xf32>
        %40 = vector.shape_cast %39 : vector<1x1x1x1x5x7xf32> to vector<5x7xf32>
        %41 = vector.extract_strided_slice %40 {offsets = [0, 0], sizes = [5, 6], strides = [1, 1]} : vector<5x7xf32> to vector<5x6xf32>
        %42 = vector.extract_strided_slice %40 {offsets = [0, 1], sizes = [5, 6], strides = [1, 1]} : vector<5x7xf32> to vector<5x6xf32>
        %c0_i32_27 = arith.constant 0 : i32
        %43 = arith.addi %25, %c0_i32_27 : i32
        %44 = arith.index_cast %43 : i32 to index
        %45 = memref.load %arg3[%44] : memref<840xf32, #tpu.memory_space<smem>>
        %46 = vector.broadcast %45 : f32 to vector<5x6xf32>
        %47 = arith.mulf %46, %41 : vector<5x6xf32>
        %48 = arith.addf %29, %47 : vector<5x6xf32>
        %c0_i32_28 = arith.constant 0 : i32
        %49 = arith.addi %28, %c0_i32_28 : i32
        %50 = arith.index_cast %49 : i32 to index
        %51 = memref.load %arg3[%50] : memref<840xf32, #tpu.memory_space<smem>>
        %52 = vector.broadcast %51 : f32 to vector<5x6xf32>
        %53 = arith.mulf %52, %41 : vector<5x6xf32>
        %54 = arith.addf %33, %53 : vector<5x6xf32>
        %c1_i32_29 = arith.constant 1 : i32
        %55 = arith.addi %25, %c1_i32_29 : i32
        %56 = arith.index_cast %55 : i32 to index
        %57 = memref.load %arg3[%56] : memref<840xf32, #tpu.memory_space<smem>>
        %58 = vector.broadcast %57 : f32 to vector<5x6xf32>
        %59 = arith.mulf %58, %42 : vector<5x6xf32>
        %60 = arith.addf %30, %59 : vector<5x6xf32>
        %c1_i32_30 = arith.constant 1 : i32
        %61 = arith.addi %28, %c1_i32_30 : i32
        %62 = arith.index_cast %61 : i32 to index
        %63 = memref.load %arg3[%62] : memref<840xf32, #tpu.memory_space<smem>>
        %64 = vector.broadcast %63 : f32 to vector<5x6xf32>
        %65 = arith.mulf %64, %42 : vector<5x6xf32>
        %66 = arith.addf %34, %65 : vector<5x6xf32>
        %c2_i32_31 = arith.constant 2 : i32
        %67 = arith.addi %25, %c2_i32_31 : i32
        %68 = arith.index_cast %67 : i32 to index
        %69 = memref.load %arg3[%68] : memref<840xf32, #tpu.memory_space<smem>>
        %70 = vector.broadcast %69 : f32 to vector<5x6xf32>
        %71 = arith.mulf %70, %41 : vector<5x6xf32>
        %72 = arith.addf %60, %71 : vector<5x6xf32>
        %c2_i32_32 = arith.constant 2 : i32
        %73 = arith.addi %28, %c2_i32_32 : i32
        %74 = arith.index_cast %73 : i32 to index
        %75 = memref.load %arg3[%74] : memref<840xf32, #tpu.memory_space<smem>>
        %76 = vector.broadcast %75 : f32 to vector<5x6xf32>
        %77 = arith.mulf %76, %41 : vector<5x6xf32>
        %78 = arith.addf %66, %77 : vector<5x6xf32>
        %c3_i32_33 = arith.constant 3 : i32
        %79 = arith.addi %25, %c3_i32_33 : i32
        %80 = arith.index_cast %79 : i32 to index
        %81 = memref.load %arg3[%80] : memref<840xf32, #tpu.memory_space<smem>>
        %82 = vector.broadcast %81 : f32 to vector<5x6xf32>
        %83 = arith.mulf %82, %42 : vector<5x6xf32>
        %84 = arith.addf %31, %83 : vector<5x6xf32>
        %c3_i32_34 = arith.constant 3 : i32
        %85 = arith.addi %28, %c3_i32_34 : i32
        %86 = arith.index_cast %85 : i32 to index
        %87 = memref.load %arg3[%86] : memref<840xf32, #tpu.memory_space<smem>>
        %88 = vector.broadcast %87 : f32 to vector<5x6xf32>
        %89 = arith.mulf %88, %42 : vector<5x6xf32>
        %90 = arith.addf %35, %89 : vector<5x6xf32>
        %c4_i32_35 = arith.constant 4 : i32
        %91 = arith.addi %25, %c4_i32_35 : i32
        %92 = arith.index_cast %91 : i32 to index
        %93 = memref.load %arg3[%92] : memref<840xf32, #tpu.memory_space<smem>>
        %94 = vector.broadcast %93 : f32 to vector<5x6xf32>
        %95 = arith.mulf %94, %41 : vector<5x6xf32>
        %96 = arith.addf %84, %95 : vector<5x6xf32>
        %c4_i32_36 = arith.constant 4 : i32
        %97 = arith.addi %28, %c4_i32_36 : i32
        %98 = arith.index_cast %97 : i32 to index
        %99 = memref.load %arg3[%98] : memref<840xf32, #tpu.memory_space<smem>>
        %100 = vector.broadcast %99 : f32 to vector<5x6xf32>
        %101 = arith.mulf %100, %41 : vector<5x6xf32>
        %102 = arith.addf %90, %101 : vector<5x6xf32>
        %c5_i32_37 = arith.constant 5 : i32
        %103 = arith.addi %25, %c5_i32_37 : i32
        %104 = arith.index_cast %103 : i32 to index
        %105 = memref.load %arg3[%104] : memref<840xf32, #tpu.memory_space<smem>>
        %106 = vector.broadcast %105 : f32 to vector<5x6xf32>
        %107 = arith.mulf %106, %42 : vector<5x6xf32>
        %108 = arith.addf %32, %107 : vector<5x6xf32>
        %c5_i32_38 = arith.constant 5 : i32
        %109 = arith.addi %28, %c5_i32_38 : i32
        %110 = arith.index_cast %109 : i32 to index
        %111 = memref.load %arg3[%110] : memref<840xf32, #tpu.memory_space<smem>>
        %112 = vector.broadcast %111 : f32 to vector<5x6xf32>
        %113 = arith.mulf %112, %42 : vector<5x6xf32>
        %114 = arith.addf %36, %113 : vector<5x6xf32>
        %c6_i32 = arith.constant 6 : i32
        %115 = arith.addi %25, %c6_i32 : i32
        %116 = arith.index_cast %115 : i32 to index
        %117 = memref.load %arg3[%116] : memref<840xf32, #tpu.memory_space<smem>>
        %118 = vector.broadcast %117 : f32 to vector<5x6xf32>
        %119 = arith.mulf %118, %41 : vector<5x6xf32>
        %120 = arith.addf %108, %119 : vector<5x6xf32>
        %c6_i32_39 = arith.constant 6 : i32
        %121 = arith.addi %28, %c6_i32_39 : i32
        %122 = arith.index_cast %121 : i32 to index
        %123 = memref.load %arg3[%122] : memref<840xf32, #tpu.memory_space<smem>>
        %124 = vector.broadcast %123 : f32 to vector<5x6xf32>
        %125 = arith.mulf %124, %41 : vector<5x6xf32>
        %126 = arith.addf %114, %125 : vector<5x6xf32>
        %c0_40 = arith.constant 0 : index
        %c0_41 = arith.constant 0 : index
        %c1_42 = arith.constant 1 : index
        %127 = arith.index_cast %37 : i32 to index
        %c1_43 = arith.constant 1 : index
        %c0_44 = arith.constant 0 : index
        %128 = vector.load %arg5[%c0_40, %c0_41, %c1_42, %127, %c1_43, %c0_44] : memref<1x1x2x5x6x7xf32, #tpu.memory_space<vmem>>, vector<1x1x1x1x5x7xf32>
        %129 = vector.shape_cast %128 : vector<1x1x1x1x5x7xf32> to vector<5x7xf32>
        %130 = vector.extract_strided_slice %129 {offsets = [0, 0], sizes = [5, 6], strides = [1, 1]} : vector<5x7xf32> to vector<5x6xf32>
        %131 = vector.extract_strided_slice %129 {offsets = [0, 1], sizes = [5, 6], strides = [1, 1]} : vector<5x7xf32> to vector<5x6xf32>
        %c7_i32 = arith.constant 7 : i32
        %132 = arith.addi %25, %c7_i32 : i32
        %133 = arith.index_cast %132 : i32 to index
        %134 = memref.load %arg3[%133] : memref<840xf32, #tpu.memory_space<smem>>
        %135 = vector.broadcast %134 : f32 to vector<5x6xf32>
        %136 = arith.mulf %135, %130 : vector<5x6xf32>
        %137 = arith.addf %48, %136 : vector<5x6xf32>
        %c7_i32_45 = arith.constant 7 : i32
        %138 = arith.addi %28, %c7_i32_45 : i32
        %139 = arith.index_cast %138 : i32 to index
        %140 = memref.load %arg3[%139] : memref<840xf32, #tpu.memory_space<smem>>
        %141 = vector.broadcast %140 : f32 to vector<5x6xf32>
        %142 = arith.mulf %141, %130 : vector<5x6xf32>
        %143 = arith.addf %54, %142 : vector<5x6xf32>
        %c8_i32 = arith.constant 8 : i32
        %144 = arith.addi %25, %c8_i32 : i32
        %145 = arith.index_cast %144 : i32 to index
        %146 = memref.load %arg3[%145] : memref<840xf32, #tpu.memory_space<smem>>
        %147 = vector.broadcast %146 : f32 to vector<5x6xf32>
        %148 = arith.mulf %147, %131 : vector<5x6xf32>
        %149 = arith.addf %72, %148 : vector<5x6xf32>
        %c8_i32_46 = arith.constant 8 : i32
        %150 = arith.addi %28, %c8_i32_46 : i32
        %151 = arith.index_cast %150 : i32 to index
        %152 = memref.load %arg3[%151] : memref<840xf32, #tpu.memory_space<smem>>
        %153 = vector.broadcast %152 : f32 to vector<5x6xf32>
        %154 = arith.mulf %153, %131 : vector<5x6xf32>
        %155 = arith.addf %78, %154 : vector<5x6xf32>
        %c9_i32 = arith.constant 9 : i32
        %156 = arith.addi %25, %c9_i32 : i32
        %157 = arith.index_cast %156 : i32 to index
        %158 = memref.load %arg3[%157] : memref<840xf32, #tpu.memory_space<smem>>
        %159 = vector.broadcast %158 : f32 to vector<5x6xf32>
        %160 = arith.mulf %159, %130 : vector<5x6xf32>
        %161 = arith.addf %149, %160 : vector<5x6xf32>
        %c9_i32_47 = arith.constant 9 : i32
        %162 = arith.addi %28, %c9_i32_47 : i32
        %163 = arith.index_cast %162 : i32 to index
        %164 = memref.load %arg3[%163] : memref<840xf32, #tpu.memory_space<smem>>
        %165 = vector.broadcast %164 : f32 to vector<5x6xf32>
        %166 = arith.mulf %165, %130 : vector<5x6xf32>
        %167 = arith.addf %155, %166 : vector<5x6xf32>
        %c10_i32 = arith.constant 10 : i32
        %168 = arith.addi %25, %c10_i32 : i32
        %169 = arith.index_cast %168 : i32 to index
        %170 = memref.load %arg3[%169] : memref<840xf32, #tpu.memory_space<smem>>
        %171 = vector.broadcast %170 : f32 to vector<5x6xf32>
        %172 = arith.mulf %171, %131 : vector<5x6xf32>
        %173 = arith.addf %96, %172 : vector<5x6xf32>
        %c10_i32_48 = arith.constant 10 : i32
        %174 = arith.addi %28, %c10_i32_48 : i32
        %175 = arith.index_cast %174 : i32 to index
        %176 = memref.load %arg3[%175] : memref<840xf32, #tpu.memory_space<smem>>
        %177 = vector.broadcast %176 : f32 to vector<5x6xf32>
        %178 = arith.mulf %177, %131 : vector<5x6xf32>
        %179 = arith.addf %102, %178 : vector<5x6xf32>
        %c11_i32 = arith.constant 11 : i32
        %180 = arith.addi %25, %c11_i32 : i32
        %181 = arith.index_cast %180 : i32 to index
        %182 = memref.load %arg3[%181] : memref<840xf32, #tpu.memory_space<smem>>
        %183 = vector.broadcast %182 : f32 to vector<5x6xf32>
        %184 = arith.mulf %183, %130 : vector<5x6xf32>
        %185 = arith.addf %173, %184 : vector<5x6xf32>
        %c11_i32_49 = arith.constant 11 : i32
        %186 = arith.addi %28, %c11_i32_49 : i32
        %187 = arith.index_cast %186 : i32 to index
        %188 = memref.load %arg3[%187] : memref<840xf32, #tpu.memory_space<smem>>
        %189 = vector.broadcast %188 : f32 to vector<5x6xf32>
        %190 = arith.mulf %189, %130 : vector<5x6xf32>
        %191 = arith.addf %179, %190 : vector<5x6xf32>
        %c12_i32 = arith.constant 12 : i32
        %192 = arith.addi %25, %c12_i32 : i32
        %193 = arith.index_cast %192 : i32 to index
        %194 = memref.load %arg3[%193] : memref<840xf32, #tpu.memory_space<smem>>
        %195 = vector.broadcast %194 : f32 to vector<5x6xf32>
        %196 = arith.mulf %195, %131 : vector<5x6xf32>
        %197 = arith.addf %120, %196 : vector<5x6xf32>
        %c12_i32_50 = arith.constant 12 : i32
        %198 = arith.addi %28, %c12_i32_50 : i32
        %199 = arith.index_cast %198 : i32 to index
        %200 = memref.load %arg3[%199] : memref<840xf32, #tpu.memory_space<smem>>
        %201 = vector.broadcast %200 : f32 to vector<5x6xf32>
        %202 = arith.mulf %201, %131 : vector<5x6xf32>
        %203 = arith.addf %126, %202 : vector<5x6xf32>
        %c13_i32 = arith.constant 13 : i32
        %204 = arith.addi %25, %c13_i32 : i32
        %205 = arith.index_cast %204 : i32 to index
        %206 = memref.load %arg3[%205] : memref<840xf32, #tpu.memory_space<smem>>
        %207 = vector.broadcast %206 : f32 to vector<5x6xf32>
        %208 = arith.mulf %207, %130 : vector<5x6xf32>
        %209 = arith.addf %197, %208 : vector<5x6xf32>
        %c13_i32_51 = arith.constant 13 : i32
        %210 = arith.addi %28, %c13_i32_51 : i32
        %211 = arith.index_cast %210 : i32 to index
        %212 = memref.load %arg3[%211] : memref<840xf32, #tpu.memory_space<smem>>
        %213 = vector.broadcast %212 : f32 to vector<5x6xf32>
        %214 = arith.mulf %213, %130 : vector<5x6xf32>
        %215 = arith.addf %203, %214 : vector<5x6xf32>
        %c0_52 = arith.constant 0 : index
        %c0_53 = arith.constant 0 : index
        %c0_54 = arith.constant 0 : index
        %216 = arith.index_cast %37 : i32 to index
        %c0_55 = arith.constant 0 : index
        %c0_56 = arith.constant 0 : index
        %217 = vector.load %arg5[%c0_52, %c0_53, %c0_54, %216, %c0_55, %c0_56] : memref<1x1x2x5x6x7xf32, #tpu.memory_space<vmem>>, vector<1x1x1x1x5x7xf32>
        %218 = vector.shape_cast %217 : vector<1x1x1x1x5x7xf32> to vector<5x7xf32>
        %219 = vector.extract_strided_slice %218 {offsets = [0, 0], sizes = [5, 6], strides = [1, 1]} : vector<5x7xf32> to vector<5x6xf32>
        %220 = vector.extract_strided_slice %218 {offsets = [0, 1], sizes = [5, 6], strides = [1, 1]} : vector<5x7xf32> to vector<5x6xf32>
        %c14_i32 = arith.constant 14 : i32
        %221 = arith.addi %25, %c14_i32 : i32
        %222 = arith.index_cast %221 : i32 to index
        %223 = memref.load %arg3[%222] : memref<840xf32, #tpu.memory_space<smem>>
        %224 = vector.broadcast %223 : f32 to vector<5x6xf32>
        %225 = arith.mulf %224, %219 : vector<5x6xf32>
        %226 = arith.addf %137, %225 : vector<5x6xf32>
        %c14_i32_57 = arith.constant 14 : i32
        %227 = arith.addi %28, %c14_i32_57 : i32
        %228 = arith.index_cast %227 : i32 to index
        %229 = memref.load %arg3[%228] : memref<840xf32, #tpu.memory_space<smem>>
        %230 = vector.broadcast %229 : f32 to vector<5x6xf32>
        %231 = arith.mulf %230, %219 : vector<5x6xf32>
        %232 = arith.addf %143, %231 : vector<5x6xf32>
        %c15_i32 = arith.constant 15 : i32
        %233 = arith.addi %25, %c15_i32 : i32
        %234 = arith.index_cast %233 : i32 to index
        %235 = memref.load %arg3[%234] : memref<840xf32, #tpu.memory_space<smem>>
        %236 = vector.broadcast %235 : f32 to vector<5x6xf32>
        %237 = arith.mulf %236, %220 : vector<5x6xf32>
        %238 = arith.addf %161, %237 : vector<5x6xf32>
        %c15_i32_58 = arith.constant 15 : i32
        %239 = arith.addi %28, %c15_i32_58 : i32
        %240 = arith.index_cast %239 : i32 to index
        %241 = memref.load %arg3[%240] : memref<840xf32, #tpu.memory_space<smem>>
        %242 = vector.broadcast %241 : f32 to vector<5x6xf32>
        %243 = arith.mulf %242, %220 : vector<5x6xf32>
        %244 = arith.addf %167, %243 : vector<5x6xf32>
        %c16_i32 = arith.constant 16 : i32
        %245 = arith.addi %25, %c16_i32 : i32
        %246 = arith.index_cast %245 : i32 to index
        %247 = memref.load %arg3[%246] : memref<840xf32, #tpu.memory_space<smem>>
        %248 = vector.broadcast %247 : f32 to vector<5x6xf32>
        %249 = arith.mulf %248, %219 : vector<5x6xf32>
        %250 = arith.addf %238, %249 : vector<5x6xf32>
        %c16_i32_59 = arith.constant 16 : i32
        %251 = arith.addi %28, %c16_i32_59 : i32
        %252 = arith.index_cast %251 : i32 to index
        %253 = memref.load %arg3[%252] : memref<840xf32, #tpu.memory_space<smem>>
        %254 = vector.broadcast %253 : f32 to vector<5x6xf32>
        %255 = arith.mulf %254, %219 : vector<5x6xf32>
        %256 = arith.addf %244, %255 : vector<5x6xf32>
        %c17_i32 = arith.constant 17 : i32
        %257 = arith.addi %25, %c17_i32 : i32
        %258 = arith.index_cast %257 : i32 to index
        %259 = memref.load %arg3[%258] : memref<840xf32, #tpu.memory_space<smem>>
        %260 = vector.broadcast %259 : f32 to vector<5x6xf32>
        %261 = arith.mulf %260, %220 : vector<5x6xf32>
        %262 = arith.addf %185, %261 : vector<5x6xf32>
        %c17_i32_60 = arith.constant 17 : i32
        %263 = arith.addi %28, %c17_i32_60 : i32
        %264 = arith.index_cast %263 : i32 to index
        %265 = memref.load %arg3[%264] : memref<840xf32, #tpu.memory_space<smem>>
        %266 = vector.broadcast %265 : f32 to vector<5x6xf32>
        %267 = arith.mulf %266, %220 : vector<5x6xf32>
        %268 = arith.addf %191, %267 : vector<5x6xf32>
        %c18_i32 = arith.constant 18 : i32
        %269 = arith.addi %25, %c18_i32 : i32
        %270 = arith.index_cast %269 : i32 to index
        %271 = memref.load %arg3[%270] : memref<840xf32, #tpu.memory_space<smem>>
        %272 = vector.broadcast %271 : f32 to vector<5x6xf32>
        %273 = arith.mulf %272, %219 : vector<5x6xf32>
        %274 = arith.addf %262, %273 : vector<5x6xf32>
        %c18_i32_61 = arith.constant 18 : i32
        %275 = arith.addi %28, %c18_i32_61 : i32
        %276 = arith.index_cast %275 : i32 to index
        %277 = memref.load %arg3[%276] : memref<840xf32, #tpu.memory_space<smem>>
        %278 = vector.broadcast %277 : f32 to vector<5x6xf32>
        %279 = arith.mulf %278, %219 : vector<5x6xf32>
        %280 = arith.addf %268, %279 : vector<5x6xf32>
        %c19_i32 = arith.constant 19 : i32
        %281 = arith.addi %25, %c19_i32 : i32
        %282 = arith.index_cast %281 : i32 to index
        %283 = memref.load %arg3[%282] : memref<840xf32, #tpu.memory_space<smem>>
        %284 = vector.broadcast %283 : f32 to vector<5x6xf32>
        %285 = arith.mulf %284, %220 : vector<5x6xf32>
        %286 = arith.addf %209, %285 : vector<5x6xf32>
        %c19_i32_62 = arith.constant 19 : i32
        %287 = arith.addi %28, %c19_i32_62 : i32
        %288 = arith.index_cast %287 : i32 to index
        %289 = memref.load %arg3[%288] : memref<840xf32, #tpu.memory_space<smem>>
        %290 = vector.broadcast %289 : f32 to vector<5x6xf32>
        %291 = arith.mulf %290, %220 : vector<5x6xf32>
        %292 = arith.addf %215, %291 : vector<5x6xf32>
        %c20_i32 = arith.constant 20 : i32
        %293 = arith.addi %25, %c20_i32 : i32
        %294 = arith.index_cast %293 : i32 to index
        %295 = memref.load %arg3[%294] : memref<840xf32, #tpu.memory_space<smem>>
        %296 = vector.broadcast %295 : f32 to vector<5x6xf32>
        %297 = arith.mulf %296, %219 : vector<5x6xf32>
        %298 = arith.addf %286, %297 : vector<5x6xf32>
        %c20_i32_63 = arith.constant 20 : i32
        %299 = arith.addi %28, %c20_i32_63 : i32
        %300 = arith.index_cast %299 : i32 to index
        %301 = memref.load %arg3[%300] : memref<840xf32, #tpu.memory_space<smem>>
        %302 = vector.broadcast %301 : f32 to vector<5x6xf32>
        %303 = arith.mulf %302, %219 : vector<5x6xf32>
        %304 = arith.addf %292, %303 : vector<5x6xf32>
        %c0_64 = arith.constant 0 : index
        %c0_65 = arith.constant 0 : index
        %c1_66 = arith.constant 1 : index
        %305 = arith.index_cast %37 : i32 to index
        %c0_67 = arith.constant 0 : index
        %c0_68 = arith.constant 0 : index
        %306 = vector.load %arg5[%c0_64, %c0_65, %c1_66, %305, %c0_67, %c0_68] : memref<1x1x2x5x6x7xf32, #tpu.memory_space<vmem>>, vector<1x1x1x1x5x7xf32>
        %307 = vector.shape_cast %306 : vector<1x1x1x1x5x7xf32> to vector<5x7xf32>
        %308 = vector.extract_strided_slice %307 {offsets = [0, 0], sizes = [5, 6], strides = [1, 1]} : vector<5x7xf32> to vector<5x6xf32>
        %309 = vector.extract_strided_slice %307 {offsets = [0, 1], sizes = [5, 6], strides = [1, 1]} : vector<5x7xf32> to vector<5x6xf32>
        %c21_i32 = arith.constant 21 : i32
        %310 = arith.addi %25, %c21_i32 : i32
        %311 = arith.index_cast %310 : i32 to index
        %312 = memref.load %arg3[%311] : memref<840xf32, #tpu.memory_space<smem>>
        %313 = vector.broadcast %312 : f32 to vector<5x6xf32>
        %314 = arith.mulf %313, %308 : vector<5x6xf32>
        %315 = arith.addf %226, %314 : vector<5x6xf32>
        %c21_i32_69 = arith.constant 21 : i32
        %316 = arith.addi %28, %c21_i32_69 : i32
        %317 = arith.index_cast %316 : i32 to index
        %318 = memref.load %arg3[%317] : memref<840xf32, #tpu.memory_space<smem>>
        %319 = vector.broadcast %318 : f32 to vector<5x6xf32>
        %320 = arith.mulf %319, %308 : vector<5x6xf32>
        %321 = arith.addf %232, %320 : vector<5x6xf32>
        %c22_i32 = arith.constant 22 : i32
        %322 = arith.addi %25, %c22_i32 : i32
        %323 = arith.index_cast %322 : i32 to index
        %324 = memref.load %arg3[%323] : memref<840xf32, #tpu.memory_space<smem>>
        %325 = vector.broadcast %324 : f32 to vector<5x6xf32>
        %326 = arith.mulf %325, %309 : vector<5x6xf32>
        %327 = arith.addf %250, %326 : vector<5x6xf32>
        %c22_i32_70 = arith.constant 22 : i32
        %328 = arith.addi %28, %c22_i32_70 : i32
        %329 = arith.index_cast %328 : i32 to index
        %330 = memref.load %arg3[%329] : memref<840xf32, #tpu.memory_space<smem>>
        %331 = vector.broadcast %330 : f32 to vector<5x6xf32>
        %332 = arith.mulf %331, %309 : vector<5x6xf32>
        %333 = arith.addf %256, %332 : vector<5x6xf32>
        %c23_i32 = arith.constant 23 : i32
        %334 = arith.addi %25, %c23_i32 : i32
        %335 = arith.index_cast %334 : i32 to index
        %336 = memref.load %arg3[%335] : memref<840xf32, #tpu.memory_space<smem>>
        %337 = vector.broadcast %336 : f32 to vector<5x6xf32>
        %338 = arith.mulf %337, %308 : vector<5x6xf32>
        %339 = arith.addf %327, %338 : vector<5x6xf32>
        %c23_i32_71 = arith.constant 23 : i32
        %340 = arith.addi %28, %c23_i32_71 : i32
        %341 = arith.index_cast %340 : i32 to index
        %342 = memref.load %arg3[%341] : memref<840xf32, #tpu.memory_space<smem>>
        %343 = vector.broadcast %342 : f32 to vector<5x6xf32>
        %344 = arith.mulf %343, %308 : vector<5x6xf32>
        %345 = arith.addf %333, %344 : vector<5x6xf32>
        %c24_i32 = arith.constant 24 : i32
        %346 = arith.addi %25, %c24_i32 : i32
        %347 = arith.index_cast %346 : i32 to index
        %348 = memref.load %arg3[%347] : memref<840xf32, #tpu.memory_space<smem>>
        %349 = vector.broadcast %348 : f32 to vector<5x6xf32>
        %350 = arith.mulf %349, %309 : vector<5x6xf32>
        %351 = arith.addf %274, %350 : vector<5x6xf32>
        %c24_i32_72 = arith.constant 24 : i32
        %352 = arith.addi %28, %c24_i32_72 : i32
        %353 = arith.index_cast %352 : i32 to index
        %354 = memref.load %arg3[%353] : memref<840xf32, #tpu.memory_space<smem>>
        %355 = vector.broadcast %354 : f32 to vector<5x6xf32>
        %356 = arith.mulf %355, %309 : vector<5x6xf32>
        %357 = arith.addf %280, %356 : vector<5x6xf32>
        %c25_i32 = arith.constant 25 : i32
        %358 = arith.addi %25, %c25_i32 : i32
        %359 = arith.index_cast %358 : i32 to index
        %360 = memref.load %arg3[%359] : memref<840xf32, #tpu.memory_space<smem>>
        %361 = vector.broadcast %360 : f32 to vector<5x6xf32>
        %362 = arith.mulf %361, %308 : vector<5x6xf32>
        %363 = arith.addf %351, %362 : vector<5x6xf32>
        %c25_i32_73 = arith.constant 25 : i32
        %364 = arith.addi %28, %c25_i32_73 : i32
        %365 = arith.index_cast %364 : i32 to index
        %366 = memref.load %arg3[%365] : memref<840xf32, #tpu.memory_space<smem>>
        %367 = vector.broadcast %366 : f32 to vector<5x6xf32>
        %368 = arith.mulf %367, %308 : vector<5x6xf32>
        %369 = arith.addf %357, %368 : vector<5x6xf32>
        %c26_i32 = arith.constant 26 : i32
        %370 = arith.addi %25, %c26_i32 : i32
        %371 = arith.index_cast %370 : i32 to index
        %372 = memref.load %arg3[%371] : memref<840xf32, #tpu.memory_space<smem>>
        %373 = vector.broadcast %372 : f32 to vector<5x6xf32>
        %374 = arith.mulf %373, %309 : vector<5x6xf32>
        %375 = arith.addf %298, %374 : vector<5x6xf32>
        %c26_i32_74 = arith.constant 26 : i32
        %376 = arith.addi %28, %c26_i32_74 : i32
        %377 = arith.index_cast %376 : i32 to index
        %378 = memref.load %arg3[%377] : memref<840xf32, #tpu.memory_space<smem>>
        %379 = vector.broadcast %378 : f32 to vector<5x6xf32>
        %380 = arith.mulf %379, %309 : vector<5x6xf32>
        %381 = arith.addf %304, %380 : vector<5x6xf32>
        %c27_i32 = arith.constant 27 : i32
        %382 = arith.addi %25, %c27_i32 : i32
        %383 = arith.index_cast %382 : i32 to index
        %384 = memref.load %arg3[%383] : memref<840xf32, #tpu.memory_space<smem>>
        %385 = vector.broadcast %384 : f32 to vector<5x6xf32>
        %386 = arith.mulf %385, %308 : vector<5x6xf32>
        %387 = arith.addf %375, %386 : vector<5x6xf32>
        %c27_i32_75 = arith.constant 27 : i32
        %388 = arith.addi %28, %c27_i32_75 : i32
        %389 = arith.index_cast %388 : i32 to index
        %390 = memref.load %arg3[%389] : memref<840xf32, #tpu.memory_space<smem>>
        %391 = vector.broadcast %390 : f32 to vector<5x6xf32>
        %392 = arith.mulf %391, %308 : vector<5x6xf32>
        %393 = arith.addf %381, %392 : vector<5x6xf32>
        %c0_i32_76 = arith.constant 0 : i32
        %394 = arith.addi %arg7, %c0_i32_76 : i32
        %c0_77 = arith.constant 0 : index
        %c0_78 = arith.constant 0 : index
        %c0_79 = arith.constant 0 : index
        %395 = arith.index_cast %394 : i32 to index
        %c1_80 = arith.constant 1 : index
        %c0_81 = arith.constant 0 : index
        %396 = vector.load %arg5[%c0_77, %c0_78, %c0_79, %395, %c1_80, %c0_81] : memref<1x1x2x5x6x7xf32, #tpu.memory_space<vmem>>, vector<1x1x1x1x5x7xf32>
        %397 = vector.shape_cast %396 : vector<1x1x1x1x5x7xf32> to vector<5x7xf32>
        %398 = vector.extract_strided_slice %397 {offsets = [0, 0], sizes = [5, 6], strides = [1, 1]} : vector<5x7xf32> to vector<5x6xf32>
        %399 = vector.extract_strided_slice %397 {offsets = [0, 1], sizes = [5, 6], strides = [1, 1]} : vector<5x7xf32> to vector<5x6xf32>
        %c28_i32 = arith.constant 28 : i32
        %400 = arith.addi %25, %c28_i32 : i32
        %401 = arith.index_cast %400 : i32 to index
        %402 = memref.load %arg3[%401] : memref<840xf32, #tpu.memory_space<smem>>
        %403 = vector.broadcast %402 : f32 to vector<5x6xf32>
        %404 = arith.mulf %403, %398 : vector<5x6xf32>
        %405 = arith.addf %315, %404 : vector<5x6xf32>
        %c28_i32_82 = arith.constant 28 : i32
        %406 = arith.addi %28, %c28_i32_82 : i32
        %407 = arith.index_cast %406 : i32 to index
        %408 = memref.load %arg3[%407] : memref<840xf32, #tpu.memory_space<smem>>
        %409 = vector.broadcast %408 : f32 to vector<5x6xf32>
        %410 = arith.mulf %409, %398 : vector<5x6xf32>
        %411 = arith.addf %321, %410 : vector<5x6xf32>
        %c29_i32 = arith.constant 29 : i32
        %412 = arith.addi %25, %c29_i32 : i32
        %413 = arith.index_cast %412 : i32 to index
        %414 = memref.load %arg3[%413] : memref<840xf32, #tpu.memory_space<smem>>
        %415 = vector.broadcast %414 : f32 to vector<5x6xf32>
        %416 = arith.mulf %415, %399 : vector<5x6xf32>
        %417 = arith.addf %339, %416 : vector<5x6xf32>
        %c29_i32_83 = arith.constant 29 : i32
        %418 = arith.addi %28, %c29_i32_83 : i32
        %419 = arith.index_cast %418 : i32 to index
        %420 = memref.load %arg3[%419] : memref<840xf32, #tpu.memory_space<smem>>
        %421 = vector.broadcast %420 : f32 to vector<5x6xf32>
        %422 = arith.mulf %421, %399 : vector<5x6xf32>
        %423 = arith.addf %345, %422 : vector<5x6xf32>
        %c30_i32 = arith.constant 30 : i32
        %424 = arith.addi %25, %c30_i32 : i32
        %425 = arith.index_cast %424 : i32 to index
        %426 = memref.load %arg3[%425] : memref<840xf32, #tpu.memory_space<smem>>
        %427 = vector.broadcast %426 : f32 to vector<5x6xf32>
        %428 = arith.mulf %427, %398 : vector<5x6xf32>
        %429 = arith.addf %417, %428 : vector<5x6xf32>
        %c30_i32_84 = arith.constant 30 : i32
        %430 = arith.addi %28, %c30_i32_84 : i32
        %431 = arith.index_cast %430 : i32 to index
        %432 = memref.load %arg3[%431] : memref<840xf32, #tpu.memory_space<smem>>
        %433 = vector.broadcast %432 : f32 to vector<5x6xf32>
        %434 = arith.mulf %433, %398 : vector<5x6xf32>
        %435 = arith.addf %423, %434 : vector<5x6xf32>
        %c31_i32 = arith.constant 31 : i32
        %436 = arith.addi %25, %c31_i32 : i32
        %437 = arith.index_cast %436 : i32 to index
        %438 = memref.load %arg3[%437] : memref<840xf32, #tpu.memory_space<smem>>
        %439 = vector.broadcast %438 : f32 to vector<5x6xf32>
        %440 = arith.mulf %439, %399 : vector<5x6xf32>
        %441 = arith.addf %363, %440 : vector<5x6xf32>
        %c31_i32_85 = arith.constant 31 : i32
        %442 = arith.addi %28, %c31_i32_85 : i32
        %443 = arith.index_cast %442 : i32 to index
        %444 = memref.load %arg3[%443] : memref<840xf32, #tpu.memory_space<smem>>
        %445 = vector.broadcast %444 : f32 to vector<5x6xf32>
        %446 = arith.mulf %445, %399 : vector<5x6xf32>
        %447 = arith.addf %369, %446 : vector<5x6xf32>
        %c32_i32 = arith.constant 32 : i32
        %448 = arith.addi %25, %c32_i32 : i32
        %449 = arith.index_cast %448 : i32 to index
        %450 = memref.load %arg3[%449] : memref<840xf32, #tpu.memory_space<smem>>
        %451 = vector.broadcast %450 : f32 to vector<5x6xf32>
        %452 = arith.mulf %451, %398 : vector<5x6xf32>
        %453 = arith.addf %441, %452 : vector<5x6xf32>
        %c32_i32_86 = arith.constant 32 : i32
        %454 = arith.addi %28, %c32_i32_86 : i32
        %455 = arith.index_cast %454 : i32 to index
        %456 = memref.load %arg3[%455] : memref<840xf32, #tpu.memory_space<smem>>
        %457 = vector.broadcast %456 : f32 to vector<5x6xf32>
        %458 = arith.mulf %457, %398 : vector<5x6xf32>
        %459 = arith.addf %447, %458 : vector<5x6xf32>
        %c33_i32 = arith.constant 33 : i32
        %460 = arith.addi %25, %c33_i32 : i32
        %461 = arith.index_cast %460 : i32 to index
        %462 = memref.load %arg3[%461] : memref<840xf32, #tpu.memory_space<smem>>
        %463 = vector.broadcast %462 : f32 to vector<5x6xf32>
        %464 = arith.mulf %463, %399 : vector<5x6xf32>
        %465 = arith.addf %387, %464 : vector<5x6xf32>
        %c33_i32_87 = arith.constant 33 : i32
        %466 = arith.addi %28, %c33_i32_87 : i32
        %467 = arith.index_cast %466 : i32 to index
        %468 = memref.load %arg3[%467] : memref<840xf32, #tpu.memory_space<smem>>
        %469 = vector.broadcast %468 : f32 to vector<5x6xf32>
        %470 = arith.mulf %469, %399 : vector<5x6xf32>
        %471 = arith.addf %393, %470 : vector<5x6xf32>
        %c34_i32 = arith.constant 34 : i32
        %472 = arith.addi %25, %c34_i32 : i32
        %473 = arith.index_cast %472 : i32 to index
        %474 = memref.load %arg3[%473] : memref<840xf32, #tpu.memory_space<smem>>
        %475 = vector.broadcast %474 : f32 to vector<5x6xf32>
        %476 = arith.mulf %475, %398 : vector<5x6xf32>
        %477 = arith.addf %465, %476 : vector<5x6xf32>
        %c34_i32_88 = arith.constant 34 : i32
        %478 = arith.addi %28, %c34_i32_88 : i32
        %479 = arith.index_cast %478 : i32 to index
        %480 = memref.load %arg3[%479] : memref<840xf32, #tpu.memory_space<smem>>
        %481 = vector.broadcast %480 : f32 to vector<5x6xf32>
        %482 = arith.mulf %481, %398 : vector<5x6xf32>
        %483 = arith.addf %471, %482 : vector<5x6xf32>
        %c0_89 = arith.constant 0 : index
        %c0_90 = arith.constant 0 : index
        %c1_91 = arith.constant 1 : index
        %484 = arith.index_cast %394 : i32 to index
        %c1_92 = arith.constant 1 : index
        %c0_93 = arith.constant 0 : index
        %485 = vector.load %arg5[%c0_89, %c0_90, %c1_91, %484, %c1_92, %c0_93] : memref<1x1x2x5x6x7xf32, #tpu.memory_space<vmem>>, vector<1x1x1x1x5x7xf32>
        %486 = vector.shape_cast %485 : vector<1x1x1x1x5x7xf32> to vector<5x7xf32>
        %487 = vector.extract_strided_slice %486 {offsets = [0, 0], sizes = [5, 6], strides = [1, 1]} : vector<5x7xf32> to vector<5x6xf32>
        %488 = vector.extract_strided_slice %486 {offsets = [0, 1], sizes = [5, 6], strides = [1, 1]} : vector<5x7xf32> to vector<5x6xf32>
        %c35_i32 = arith.constant 35 : i32
        %489 = arith.addi %25, %c35_i32 : i32
        %490 = arith.index_cast %489 : i32 to index
        %491 = memref.load %arg3[%490] : memref<840xf32, #tpu.memory_space<smem>>
        %492 = vector.broadcast %491 : f32 to vector<5x6xf32>
        %493 = arith.mulf %492, %487 : vector<5x6xf32>
        %494 = arith.addf %405, %493 : vector<5x6xf32>
        %c35_i32_94 = arith.constant 35 : i32
        %495 = arith.addi %28, %c35_i32_94 : i32
        %496 = arith.index_cast %495 : i32 to index
        %497 = memref.load %arg3[%496] : memref<840xf32, #tpu.memory_space<smem>>
        %498 = vector.broadcast %497 : f32 to vector<5x6xf32>
        %499 = arith.mulf %498, %487 : vector<5x6xf32>
        %500 = arith.addf %411, %499 : vector<5x6xf32>
        %c36_i32 = arith.constant 36 : i32
        %501 = arith.addi %25, %c36_i32 : i32
        %502 = arith.index_cast %501 : i32 to index
        %503 = memref.load %arg3[%502] : memref<840xf32, #tpu.memory_space<smem>>
        %504 = vector.broadcast %503 : f32 to vector<5x6xf32>
        %505 = arith.mulf %504, %488 : vector<5x6xf32>
        %506 = arith.addf %429, %505 : vector<5x6xf32>
        %c36_i32_95 = arith.constant 36 : i32
        %507 = arith.addi %28, %c36_i32_95 : i32
        %508 = arith.index_cast %507 : i32 to index
        %509 = memref.load %arg3[%508] : memref<840xf32, #tpu.memory_space<smem>>
        %510 = vector.broadcast %509 : f32 to vector<5x6xf32>
        %511 = arith.mulf %510, %488 : vector<5x6xf32>
        %512 = arith.addf %435, %511 : vector<5x6xf32>
        %c37_i32 = arith.constant 37 : i32
        %513 = arith.addi %25, %c37_i32 : i32
        %514 = arith.index_cast %513 : i32 to index
        %515 = memref.load %arg3[%514] : memref<840xf32, #tpu.memory_space<smem>>
        %516 = vector.broadcast %515 : f32 to vector<5x6xf32>
        %517 = arith.mulf %516, %487 : vector<5x6xf32>
        %518 = arith.addf %506, %517 : vector<5x6xf32>
        %c37_i32_96 = arith.constant 37 : i32
        %519 = arith.addi %28, %c37_i32_96 : i32
        %520 = arith.index_cast %519 : i32 to index
        %521 = memref.load %arg3[%520] : memref<840xf32, #tpu.memory_space<smem>>
        %522 = vector.broadcast %521 : f32 to vector<5x6xf32>
        %523 = arith.mulf %522, %487 : vector<5x6xf32>
        %524 = arith.addf %512, %523 : vector<5x6xf32>
        %c38_i32 = arith.constant 38 : i32
        %525 = arith.addi %25, %c38_i32 : i32
        %526 = arith.index_cast %525 : i32 to index
        %527 = memref.load %arg3[%526] : memref<840xf32, #tpu.memory_space<smem>>
        %528 = vector.broadcast %527 : f32 to vector<5x6xf32>
        %529 = arith.mulf %528, %488 : vector<5x6xf32>
        %530 = arith.addf %453, %529 : vector<5x6xf32>
        %c38_i32_97 = arith.constant 38 : i32
        %531 = arith.addi %28, %c38_i32_97 : i32
        %532 = arith.index_cast %531 : i32 to index
        %533 = memref.load %arg3[%532] : memref<840xf32, #tpu.memory_space<smem>>
        %534 = vector.broadcast %533 : f32 to vector<5x6xf32>
        %535 = arith.mulf %534, %488 : vector<5x6xf32>
        %536 = arith.addf %459, %535 : vector<5x6xf32>
        %c39_i32 = arith.constant 39 : i32
        %537 = arith.addi %25, %c39_i32 : i32
        %538 = arith.index_cast %537 : i32 to index
        %539 = memref.load %arg3[%538] : memref<840xf32, #tpu.memory_space<smem>>
        %540 = vector.broadcast %539 : f32 to vector<5x6xf32>
        %541 = arith.mulf %540, %487 : vector<5x6xf32>
        %542 = arith.addf %530, %541 : vector<5x6xf32>
        %c39_i32_98 = arith.constant 39 : i32
        %543 = arith.addi %28, %c39_i32_98 : i32
        %544 = arith.index_cast %543 : i32 to index
        %545 = memref.load %arg3[%544] : memref<840xf32, #tpu.memory_space<smem>>
        %546 = vector.broadcast %545 : f32 to vector<5x6xf32>
        %547 = arith.mulf %546, %487 : vector<5x6xf32>
        %548 = arith.addf %536, %547 : vector<5x6xf32>
        %c40_i32 = arith.constant 40 : i32
        %549 = arith.addi %25, %c40_i32 : i32
        %550 = arith.index_cast %549 : i32 to index
        %551 = memref.load %arg3[%550] : memref<840xf32, #tpu.memory_space<smem>>
        %552 = vector.broadcast %551 : f32 to vector<5x6xf32>
        %553 = arith.mulf %552, %488 : vector<5x6xf32>
        %554 = arith.addf %477, %553 : vector<5x6xf32>
        %c40_i32_99 = arith.constant 40 : i32
        %555 = arith.addi %28, %c40_i32_99 : i32
        %556 = arith.index_cast %555 : i32 to index
        %557 = memref.load %arg3[%556] : memref<840xf32, #tpu.memory_space<smem>>
        %558 = vector.broadcast %557 : f32 to vector<5x6xf32>
        %559 = arith.mulf %558, %488 : vector<5x6xf32>
        %560 = arith.addf %483, %559 : vector<5x6xf32>
        %c41_i32 = arith.constant 41 : i32
        %561 = arith.addi %25, %c41_i32 : i32
        %562 = arith.index_cast %561 : i32 to index
        %563 = memref.load %arg3[%562] : memref<840xf32, #tpu.memory_space<smem>>
        %564 = vector.broadcast %563 : f32 to vector<5x6xf32>
        %565 = arith.mulf %564, %487 : vector<5x6xf32>
        %566 = arith.addf %554, %565 : vector<5x6xf32>
        %c41_i32_100 = arith.constant 41 : i32
        %567 = arith.addi %28, %c41_i32_100 : i32
        %568 = arith.index_cast %567 : i32 to index
        %569 = memref.load %arg3[%568] : memref<840xf32, #tpu.memory_space<smem>>
        %570 = vector.broadcast %569 : f32 to vector<5x6xf32>
        %571 = arith.mulf %570, %487 : vector<5x6xf32>
        %572 = arith.addf %560, %571 : vector<5x6xf32>
        %c0_101 = arith.constant 0 : index
        %c0_102 = arith.constant 0 : index
        %c0_103 = arith.constant 0 : index
        %573 = arith.index_cast %394 : i32 to index
        %c0_104 = arith.constant 0 : index
        %c0_105 = arith.constant 0 : index
        %574 = vector.load %arg5[%c0_101, %c0_102, %c0_103, %573, %c0_104, %c0_105] : memref<1x1x2x5x6x7xf32, #tpu.memory_space<vmem>>, vector<1x1x1x1x5x7xf32>
        %575 = vector.shape_cast %574 : vector<1x1x1x1x5x7xf32> to vector<5x7xf32>
        %576 = vector.extract_strided_slice %575 {offsets = [0, 0], sizes = [5, 6], strides = [1, 1]} : vector<5x7xf32> to vector<5x6xf32>
        %577 = vector.extract_strided_slice %575 {offsets = [0, 1], sizes = [5, 6], strides = [1, 1]} : vector<5x7xf32> to vector<5x6xf32>
        %c42_i32 = arith.constant 42 : i32
        %578 = arith.addi %25, %c42_i32 : i32
        %579 = arith.index_cast %578 : i32 to index
        %580 = memref.load %arg3[%579] : memref<840xf32, #tpu.memory_space<smem>>
        %581 = vector.broadcast %580 : f32 to vector<5x6xf32>
        %582 = arith.mulf %581, %576 : vector<5x6xf32>
        %583 = arith.addf %494, %582 : vector<5x6xf32>
        %c42_i32_106 = arith.constant 42 : i32
        %584 = arith.addi %28, %c42_i32_106 : i32
        %585 = arith.index_cast %584 : i32 to index
        %586 = memref.load %arg3[%585] : memref<840xf32, #tpu.memory_space<smem>>
        %587 = vector.broadcast %586 : f32 to vector<5x6xf32>
        %588 = arith.mulf %587, %576 : vector<5x6xf32>
        %589 = arith.addf %500, %588 : vector<5x6xf32>
        %c43_i32 = arith.constant 43 : i32
        %590 = arith.addi %25, %c43_i32 : i32
        %591 = arith.index_cast %590 : i32 to index
        %592 = memref.load %arg3[%591] : memref<840xf32, #tpu.memory_space<smem>>
        %593 = vector.broadcast %592 : f32 to vector<5x6xf32>
        %594 = arith.mulf %593, %577 : vector<5x6xf32>
        %595 = arith.addf %518, %594 : vector<5x6xf32>
        %c43_i32_107 = arith.constant 43 : i32
        %596 = arith.addi %28, %c43_i32_107 : i32
        %597 = arith.index_cast %596 : i32 to index
        %598 = memref.load %arg3[%597] : memref<840xf32, #tpu.memory_space<smem>>
        %599 = vector.broadcast %598 : f32 to vector<5x6xf32>
        %600 = arith.mulf %599, %577 : vector<5x6xf32>
        %601 = arith.addf %524, %600 : vector<5x6xf32>
        %c44_i32 = arith.constant 44 : i32
        %602 = arith.addi %25, %c44_i32 : i32
        %603 = arith.index_cast %602 : i32 to index
        %604 = memref.load %arg3[%603] : memref<840xf32, #tpu.memory_space<smem>>
        %605 = vector.broadcast %604 : f32 to vector<5x6xf32>
        %606 = arith.mulf %605, %576 : vector<5x6xf32>
        %607 = arith.addf %595, %606 : vector<5x6xf32>
        %c44_i32_108 = arith.constant 44 : i32
        %608 = arith.addi %28, %c44_i32_108 : i32
        %609 = arith.index_cast %608 : i32 to index
        %610 = memref.load %arg3[%609] : memref<840xf32, #tpu.memory_space<smem>>
        %611 = vector.broadcast %610 : f32 to vector<5x6xf32>
        %612 = arith.mulf %611, %576 : vector<5x6xf32>
        %613 = arith.addf %601, %612 : vector<5x6xf32>
        %c45_i32 = arith.constant 45 : i32
        %614 = arith.addi %25, %c45_i32 : i32
        %615 = arith.index_cast %614 : i32 to index
        %616 = memref.load %arg3[%615] : memref<840xf32, #tpu.memory_space<smem>>
        %617 = vector.broadcast %616 : f32 to vector<5x6xf32>
        %618 = arith.mulf %617, %577 : vector<5x6xf32>
        %619 = arith.addf %542, %618 : vector<5x6xf32>
        %c45_i32_109 = arith.constant 45 : i32
        %620 = arith.addi %28, %c45_i32_109 : i32
        %621 = arith.index_cast %620 : i32 to index
        %622 = memref.load %arg3[%621] : memref<840xf32, #tpu.memory_space<smem>>
        %623 = vector.broadcast %622 : f32 to vector<5x6xf32>
        %624 = arith.mulf %623, %577 : vector<5x6xf32>
        %625 = arith.addf %548, %624 : vector<5x6xf32>
        %c46_i32 = arith.constant 46 : i32
        %626 = arith.addi %25, %c46_i32 : i32
        %627 = arith.index_cast %626 : i32 to index
        %628 = memref.load %arg3[%627] : memref<840xf32, #tpu.memory_space<smem>>
        %629 = vector.broadcast %628 : f32 to vector<5x6xf32>
        %630 = arith.mulf %629, %576 : vector<5x6xf32>
        %631 = arith.addf %619, %630 : vector<5x6xf32>
        %c46_i32_110 = arith.constant 46 : i32
        %632 = arith.addi %28, %c46_i32_110 : i32
        %633 = arith.index_cast %632 : i32 to index
        %634 = memref.load %arg3[%633] : memref<840xf32, #tpu.memory_space<smem>>
        %635 = vector.broadcast %634 : f32 to vector<5x6xf32>
        %636 = arith.mulf %635, %576 : vector<5x6xf32>
        %637 = arith.addf %625, %636 : vector<5x6xf32>
        %c47_i32 = arith.constant 47 : i32
        %638 = arith.addi %25, %c47_i32 : i32
        %639 = arith.index_cast %638 : i32 to index
        %640 = memref.load %arg3[%639] : memref<840xf32, #tpu.memory_space<smem>>
        %641 = vector.broadcast %640 : f32 to vector<5x6xf32>
        %642 = arith.mulf %641, %577 : vector<5x6xf32>
        %643 = arith.addf %566, %642 : vector<5x6xf32>
        %c47_i32_111 = arith.constant 47 : i32
        %644 = arith.addi %28, %c47_i32_111 : i32
        %645 = arith.index_cast %644 : i32 to index
        %646 = memref.load %arg3[%645] : memref<840xf32, #tpu.memory_space<smem>>
        %647 = vector.broadcast %646 : f32 to vector<5x6xf32>
        %648 = arith.mulf %647, %577 : vector<5x6xf32>
        %649 = arith.addf %572, %648 : vector<5x6xf32>
        %c48_i32 = arith.constant 48 : i32
        %650 = arith.addi %25, %c48_i32 : i32
        %651 = arith.index_cast %650 : i32 to index
        %652 = memref.load %arg3[%651] : memref<840xf32, #tpu.memory_space<smem>>
        %653 = vector.broadcast %652 : f32 to vector<5x6xf32>
        %654 = arith.mulf %653, %576 : vector<5x6xf32>
        %655 = arith.addf %643, %654 : vector<5x6xf32>
        %c48_i32_112 = arith.constant 48 : i32
        %656 = arith.addi %28, %c48_i32_112 : i32
        %657 = arith.index_cast %656 : i32 to index
        %658 = memref.load %arg3[%657] : memref<840xf32, #tpu.memory_space<smem>>
        %659 = vector.broadcast %658 : f32 to vector<5x6xf32>
        %660 = arith.mulf %659, %576 : vector<5x6xf32>
        %661 = arith.addf %649, %660 : vector<5x6xf32>
        %c0_113 = arith.constant 0 : index
        %c0_114 = arith.constant 0 : index
        %c1_115 = arith.constant 1 : index
        %662 = arith.index_cast %394 : i32 to index
        %c0_116 = arith.constant 0 : index
        %c0_117 = arith.constant 0 : index
        %663 = vector.load %arg5[%c0_113, %c0_114, %c1_115, %662, %c0_116, %c0_117] : memref<1x1x2x5x6x7xf32, #tpu.memory_space<vmem>>, vector<1x1x1x1x5x7xf32>
        %664 = vector.shape_cast %663 : vector<1x1x1x1x5x7xf32> to vector<5x7xf32>
        %665 = vector.extract_strided_slice %664 {offsets = [0, 0], sizes = [5, 6], strides = [1, 1]} : vector<5x7xf32> to vector<5x6xf32>
        %666 = vector.extract_strided_slice %664 {offsets = [0, 1], sizes = [5, 6], strides = [1, 1]} : vector<5x7xf32> to vector<5x6xf32>
        %c49_i32 = arith.constant 49 : i32
        %667 = arith.addi %25, %c49_i32 : i32
        %668 = arith.index_cast %667 : i32 to index
        %669 = memref.load %arg3[%668] : memref<840xf32, #tpu.memory_space<smem>>
        %670 = vector.broadcast %669 : f32 to vector<5x6xf32>
        %671 = arith.mulf %670, %665 : vector<5x6xf32>
        %672 = arith.addf %583, %671 : vector<5x6xf32>
        %c49_i32_118 = arith.constant 49 : i32
        %673 = arith.addi %28, %c49_i32_118 : i32
        %674 = arith.index_cast %673 : i32 to index
        %675 = memref.load %arg3[%674] : memref<840xf32, #tpu.memory_space<smem>>
        %676 = vector.broadcast %675 : f32 to vector<5x6xf32>
        %677 = arith.mulf %676, %665 : vector<5x6xf32>
        %678 = arith.addf %589, %677 : vector<5x6xf32>
        %c50_i32 = arith.constant 50 : i32
        %679 = arith.addi %25, %c50_i32 : i32
        %680 = arith.index_cast %679 : i32 to index
        %681 = memref.load %arg3[%680] : memref<840xf32, #tpu.memory_space<smem>>
        %682 = vector.broadcast %681 : f32 to vector<5x6xf32>
        %683 = arith.mulf %682, %666 : vector<5x6xf32>
        %684 = arith.addf %607, %683 : vector<5x6xf32>
        %c50_i32_119 = arith.constant 50 : i32
        %685 = arith.addi %28, %c50_i32_119 : i32
        %686 = arith.index_cast %685 : i32 to index
        %687 = memref.load %arg3[%686] : memref<840xf32, #tpu.memory_space<smem>>
        %688 = vector.broadcast %687 : f32 to vector<5x6xf32>
        %689 = arith.mulf %688, %666 : vector<5x6xf32>
        %690 = arith.addf %613, %689 : vector<5x6xf32>
        %c51_i32 = arith.constant 51 : i32
        %691 = arith.addi %25, %c51_i32 : i32
        %692 = arith.index_cast %691 : i32 to index
        %693 = memref.load %arg3[%692] : memref<840xf32, #tpu.memory_space<smem>>
        %694 = vector.broadcast %693 : f32 to vector<5x6xf32>
        %695 = arith.mulf %694, %665 : vector<5x6xf32>
        %696 = arith.addf %684, %695 : vector<5x6xf32>
        %c51_i32_120 = arith.constant 51 : i32
        %697 = arith.addi %28, %c51_i32_120 : i32
        %698 = arith.index_cast %697 : i32 to index
        %699 = memref.load %arg3[%698] : memref<840xf32, #tpu.memory_space<smem>>
        %700 = vector.broadcast %699 : f32 to vector<5x6xf32>
        %701 = arith.mulf %700, %665 : vector<5x6xf32>
        %702 = arith.addf %690, %701 : vector<5x6xf32>
        %c52_i32 = arith.constant 52 : i32
        %703 = arith.addi %25, %c52_i32 : i32
        %704 = arith.index_cast %703 : i32 to index
        %705 = memref.load %arg3[%704] : memref<840xf32, #tpu.memory_space<smem>>
        %706 = vector.broadcast %705 : f32 to vector<5x6xf32>
        %707 = arith.mulf %706, %666 : vector<5x6xf32>
        %708 = arith.addf %631, %707 : vector<5x6xf32>
        %c52_i32_121 = arith.constant 52 : i32
        %709 = arith.addi %28, %c52_i32_121 : i32
        %710 = arith.index_cast %709 : i32 to index
        %711 = memref.load %arg3[%710] : memref<840xf32, #tpu.memory_space<smem>>
        %712 = vector.broadcast %711 : f32 to vector<5x6xf32>
        %713 = arith.mulf %712, %666 : vector<5x6xf32>
        %714 = arith.addf %637, %713 : vector<5x6xf32>
        %c53_i32 = arith.constant 53 : i32
        %715 = arith.addi %25, %c53_i32 : i32
        %716 = arith.index_cast %715 : i32 to index
        %717 = memref.load %arg3[%716] : memref<840xf32, #tpu.memory_space<smem>>
        %718 = vector.broadcast %717 : f32 to vector<5x6xf32>
        %719 = arith.mulf %718, %665 : vector<5x6xf32>
        %720 = arith.addf %708, %719 : vector<5x6xf32>
        %c53_i32_122 = arith.constant 53 : i32
        %721 = arith.addi %28, %c53_i32_122 : i32
        %722 = arith.index_cast %721 : i32 to index
        %723 = memref.load %arg3[%722] : memref<840xf32, #tpu.memory_space<smem>>
        %724 = vector.broadcast %723 : f32 to vector<5x6xf32>
        %725 = arith.mulf %724, %665 : vector<5x6xf32>
        %726 = arith.addf %714, %725 : vector<5x6xf32>
        %c54_i32 = arith.constant 54 : i32
        %727 = arith.addi %25, %c54_i32 : i32
        %728 = arith.index_cast %727 : i32 to index
        %729 = memref.load %arg3[%728] : memref<840xf32, #tpu.memory_space<smem>>
        %730 = vector.broadcast %729 : f32 to vector<5x6xf32>
        %731 = arith.mulf %730, %666 : vector<5x6xf32>
        %732 = arith.addf %655, %731 : vector<5x6xf32>
        %c54_i32_123 = arith.constant 54 : i32
        %733 = arith.addi %28, %c54_i32_123 : i32
        %734 = arith.index_cast %733 : i32 to index
        %735 = memref.load %arg3[%734] : memref<840xf32, #tpu.memory_space<smem>>
        %736 = vector.broadcast %735 : f32 to vector<5x6xf32>
        %737 = arith.mulf %736, %666 : vector<5x6xf32>
        %738 = arith.addf %661, %737 : vector<5x6xf32>
        %c55_i32 = arith.constant 55 : i32
        %739 = arith.addi %25, %c55_i32 : i32
        %740 = arith.index_cast %739 : i32 to index
        %741 = memref.load %arg3[%740] : memref<840xf32, #tpu.memory_space<smem>>
        %742 = vector.broadcast %741 : f32 to vector<5x6xf32>
        %743 = arith.mulf %742, %665 : vector<5x6xf32>
        %744 = arith.addf %732, %743 : vector<5x6xf32>
        %c55_i32_124 = arith.constant 55 : i32
        %745 = arith.addi %28, %c55_i32_124 : i32
        %746 = arith.index_cast %745 : i32 to index
        %747 = memref.load %arg3[%746] : memref<840xf32, #tpu.memory_space<smem>>
        %748 = vector.broadcast %747 : f32 to vector<5x6xf32>
        %749 = arith.mulf %748, %665 : vector<5x6xf32>
        %750 = arith.addf %738, %749 : vector<5x6xf32>
        %751 = tpu.concatenate %672, %696, %720, %744 in 1 : vector<5x6xf32>, vector<5x6xf32>, vector<5x6xf32>, vector<5x6xf32> -> vector<5x24xf32>
        %752 = arith.addi %0, %22 : i32
        %c0_i32_125 = arith.constant 0 : i32
        %753 = arith.addi %752, %c0_i32_125 : i32
        %754 = arith.index_cast %753 : i32 to index
        %755 = memref.load %arg4[%754] : memref<4xf32, #tpu.memory_space<smem>>
        %756 = vector.broadcast %755 : f32 to vector<5x24xf32>
        %757 = arith.addf %751, %756 : vector<5x24xf32>
        %c0_i32_126 = arith.constant 0 : i32
        %758 = arith.addi %22, %c0_i32_126 : i32
        %c0_127 = arith.constant 0 : index
        %c0_128 = arith.constant 0 : index
        %c0_129 = arith.constant 0 : index
        %759 = arith.index_cast %758 : i32 to index
        %760 = arith.index_cast %arg7 : i32 to index
        %c0_130 = arith.constant 0 : index
        %c0_131 = arith.constant 0 : index
        %761 = vector.load %arg6[%c0_127, %c0_128, %c0_129, %759, %760, %c0_130, %c0_131] : memref<1x1x1x2x4x5x24xf32, #tpu.memory_space<vmem>>, vector<1x1x1x1x1x5x24xf32>
        %762 = vector.shape_cast %761 : vector<1x1x1x1x1x5x24xf32> to vector<5x24xf32>
        %763 = vector.shape_cast %757 : vector<5x24xf32> to vector<1x1x1x1x1x5x24xf32>
        tpu.vector_store %arg6[%c0_127, %c0_128, %c0_129, %759, %760, %c0_130, %c0_131], %763 {strides = array<i32>} : memref<1x1x1x2x4x5x24xf32, #tpu.memory_space<vmem>>, vector<1x1x1x1x1x5x24xf32>,
        %764 = tpu.concatenate %678, %702, %726, %750 in 1 : vector<5x6xf32>, vector<5x6xf32>, vector<5x6xf32>, vector<5x6xf32> -> vector<5x24xf32>
        %765 = arith.addi %0, %22 : i32
        %c1_i32_132 = arith.constant 1 : i32
        %766 = arith.addi %765, %c1_i32_132 : i32
        %767 = arith.index_cast %766 : i32 to index
        %768 = memref.load %arg4[%767] : memref<4xf32, #tpu.memory_space<smem>>
        %769 = vector.broadcast %768 : f32 to vector<5x24xf32>
        %770 = arith.addf %764, %769 : vector<5x24xf32>
        %c1_i32_133 = arith.constant 1 : i32
        %771 = arith.addi %22, %c1_i32_133 : i32
        %c0_134 = arith.constant 0 : index
        %c0_135 = arith.constant 0 : index
        %c0_136 = arith.constant 0 : index
        %772 = arith.index_cast %771 : i32 to index
        %773 = arith.index_cast %arg7 : i32 to index
        %c0_137 = arith.constant 0 : index
        %c0_138 = arith.constant 0 : index
        %774 = vector.load %arg6[%c0_134, %c0_135, %c0_136, %772, %773, %c0_137, %c0_138] : memref<1x1x1x2x4x5x24xf32, #tpu.memory_space<vmem>>, vector<1x1x1x1x1x5x24xf32>
        %775 = vector.shape_cast %774 : vector<1x1x1x1x1x5x24xf32> to vector<5x24xf32>
        %776 = vector.shape_cast %770 : vector<5x24xf32> to vector<1x1x1x1x1x5x24xf32>
        tpu.vector_store %arg6[%c0_134, %c0_135, %c0_136, %772, %773, %c0_137, %c0_138], %776 {strides = array<i32>} : memref<1x1x1x2x4x5x24xf32, #tpu.memory_space<vmem>>, vector<1x1x1x1x1x5x24xf32>,
        %c1_i32_139 = arith.constant 1 : i32
      }
      %c4_i32_10 = arith.constant 4 : i32
    } else {
    }
    return
  }
  func.func @transform_0(%arg0: i32, %arg1: i32, %arg2: i32) -> i32 {
    %c0_i32 = arith.constant 0 : i32
    %c0_i32_0 = arith.constant 0 : i32
    return %c0_i32 : i32
  }
  func.func @transform_1(%arg0: i32, %arg1: i32, %arg2: i32) -> i32 {
    %c0_i32 = arith.constant 0 : i32
    %c0_i32_0 = arith.constant 0 : i32
    return %c0_i32 : i32
  }
  func.func @transform_2(%arg0: i32, %arg1: i32, %arg2: i32) -> (i32, i32, i32, i32, i32, i32) {
    %c0_i32 = arith.constant 0 : i32
    %c0_i32_0 = arith.constant 0 : i32
    %c0_i32_1 = arith.constant 0 : i32
    %c0_i32_2 = arith.constant 0 : i32
    %c0_i32_3 = arith.constant 0 : i32
    return %arg0, %arg1, %c0_i32, %c0_i32_0, %c0_i32_1, %c0_i32_2 : i32, i32, i32, i32, i32, i32
  }
  func.func @transform_3(%arg0: i32, %arg1: i32, %arg2: i32) -> (i32, i32, i32, i32, i32, i32, i32) {
    %c0_i32 = arith.constant 0 : i32
    %c0_i32_0 = arith.constant 0 : i32
    %c0_i32_1 = arith.constant 0 : i32
    %c0_i32_2 = arith.constant 0 : i32
    %c0_i32_3 = arith.constant 0 : i32
    return %arg0, %arg1, %arg2, %c0_i32, %c0_i32_0, %c0_i32_1, %c0_i32_2 : i32, i32, i32, i32, i32, i32, i32
  }
}

</mosaic_0001>

<bundles_post_ra>
// kernel: tpu_custom_call.1
= control target key start
LH: loop header
LB: loop body
LE: loop exit
PB: predicated region body
PF: predicated region fallthrough
CT: control target
= control target key end

     0   :  { %s6369_s0 = inlined_call_operand.vmem [shape: f32[840], index: 0, kind: input, shape index: {}]   ;;  %s6370_s1 = inlined_call_operand.vmem [shape: f32[4], index: 1, kind: input, shape index: {}]   ;;  %s6371_s2 = inlined_call_operand.vmem [shape: f32[2,2,2,5,6,7], index: 2, kind: input, shape index: {}]   ;;  %s6372_s3 = inlined_call_operand.vmem [shape: f32[2,2,6,2,4,5,24], index: 3, kind: output, shape index: {}]  }
   0x1   :  { %6381 = sst [smem:[#allocation11_spill]] %s6369_s0 }
   0x2   :  { %6382 = sst [smem:[#allocation12_spill]] %s6370_s1 }
   0x3   :  { %6383 = sst [smem:[#allocation13_spill]] %s6371_s2 }
   0x4   :  { %6384 = sst [smem:[#allocation14_spill]] %s6372_s3 }
   0x5   :  { %8 = vsyncpa [#allocation3], 0 }
   0x6   :  { %9 = vsyncpa [#allocation5], 0  ;;  %s4152_s12 = smov 0   ;;  %s4154_s13 = smov 0  }
   0x7   :  { %s4156_s14 = smov 0   ;;  %s4158_s15 = smov 0  }
   0x8   :  { %s4160_s16 = smov 0   ;;  %s4162_s17 = smov 0  }
   0x9   :  { %s4164_s18 = smov 0  }
   0xa LB: > { %s3730_s19 = sadd.s32 4294967295, %s4080_s18   ;;  %s27_s20 = sadd.s32 1, %s4068_s15  ;;  %s4080_s18 = sphi %s4164_s18, %s15_s18   ;;  %s4076_s17 = sphi %s4162_s17, %s6414_s17   ;;  %s4072_s16 = sphi %s4160_s16, %s6413_s16   ;;  %s4068_s15 = sphi %s4158_s15, %s6412_s15   ;;  %s4064_s14 = sphi %s4156_s14, %s6411_s14   ;;  %s4060_s13 = sphi %s4154_s13, %s6410_s13   ;;  %s4056_s12 = sphi %s4152_s12, %s6409_s12  }
   0xb   : > { %p28_p0 = scmp.ge.s32.totalorder %s27_s20, 6  ;;  %s30_s21 = sadd.s32 1, %s4072_s16 }
   0xc   : > { %s34_s22 = sadd.s32 1, %s4076_s17  ;;  %p3732_p1 = scmp.ge.s32.totalorder %s4080_s18, 1 }
   0xd   : > { %s6416_s20 = smov (%p28_p0, %s27_s20), 0  ;;  %s6418_s21 = smov (!%p28_p0, %s30_s21), %s4072_s16 }
   0xe   : > { %6385 = sst [smem:[#allocation8_spill]] %s6416_s20  ;;  %p139_p2 = scmp.lt.s32.totalorder %s4080_s18, 25 }
   0xf   : > { %p32_p3 = scmp.ge.s32.totalorder %s6418_s21, 2  ;;  %p4196_p4 = scmp.eq.s32.totalorder %s3730_s19, 0 }
  0x10   : > { %p4200_p5 = pnand %p3732_p1, %p139_p2  ;;  %s6388_s0 = sld [smem:[#allocation11_spill]] }
  0x11   : > { %s6386_s23 = scalar_select %p4196_p4, 1, 0 }
  0x12   : > { %s6387_s24 = scalar_select %p4200_p5, 1, 0 }
  0x13   : > { %s6420_s21 = smov (%p32_p3, %s6418_s21), 0  ;;  %s6422_s22 = smov (!%p32_p3, %s34_s22), %s4076_s17 }
  0x14   : > { %6389 = sst [smem:[#allocation9_spill]] %s6420_s21  ;;  %p3813_p6 = pneg %p4200_p5 }
  0x15   : > { %p36_p7 = scmp.ge.s32.totalorder %s6422_s22, 2  ;;  %s6391_s1 = sld [smem:[#allocation12_spill]] }
  0x16   : > { %s152_s27 = sshll.u32 %s6388_s0, 4  ;;  %p4214_p8 = pnand %p4196_p4, %p3813_p6  ;;  %s153_s27 = int_to_ptr.vmem [resolvable:$true] %s152_s27 }
  0x17   : > { %s6424_s22 = smov (%p36_p7, %s6422_s22), 0  ;;  %s3964_s5 = scalar_lea.vmem %s153_s27, 112 }
  0x18   : > { %6392 = sst [smem:[#allocation10_spill]] %s6424_s22  ;;  %p3965_p9 = scmp.ne.s32.totalorder %s153_s27, %s3964_s5 }
  0x19   : > { %p3966_p10 = pneg %p4214_p8  ;;  %s3971_s6 = scalar_lea.vmem %s153_s27, 128 }
  0x1a   : > { %p3972_p13 = scmp.lt.s32.totalorder %s153_s27, %s153_s27  ;;  %p3973_p0 = scmp.lt.s32.totalorder %s3971_s6, %s3964_s5 }
  0x1b   : > { %s163_s4 = sshll.u32 %s6391_s1, 4  ;;  %p3967_p11 = pnand %p3966_p10, %p3965_p9  ;;  %s164_s4 = int_to_ptr.vmem [resolvable:$true] %s163_s4 }
  0x1c   : > { %p3974_p1 = por %p3973_p0, %p3972_p13 }
  0x1d   : > { %p3968_p12 = pneg %p3967_p11 }
  0x1f   : > { %p3975_p2 = pnand %p3974_p1, %p3968_p12 }
  0x21   : > { %3978 = shalt.err (!%p3975_p2)
}
  0x22   : > { %s4106_s7 = smov [#allocation2]   ;;  %s3979_s8 = scalar_lea.vmem %s164_s4, 16 }
  0x23   : > { %3816 = dma.vmem_to_smem (!%p4214_p8), %s153_s27, 112, %s4106_s7, [#allocation3]  }
  0x24   : > { %p3980_p3 = scmp.ne.s32.totalorder %s164_s4, %s3979_s8  ;;  %p3987_p4 = scmp.lt.s32.totalorder %s164_s4, %s164_s4 }
  0x25   : > { %p3988_p9 = scmp.lt.s32.totalorder %s3979_s8, %s3979_s8 }
  0x26   : > { %p3982_p6 = pnand %p3980_p3, %p3966_p10 }
  0x27   : > { %p3989_p11 = por %p3988_p9, %p3987_p4 }
  0x28   : > { %p3983_p7 = pneg %p3982_p6 }
  0x2a   : > { %p3990_p5 = pnand %p3989_p11, %p3983_p7 }
  0x2c   : > { %3993 = shalt.err (!%p3990_p5)
}
  0x2d   : > { %s4107_s9 = smov [#allocation4]   ;;  %p6393_p12 = scmp.ne.s32.totalorder %s6387_s24, 0 }
  0x2e   : > { %3819 = dma.vmem_to_smem (!%p4214_p8), %s164_s4, 16, %s4107_s9, [#allocation5]  }
  0x2f   : > { %188 = sbr.rel (%p6393_p12) target bundleno = 1946 (0x79a), region = 32  ;;  %p6394_p13 = scmp.ne.s32.totalorder (!%p6393_p12), %s6386_s23, 0 }
  0x36   : > { %4047 = dma.done.wait (%p6394_p13), [#allocation3], 112  }
  0x37   : > { %4049 = vsyncadd (%p6394_p13), [#allocation3], 4294967184 }
  0x38   : > { %4051 = dma.done.wait (%p6394_p13), [#allocation5], 16  }
  0x39   : > { %4053 = vsyncadd (%p6394_p13), [#allocation5], 4294967280 }
  0x3a   : > { %198 = sfence }
  0x3b   : > { %p229_p4 = scmp.lt.s32.totalorder %s4064_s14, 1  ;;  %p231_p5 = scmp.lt.s32.totalorder %s4060_s13, 1 }
  0x3c   : > { %p242_p8 = scmp.lt.s32.totalorder %s4056_s12, 5  ;;  %s4249_s10 = sshll.u32 %s4060_s13, 1 }
  0x3d   : > { %s6426_s14 = smov (!%p229_p4, %s4064_s14), 1  ;;  %s6395_s2 = sld [smem:[#allocation13_spill]] }
  0x3e   : > { %s232_s11 = scalar_select %p231_p5, %s4060_s13, 1 }
  0x3f   : > { %s3802_s19 = smul.u32 20, %s6426_s14  ;;  %s6396_s3 = sld [smem:[#allocation14_spill]] }
  0x40   : > { %s3801_s24 = smul.u32 10, %s232_s11  ;;  %p3743_p10 = scmp.ne.s32.totalorder %s4056_s12, 0 }
  0x41   : > { %s243_s25 = scalar_select %p242_p8, %s4056_s12, 5 }
  0x42   : > { %s235_s23 = sadd.s32 %s3802_s19, %s3801_s24  ;;  %s3803_s26 = smul.u32 48, %s232_s11 }
  0x43   : > { %s3739_s27 = sshll.u32 %s235_s23, 3  ;;  %s3740_s28 = sshll.u32 %s243_s25, 3 }
  0x44   : > { %s4257_s4 = scalar_lea.vmem %s6395_s2, %s3739_s27  ;;  %s246_s5 = sadd.s32 %s3803_s26, %s3740_s28 }
  0x45   : > { %s3804_s6 = smul.u32 96, %s6426_s14  ;;  %s4268_s19 = smov (!%p3743_p10), 0  }
  0x46   : > { %255 = sbr.rel (%p3743_p10) target bundleno = 345 (0x159), region = 44 }
  0x47   : > { %s248_s7 = sadd.s32 %s3804_s6, %s246_s5  ;;  %s4266_s11 = smul.u32 (!%p3743_p10), 28, %s4060_s13 }
  0x48   : > { %s3741_s8 = sshll.u32 %s248_s7, 3 }
  0x49   : > { %s4262_s1 = scalar_lea.vmem %s6396_s3, %s3741_s8 }
  0x4d LB: >> { %s313_s0 = sadd.s32 4, %s4266_s11  ;;  %s6376_s14 = sshll.u32 %s4084_s19, 3  ;;  %vm468_vm0 = vcmask 48128   ;;  %vm470_vm1 = vcmask 97280   ;;  %vm472_vm2 = vcmask 146432   ;;  %vm478_vm3 = vcmask 192512   ;;  %s4084_s19 = sphi %s4268_s19, %s262_s19  }
  0x4e   : >> { %s314_s24 = sld [smem:[#allocation2 + %s313_s0]]  ;;  %s4278_s25 = scalar_lea.vmem %s4257_s4, %s6376_s14 }
  0x4f   : >> { %s285_s23 = sadd.s32 2, %s4266_s11  ;;  %s322_s27 = sadd.s32 18, %s4266_s11  ;;  %v4284_v0 = vld [vmem:[%s4278_s25] sm:$0x1f]  ;;  %v4307_v12 = vld [vmem:[%s4278_s25 + $0x28] sm:$0x1f] }
  0x50   : >> { %s286_s26 = sld [smem:[#allocation2 + %s285_s23]]  ;;  %s294_s29 = sadd.s32 16, %s4266_s11 }
  0x51   : >> { %s323_s28 = sld [smem:[#allocation2 + %s322_s27]]  ;;  %s350_s5 = sadd.s32 20, %s4266_s11 }
  0x52   : >> { %s295_s30 = sld [smem:[#allocation2 + %s294_s29]]  ;;  %s341_s7 = sadd.s32 6, %s4266_s11 }
  0x53   : >> { %s351_s6 = sld [smem:[#allocation2 + %s350_s5]]  ;;  %s391_s9 = sadd.s32 23, %s4266_s11 }
  0x54   : >> { %v315_v1 = vstv %s314_s24  ;;  %s342_s8 = sld [smem:[#allocation2 + %s341_s7]]  ;;  %s382_s23 = sadd.s32 9, %s4266_s11 }
  0x55   : >> { %v316_v2 = vmul.f32 %v315_v1, %v4284_v0  ;;  %s4290_s0 = sld [smem:[#allocation2 + %s391_s9]]  ;;  %s419_s27 = sadd.s32 25, %s4266_s11 }
  0x56   : >> { %v287_v3 = vstv %s286_s26  ;;  %s4293_s14 = sld [smem:[#allocation2 + %s382_s23]]  ;;  %s4108_s2 = smov 1  }
  0x57   : >> { %318 = vrot.lane.b32.xlu1 %v316_v2, %s4108_s2  ;;  %v288_v4 = vmul.f32 %v287_v3, %v4284_v0  ;;  %v324_v5 = vstv %s323_s28  ;;  %s410_s24 = sadd.s32 11, %s4266_s11  ;;  %s420_s29 = sld [smem:[#allocation2 + %s419_s27]] }
  0x58   : >> { %v325_v6 = vmul.f32 %v324_v5, %v4284_v0  ;;  %v296_v7 = vstv %s295_s30  ;;  %s447_s26 = sadd.s32 27, %s4266_s11  ;;  %s411_s5 = sld [smem:[#allocation2 + %s410_s24]] }
  0x59   : >> { %290 = vrot.lane.b32.xlu0 %v288_v4, %s4108_s2  ;;  %v297_v8 = vmul.f32 %v296_v7, %v4284_v0  ;;  %v352_v9 = vstv %s351_s6  ;;  %s438_s7 = sadd.s32 13, %s4266_s11  ;;  %s448_s28 = sld [smem:[#allocation2 + %s447_s26]] }
  0x5a   : >> { %v343_v10 = vstv %s342_s8  ;;  %v353_v11 = vmul.f32 %v352_v9, %v4284_v0  ;;  %s439_s30 = sld [smem:[#allocation2 + %s438_s7]]  ;;  %s275_s25 = sadd.s32 1, %s4266_s11 }
  0x5b   : >> { %327 = vrot.lane.b32.xlu1 %v325_v6, %s4108_s2  ;;  %v393_v13 = vstv %s4290_s0  ;;  %v344_v14 = vmul.f32 %v343_v10, %v4284_v0  ;;  %s303_s6 = sadd.s32 3, %s4266_s11  ;;  %s308_s9 = sadd.s32 17, %s4266_s11 }
  0x5c   : >> { %v384_v15 = vstv %s4293_s14  ;;  %v394_v16 = vmul.f32 %v4307_v12, %v393_v13  ;;  %s280_s14 = sadd.s32 15, %s4266_s11  ;;  %s377_s0 = sadd.s32 22, %s4266_s11 }
  0x5d   : >> { %299 = vrot.lane.b32.xlu0 %v297_v8, %s4108_s2  ;;  %v421_v17 = vstv %s420_s29  ;;  %v385_v18 = vmul.f32 %v4307_v12, %v384_v15  ;;  %s281_s8 = sld [smem:[#allocation2 + %s280_s14]]  ;;  %s372_s24 = sadd.s32 8, %s4266_s11 }
  0x5e   : >> { %v412_v19 = vstv %s411_s5  ;;  %v422_v20 = vmul.f32 %v4307_v12, %v421_v17  ;;  %s276_s23 = sld [smem:[#allocation2 + %s275_s25]]  ;;  %s336_s5 = sadd.s32 19, %s4266_s11 }
  0x5f   : >> { %355 = vrot.lane.b32.xlu1 %v353_v11, %s4108_s2  ;;  %v449_v21 = vstv %s448_s28  ;;  %v413_v22 = vmul.f32 %v4307_v12, %v412_v19  ;;  %s4332_s27 = sld [smem:[#allocation2 + %s303_s6]]  ;;  %s405_s7 = sadd.s32 24, %s4266_s11 }
  0x60   : >> { %v440_v23 = vstv %s439_s30  ;;  %v450_v24 = vmul.f32 %v4307_v12, %v449_v21  ;;  %s309_s29 = sld [smem:[#allocation2 + %s308_s9]]  ;;  %s331_s28 = sadd.s32 5, %s4266_s11 }
  0x61   : >> { %346 = vrot.lane.b32.xlu0 %v344_v14, %s4108_s2  ;;  %v441_v25 = vmul.f32 %v4307_v12, %v440_v23  ;;  %s378_s26 = sld [smem:[#allocation2 + %s377_s0]]  ;;  %s433_s6 = sadd.s32 26, %s4266_s11 }
  0x62   : >> { %s4338_s30 = sld [smem:[#allocation2 + %s372_s24]]  ;;  %s428_s0 = sadd.s32 12, %s4266_s11 }
  0x63   : >> { %396 = vrot.lane.b32.xlu1 %v394_v16, %s4108_s2  ;;  %v282_v27 = vstv %s281_s8  ;;  %s4341_s14 = sld [smem:[#allocation2 + %s336_s5]]  ;;  %s4111_s24 = smov 17  }
  0x64   : >> { %s4343_s3 = sld [smem:[#allocation2 + %s405_s7]]  ;;  %v277_v28 = vstv %s276_s23  ;;  %v283_v30 = vmul.f32 %v282_v27, %v4284_v0  ;;  %s362_s5 = sadd.s32 7, %s4266_s11 }
  0x65   : >> { %387 = vrot.lane.b32.xlu0 %v385_v18, %s4108_s2  ;;  %s4345_s25 = sld [smem:[#allocation2 + %s331_s28]]  ;;  %v278_v34 = vmul.f32 %v277_v28, %v4284_v0  ;;  %v305_v35 = vstv %s4332_s27  ;;  %s4110_s27 = smov 11  }
  0x66   : >> { %v310_v31 = vstv %s309_s29  ;;  %s4352_s8 = sld [smem:[#allocation2 + %s433_s6]]  ;;  %v306_v44 = vmul.f32 %v305_v35, %v4284_v0  ;;  %s263_s29 = sadd.s32 14, %s4266_s11 }
  0x67   : >> { %424 = vrot.lane.b32.xlu1 %v422_v20, %s4108_s2  ;;  %v379_v33 = vstv %s378_s26  ;;  %s4357_s23 = sld [smem:[#allocation2 + %s428_s0]]  ;;  %v311_v38 = vmul.f32 %v310_v31, %v4284_v0  ;;  %s367_s26 = sadd.s32 21, %s4266_s11 }
  0x68   : >> { %v374_v37 = vstv %s4338_s30  ;;  %v380_v40 = vmul.f32 %v4307_v12, %v379_v33  ;;  %s271_s7 = sld [smem:[#allocation2 + %s263_s29]] }
  0x69   : >> { %415 = vrot.lane.b32.xlu0 %v413_v22, %s4108_s2  ;;  %v338_v41 = vstv %s4341_s14  ;;  %v375_v47 = vmul.f32 %v4307_v12, %v374_v37  ;;  %s368_s28 = sld [smem:[#allocation2 + %s367_s26]]  ;;  %s495_s14 = sadd.s32 1, %s4249_s10 }
  0x6a   : >> { %v407_v43 = vstv %s4343_s3  ;;  %v339_v51 = vmul.f32 %v338_v41, %v4284_v0  ;;  %s4109_s3 = smov 5   ;;  %s267_s30 = sld [smem:[#allocation2 + %s4266_s11]] }
  0x6b   : >> { %452 = vrot.lane.b32.xlu1 %v450_v24, %s4108_s2  ;;  %v333_v46 = vstv %s4345_s25  ;;  %v408_v53 = vmul.f32 %v4307_v12, %v407_v43  ;;  %s496_s25 = sld [smem:[#allocation4 + %s495_s14]] }
  0x6c   : >> { %v334_v54 = vmul.f32 %v333_v46, %v4284_v0  ;;  %v435_v56 = vstv %s4352_s8  ;;  %s474_s6 = sld [smem:[#allocation4 + %s4249_s10]] }
  0x6d   : >> { %443 = vrot.lane.b32.xlu0 %v441_v25, %s4108_s2  ;;  %s400_s2 = sadd.s32 10, %s4266_s11  ;;  %v430_v62 = vstv %s4357_s23  ;;  %v436_v3 = vmul.f32 %v4307_v12, %v435_v56 }
  0x6e   : >> { %s4348_s9 = sld [smem:[#allocation2 + %s400_s2]]  ;;  %v431_v8 = vmul.f32 %v4307_v12, %v430_v62  ;;  %v272_v18 = vstv %s271_s7 }
  0x6f   : >> { %s363_s2 = sld [smem:[#allocation2 + %s362_s5]]  ;;  %v369_v19 = vstv %s368_s28  ;;  %v273_v23 = vmul.f32 %v272_v18, %v4284_v0 }
  0x70   : >> { %v268_v20 = vstv %s267_s30  ;;  %v370_v22 = vmul.f32 %v4307_v12, %v369_v19 }
  0x71   : >> { %v497_v33 = vstv %s496_s25 }
  0x72   : >> { %v371_v28 = vadd.f32 %v370_v22, %v273_v23  ;;  %v475_v37 = vstv %s474_s6 }
  0x74   : >> { %v402_v49 = vstv %s4348_s9  ;;  %s6397_s9 = sshll.u32 %s4084_s19, 3  ;;  %s262_s19 = sadd.s32 1, %s4084_s19  }
  0x75   : >> { %v403_v60 = vmul.f32 %v4307_v12, %v402_v49  ;;  %v364_v21 = vstv %s363_s2  ;;  %s477_s0 = scalar_lea.vmem %s4262_s1, %s6397_s9  ;;  %p259_p0 = scmp.ge.s32.totalorder %s262_s19, 4  }
  0x76   : >> { %v365_v25 = vmul.f32 %v4307_v12, %v364_v21 }
  0xc9   : >> { %v319_v26 = vpop.permute.xlu1 %318 }
  0xca   : >> { %v321_v57 = vadd.f32 %v319_v26, %v306_v44  ;;  %v269_v26 = vmul.f32 %v268_v20, %v4284_v0 }
  0xcb   : >> { %v291_v29 = vpop.permute.xlu0 %290 }
  0xcc   : >> { %v293_v45 = vadd.f32 %v291_v29, %v278_v34  ;;  %v404_v7 = vadd.f32 %v403_v60, %v321_v57 }
  0xcd   : >> { %v328_v32 = vpop.permute.xlu1 %327 }
  0xce   : >> { %v330_v50 = vadd.f32 %v328_v32, %v311_v38  ;;  %v376_v59 = vadd.f32 %v375_v47, %v293_v45 }
  0xcf   : >> { %v300_v36 = vpop.permute.xlu0 %299 }
  0xd0   : >> { %v302_v39 = vadd.f32 %v300_v36, %v283_v30  ;;  %v409_v2 = vadd.f32 %v408_v53, %v330_v50  ;;  %v366_v30 = vadd.f32 %v365_v25, %v269_v26 }
  0xd1   : >> { %v356_v42 = vpop.permute.xlu1 %355 }
  0xd2   : >> { %v381_v52 = vadd.f32 %v380_v40, %v302_v39  ;;  %v358_v63 = vadd.f32 %v356_v42, %v339_v51 }
  0xd3   : >> { %v347_v48 = vpop.permute.xlu0 %346 }
  0xd4   : >> { %v349_v5 = vadd.f32 %v347_v48, %v334_v54  ;;  %v437_v11 = vadd.f32 %v436_v3, %v358_v63 }
  0xd5   : >> { %v397_v55 = vpop.permute.xlu1 %396 }
  0xd6   : >> { %v399_v58 = vadd.f32 %v397_v55, %v381_v52  ;;  %v432_v15 = vadd.f32 %v431_v8, %v349_v5 }
  0xd7   : >> { %v388_v61 = vpop.permute.xlu0 %387 }
  0xd8   : >> { %v390_v1 = vadd.f32 %v388_v61, %v376_v59  ;;  %481 = vrot.lane.b32.xlu1 %v399_v58, %s4109_s3 }
  0xd9   : >> { %v425_v4 = vpop.permute.xlu1 %424 }
  0xda   : >> { %457 = vrot.lane.b32.xlu0 %v390_v1, %s4109_s3  ;;  %v427_v6 = vadd.f32 %v425_v4, %v409_v2 }
  0xdb   : >> { %v416_v9 = vpop.permute.xlu0 %415 }
  0xdc   : >> { %v418_v10 = vadd.f32 %v416_v9, %v404_v7  ;;  %485 = vrot.lane.b32.xlu1 %v427_v6, %s4110_s27 }
  0xdd   : >> { %v453_v13 = vpop.permute.xlu1 %452 }
  0xde   : >> { %461 = vrot.lane.b32.xlu0 %v418_v10, %s4110_s27  ;;  %v455_v14 = vadd.f32 %v453_v13, %v437_v11 }
  0xdf   : >> { %v444_v16 = vpop.permute.xlu0 %443 }
  0xe0   : >> { %v446_v17 = vadd.f32 %v444_v16, %v432_v15  ;;  %489 = vrot.lane.b32.xlu1 %v455_v14, %s4111_s24 }
  0xe2   : >> { %465 = vrot.lane.b32.xlu0 %v446_v17, %s4111_s24 }
 0x14a   : >> { %v482_v24 = vpop.permute.xlu1 %481 }
 0x14b   : >> { %v492_v32 = vsel %vm468_vm0, %v371_v28, %v482_v24 }
 0x14c   : >> { %v458_v27 = vpop.permute.xlu0 %457 }
 0x14d   : >> { %v469_v36 = vsel %vm468_vm0, %v366_v30, %v458_v27 }
 0x14e   : >> { %v486_v29 = vpop.permute.xlu1 %485 }
 0x14f   : >> { %v493_v34 = vsel %vm470_vm1, %v492_v32, %v486_v29 }
 0x150   : >> { %v462_v31 = vpop.permute.xlu0 %461 }
 0x151   : >> { %v471_v0 = vsel %vm470_vm1, %v469_v36, %v462_v31 }
 0x152   : >> { %v490_v35 = vpop.permute.xlu1 %489  ;;  %261 = sbr.rel (!%p259_p0) target bundleno = 77 (0x4d), region = 167 }
 0x153   : >> { %v494_v12 = vsel %vm472_vm2, %v493_v34, %v490_v35 }
 0x154   : >> { %v498_v38 = vadd.f32 %v497_v33, %v494_v12  ;;  %v466_v39 = vpop.permute.xlu0 %465 }
 0x155   : >> { %v473_v40 = vsel %vm472_vm2, %v471_v0, %v466_v39 }
 0x156   : >> { %3748 = vst.msk [vmem:[%s477_s0 + $0x20] sm:$0x1f] %vm478_vm3, %v498_v38  ;;  %v476_v41 = vadd.f32 %v475_v37, %v473_v40 }
 0x158   : >> { %479 = vst.msk [vmem:[%s477_s0] sm:$0x1f] %vm478_vm3, %v476_v41 }
 0x159 PF: > { %p3749_p1 = scmp.ne.s32.totalorder %s4056_s12, 1 }
 0x15a   : > { %s4393_s8 = smul.u32 (!%p3749_p1), 56, %s4060_s13  ;;  %s4396_s3 = smov (!%p3749_p1), 0  }
 0x15b   : > { %505 = sbr.rel (%p3749_p1) target bundleno = 646 (0x286), region = 55 }
 0x162 LB: >> { %s564_s11 = sadd.s32 60, %s4393_s8  ;;  %s6377_s19 = sshll.u32 %s4088_s3, 3  ;;  %vm909_vm4 = vcmask 48128   ;;  %vm911_vm5 = vcmask 97280   ;;  %vm913_vm6 = vcmask 146432   ;;  %vm919_vm7 = vcmask 192512   ;;  %s4088_s3 = sphi %s4396_s3, %s513_s3  }
 0x163   : >> { %s565_s27 = sld [smem:[#allocation2 + %s564_s11]]  ;;  %s4406_s24 = scalar_lea.vmem %s4257_s4, %s6377_s19 }
 0x164   : >> { %s536_s29 = sadd.s32 58, %s4393_s8  ;;  %s573_s5 = sadd.s32 88, %s4393_s8  ;;  %v4412_v42 = vld [vmem:[%s4406_s24 + $0x1] sm:$0x1f]  ;;  %v4435_v54 = vld [vmem:[%s4406_s24 + $0x29] sm:$0x1f] }
 0x165   : >> { %s537_s26 = sld [smem:[#allocation2 + %s536_s29]]  ;;  %s545_s28 = sadd.s32 86, %s4393_s8  ;;  %v4458_v4 = vld [vmem:[%s4406_s24] sm:$0x1f]  ;;  %v4479_v18 = vld [vmem:[%s4406_s24 + $0x28] sm:$0x1f] }
 0x166   : >> { %s574_s7 = sld [smem:[#allocation2 + %s573_s5]]  ;;  %s601_s2 = sadd.s32 90, %s4393_s8 }
 0x167   : >> { %s546_s30 = sld [smem:[#allocation2 + %s545_s28]]  ;;  %s592_s25 = sadd.s32 62, %s4393_s8 }
 0x168   : >> { %s602_s14 = sld [smem:[#allocation2 + %s601_s2]]  ;;  %s642_s9 = sadd.s32 93, %s4393_s8 }
 0x169   : >> { %v566_v43 = vstv %s565_s27  ;;  %s593_s6 = sld [smem:[#allocation2 + %s592_s25]]  ;;  %s633_s11 = sadd.s32 65, %s4393_s8 }
 0x16a   : >> { %v567_v44 = vmul.f32 %v566_v43, %v4412_v42  ;;  %s4418_s0 = sld [smem:[#allocation2 + %s642_s9]]  ;;  %s670_s5 = sadd.s32 95, %s4393_s8 }
 0x16b   : >> { %v538_v45 = vstv %s537_s26  ;;  %s4421_s29 = sld [smem:[#allocation2 + %s633_s11]]  ;;  %s4112_s19 = smov 1  }
 0x16c   : >> { %569 = vrot.lane.b32.xlu1 %v567_v44, %s4112_s19  ;;  %v539_v46 = vmul.f32 %v538_v45, %v4412_v42  ;;  %v575_v47 = vstv %s574_s7  ;;  %s661_s27 = sadd.s32 67, %s4393_s8  ;;  %s671_s28 = sld [smem:[#allocation2 + %s670_s5]] }
 0x16d   : >> { %v576_v48 = vmul.f32 %v575_v47, %v4412_v42  ;;  %v547_v49 = vstv %s546_s30  ;;  %s698_s26 = sadd.s32 97, %s4393_s8  ;;  %s662_s2 = sld [smem:[#allocation2 + %s661_s27]] }
 0x16e   : >> { %541 = vrot.lane.b32.xlu0 %v539_v46, %s4112_s19  ;;  %v548_v50 = vmul.f32 %v547_v49, %v4412_v42  ;;  %v603_v51 = vstv %s602_s14  ;;  %s689_s7 = sadd.s32 69, %s4393_s8  ;;  %s699_s30 = sld [smem:[#allocation2 + %s698_s26]] }
 0x16f   : >> { %v594_v52 = vstv %s593_s6  ;;  %v604_v53 = vmul.f32 %v603_v51, %v4412_v42  ;;  %s737_s14 = sadd.s32 100, %s4393_s8  ;;  %s690_s25 = sld [smem:[#allocation2 + %s689_s7]] }
 0x170   : >> { %578 = vrot.lane.b32.xlu1 %v576_v48, %s4112_s19  ;;  %v644_v55 = vstv %s4418_s0  ;;  %v595_v56 = vmul.f32 %v594_v52, %v4412_v42  ;;  %s728_s6 = sadd.s32 72, %s4393_s8  ;;  %s738_s9 = sld [smem:[#allocation2 + %s737_s14]] }
 0x171   : >> { %v635_v57 = vstv %s4421_s29  ;;  %v645_v58 = vmul.f32 %v4435_v54, %v644_v55  ;;  %s765_s0 = sadd.s32 102, %s4393_s8  ;;  %s729_s11 = sld [smem:[#allocation2 + %s728_s6]] }
 0x172   : >> { %550 = vrot.lane.b32.xlu0 %v548_v50, %s4112_s19  ;;  %v672_v59 = vstv %s671_s28  ;;  %v636_v60 = vmul.f32 %v4435_v54, %v635_v57  ;;  %s756_s29 = sadd.s32 74, %s4393_s8  ;;  %s766_s5 = sld [smem:[#allocation2 + %s765_s0]] }
 0x173   : >> { %v663_v61 = vstv %s662_s2  ;;  %v673_v62 = vmul.f32 %v4435_v54, %v672_v59  ;;  %s793_s27 = sadd.s32 104, %s4393_s8  ;;  %s757_s28 = sld [smem:[#allocation2 + %s756_s29]] }
 0x174   : >> { %606 = vrot.lane.b32.xlu1 %v604_v53, %s4112_s19  ;;  %v700_v63 = vstv %s699_s30  ;;  %v664_v1 = vmul.f32 %v4435_v54, %v663_v61  ;;  %s784_s26 = sadd.s32 76, %s4393_s8  ;;  %s794_s2 = sld [smem:[#allocation2 + %s793_s27]] }
 0x175   : >> { %v691_v2 = vstv %s690_s25  ;;  %v701_v3 = vmul.f32 %v4435_v54, %v700_v63  ;;  %s832_s7 = sadd.s32 107, %s4393_s8  ;;  %s785_s30 = sld [smem:[#allocation2 + %s784_s26]] }
 0x176   : >> { %597 = vrot.lane.b32.xlu0 %v595_v56, %s4112_s19  ;;  %v739_v5 = vstv %s738_s9  ;;  %v692_v6 = vmul.f32 %v4435_v54, %v691_v2  ;;  %s823_s14 = sadd.s32 79, %s4393_s8  ;;  %s833_s25 = sld [smem:[#allocation2 + %s832_s7]] }
 0x177   : >> { %v730_v7 = vstv %s729_s11  ;;  %v740_v8 = vmul.f32 %v739_v5, %v4458_v4  ;;  %s860_s6 = sadd.s32 109, %s4393_s8  ;;  %s824_s9 = sld [smem:[#allocation2 + %s823_s14]] }
 0x178   : >> { %647 = vrot.lane.b32.xlu1 %v645_v58, %s4112_s19  ;;  %v767_v9 = vstv %s766_s5  ;;  %v731_v10 = vmul.f32 %v730_v7, %v4458_v4  ;;  %s851_s0 = sadd.s32 81, %s4393_s8  ;;  %s861_s11 = sld [smem:[#allocation2 + %s860_s6]] }
 0x179   : >> { %v758_v11 = vstv %s757_s28  ;;  %v768_v13 = vmul.f32 %v767_v9, %v4458_v4  ;;  %s888_s29 = sadd.s32 111, %s4393_s8  ;;  %s852_s5 = sld [smem:[#allocation2 + %s851_s0]] }
 0x17a   : >> { %638 = vrot.lane.b32.xlu0 %v636_v60, %s4112_s19  ;;  %v795_v14 = vstv %s794_s2  ;;  %v759_v15 = vmul.f32 %v758_v11, %v4458_v4  ;;  %s879_s27 = sadd.s32 83, %s4393_s8  ;;  %s889_s28 = sld [smem:[#allocation2 + %s888_s29]] }
 0x17b   : >> { %v786_v16 = vstv %s785_s30  ;;  %v796_v17 = vmul.f32 %v795_v14, %v4458_v4  ;;  %s880_s26 = sld [smem:[#allocation2 + %s879_s27]]  ;;  %s554_s24 = sadd.s32 59, %s4393_s8 }
 0x17c   : >> { %675 = vrot.lane.b32.xlu1 %v673_v62, %s4112_s19  ;;  %v834_v19 = vstv %s833_s25  ;;  %v787_v20 = vmul.f32 %v786_v16, %v4458_v4  ;;  %s526_s2 = sadd.s32 57, %s4393_s8  ;;  %s531_s7 = sadd.s32 85, %s4393_s8 }
 0x17d   : >> { %v825_v21 = vstv %s824_s9  ;;  %v835_v22 = vmul.f32 %v4479_v18, %v834_v19  ;;  %s4502_s30 = sld [smem:[#allocation2 + %s554_s24]]  ;;  %s559_s25 = sadd.s32 87, %s4393_s8 }
 0x17e   : >> { %666 = vrot.lane.b32.xlu0 %v664_v1, %s4112_s19  ;;  %v862_v23 = vstv %s861_s11  ;;  %v826_v24 = vmul.f32 %v4479_v18, %v825_v21  ;;  %s4504_s14 = sld [smem:[#allocation2 + %s526_s2]]  ;;  %s582_s9 = sadd.s32 61, %s4393_s8 }
 0x17f   : >> { %v853_v25 = vstv %s852_s5  ;;  %v863_v26 = vmul.f32 %v4479_v18, %v862_v23  ;;  %s4509_s6 = sld [smem:[#allocation2 + %s531_s7]]  ;;  %s628_s0 = sadd.s32 92, %s4393_s8 }
 0x180   : >> { %703 = vrot.lane.b32.xlu1 %v701_v3, %s4112_s19  ;;  %v890_v27 = vstv %s889_s28  ;;  %v854_v28 = vmul.f32 %v4479_v18, %v853_v25  ;;  %s4514_s11 = sld [smem:[#allocation2 + %s559_s25]]  ;;  %s623_s29 = sadd.s32 64, %s4393_s8 }
 0x181   : >> { %v881_v29 = vstv %s880_s26  ;;  %v891_v30 = vmul.f32 %v4479_v18, %v890_v27  ;;  %s656_s27 = sadd.s32 94, %s4393_s8  ;;  %s4522_s28 = sld [smem:[#allocation2 + %s582_s9]] }
 0x182   : >> { %694 = vrot.lane.b32.xlu0 %v692_v6, %s4112_s19  ;;  %v882_v31 = vmul.f32 %v4479_v18, %v881_v29  ;;  %s4524_s26 = sld [smem:[#allocation2 + %s628_s0]]  ;;  %s651_s2 = sadd.s32 66, %s4393_s8 }
 0x183   : >> { %s4526_s24 = sld [smem:[#allocation2 + %s623_s29]]  ;;  %s723_s25 = sadd.s32 99, %s4393_s8  ;;  %v556_v45 = vstv %s4502_s30 }
 0x184   : >> { %742 = vrot.lane.b32.xlu1 %v740_v8, %s4112_s19  ;;  %s4531_s7 = sld [smem:[#allocation2 + %s656_s27]]  ;;  %s679_s23 = sadd.s32 68, %s4393_s8  ;;  %v528_v38 = vstv %s4504_s14  ;;  %v557_v55 = vmul.f32 %v556_v45, %v4412_v42 }
 0x185   : >> { %v533_v37 = vstv %s4509_s6  ;;  %s4537_s9 = sld [smem:[#allocation2 + %s651_s2]]  ;;  %s718_s0 = sadd.s32 71, %s4393_s8  ;;  %v529_v46 = vmul.f32 %v528_v38, %v4412_v42 }
 0x186   : >> { %733 = vrot.lane.b32.xlu0 %v731_v10, %s4112_s19  ;;  %s4540_s29 = sld [smem:[#allocation2 + %s723_s25]]  ;;  %s751_s22 = sadd.s32 101, %s4393_s8  ;;  %v561_v40 = vstv %s4514_s11  ;;  %v534_v41 = vmul.f32 %v533_v37, %v4412_v42 }
 0x187   : >> { %s4546_s21 = sld [smem:[#allocation2 + %s679_s23]]  ;;  %s746_s2 = sadd.s32 73, %s4393_s8  ;;  %v562_v47 = vmul.f32 %v561_v40, %v4412_v42  ;;  %v584_v56 = vstv %s4522_s28 }
 0x188   : >> { %770 = vrot.lane.b32.xlu1 %v768_v13, %s4112_s19  ;;  %s4550_s6 = sld [smem:[#allocation2 + %s718_s0]]  ;;  %v630_v43 = vstv %s4524_s26  ;;  %s818_s14 = sadd.s32 106, %s4393_s8  ;;  %v585_v7 = vmul.f32 %v584_v56, %v4412_v42 }
 0x189   : >> { %s4556_s25 = sld [smem:[#allocation2 + %s751_s22]]  ;;  %s779_s23 = sadd.s32 103, %s4393_s8  ;;  %v625_v48 = vstv %s4526_s24  ;;  %v631_v52 = vmul.f32 %v4435_v54, %v630_v43 }
 0x18a   : >> { %761 = vrot.lane.b32.xlu0 %v759_v15, %s4112_s19  ;;  %s813_s11 = sadd.s32 78, %s4393_s8  ;;  %s4567_s26 = sld [smem:[#allocation2 + %s746_s2]]  ;;  %v658_v53 = vstv %s4531_s7  ;;  %v626_v59 = vmul.f32 %v4435_v54, %v625_v48 }
 0x18b   : >> { %s4573_s22 = sld [smem:[#allocation2 + %s818_s14]]  ;;  %s846_s30 = sadd.s32 108, %s4393_s8  ;;  %v653_v60 = vstv %s4537_s9  ;;  %v659_v63 = vmul.f32 %v4435_v54, %v658_v53 }
 0x18c   : >> { %798 = vrot.lane.b32.xlu1 %v796_v17, %s4112_s19  ;;  %s4578_s24 = sld [smem:[#allocation2 + %s779_s23]]  ;;  %v725_v61 = vstv %s4540_s29  ;;  %s874_s2 = sadd.s32 110, %s4393_s8  ;;  %v654_v8 = vmul.f32 %v4435_v54, %v653_v60 }
 0x18d   : >> { %s4580_s0 = sld [smem:[#allocation2 + %s813_s11]]  ;;  %v681_v9 = vstv %s4546_s21  ;;  %v726_v10 = vmul.f32 %v725_v61, %v4458_v4  ;;  %s869_s29 = sadd.s32 82, %s4393_s8 }
 0x18e   : >> { %789 = vrot.lane.b32.xlu0 %v787_v20, %s4112_s19  ;;  %s4590_s7 = sld [smem:[#allocation2 + %s846_s30]]  ;;  %v720_v6 = vstv %s4550_s6  ;;  %s4113_s6 = smov 5  }
 0x18f   : >> { %v753_v16 = vstv %s4556_s25  ;;  %v721_v19 = vmul.f32 %v720_v6, %v4458_v4  ;;  %s4607_s21 = sld [smem:[#allocation2 + %s874_s2]]  ;;  %s4114_s25 = smov 11  }
 0x190   : >> { %837 = vrot.lane.b32.xlu1 %v835_v22, %s4112_s19  ;;  %v748_v21 = vstv %s4567_s26  ;;  %v754_v27 = vmul.f32 %v753_v16, %v4458_v4  ;;  %s4115_s14 = smov 17   ;;  %s514_s23 = sadd.s32 84, %s4393_s8 }
 0x191   : >> { %v820_v25 = vstv %s4573_s22  ;;  %s618_s11 = sadd.s32 91, %s4393_s8  ;;  %s613_s26 = sadd.s32 63, %s4393_s8 }
 0x192   : >> { %828 = vrot.lane.b32.xlu0 %v826_v24, %s4112_s19  ;;  %v781_v29 = vstv %s4578_s24  ;;  %s619_s22 = sld [smem:[#allocation2 + %s618_s11]]  ;;  %s713_s30 = sadd.s32 98, %s4393_s8 }
 0x193   : >> { %v782_v43 = vmul.f32 %v781_v29, %v4458_v4  ;;  %s6398_s24 = sadd.s32 56, %s4393_s8  ;;  %s808_s2 = sadd.s32 105, %s4393_s8 }
 0x194   : >> { %865 = vrot.lane.b32.xlu1 %v863_v26, %s4112_s19  ;;  %v682_v26 = vmul.f32 %v4435_v54, %v681_v9  ;;  %v848_v38 = vstv %s4590_s7  ;;  %s714_s7 = sld [smem:[#allocation2 + %s713_s30]] }
 0x196   : >> { %856 = vrot.lane.b32.xlu0 %v854_v28, %s4112_s19 }
 0x198   : >> { %893 = vrot.lane.b32.xlu1 %v891_v30, %s4112_s19  ;;  %v815_v30 = vstv %s4580_s0  ;;  %s518_s0 = sld [smem:[#allocation2 + %s6398_s24]] }
 0x199   : >> { %v816_v45 = vmul.f32 %v4479_v18, %v815_v30 }
 0x19a   : >> { %884 = vrot.lane.b32.xlu0 %v882_v31, %s4112_s19  ;;  %s587_s19 = sadd.s32 89, %s4393_s8 }
 0x19b   : >> { %s4517_s5 = sld [smem:[#allocation2 + %s587_s19]]  ;;  %s684_s19 = sadd.s32 96, %s4393_s8 }
 0x19c   : >> { %s4544_s27 = sld [smem:[#allocation2 + %s684_s19]]  ;;  %s774_s19 = sadd.s32 75, %s4393_s8 }
 0x19d   : >> { %s4588_s28 = sld [smem:[#allocation2 + %s774_s19]] }
 0x19e   : >> { %s522_s19 = sld [smem:[#allocation2 + %s514_s23]]  ;;  %s6399_s23 = sshll.u32 %s4088_s3, 3 }
 0x19f   : >> { %s918_s11 = scalar_lea.vmem %s4262_s1, %s6399_s23  ;;  %s513_s3 = sadd.s32 1, %s4088_s3  }
 0x1a0   : >> { %p510_p2 = scmp.ge.s32.totalorder %s513_s3, 4  }
 0x1a1   : >> { %v589_v51 = vstv %s4517_s5  ;;  %s841_s5 = sadd.s32 80, %s4393_s8 }
 0x1a2   : >> { %v590_v62 = vmul.f32 %v589_v51, %v4412_v42  ;;  %v686_v5 = vstv %s4544_s27  ;;  %s4600_s9 = sld [smem:[#allocation2 + %s841_s5]] }
 0x1a3   : >> { %v687_v17 = vmul.f32 %v4435_v54, %v686_v5  ;;  %v776_v37 = vstv %s4588_s28  ;;  %s4622_s27 = sld [smem:[#allocation2 + %s869_s29]]  ;;  %s708_s28 = sadd.s32 70, %s4393_s8 }
 0x1a4   : >> { %s614_s5 = sld [smem:[#allocation2 + %s613_s26]] }
 0x1a5   : >> { %s809_s29 = sld [smem:[#allocation2 + %s808_s2]] }
 0x1aa   : >> { %v615_v29 = vstv %s614_s5 }
 0x1de   : >> { %v4498_v32 = vpop.permute.xlu1 %569 }
 0x1df   : >> { %v572_v13 = vadd.f32 %v4498_v32, %v557_v55  ;;  %v849_v55 = vmul.f32 %v4479_v18, %v848_v38 }
 0x1e0   : >> { %v542_v33 = vpop.permute.xlu0 %541 }
 0x1e1   : >> { %v544_v58 = vadd.f32 %v542_v33, %v529_v46  ;;  %v655_v33 = vadd.f32 %v654_v8, %v572_v13  ;;  %v843_v46 = vstv %s4600_s9  ;;  %s709_s9 = sld [smem:[#allocation2 + %s708_s28]] }
 0x1e2   : >> { %v4507_v34 = vpop.permute.xlu1 %578 }
 0x1e3   : >> { %v581_v2 = vadd.f32 %v4507_v34, %v562_v47  ;;  %v627_v15 = vadd.f32 %v626_v59, %v544_v58 }
 0x1e4   : >> { %v551_v35 = vpop.permute.xlu0 %550 }
 0x1e5   : >> { %v553_v50 = vadd.f32 %v551_v35, %v534_v41  ;;  %v660_v24 = vadd.f32 %v659_v63, %v581_v2  ;;  %v749_v35 = vmul.f32 %v748_v21, %v4458_v4 }
 0x1e6   : >> { %v4520_v36 = vpop.permute.xlu1 %606 }
 0x1e7   : >> { %v632_v3 = vadd.f32 %v631_v52, %v553_v50  ;;  %v609_v22 = vadd.f32 %v4520_v36, %v590_v62  ;;  %v777_v52 = vmul.f32 %v776_v37, %v4458_v4  ;;  %v844_v62 = vmul.f32 %v4479_v18, %v843_v46 }
 0x1e8   : >> { %v4529_v12 = vpop.permute.xlu0 %597 }
 0x1e9   : >> { %v600_v31 = vadd.f32 %v4529_v12, %v585_v7  ;;  %v688_v40 = vadd.f32 %v687_v17, %v609_v22  ;;  %v871_v7 = vstv %s4622_s27 }
 0x1ea   : >> { %v648_v0 = vpop.permute.xlu1 %647  ;;  %v872_v16 = vmul.f32 %v4479_v18, %v871_v7 }
 0x1eb   : >> { %v650_v14 = vadd.f32 %v648_v0, %v632_v3  ;;  %v821_v0 = vmul.f32 %v4479_v18, %v820_v25  ;;  %v683_v48 = vadd.f32 %v682_v26, %v600_v31  ;;  %v523_v26 = vstv %s522_s19 }
 0x1ec   : >> { %v639_v39 = vpop.permute.xlu0 %638  ;;  %v524_v31 = vmul.f32 %v523_v26, %v4412_v42 }
 0x1ed   : >> { %v641_v23 = vadd.f32 %v639_v39, %v627_v15  ;;  %v727_v34 = vadd.f32 %v726_v10, %v650_v14 }
 0x1ee   : >> { %v4554_v44 = vpop.permute.xlu1 %675 }
 0x1ef   : >> { %v678_v32 = vadd.f32 %v4554_v44, %v660_v24  ;;  %v722_v12 = vadd.f32 %v721_v19, %v641_v23 }
 0x1f0   : >> { %v4565_v49 = vpop.permute.xlu0 %666 }
 0x1f1   : >> { %v669_v39 = vadd.f32 %v4565_v49, %v655_v33  ;;  %v755_v51 = vadd.f32 %v754_v27, %v678_v32  ;;  %v876_v49 = vstv %s4607_s21  ;;  %s803_s21 = sadd.s32 77, %s4393_s8  ;;  %v620_v27 = vstv %s619_s22 }
 0x1f2   : >> { %v704_v57 = vpop.permute.xlu1 %703  ;;  %v877_v6 = vmul.f32 %v4479_v18, %v876_v49  ;;  %s804_s27 = sld [smem:[#allocation2 + %s803_s21]]  ;;  %v621_v30 = vmul.f32 %v4435_v54, %v620_v27  ;;  %v715_v32 = vstv %s714_s7  ;;  %v616_v33 = vmul.f32 %v4435_v54, %v615_v29 }
 0x1f3   : >> { %v706_v47 = vadd.f32 %v704_v57, %v688_v40  ;;  %v750_v59 = vadd.f32 %v749_v35, %v669_v39  ;;  %v710_v35 = vstv %s709_s9 }
 0x1f4   : >> { %v695_v1 = vpop.permute.xlu0 %694  ;;  %v622_v37 = vadd.f32 %v621_v30, %v524_v31  ;;  %v711_v38 = vmul.f32 %v710_v35, %v4458_v4 }
 0x1f5   : >> { %v697_v56 = vadd.f32 %v695_v1, %v683_v48  ;;  %v783_v2 = vadd.f32 %v782_v43, %v706_v47 }
 0x1f6   : >> { %v743_v11 = vpop.permute.xlu1 %742 }
 0x1f7   : >> { %v745_v41 = vadd.f32 %v743_v11, %v727_v34  ;;  %v778_v9 = vadd.f32 %v777_v52, %v697_v56 }
 0x1f8   : >> { %v734_v20 = vpop.permute.xlu0 %733  ;;  %v805_v40 = vstv %s804_s27 }
 0x1f9   : >> { %v736_v50 = vadd.f32 %v734_v20, %v722_v12  ;;  %v822_v60 = vadd.f32 %v821_v0, %v745_v41  ;;  %v810_v0 = vstv %s809_s29  ;;  %v806_v54 = vmul.f32 %v4479_v18, %v805_v40 }
 0x1fa   : >> { %v771_v28 = vpop.permute.xlu1 %770  ;;  %v811_v41 = vmul.f32 %v4479_v18, %v810_v0 }
 0x1fb   : >> { %v773_v58 = vadd.f32 %v771_v28, %v755_v51  ;;  %v817_v3 = vadd.f32 %v816_v45, %v736_v50  ;;  %v519_v28 = vstv %s518_s0 }
 0x1fc   : >> { %v762_v36 = vpop.permute.xlu0 %761  ;;  %v520_v34 = vmul.f32 %v519_v28, %v4412_v42 }
 0x1fd   : >> { %v764_v63 = vadd.f32 %v762_v36, %v750_v59  ;;  %v850_v1 = vadd.f32 %v849_v55, %v773_v58  ;;  %v716_v36 = vmul.f32 %v715_v32, %v4458_v4 }
 0x1fe   : >> { %v799_v44 = vpop.permute.xlu1 %798  ;;  %v617_v39 = vadd.f32 %v616_v33, %v520_v34 }
 0x1ff   : >> { %v801_v8 = vadd.f32 %v799_v44, %v783_v2  ;;  %v845_v15 = vadd.f32 %v844_v62, %v764_v63  ;;  %v717_v12 = vadd.f32 %v716_v36, %v622_v37 }
 0x200   : >> { %v790_v53 = vpop.permute.xlu0 %789  ;;  %v712_v42 = vadd.f32 %v711_v38, %v617_v39 }
 0x201   : >> { %v792_v13 = vadd.f32 %v790_v53, %v778_v9  ;;  %v878_v20 = vadd.f32 %v877_v6, %v801_v8  ;;  %v812_v45 = vadd.f32 %v811_v41, %v717_v12 }
 0x202   : >> { %v838_v61 = vpop.permute.xlu1 %837  ;;  %v807_v47 = vadd.f32 %v806_v54, %v712_v42 }
 0x203   : >> { %v840_v57 = vadd.f32 %v838_v61, %v822_v60  ;;  %v873_v23 = vadd.f32 %v872_v16, %v792_v13 }
 0x204   : >> { %v829_v5 = vpop.permute.xlu0 %828 }
 0x205   : >> { %v831_v10 = vadd.f32 %v829_v5, %v817_v3  ;;  %922 = vrot.lane.b32.xlu1 %v840_v57, %s4113_s6 }
 0x206   : >> { %v866_v11 = vpop.permute.xlu1 %865 }
 0x207   : >> { %898 = vrot.lane.b32.xlu0 %v831_v10, %s4113_s6  ;;  %v868_v14 = vadd.f32 %v866_v11, %v850_v1  ;;  %s936_s6 = sadd.s32 1, %s4249_s10 }
 0x208   : >> { %v857_v17 = vpop.permute.xlu0 %856 }
 0x209   : >> { %v859_v19 = vadd.f32 %v857_v17, %v845_v15  ;;  %926 = vrot.lane.b32.xlu1 %v868_v14, %s4114_s25 }
 0x20a   : >> { %v894_v21 = vpop.permute.xlu1 %893 }
 0x20b   : >> { %902 = vrot.lane.b32.xlu0 %v859_v19, %s4114_s25  ;;  %v896_v22 = vadd.f32 %v894_v21, %v878_v20  ;;  %s937_s25 = sld [smem:[#allocation4 + %s936_s6]] }
 0x20c   : >> { %v885_v24 = vpop.permute.xlu0 %884 }
 0x20d   : >> { %v887_v25 = vadd.f32 %v885_v24, %v873_v23  ;;  %930 = vrot.lane.b32.xlu1 %v896_v22, %s4115_s14 }
 0x20f   : >> { %906 = vrot.lane.b32.xlu0 %v887_v25, %s4115_s14  ;;  %s915_s14 = sld [smem:[#allocation4 + %s4249_s10]] }
 0x211   : >> { %v938_v50 = vstv %s937_s25 }
 0x215   : >> { %v916_v55 = vstv %s915_s14 }
 0x277   : >> { %v923_v43 = vpop.permute.xlu1 %922 }
 0x278   : >> { %v933_v48 = vsel %vm909_vm4, %v812_v45, %v923_v43 }
 0x279   : >> { %v899_v44 = vpop.permute.xlu0 %898 }
 0x27a   : >> { %v910_v53 = vsel %vm909_vm4, %v807_v47, %v899_v44 }
 0x27b   : >> { %v927_v46 = vpop.permute.xlu1 %926 }
 0x27c   : >> { %v934_v51 = vsel %vm911_vm5, %v933_v48, %v927_v46 }
 0x27d   : >> { %v903_v4 = vpop.permute.xlu0 %902 }
 0x27e   : >> { %v912_v49 = vsel %vm911_vm5, %v910_v53, %v903_v4 }
 0x27f   : >> { %v931_v52 = vpop.permute.xlu1 %930  ;;  %512 = sbr.rel (!%p510_p2) target bundleno = 354 (0x162), region = 178 }
 0x280   : >> { %v935_v18 = vsel %vm913_vm6, %v934_v51, %v931_v52 }
 0x281   : >> { %v939_v56 = vadd.f32 %v938_v50, %v935_v18  ;;  %v907_v58 = vpop.permute.xlu0 %906 }
 0x282   : >> { %v914_v59 = vsel %vm913_vm6, %v912_v49, %v907_v58 }
 0x283   : >> { %3755 = vst.msk [vmem:[%s918_s11 + $0x20] sm:$0x1f] %vm919_vm7, %v939_v56  ;;  %v917_v60 = vadd.f32 %v916_v55, %v914_v59 }
 0x285   : >> { %920 = vst.msk [vmem:[%s918_s11] sm:$0x1f] %vm919_vm7, %v917_v60 }
 0x286 PF: > { %p3756_p3 = scmp.ne.s32.totalorder %s4056_s12, 2 }
 0x287   : > { %s4662_s26 = smul.u32 (!%p3756_p3), 56, %s4060_s13  ;;  %s4665_s22 = smov (!%p3756_p3), 0  }
 0x288   : > { %946 = sbr.rel (%p3756_p3) target bundleno = 947 (0x3b3), region = 66 }
 0x28f LB: >> { %s1005_s8 = sadd.s32 172, %s4662_s26  ;;  %s6378_s3 = sshll.u32 %s4092_s22, 3  ;;  %vm1350_vm8 = vcmask 48128   ;;  %vm1352_vm9 = vcmask 97280   ;;  %vm1354_vm10 = vcmask 146432   ;;  %vm1360_vm11 = vcmask 192512   ;;  %s4092_s22 = sphi %s4665_s22, %s954_s22  }
 0x290   : >> { %s1006_s30 = sld [smem:[#allocation2 + %s1005_s8]]  ;;  %s4675_s24 = scalar_lea.vmem %s4257_s4, %s6378_s3 }
 0x291   : >> { %s977_s0 = sadd.s32 170, %s4662_s26  ;;  %s1014_s28 = sadd.s32 200, %s4662_s26  ;;  %v4681_v61 = vld [vmem:[%s4675_s24 + $0x1] sm:$0x1f]  ;;  %v4704_v1 = vld [vmem:[%s4675_s24 + $0x29] sm:$0x1f] }
 0x292   : >> { %s978_s5 = sld [smem:[#allocation2 + %s977_s0]]  ;;  %s986_s2 = sadd.s32 198, %s4662_s26  ;;  %v4727_v25 = vld [vmem:[%s4675_s24] sm:$0x1f]  ;;  %v4748_v0 = vld [vmem:[%s4675_s24 + $0x28] sm:$0x1f] }
 0x293   : >> { %s1015_s7 = sld [smem:[#allocation2 + %s1014_s28]]  ;;  %s1042_s21 = sadd.s32 202, %s4662_s26 }
 0x294   : >> { %s987_s9 = sld [smem:[#allocation2 + %s986_s2]]  ;;  %s1033_s27 = sadd.s32 174, %s4662_s26 }
 0x295   : >> { %s1043_s29 = sld [smem:[#allocation2 + %s1042_s21]]  ;;  %s1083_s25 = sadd.s32 205, %s4662_s26 }
 0x296   : >> { %v1007_v62 = vstv %s1006_s30  ;;  %s1034_s6 = sld [smem:[#allocation2 + %s1033_s27]]  ;;  %s1074_s23 = sadd.s32 177, %s4662_s26 }
 0x297   : >> { %v1008_v63 = vmul.f32 %v1007_v62, %v4681_v61  ;;  %s4687_s14 = sld [smem:[#allocation2 + %s1083_s25]]  ;;  %s1111_s8 = sadd.s32 207, %s4662_s26 }
 0x298   : >> { %v979_v2 = vstv %s978_s5  ;;  %s4690_s11 = sld [smem:[#allocation2 + %s1074_s23]]  ;;  %s4116_s0 = smov 1  }
 0x299   : >> { %1010 = vrot.lane.b32.xlu1 %v1008_v63, %s4116_s0  ;;  %v980_v57 = vmul.f32 %v979_v2, %v4681_v61  ;;  %v1016_v3 = vstv %s1015_s7  ;;  %s1102_s30 = sadd.s32 179, %s4662_s26  ;;  %s1112_s28 = sld [smem:[#allocation2 + %s1111_s8]] }
 0x29a   : >> { %v1017_v5 = vmul.f32 %v1016_v3, %v4681_v61  ;;  %v988_v6 = vstv %s987_s9  ;;  %s1139_s5 = sadd.s32 209, %s4662_s26  ;;  %s1103_s2 = sld [smem:[#allocation2 + %s1102_s30]] }
 0x29b   : >> { %982 = vrot.lane.b32.xlu0 %v980_v57, %s4116_s0  ;;  %v989_v7 = vmul.f32 %v988_v6, %v4681_v61  ;;  %v1044_v8 = vstv %s1043_s29  ;;  %s1130_s7 = sadd.s32 181, %s4662_s26  ;;  %s1140_s9 = sld [smem:[#allocation2 + %s1139_s5]] }
 0x29c   : >> { %v1035_v9 = vstv %s1034_s6  ;;  %v1045_v10 = vmul.f32 %v1044_v8, %v4681_v61  ;;  %s1178_s21 = sadd.s32 212, %s4662_s26  ;;  %s1131_s29 = sld [smem:[#allocation2 + %s1130_s7]] }
 0x29d   : >> { %1019 = vrot.lane.b32.xlu1 %v1017_v5, %s4116_s0  ;;  %v1085_v11 = vstv %s4687_s14  ;;  %v1036_v13 = vmul.f32 %v1035_v9, %v4681_v61  ;;  %s1169_s27 = sadd.s32 184, %s4662_s26  ;;  %s1179_s6 = sld [smem:[#allocation2 + %s1178_s21]] }
 0x29e   : >> { %v1076_v14 = vstv %s4690_s11  ;;  %v1086_v15 = vmul.f32 %v4704_v1, %v1085_v11  ;;  %s1206_s25 = sadd.s32 214, %s4662_s26  ;;  %s1170_s14 = sld [smem:[#allocation2 + %s1169_s27]] }
 0x29f   : >> { %991 = vrot.lane.b32.xlu0 %v989_v7, %s4116_s0  ;;  %v1113_v16 = vstv %s1112_s28  ;;  %v1077_v17 = vmul.f32 %v4704_v1, %v1076_v14  ;;  %s1197_s23 = sadd.s32 186, %s4662_s26  ;;  %s1207_s11 = sld [smem:[#allocation2 + %s1206_s25]] }
 0x2a0   : >> { %v1104_v19 = vstv %s1103_s2  ;;  %v1114_v20 = vmul.f32 %v4704_v1, %v1113_v16  ;;  %s1234_s8 = sadd.s32 216, %s4662_s26  ;;  %s1198_s30 = sld [smem:[#allocation2 + %s1197_s23]] }
 0x2a1   : >> { %1047 = vrot.lane.b32.xlu1 %v1045_v10, %s4116_s0  ;;  %v1141_v21 = vstv %s1140_s9  ;;  %v1105_v22 = vmul.f32 %v4704_v1, %v1104_v19  ;;  %s1225_s28 = sadd.s32 188, %s4662_s26  ;;  %s1235_s5 = sld [smem:[#allocation2 + %s1234_s8]] }
 0x2a2   : >> { %v1132_v23 = vstv %s1131_s29  ;;  %v1142_v24 = vmul.f32 %v4704_v1, %v1141_v21  ;;  %s1273_s2 = sadd.s32 219, %s4662_s26  ;;  %s1226_s7 = sld [smem:[#allocation2 + %s1225_s28]] }
 0x2a3   : >> { %1038 = vrot.lane.b32.xlu0 %v1036_v13, %s4116_s0  ;;  %v1180_v26 = vstv %s1179_s6  ;;  %v1133_v27 = vmul.f32 %v4704_v1, %v1132_v23  ;;  %s1264_s9 = sadd.s32 191, %s4662_s26  ;;  %s1274_s21 = sld [smem:[#allocation2 + %s1273_s2]] }
 0x2a4   : >> { %v1171_v28 = vstv %s1170_s14  ;;  %v1181_v29 = vmul.f32 %v1180_v26, %v4727_v25  ;;  %s1301_s29 = sadd.s32 221, %s4662_s26  ;;  %s1265_s27 = sld [smem:[#allocation2 + %s1264_s9]] }
 0x2a5   : >> { %1088 = vrot.lane.b32.xlu1 %v1086_v15, %s4116_s0  ;;  %v1208_v30 = vstv %s1207_s11  ;;  %v1172_v31 = vmul.f32 %v1171_v28, %v4727_v25  ;;  %s1292_s6 = sadd.s32 193, %s4662_s26  ;;  %s1302_s25 = sld [smem:[#allocation2 + %s1301_s29]] }
 0x2a6   : >> { %v1199_v32 = vstv %s1198_s30  ;;  %v1209_v33 = vmul.f32 %v1208_v30, %v4727_v25  ;;  %s1329_s14 = sadd.s32 223, %s4662_s26  ;;  %s1293_s23 = sld [smem:[#allocation2 + %s1292_s6]] }
 0x2a7   : >> { %1079 = vrot.lane.b32.xlu0 %v1077_v17, %s4116_s0  ;;  %v1236_v34 = vstv %s1235_s5  ;;  %v1200_v35 = vmul.f32 %v1199_v32, %v4727_v25  ;;  %s1320_s11 = sadd.s32 195, %s4662_s26  ;;  %s1330_s8 = sld [smem:[#allocation2 + %s1329_s14]] }
 0x2a8   : >> { %v1227_v36 = vstv %s1226_s7  ;;  %v1237_v37 = vmul.f32 %v1236_v34, %v4727_v25  ;;  %s1321_s30 = sld [smem:[#allocation2 + %s1320_s11]]  ;;  %s995_s24 = sadd.s32 171, %s4662_s26 }
 0x2a9   : >> { %1116 = vrot.lane.b32.xlu1 %v1114_v20, %s4116_s0  ;;  %v1275_v38 = vstv %s1274_s21  ;;  %v1228_v39 = vmul.f32 %v1227_v36, %v4727_v25  ;;  %s967_s28 = sadd.s32 169, %s4662_s26  ;;  %s972_s5 = sadd.s32 197, %s4662_s26 }
 0x2aa   : >> { %v1266_v40 = vstv %s1265_s27  ;;  %v1276_v41 = vmul.f32 %v4748_v0, %v1275_v38  ;;  %s4771_s2 = sld [smem:[#allocation2 + %s995_s24]]  ;;  %s1000_s9 = sadd.s32 199, %s4662_s26 }
 0x2ab   : >> { %1107 = vrot.lane.b32.xlu0 %v1105_v22, %s4116_s0  ;;  %v1303_v12 = vstv %s1302_s25  ;;  %v1267_v43 = vmul.f32 %v4748_v0, %v1266_v40  ;;  %s4773_s7 = sld [smem:[#allocation2 + %s967_s28]]  ;;  %s1023_s29 = sadd.s32 173, %s4662_s26 }
 0x2ac   : >> { %v1294_v54 = vstv %s1293_s23  ;;  %v1304_v42 = vmul.f32 %v4748_v0, %v1303_v12  ;;  %s4778_s21 = sld [smem:[#allocation2 + %s972_s5]]  ;;  %s1069_s27 = sadd.s32 204, %s4662_s26 }
 0x2ad   : >> { %1144 = vrot.lane.b32.xlu1 %v1142_v24, %s4116_s0  ;;  %v1331_v44 = vstv %s1330_s8  ;;  %v1295_v45 = vmul.f32 %v4748_v0, %v1294_v54  ;;  %s4783_s6 = sld [smem:[#allocation2 + %s1000_s9]]  ;;  %s1064_s25 = sadd.s32 176, %s4662_s26 }
 0x2ae   : >> { %v1322_v46 = vstv %s1321_s30  ;;  %v1332_v47 = vmul.f32 %v4748_v0, %v1331_v44  ;;  %s1097_s23 = sadd.s32 206, %s4662_s26  ;;  %s4791_s11 = sld [smem:[#allocation2 + %s1023_s29]] }
 0x2af   : >> { %1135 = vrot.lane.b32.xlu0 %v1133_v27, %s4116_s0  ;;  %v1323_v4 = vmul.f32 %v4748_v0, %v1322_v46  ;;  %s4793_s8 = sld [smem:[#allocation2 + %s1069_s27]]  ;;  %s1092_s24 = sadd.s32 178, %s4662_s26 }
 0x2b0   : >> { %s4795_s30 = sld [smem:[#allocation2 + %s1064_s25]]  ;;  %s1164_s5 = sadd.s32 211, %s4662_s26  ;;  %v997_v2 = vstv %s4771_s2 }
 0x2b1   : >> { %1183 = vrot.lane.b32.xlu1 %v1181_v29, %s4116_s0  ;;  %s4800_s28 = sld [smem:[#allocation2 + %s1097_s23]]  ;;  %s1125_s9 = sadd.s32 208, %s4662_s26  ;;  %v969_v56 = vstv %s4773_s7  ;;  %v998_v11 = vmul.f32 %v997_v2, %v4681_v61 }
 0x2b2   : >> { %v974_v55 = vstv %s4778_s21  ;;  %s4806_s29 = sld [smem:[#allocation2 + %s1092_s24]]  ;;  %s1159_s27 = sadd.s32 183, %s4662_s26  ;;  %v970_v57 = vmul.f32 %v969_v56, %v4681_v61 }
 0x2b3   : >> { %1174 = vrot.lane.b32.xlu0 %v1172_v31, %s4116_s0  ;;  %s4809_s25 = sld [smem:[#allocation2 + %s1164_s5]]  ;;  %s1192_s3 = sadd.s32 213, %s4662_s26  ;;  %v1002_v59 = vstv %s4783_s6  ;;  %v975_v60 = vmul.f32 %v974_v55, %v4681_v61 }
 0x2b4   : >> { %s4813_s23 = sld [smem:[#allocation2 + %s1125_s9]]  ;;  %s1187_s24 = sadd.s32 185, %s4662_s26  ;;  %v1003_v3 = vmul.f32 %v1002_v59, %v4681_v61  ;;  %v1025_v13 = vstv %s4791_s11 }
 0x2b5   : >> { %1211 = vrot.lane.b32.xlu1 %v1209_v33, %s4116_s0  ;;  %s4819_s21 = sld [smem:[#allocation2 + %s1159_s27]]  ;;  %v1071_v62 = vstv %s4793_s8  ;;  %s1259_s7 = sadd.s32 218, %s4662_s26  ;;  %v1026_v28 = vmul.f32 %v1025_v13, %v4681_v61 }
 0x2b6   : >> { %s4825_s5 = sld [smem:[#allocation2 + %s1192_s3]]  ;;  %s1220_s6 = sadd.s32 215, %s4662_s26  ;;  %v1066_v5 = vstv %s4795_s30  ;;  %v1072_v9 = vmul.f32 %v4704_v1, %v1071_v62 }
 0x2b7   : >> { %1202 = vrot.lane.b32.xlu0 %v1200_v35, %s4116_s0  ;;  %s1254_s9 = sadd.s32 190, %s4662_s26  ;;  %s4836_s8 = sld [smem:[#allocation2 + %s1187_s24]]  ;;  %v1099_v10 = vstv %s4800_s28  ;;  %v1067_v16 = vmul.f32 %v4704_v1, %v1066_v5 }
 0x2b8   : >> { %s4842_s3 = sld [smem:[#allocation2 + %s1259_s7]]  ;;  %s1287_s2 = sadd.s32 220, %s4662_s26  ;;  %v1094_v17 = vstv %s4806_s29  ;;  %v1100_v21 = vmul.f32 %v4704_v1, %v1099_v10 }
 0x2b9   : >> { %1239 = vrot.lane.b32.xlu1 %v1237_v37, %s4116_s0  ;;  %s4847_s30 = sld [smem:[#allocation2 + %s1220_s6]]  ;;  %v1166_v19 = vstv %s4809_s25  ;;  %s1315_s24 = sadd.s32 222, %s4662_s26  ;;  %v1095_v29 = vmul.f32 %v4704_v1, %v1094_v17 }
 0x2ba   : >> { %s4849_s27 = sld [smem:[#allocation2 + %s1254_s9]]  ;;  %v1127_v26 = vstv %s4813_s23  ;;  %v1167_v31 = vmul.f32 %v1166_v19, %v4727_v25  ;;  %s1310_s25 = sadd.s32 194, %s4662_s26 }
 0x2bb   : >> { %1230 = vrot.lane.b32.xlu0 %v1228_v39, %s4116_s0  ;;  %s4859_s28 = sld [smem:[#allocation2 + %s1287_s2]]  ;;  %v1161_v27 = vstv %s4819_s21  ;;  %v1128_v37 = vmul.f32 %v4704_v1, %v1127_v26  ;;  %s4117_s21 = smov 5  }
 0x2bc   : >> { %v1194_v36 = vstv %s4825_s5  ;;  %v1162_v38 = vmul.f32 %v1161_v27, %v4727_v25  ;;  %s4891_s23 = sld [smem:[#allocation2 + %s1310_s25]]  ;;  %s4118_s5 = smov 11  }
 0x2bd   : >> { %1278 = vrot.lane.b32.xlu1 %v1276_v41, %s4116_s0  ;;  %v1189_v40 = vstv %s4836_s8  ;;  %v1195_v44 = vmul.f32 %v1194_v36, %v4727_v25  ;;  %s4119_s7 = smov 17   ;;  %s955_s6 = sadd.s32 196, %s4662_s26 }
 0x2be   : >> { %v1261_v54 = vstv %s4842_s3  ;;  %s1059_s9 = sadd.s32 203, %s4662_s26  ;;  %s1054_s8 = sadd.s32 175, %s4662_s26 }
 0x2bf   : >> { %1269 = vrot.lane.b32.xlu0 %v1267_v43, %s4116_s0  ;;  %v1222_v46 = vstv %s4847_s30  ;;  %s1060_s3 = sld [smem:[#allocation2 + %s1059_s9]]  ;;  %s1154_s2 = sadd.s32 210, %s4662_s26 }
 0x2c0   : >> { %v1223_v62 = vmul.f32 %v1222_v46, %v4727_v25  ;;  %s6400_s30 = sadd.s32 168, %s4662_s26 }
 0x2c1   : >> { %1306 = vrot.lane.b32.xlu1 %v1304_v42, %s4116_s0  ;;  %v1289_v56 = vstv %s4859_s28  ;;  %s1155_s28 = sld [smem:[#allocation2 + %s1154_s2]] }
 0x2c3   : >> { %1297 = vrot.lane.b32.xlu0 %v1295_v45, %s4116_s0 }
 0x2c5   : >> { %1334 = vrot.lane.b32.xlu1 %v1332_v47, %s4116_s0  ;;  %v1256_v47 = vstv %s4849_s27  ;;  %s959_s27 = sld [smem:[#allocation2 + %s6400_s30]] }
 0x2c6   : >> { %v1257_v2 = vmul.f32 %v4748_v0, %v1256_v47 }
 0x2c7   : >> { %1325 = vrot.lane.b32.xlu0 %v1323_v4, %s4116_s0  ;;  %s1028_s0 = sadd.s32 201, %s4662_s26 }
 0x2c8   : >> { %s4786_s14 = sld [smem:[#allocation2 + %s1028_s0]]  ;;  %s1120_s0 = sadd.s32 180, %s4662_s26 }
 0x2c9   : >> { %s4815_s19 = sld [smem:[#allocation2 + %s1120_s0]]  ;;  %s1215_s0 = sadd.s32 187, %s4662_s26 }
 0x2ca   : >> { %s4857_s11 = sld [smem:[#allocation2 + %s1215_s0]] }
 0x2cb   : >> { %s963_s0 = sld [smem:[#allocation2 + %s955_s6]]  ;;  %s6401_s6 = sshll.u32 %s4092_s22, 3 }
 0x2cc   : >> { %s1359_s9 = scalar_lea.vmem %s4262_s1, %s6401_s6  ;;  %s954_s22 = sadd.s32 1, %s4092_s22  }
 0x2cd   : >> { %p951_p6 = scmp.ge.s32.totalorder %s954_s22, 4  }
 0x2ce   : >> { %v1030_v8 = vstv %s4786_s14  ;;  %s1282_s14 = sadd.s32 192, %s4662_s26 }
 0x2cf   : >> { %v1031_v20 = vmul.f32 %v1030_v8, %v4681_v61  ;;  %v1122_v30 = vstv %s4815_s19  ;;  %s4869_s29 = sld [smem:[#allocation2 + %s1282_s14]] }
 0x2d0   : >> { %s4876_s19 = sld [smem:[#allocation2 + %s1315_s24]]  ;;  %v1123_v42 = vmul.f32 %v4704_v1, %v1122_v30  ;;  %v1217_v55 = vstv %s4857_s11  ;;  %s1149_s11 = sadd.s32 182, %s4662_s26 }
 0x2d1   : >> { %s1055_s14 = sld [smem:[#allocation2 + %s1054_s8]]  ;;  %s1249_s24 = sadd.s32 217, %s4662_s26 }
 0x2d2   : >> { %s1250_s25 = sld [smem:[#allocation2 + %s1249_s24]] }
 0x2d7   : >> { %v1056_v46 = vstv %s1055_s14 }
 0x30b   : >> { %v4767_v48 = vpop.permute.xlu1 %1010 }
 0x30c   : >> { %v1013_v33 = vadd.f32 %v4767_v48, %v998_v11  ;;  %v1290_v11 = vmul.f32 %v4748_v0, %v1289_v56 }
 0x30d   : >> { %v983_v50 = vpop.permute.xlu0 %982 }
 0x30e   : >> { %v985_v15 = vadd.f32 %v983_v50, %v970_v57  ;;  %v1096_v50 = vadd.f32 %v1095_v29, %v1013_v33  ;;  %v1284_v57 = vstv %s4869_s29  ;;  %s1150_s29 = sld [smem:[#allocation2 + %s1149_s11]] }
 0x30f   : >> { %v4776_v51 = vpop.permute.xlu1 %1019 }
 0x310   : >> { %v1022_v23 = vadd.f32 %v4776_v51, %v1003_v3  ;;  %v1068_v35 = vadd.f32 %v1067_v16, %v985_v15 }
 0x311   : >> { %v992_v52 = vpop.permute.xlu0 %991 }
 0x312   : >> { %v994_v7 = vadd.f32 %v992_v52, %v975_v60  ;;  %v1101_v43 = vadd.f32 %v1100_v21, %v1022_v23  ;;  %v1190_v52 = vmul.f32 %v1189_v40, %v4727_v25 }
 0x313   : >> { %v4789_v53 = vpop.permute.xlu1 %1047 }
 0x314   : >> { %v1073_v24 = vadd.f32 %v1072_v9, %v994_v7  ;;  %v1050_v41 = vadd.f32 %v4789_v53, %v1031_v20  ;;  %v1218_v9 = vmul.f32 %v1217_v55, %v4727_v25  ;;  %v1285_v20 = vmul.f32 %v4748_v0, %v1284_v57 }
 0x315   : >> { %v4798_v18 = vpop.permute.xlu0 %1038 }
 0x316   : >> { %v1041_v4 = vadd.f32 %v4798_v18, %v1026_v28  ;;  %v1129_v59 = vadd.f32 %v1128_v37, %v1050_v41  ;;  %v1312_v28 = vstv %s4891_s23 }
 0x317   : >> { %v1089_v49 = vpop.permute.xlu1 %1088  ;;  %v1313_v36 = vmul.f32 %v4748_v0, %v1312_v28 }
 0x318   : >> { %v1091_v34 = vadd.f32 %v1089_v49, %v1073_v24  ;;  %v1262_v49 = vmul.f32 %v4748_v0, %v1261_v54  ;;  %v1124_v5 = vadd.f32 %v1123_v42, %v1041_v4  ;;  %v964_v42 = vstv %s963_s0 }
 0x319   : >> { %v1080_v58 = vpop.permute.xlu0 %1079  ;;  %v965_v4 = vmul.f32 %v964_v42, %v4681_v61 }
 0x31a   : >> { %v1082_v12 = vadd.f32 %v1080_v58, %v1068_v35  ;;  %v1168_v51 = vadd.f32 %v1167_v31, %v1091_v34 }
 0x31b   : >> { %v4823_v63 = vpop.permute.xlu1 %1116 }
 0x31c   : >> { %v1119_v48 = vadd.f32 %v4823_v63, %v1101_v43  ;;  %v1163_v18 = vadd.f32 %v1162_v38, %v1082_v12 }
 0x31d   : >> { %v4834_v6 = vpop.permute.xlu0 %1107 }
 0x31e   : >> { %v1110_v58 = vadd.f32 %v4834_v6, %v1096_v50  ;;  %v1196_v8 = vadd.f32 %v1195_v44, %v1119_v48  ;;  %v1317_v6 = vstv %s4876_s19  ;;  %s1244_s19 = sadd.s32 189, %s4662_s26  ;;  %v1061_v44 = vstv %s1060_s3 }
 0x31f   : >> { %v1145_v14 = vpop.permute.xlu1 %1144  ;;  %v1318_v27 = vmul.f32 %v4748_v0, %v1317_v6  ;;  %s1245_s23 = sld [smem:[#allocation2 + %s1244_s19]]  ;;  %v1062_v47 = vmul.f32 %v4704_v1, %v1061_v44  ;;  %v1156_v48 = vstv %s1155_s28  ;;  %v1057_v50 = vmul.f32 %v4704_v1, %v1056_v46 }
 0x320   : >> { %v1147_v3 = vadd.f32 %v1145_v14, %v1129_v59  ;;  %v1191_v16 = vadd.f32 %v1190_v52, %v1110_v58  ;;  %v1151_v52 = vstv %s1150_s29 }
 0x321   : >> { %v1136_v22 = vpop.permute.xlu0 %1135  ;;  %v1063_v55 = vadd.f32 %v1062_v47, %v965_v4  ;;  %v1152_v56 = vmul.f32 %v1151_v52, %v4727_v25 }
 0x322   : >> { %v1138_v13 = vadd.f32 %v1136_v22, %v1124_v5  ;;  %v1224_v23 = vadd.f32 %v1223_v62, %v1147_v3 }
 0x323   : >> { %v1184_v32 = vpop.permute.xlu1 %1183 }
 0x324   : >> { %v1186_v60 = vadd.f32 %v1184_v32, %v1168_v51  ;;  %v1219_v30 = vadd.f32 %v1218_v9, %v1138_v13 }
 0x325   : >> { %v1175_v39 = vpop.permute.xlu0 %1174  ;;  %v1246_v59 = vstv %s1245_s23 }
 0x326   : >> { %v1177_v7 = vadd.f32 %v1175_v39, %v1163_v18  ;;  %v1263_v17 = vadd.f32 %v1262_v49, %v1186_v60  ;;  %v1251_v49 = vstv %s1250_s25  ;;  %v1247_v1 = vmul.f32 %v4748_v0, %v1246_v59 }
 0x327   : >> { %v1212_v45 = vpop.permute.xlu1 %1211  ;;  %v1252_v60 = vmul.f32 %v4748_v0, %v1251_v49 }
 0x328   : >> { %v1214_v15 = vadd.f32 %v1212_v45, %v1196_v8  ;;  %v1258_v24 = vadd.f32 %v1257_v2, %v1177_v7  ;;  %v960_v45 = vstv %s959_s27 }
 0x329   : >> { %v1203_v53 = vpop.permute.xlu0 %1202  ;;  %v961_v51 = vmul.f32 %v960_v45, %v4681_v61 }
 0x32a   : >> { %v1205_v21 = vadd.f32 %v1203_v53, %v1191_v16  ;;  %v1291_v22 = vadd.f32 %v1290_v11, %v1214_v15  ;;  %v1157_v53 = vmul.f32 %v1156_v48, %v4727_v25 }
 0x32b   : >> { %v1240_v63 = vpop.permute.xlu1 %1239  ;;  %v1058_v58 = vadd.f32 %v1057_v50, %v961_v51 }
 0x32c   : >> { %v1242_v29 = vadd.f32 %v1240_v63, %v1224_v23  ;;  %v1286_v35 = vadd.f32 %v1285_v20, %v1205_v21  ;;  %v1158_v18 = vadd.f32 %v1157_v53, %v1063_v55 }
 0x32d   : >> { %v1231_v10 = vpop.permute.xlu0 %1230  ;;  %v1153_v61 = vadd.f32 %v1152_v56, %v1058_v58 }
 0x32e   : >> { %v1233_v33 = vadd.f32 %v1231_v10, %v1219_v30  ;;  %v1319_v39 = vadd.f32 %v1318_v27, %v1242_v29  ;;  %v1253_v2 = vadd.f32 %v1252_v60, %v1158_v18 }
 0x32f   : >> { %v1279_v19 = vpop.permute.xlu1 %1278  ;;  %v1248_v3 = vadd.f32 %v1247_v1, %v1153_v61 }
 0x330   : >> { %v1281_v14 = vadd.f32 %v1279_v19, %v1263_v17  ;;  %v1314_v12 = vadd.f32 %v1313_v36, %v1233_v33 }
 0x331   : >> { %v1270_v26 = vpop.permute.xlu0 %1269 }
 0x332   : >> { %v1272_v31 = vadd.f32 %v1270_v26, %v1258_v24  ;;  %1363 = vrot.lane.b32.xlu1 %v1281_v14, %s4117_s21 }
 0x333   : >> { %v1307_v32 = vpop.permute.xlu1 %1306 }
 0x334   : >> { %1339 = vrot.lane.b32.xlu0 %v1272_v31, %s4117_s21  ;;  %v1309_v34 = vadd.f32 %v1307_v32, %v1291_v22  ;;  %s1377_s21 = sadd.s32 1, %s4249_s10 }
 0x335   : >> { %v1298_v37 = vpop.permute.xlu0 %1297 }
 0x336   : >> { %v1300_v38 = vadd.f32 %v1298_v37, %v1286_v35  ;;  %1367 = vrot.lane.b32.xlu1 %v1309_v34, %s4118_s5 }
 0x337   : >> { %v1335_v40 = vpop.permute.xlu1 %1334 }
 0x338   : >> { %1343 = vrot.lane.b32.xlu0 %v1300_v38, %s4118_s5  ;;  %v1337_v41 = vadd.f32 %v1335_v40, %v1319_v39  ;;  %s1378_s5 = sld [smem:[#allocation4 + %s1377_s21]] }
 0x339   : >> { %v1326_v43 = vpop.permute.xlu0 %1325 }
 0x33a   : >> { %v1328_v54 = vadd.f32 %v1326_v43, %v1314_v12  ;;  %1371 = vrot.lane.b32.xlu1 %v1337_v41, %s4119_s7 }
 0x33c   : >> { %1347 = vrot.lane.b32.xlu0 %v1328_v54, %s4119_s7  ;;  %s1356_s7 = sld [smem:[#allocation4 + %s4249_s10]] }
 0x33e   : >> { %v1379_v7 = vstv %s1378_s5 }
 0x342   : >> { %v1357_v11 = vstv %s1356_s7 }
 0x3a4   : >> { %v1364_v62 = vpop.permute.xlu1 %1363 }
 0x3a5   : >> { %v1374_v5 = vsel %vm1350_vm8, %v1253_v2, %v1364_v62 }
 0x3a6   : >> { %v1340_v63 = vpop.permute.xlu0 %1339 }
 0x3a7   : >> { %v1351_v10 = vsel %vm1350_vm8, %v1248_v3, %v1340_v63 }
 0x3a8   : >> { %v1368_v57 = vpop.permute.xlu1 %1367 }
 0x3a9   : >> { %v1375_v8 = vsel %vm1352_vm9, %v1374_v5, %v1368_v57 }
 0x3aa   : >> { %v1344_v25 = vpop.permute.xlu0 %1343 }
 0x3ab   : >> { %v1353_v6 = vsel %vm1352_vm9, %v1351_v10, %v1344_v25 }
 0x3ac   : >> { %v1372_v9 = vpop.permute.xlu1 %1371  ;;  %953 = sbr.rel (!%p951_p6) target bundleno = 655 (0x28f), region = 189 }
 0x3ad   : >> { %v1376_v0 = vsel %vm1354_vm10, %v1375_v8, %v1372_v9 }
 0x3ae   : >> { %v1380_v13 = vadd.f32 %v1379_v7, %v1376_v0  ;;  %v1348_v15 = vpop.permute.xlu0 %1347 }
 0x3af   : >> { %v1355_v16 = vsel %vm1354_vm10, %v1353_v6, %v1348_v15 }
 0x3b0   : >> { %3762 = vst.msk [vmem:[%s1359_s9 + $0x20] sm:$0x1f] %vm1360_vm11, %v1380_v13  ;;  %v1358_v17 = vadd.f32 %v1357_v11, %v1355_v16 }
 0x3b2   : >> { %1361 = vst.msk [vmem:[%s1359_s9] sm:$0x1f] %vm1360_vm11, %v1358_v17 }
 0x3b3 PF: > { %p3763_p7 = scmp.ne.s32.totalorder %s4056_s12, 3 }
 0x3b4   : > { %s4931_s8 = smul.u32 (!%p3763_p7), 56, %s4060_s13  ;;  %s4934_s3 = smov (!%p3763_p7), 0  }
 0x3b5   : > { %1387 = sbr.rel (%p3763_p7) target bundleno = 1248 (0x4e0), region = 77 }
 0x3bc LB: >> { %s1447_s26 = sadd.s32 284, %s4931_s8  ;;  %s6379_s22 = sshll.u32 %s4096_s3, 3  ;;  %vm1796_vm12 = vcmask 48128   ;;  %vm1798_vm13 = vcmask 97280   ;;  %vm1800_vm14 = vcmask 146432   ;;  %vm1806_vm15 = vcmask 192512   ;;  %s4096_s3 = sphi %s4934_s3, %s1395_s3  }
 0x3bd   : >> { %s1448_s2 = sld [smem:[#allocation2 + %s1447_s26]]  ;;  %s4944_s30 = scalar_lea.vmem %s4257_s4, %s6379_s22 }
 0x3be   : >> { %s1419_s27 = sadd.s32 282, %s4931_s8  ;;  %s1456_s11 = sadd.s32 312, %s4931_s8  ;;  %v4950_v19 = vld [vmem:[%s4944_s30 + $0x8] sm:$0x1f]  ;;  %v4973_v22 = vld [vmem:[%s4944_s30 + $0x30] sm:$0x1f] }
 0x3bf   : >> { %s1420_s14 = sld [smem:[#allocation2 + %s1419_s27]]  ;;  %s1428_s24 = sadd.s32 310, %s4931_s8  ;;  %v4996_v54 = vld [vmem:[%s4944_s30] sm:$0x1f]  ;;  %v5017_v49 = vld [vmem:[%s4944_s30 + $0x28] sm:$0x1f] }
 0x3c0   : >> { %s1457_s28 = sld [smem:[#allocation2 + %s1456_s11]]  ;;  %s1484_s19 = sadd.s32 314, %s4931_s8 }
 0x3c1   : >> { %s1429_s29 = sld [smem:[#allocation2 + %s1428_s24]]  ;;  %s1475_s23 = sadd.s32 286, %s4931_s8 }
 0x3c2   : >> { %s1485_s25 = sld [smem:[#allocation2 + %s1484_s19]]  ;;  %s1525_s5 = sadd.s32 317, %s4931_s8 }
 0x3c3   : >> { %v1449_v20 = vstv %s1448_s2  ;;  %s1476_s21 = sld [smem:[#allocation2 + %s1475_s23]]  ;;  %s1516_s6 = sadd.s32 289, %s4931_s8 }
 0x3c4   : >> { %v1450_v21 = vmul.f32 %v4950_v19, %v1449_v20  ;;  %s4956_s7 = sld [smem:[#allocation2 + %s1525_s5]]  ;;  %s1553_s26 = sadd.s32 319, %s4931_s8 }
 0x3c5   : >> { %v1421_v23 = vstv %s1420_s14  ;;  %s4959_s9 = sld [smem:[#allocation2 + %s1516_s6]]  ;;  %s4120_s27 = smov 1  }
 0x3c6   : >> { %1452 = vrot.lane.b32.xlu1 %v1450_v21, %s4120_s27  ;;  %v1422_v14 = vmul.f32 %v4950_v19, %v1421_v23  ;;  %v1458_v24 = vstv %s1457_s28  ;;  %s1544_s2 = sadd.s32 291, %s4931_s8  ;;  %s1554_s11 = sld [smem:[#allocation2 + %s1553_s26]] }
 0x3c7   : >> { %v1459_v26 = vmul.f32 %v4950_v19, %v1458_v24  ;;  %v1430_v27 = vstv %s1429_s29  ;;  %s1581_s14 = sadd.s32 321, %s4931_s8  ;;  %s1545_s24 = sld [smem:[#allocation2 + %s1544_s2]] }
 0x3c8   : >> { %1424 = vrot.lane.b32.xlu0 %v1422_v14, %s4120_s27  ;;  %v1431_v28 = vmul.f32 %v4950_v19, %v1430_v27  ;;  %v1486_v29 = vstv %s1485_s25  ;;  %s1572_s28 = sadd.s32 293, %s4931_s8  ;;  %s1582_s29 = sld [smem:[#allocation2 + %s1581_s14]] }
 0x3c9   : >> { %v1477_v30 = vstv %s1476_s21  ;;  %v1487_v31 = vmul.f32 %v4950_v19, %v1486_v29  ;;  %s1622_s19 = sadd.s32 324, %s4931_s8  ;;  %s1573_s25 = sld [smem:[#allocation2 + %s1572_s28]] }
 0x3ca   : >> { %1461 = vrot.lane.b32.xlu1 %v1459_v26, %s4120_s27  ;;  %v1527_v32 = vstv %s4956_s7  ;;  %v1478_v33 = vmul.f32 %v4950_v19, %v1477_v30  ;;  %s1613_s23 = sadd.s32 296, %s4931_s8  ;;  %s1623_s21 = sld [smem:[#allocation2 + %s1622_s19]] }
 0x3cb   : >> { %v1518_v34 = vstv %s4959_s9  ;;  %v1528_v35 = vmul.f32 %v4973_v22, %v1527_v32  ;;  %s1650_s5 = sadd.s32 326, %s4931_s8  ;;  %s1614_s7 = sld [smem:[#allocation2 + %s1613_s23]] }
 0x3cc   : >> { %1433 = vrot.lane.b32.xlu0 %v1431_v28, %s4120_s27  ;;  %v1555_v36 = vstv %s1554_s11  ;;  %v1519_v37 = vmul.f32 %v4973_v22, %v1518_v34  ;;  %s1641_s6 = sadd.s32 298, %s4931_s8  ;;  %s1651_s9 = sld [smem:[#allocation2 + %s1650_s5]] }
 0x3cd   : >> { %v1546_v38 = vstv %s1545_s24  ;;  %v1556_v39 = vmul.f32 %v4973_v22, %v1555_v36  ;;  %s1678_s26 = sadd.s32 328, %s4931_s8  ;;  %s1642_s2 = sld [smem:[#allocation2 + %s1641_s6]] }
 0x3ce   : >> { %1489 = vrot.lane.b32.xlu1 %v1487_v31, %s4120_s27  ;;  %v1583_v40 = vstv %s1582_s29  ;;  %v1547_v41 = vmul.f32 %v4973_v22, %v1546_v38  ;;  %s1669_s11 = sadd.s32 300, %s4931_s8  ;;  %s1679_s14 = sld [smem:[#allocation2 + %s1678_s26]] }
 0x3cf   : >> { %v1574_v12 = vstv %s1573_s25  ;;  %v1584_v43 = vmul.f32 %v4973_v22, %v1583_v40  ;;  %s1719_s24 = sadd.s32 331, %s4931_s8  ;;  %s1670_s28 = sld [smem:[#allocation2 + %s1669_s11]] }
 0x3d0   : >> { %1480 = vrot.lane.b32.xlu0 %v1478_v33, %s4120_s27  ;;  %v1624_v42 = vstv %s1623_s21  ;;  %v1575_v44 = vmul.f32 %v4973_v22, %v1574_v12  ;;  %s1710_s29 = sadd.s32 303, %s4931_s8  ;;  %s1720_s19 = sld [smem:[#allocation2 + %s1719_s24]] }
 0x3d1   : >> { %v1615_v45 = vstv %s1614_s7  ;;  %v1625_v46 = vmul.f32 %v1624_v42, %v4996_v54  ;;  %s1747_s25 = sadd.s32 333, %s4931_s8  ;;  %s1711_s23 = sld [smem:[#allocation2 + %s1710_s29]] }
 0x3d2   : >> { %1530 = vrot.lane.b32.xlu1 %v1528_v35, %s4120_s27  ;;  %v1652_v47 = vstv %s1651_s9  ;;  %v1616_v4 = vmul.f32 %v1615_v45, %v4996_v54  ;;  %s1738_s21 = sadd.s32 305, %s4931_s8  ;;  %s1748_s5 = sld [smem:[#allocation2 + %s1747_s25]] }
 0x3d3   : >> { %v1643_v48 = vstv %s1642_s2  ;;  %v1653_v50 = vmul.f32 %v1652_v47, %v4996_v54  ;;  %s1775_s7 = sadd.s32 335, %s4931_s8  ;;  %s1739_s6 = sld [smem:[#allocation2 + %s1738_s21]] }
 0x3d4   : >> { %1521 = vrot.lane.b32.xlu0 %v1519_v37, %s4120_s27  ;;  %v1680_v51 = vstv %s1679_s14  ;;  %v1644_v52 = vmul.f32 %v1643_v48, %v4996_v54  ;;  %s1766_s9 = sadd.s32 307, %s4931_s8  ;;  %s1776_s26 = sld [smem:[#allocation2 + %s1775_s7]] }
 0x3d5   : >> { %v1671_v53 = vstv %s1670_s28  ;;  %v1681_v55 = vmul.f32 %v1680_v51, %v4996_v54  ;;  %s1767_s2 = sld [smem:[#allocation2 + %s1766_s9]]  ;;  %s1437_s30 = sadd.s32 283, %s4931_s8 }
 0x3d6   : >> { %1558 = vrot.lane.b32.xlu1 %v1556_v39, %s4120_s27  ;;  %v1721_v56 = vstv %s1720_s19  ;;  %v1672_v58 = vmul.f32 %v1671_v53, %v4996_v54  ;;  %s1409_s11 = sadd.s32 281, %s4931_s8  ;;  %s1414_s14 = sadd.s32 309, %s4931_s8 }
 0x3d7   : >> { %v1712_v59 = vstv %s1711_s23  ;;  %v1722_v60 = vmul.f32 %v5017_v49, %v1721_v56  ;;  %s5040_s24 = sld [smem:[#allocation2 + %s1437_s30]]  ;;  %s1442_s29 = sadd.s32 311, %s4931_s8 }
 0x3d8   : >> { %1549 = vrot.lane.b32.xlu0 %v1547_v41, %s4120_s27  ;;  %v1749_v18 = vstv %s1748_s5  ;;  %v1713_v62 = vmul.f32 %v5017_v49, %v1712_v59  ;;  %s5042_s28 = sld [smem:[#allocation2 + %s1409_s11]]  ;;  %s1465_s25 = sadd.s32 285, %s4931_s8 }
 0x3d9   : >> { %v1740_v1 = vstv %s1739_s6  ;;  %v1750_v61 = vmul.f32 %v5017_v49, %v1749_v18  ;;  %s5047_s19 = sld [smem:[#allocation2 + %s1414_s14]]  ;;  %s1511_s23 = sadd.s32 316, %s4931_s8 }
 0x3da   : >> { %1586 = vrot.lane.b32.xlu1 %v1584_v43, %s4120_s27  ;;  %v1777_v63 = vstv %s1776_s26  ;;  %v1741_v2 = vmul.f32 %v5017_v49, %v1740_v1  ;;  %s5052_s21 = sld [smem:[#allocation2 + %s1442_s29]]  ;;  %s1506_s5 = sadd.s32 288, %s4931_s8 }
 0x3db   : >> { %v1768_v57 = vstv %s1767_s2  ;;  %v1778_v3 = vmul.f32 %v5017_v49, %v1777_v63  ;;  %s1539_s6 = sadd.s32 318, %s4931_s8  ;;  %s5060_s9 = sld [smem:[#allocation2 + %s1465_s25]] }
 0x3dc   : >> { %1577 = vrot.lane.b32.xlu0 %v1575_v44, %s4120_s27  ;;  %v1769_v25 = vmul.f32 %v5017_v49, %v1768_v57  ;;  %s5062_s26 = sld [smem:[#allocation2 + %s1511_s23]]  ;;  %s1534_s30 = sadd.s32 290, %s4931_s8 }
 0x3dd   : >> { %s5064_s2 = sld [smem:[#allocation2 + %s1506_s5]]  ;;  %s1608_s14 = sadd.s32 323, %s4931_s8  ;;  %v1439_v23 = vstv %s5040_s24 }
 0x3de   : >> { %1627 = vrot.lane.b32.xlu1 %v1625_v46, %s4120_s27  ;;  %s5069_s11 = sld [smem:[#allocation2 + %s1539_s6]]  ;;  %s1567_s29 = sadd.s32 320, %s4931_s8  ;;  %v1411_v13 = vstv %s5042_s28  ;;  %v1440_v32 = vmul.f32 %v4950_v19, %v1439_v23 }
 0x3df   : >> { %v1416_v11 = vstv %s5047_s19  ;;  %s5075_s25 = sld [smem:[#allocation2 + %s1534_s30]]  ;;  %s1603_s23 = sadd.s32 295, %s4931_s8  ;;  %v1412_v14 = vmul.f32 %v4950_v19, %v1411_v13 }
 0x3e0   : >> { %1618 = vrot.lane.b32.xlu0 %v1616_v4, %s4120_s27  ;;  %s5078_s5 = sld [smem:[#allocation2 + %s1608_s14]]  ;;  %s1636_s22 = sadd.s32 325, %s4931_s8  ;;  %v1444_v16 = vstv %s5052_s21  ;;  %v1417_v17 = vmul.f32 %v4950_v19, %v1416_v11 }
 0x3e1   : >> { %s5082_s6 = sld [smem:[#allocation2 + %s1567_s29]]  ;;  %s1631_s30 = sadd.s32 297, %s4931_s8  ;;  %v1445_v24 = vmul.f32 %v4950_v19, %v1444_v16  ;;  %v1467_v33 = vstv %s5060_s9 }
 0x3e2   : >> { %1655 = vrot.lane.b32.xlu1 %v1653_v50, %s4120_s27  ;;  %s5088_s19 = sld [smem:[#allocation2 + %s1603_s23]]  ;;  %v1513_v20 = vstv %s5062_s26  ;;  %s1705_s28 = sadd.s32 330, %s4931_s8  ;;  %v1468_v45 = vmul.f32 %v4950_v19, %v1467_v33 }
 0x3e3   : >> { %s5094_s14 = sld [smem:[#allocation2 + %s1636_s22]]  ;;  %s1664_s21 = sadd.s32 327, %s4931_s8  ;;  %v1508_v26 = vstv %s5064_s2  ;;  %v1514_v30 = vmul.f32 %v4973_v22, %v1513_v20 }
 0x3e4   : >> { %1646 = vrot.lane.b32.xlu0 %v1644_v52, %s4120_s27  ;;  %s1700_s29 = sadd.s32 302, %s4931_s8  ;;  %s5105_s26 = sld [smem:[#allocation2 + %s1631_s30]]  ;;  %v1541_v31 = vstv %s5069_s11  ;;  %v1509_v36 = vmul.f32 %v4973_v22, %v1508_v26 }
 0x3e5   : >> { %s5111_s22 = sld [smem:[#allocation2 + %s1705_s28]]  ;;  %s1733_s24 = sadd.s32 332, %s4931_s8  ;;  %v1536_v37 = vstv %s5075_s25  ;;  %v1542_v40 = vmul.f32 %v4973_v22, %v1541_v31 }
 0x3e6   : >> { %1683 = vrot.lane.b32.xlu1 %v1681_v55, %s4120_s27  ;;  %s5116_s2 = sld [smem:[#allocation2 + %s1664_s21]]  ;;  %v1610_v38 = vstv %s5078_s5  ;;  %s1761_s30 = sadd.s32 334, %s4931_s8  ;;  %v1537_v46 = vmul.f32 %v4973_v22, %v1536_v37 }
 0x3e7   : >> { %s5118_s23 = sld [smem:[#allocation2 + %s1700_s29]]  ;;  %v1569_v42 = vstv %s5082_s6  ;;  %v1611_v4 = vmul.f32 %v1610_v38, %v4996_v54  ;;  %s1756_s5 = sadd.s32 306, %s4931_s8 }
 0x3e8   : >> { %1674 = vrot.lane.b32.xlu0 %v1672_v58, %s4120_s27  ;;  %s5128_s11 = sld [smem:[#allocation2 + %s1733_s24]]  ;;  %v1605_v44 = vstv %s5088_s19  ;;  %v1570_v55 = vmul.f32 %v4973_v22, %v1569_v42  ;;  %s4121_s19 = smov 5  }
 0x3e9   : >> { %v1638_v53 = vstv %s5094_s14  ;;  %v1606_v56 = vmul.f32 %v1605_v44, %v4996_v54  ;;  %s5160_s6 = sld [smem:[#allocation2 + %s1756_s5]]  ;;  %s4122_s14 = smov 11  }
 0x3ea   : >> { %1724 = vrot.lane.b32.xlu1 %v1722_v60, %s4120_s27  ;;  %v1633_v59 = vstv %s5105_s26  ;;  %v1639_v63 = vmul.f32 %v1638_v53, %v4996_v54  ;;  %s4123_s28 = smov 17   ;;  %s1396_s21 = sadd.s32 308, %s4931_s8 }
 0x3eb   : >> { %v1707_v1 = vstv %s5111_s22  ;;  %s1501_s29 = sadd.s32 315, %s4931_s8  ;;  %s1496_s26 = sadd.s32 287, %s4931_s8 }
 0x3ec   : >> { %1715 = vrot.lane.b32.xlu0 %v1713_v62, %s4120_s27  ;;  %v1666_v57 = vstv %s5116_s2  ;;  %s1502_s22 = sld [smem:[#allocation2 + %s1501_s29]]  ;;  %s1598_s24 = sadd.s32 322, %s4931_s8 }
 0x3ed   : >> { %v1667_v20 = vmul.f32 %v1666_v57, %v4996_v54  ;;  %s6402_s2 = sadd.s32 280, %s4931_s8 }
 0x3ee   : >> { %1752 = vrot.lane.b32.xlu1 %v1750_v61, %s4120_s27  ;;  %v1735_v13 = vstv %s5128_s11  ;;  %s1599_s11 = sld [smem:[#allocation2 + %s1598_s24]] }
 0x3f0   : >> { %1743 = vrot.lane.b32.xlu0 %v1741_v2, %s4120_s27 }
 0x3f2   : >> { %1780 = vrot.lane.b32.xlu1 %v1778_v3, %s4120_s27  ;;  %v1702_v3 = vstv %s5118_s23  ;;  %s1401_s23 = sld [smem:[#allocation2 + %s6402_s2]] }
 0x3f3   : >> { %v1703_v23 = vmul.f32 %v5017_v49, %v1702_v3 }
 0x3f4   : >> { %1771 = vrot.lane.b32.xlu0 %v1769_v25, %s4120_s27  ;;  %s1470_s27 = sadd.s32 313, %s4931_s8 }
 0x3f5   : >> { %s5055_s7 = sld [smem:[#allocation2 + %s1470_s27]]  ;;  %s1562_s27 = sadd.s32 292, %s4931_s8 }
 0x3f6   : >> { %s5084_s0 = sld [smem:[#allocation2 + %s1562_s27]]  ;;  %s1659_s27 = sadd.s32 299, %s4931_s8 }
 0x3f7   : >> { %s5126_s9 = sld [smem:[#allocation2 + %s1659_s27]] }
 0x3f8   : >> { %s1405_s27 = sld [smem:[#allocation2 + %s1396_s21]]  ;;  %s6403_s21 = sshll.u32 %s4096_s3, 3 }
 0x3f9   : >> { %s1805_s29 = scalar_lea.vmem %s4262_s1, %s6403_s21  ;;  %s1395_s3 = sadd.s32 1, %s4096_s3  }
 0x3fa   : >> { %p1392_p9 = scmp.ge.s32.totalorder %s1395_s3, 4  }
 0x3fb   : >> { %v1472_v29 = vstv %s5055_s7  ;;  %s1728_s7 = sadd.s32 304, %s4931_s8 }
 0x3fc   : >> { %v1473_v39 = vmul.f32 %v4950_v19, %v1472_v29  ;;  %v1564_v47 = vstv %s5084_s0  ;;  %s5138_s25 = sld [smem:[#allocation2 + %s1728_s7]] }
 0x3fd   : >> { %s5145_s0 = sld [smem:[#allocation2 + %s1761_s30]]  ;;  %v1565_v61 = vmul.f32 %v4973_v22, %v1564_v47  ;;  %v1661_v11 = vstv %s5126_s9  ;;  %s1593_s9 = sadd.s32 294, %s4931_s8 }
 0x3fe   : >> { %s1497_s7 = sld [smem:[#allocation2 + %s1496_s26]]  ;;  %s1695_s30 = sadd.s32 329, %s4931_s8 }
 0x3ff   : >> { %s1696_s5 = sld [smem:[#allocation2 + %s1695_s30]] }
 0x404   : >> { %v1498_v57 = vstv %s1497_s7 }
 0x438   : >> { %v5036_v5 = vpop.permute.xlu1 %1452 }
 0x439   : >> { %v1455_v50 = vadd.f32 %v5036_v5, %v1440_v32  ;;  %v1736_v32 = vmul.f32 %v5017_v49, %v1735_v13 }
 0x43a   : >> { %v1425_v7 = vpop.permute.xlu0 %1424 }
 0x43b   : >> { %v1427_v35 = vadd.f32 %v1425_v7, %v1412_v14  ;;  %v1538_v7 = vadd.f32 %v1537_v46, %v1455_v50  ;;  %v1730_v14 = vstv %s5138_s25  ;;  %s1594_s25 = sld [smem:[#allocation2 + %s1593_s9]] }
 0x43c   : >> { %v5045_v8 = vpop.permute.xlu1 %1461 }
 0x43d   : >> { %v1464_v12 = vadd.f32 %v5045_v8, %v1445_v24  ;;  %v1510_v52 = vadd.f32 %v1509_v36, %v1427_v35 }
 0x43e   : >> { %v1434_v9 = vpop.permute.xlu0 %1433 }
 0x43f   : >> { %v1436_v28 = vadd.f32 %v1434_v9, %v1417_v17  ;;  %v1543_v62 = vadd.f32 %v1542_v40, %v1464_v12  ;;  %v1634_v9 = vmul.f32 %v1633_v59, %v4996_v54 }
 0x440   : >> { %v5058_v10 = vpop.permute.xlu1 %1489 }
 0x441   : >> { %v1515_v43 = vadd.f32 %v1514_v30, %v1436_v28  ;;  %v1492_v60 = vadd.f32 %v5058_v10, %v1473_v39  ;;  %v1662_v30 = vmul.f32 %v1661_v11, %v4996_v54  ;;  %v1731_v39 = vmul.f32 %v5017_v49, %v1730_v14 }
 0x442   : >> { %v5067_v0 = vpop.permute.xlu0 %1480 }
 0x443   : >> { %v1483_v25 = vadd.f32 %v5067_v0, %v1468_v45  ;;  %v1571_v16 = vadd.f32 %v1570_v55, %v1492_v60  ;;  %v1758_v45 = vstv %s5160_s6 }
 0x444   : >> { %v1531_v6 = vpop.permute.xlu1 %1530  ;;  %v1759_v53 = vmul.f32 %v5017_v49, %v1758_v45 }
 0x445   : >> { %v1533_v51 = vadd.f32 %v1531_v6, %v1515_v43  ;;  %v1708_v6 = vmul.f32 %v5017_v49, %v1707_v1  ;;  %v1566_v26 = vadd.f32 %v1565_v61, %v1483_v25  ;;  %v1406_v61 = vstv %s1405_s27 }
 0x446   : >> { %v1522_v15 = vpop.permute.xlu0 %1521  ;;  %v1407_v25 = vmul.f32 %v4950_v19, %v1406_v61 }
 0x447   : >> { %v1524_v18 = vadd.f32 %v1522_v15, %v1510_v52  ;;  %v1612_v8 = vadd.f32 %v1611_v4, %v1533_v51 }
 0x448   : >> { %v5092_v21 = vpop.permute.xlu1 %1558 }
 0x449   : >> { %v1561_v5 = vadd.f32 %v5092_v21, %v1543_v62  ;;  %v1607_v0 = vadd.f32 %v1606_v56, %v1524_v18 }
 0x44a   : >> { %v5103_v27 = vpop.permute.xlu0 %1549 }
 0x44b   : >> { %v1552_v15 = vadd.f32 %v5103_v27, %v1538_v7  ;;  %v1640_v29 = vadd.f32 %v1639_v63, %v1561_v5  ;;  %v1763_v27 = vstv %s5145_s0  ;;  %s1690_s0 = sadd.s32 301, %s4931_s8  ;;  %v1503_v63 = vstv %s1502_s22 }
 0x44c   : >> { %v1587_v34 = vpop.permute.xlu1 %1586  ;;  %v1764_v44 = vmul.f32 %v5017_v49, %v1763_v27  ;;  %s1691_s6 = sld [smem:[#allocation2 + %s1690_s0]]  ;;  %v1504_v3 = vmul.f32 %v4973_v22, %v1503_v63  ;;  %v1600_v5 = vstv %s1599_s11  ;;  %v1499_v7 = vmul.f32 %v4973_v22, %v1498_v57 }
 0x44d   : >> { %v1589_v24 = vadd.f32 %v1587_v34, %v1571_v16  ;;  %v1635_v36 = vadd.f32 %v1634_v9, %v1552_v15  ;;  %v1595_v9 = vstv %s1594_s25 }
 0x44e   : >> { %v1578_v41 = vpop.permute.xlu0 %1577  ;;  %v1505_v11 = vadd.f32 %v1504_v3, %v1407_v25  ;;  %v1596_v13 = vmul.f32 %v1595_v9, %v4996_v54 }
 0x44f   : >> { %v1580_v33 = vadd.f32 %v1578_v41, %v1566_v26  ;;  %v1668_v12 = vadd.f32 %v1667_v20, %v1589_v24 }
 0x450   : >> { %v1628_v48 = vpop.permute.xlu1 %1627 }
 0x451   : >> { %v1630_v17 = vadd.f32 %v1628_v48, %v1612_v8  ;;  %v1663_v47 = vadd.f32 %v1662_v30, %v1580_v33 }
 0x452   : >> { %v1619_v58 = vpop.permute.xlu0 %1618  ;;  %v1692_v16 = vstv %s1691_s6 }
 0x453   : >> { %v1621_v28 = vadd.f32 %v1619_v58, %v1607_v0  ;;  %v1709_v37 = vadd.f32 %v1708_v6, %v1630_v17  ;;  %v1697_v6 = vstv %s1696_s5  ;;  %v1693_v22 = vmul.f32 %v5017_v49, %v1692_v16 }
 0x454   : >> { %v1656_v2 = vpop.permute.xlu1 %1655  ;;  %v1698_v17 = vmul.f32 %v5017_v49, %v1697_v6 }
 0x455   : >> { %v1658_v35 = vadd.f32 %v1656_v2, %v1640_v29  ;;  %v1704_v43 = vadd.f32 %v1703_v23, %v1621_v28  ;;  %v1402_v2 = vstv %s1401_s23 }
 0x456   : >> { %v1647_v10 = vpop.permute.xlu0 %1646  ;;  %v1403_v8 = vmul.f32 %v4950_v19, %v1402_v2 }
 0x457   : >> { %v1649_v40 = vadd.f32 %v1647_v10, %v1635_v36  ;;  %v1737_v41 = vadd.f32 %v1736_v32, %v1658_v35  ;;  %v1601_v10 = vmul.f32 %v1600_v5, %v4996_v54 }
 0x458   : >> { %v1684_v21 = vpop.permute.xlu1 %1683  ;;  %v1500_v15 = vadd.f32 %v1499_v7, %v1403_v8 }
 0x459   : >> { %v1686_v46 = vadd.f32 %v1684_v21, %v1668_v12  ;;  %v1732_v52 = vadd.f32 %v1731_v39, %v1649_v40  ;;  %v1602_v0 = vadd.f32 %v1601_v10, %v1505_v11 }
 0x45a   : >> { %v1675_v31 = vpop.permute.xlu0 %1674  ;;  %v1597_v19 = vadd.f32 %v1596_v13, %v1500_v15 }
 0x45b   : >> { %v1677_v50 = vadd.f32 %v1675_v31, %v1663_v47  ;;  %v1765_v58 = vadd.f32 %v1764_v44, %v1686_v46  ;;  %v1699_v23 = vadd.f32 %v1698_v17, %v1602_v0 }
 0x45c   : >> { %v1725_v38 = vpop.permute.xlu1 %1724  ;;  %v1694_v24 = vadd.f32 %v1693_v22, %v1597_v19 }
 0x45d   : >> { %v1727_v34 = vadd.f32 %v1725_v38, %v1709_v37  ;;  %v1760_v18 = vadd.f32 %v1759_v53, %v1677_v50 }
 0x45e   : >> { %v1716_v42 = vpop.permute.xlu0 %1715 }
 0x45f   : >> { %v1718_v4 = vadd.f32 %v1716_v42, %v1704_v43  ;;  %1809 = vrot.lane.b32.xlu1 %v1727_v34, %s4121_s19 }
 0x460   : >> { %v1753_v48 = vpop.permute.xlu1 %1752 }
 0x461   : >> { %1785 = vrot.lane.b32.xlu0 %v1718_v4, %s4121_s19  ;;  %v1755_v51 = vadd.f32 %v1753_v48, %v1737_v41  ;;  %s1823_s19 = sadd.s32 1, %s4249_s10 }
 0x462   : >> { %v1744_v55 = vpop.permute.xlu0 %1743 }
 0x463   : >> { %v1746_v56 = vadd.f32 %v1744_v55, %v1732_v52  ;;  %1813 = vrot.lane.b32.xlu1 %v1755_v51, %s4122_s14 }
 0x464   : >> { %v1781_v59 = vpop.permute.xlu1 %1780 }
 0x465   : >> { %1789 = vrot.lane.b32.xlu0 %v1746_v56, %s4122_s14  ;;  %v1783_v60 = vadd.f32 %v1781_v59, %v1765_v58  ;;  %s1824_s14 = sld [smem:[#allocation4 + %s1823_s19]] }
 0x466   : >> { %v1772_v62 = vpop.permute.xlu0 %1771 }
 0x467   : >> { %v1774_v1 = vadd.f32 %v1772_v62, %v1760_v18  ;;  %1817 = vrot.lane.b32.xlu1 %v1783_v60, %s4123_s28 }
 0x469   : >> { %1793 = vrot.lane.b32.xlu0 %v1774_v1, %s4123_s28  ;;  %s1802_s28 = sld [smem:[#allocation4 + %s4249_s10]] }
 0x46b   : >> { %v1825_v28 = vstv %s1824_s14 }
 0x46f   : >> { %v1803_v32 = vstv %s1802_s28 }
 0x4d1   : >> { %v1810_v20 = vpop.permute.xlu1 %1809 }
 0x4d2   : >> { %v1820_v26 = vsel %vm1796_vm12, %v1699_v23, %v1810_v20 }
 0x4d3   : >> { %v1786_v21 = vpop.permute.xlu0 %1785 }
 0x4d4   : >> { %v1797_v31 = vsel %vm1796_vm12, %v1694_v24, %v1786_v21 }
 0x4d5   : >> { %v1814_v14 = vpop.permute.xlu1 %1813 }
 0x4d6   : >> { %v1821_v29 = vsel %vm1798_vm13, %v1820_v26, %v1814_v14 }
 0x4d7   : >> { %v1790_v54 = vpop.permute.xlu0 %1789 }
 0x4d8   : >> { %v1799_v27 = vsel %vm1798_vm13, %v1797_v31, %v1790_v54 }
 0x4d9   : >> { %v1818_v30 = vpop.permute.xlu1 %1817  ;;  %1394 = sbr.rel (!%p1392_p9) target bundleno = 956 (0x3bc), region = 200 }
 0x4da   : >> { %v1822_v49 = vsel %vm1800_vm14, %v1821_v29, %v1818_v30 }
 0x4db   : >> { %v1826_v33 = vadd.f32 %v1825_v28, %v1822_v49  ;;  %v1794_v35 = vpop.permute.xlu0 %1793 }
 0x4dc   : >> { %v1801_v36 = vsel %vm1800_vm14, %v1799_v27, %v1794_v35 }
 0x4dd   : >> { %3772 = vst.msk [vmem:[%s1805_s29 + $0x20] sm:$0x1f] %vm1806_vm15, %v1826_v33  ;;  %v1804_v37 = vadd.f32 %v1803_v32, %v1801_v36 }
 0x4df   : >> { %1807 = vst.msk [vmem:[%s1805_s29] sm:$0x1f] %vm1806_vm15, %v1804_v37 }
 0x4e0 PF: > { %p3773_p11 = scmp.ne.s32.totalorder %s4056_s12, 4 }
 0x4e1   : > { %s5200_s26 = smul.u32 (!%p3773_p11), 112, %s4060_s13  ;;  %s5203_s22 = smov (!%p3773_p11), 0  }
 0x4e2   : > { %1833 = sbr.rel (%p3773_p11) target bundleno = 1597 (0x63d), region = 88 }
 0x4e9 LB: >> { %s1893_s8 = sadd.s32 396, %s5200_s26  ;;  %s6380_s3 = sshll.u32 %s4100_s22, 3  ;;  %vm2622_vm0 = vcmask 48128   ;;  %vm2624_vm1 = vcmask 97280   ;;  %vm2626_vm2 = vcmask 146432   ;;  %vm2632_vm3 = vcmask 192512   ;;  %s4100_s22 = sphi %s5203_s22, %s1841_s22  }
 0x4ea   : >> { %s1894_s24 = sld [smem:[#allocation2 + %s1893_s8]]  ;;  %s5213_s2 = scalar_lea.vmem %s4257_s4, %s6380_s3 }
 0x4eb   : >> { %s1865_s23 = sadd.s32 394, %s5200_s26  ;;  %s1902_s9 = sadd.s32 452, %s5200_s26  ;;  %v5219_v38 = vld [vmem:[%s5213_s2 + $0x9] sm:$0x1f]  ;;  %v5242_v41 = vld [vmem:[%s5213_s2 + $0x31] sm:$0x1f] }
 0x4ec   : >> { %s1866_s7 = sld [smem:[#allocation2 + %s1865_s23]]  ;;  %s1874_s30 = sadd.s32 450, %s5200_s26  ;;  %v5265_v1 = vld [vmem:[%s5213_s2 + $0x8] sm:$0x1f]  ;;  %v5286_v6 = vld [vmem:[%s5213_s2 + $0x30] sm:$0x1f] }
 0x4ed   : >> { %s1903_s11 = sld [smem:[#allocation2 + %s1902_s9]]  ;;  %s1930_s0 = sadd.s32 454, %s5200_s26  ;;  %v5307_v54 = vld [vmem:[%s5213_s2 + $0x1] sm:$0x1f] }
 0x4ee   : >> { %s1875_s25 = sld [smem:[#allocation2 + %s1874_s30]]  ;;  %s1921_s6 = sadd.s32 398, %s5200_s26 }
 0x4ef   : >> { %s1931_s5 = sld [smem:[#allocation2 + %s1930_s0]]  ;;  %s1971_s14 = sadd.s32 457, %s5200_s26 }
 0x4f0   : >> { %v1895_v39 = vstv %s1894_s24  ;;  %s1922_s19 = sld [smem:[#allocation2 + %s1921_s6]]  ;;  %s1962_s21 = sadd.s32 401, %s5200_s26 }
 0x4f1   : >> { %v1896_v40 = vmul.f32 %v5219_v38, %v1895_v39  ;;  %s5225_s28 = sld [smem:[#allocation2 + %s1971_s14]]  ;;  %s1999_s8 = sadd.s32 459, %s5200_s26  ;;  %v5328_v39 = vld [vmem:[%s5213_s2 + $0x29] sm:$0x1f] }
 0x4f2   : >> { %v1867_v12 = vstv %s1866_s7  ;;  %s5228_s29 = sld [smem:[#allocation2 + %s1962_s21]]  ;;  %s4124_s23 = smov 1  }
 0x4f3   : >> { %1898 = vrot.lane.b32.xlu1 %v1896_v40, %s4124_s23  ;;  %v1868_v34 = vmul.f32 %v5219_v38, %v1867_v12  ;;  %v1904_v43 = vstv %s1903_s11  ;;  %s1990_s24 = sadd.s32 403, %s5200_s26  ;;  %s2000_s9 = sld [smem:[#allocation2 + %s1999_s8]] }
 0x4f4   : >> { %v1905_v42 = vmul.f32 %v5219_v38, %v1904_v43  ;;  %v1876_v44 = vstv %s1875_s25  ;;  %s2027_s7 = sadd.s32 461, %s5200_s26  ;;  %s1991_s30 = sld [smem:[#allocation2 + %s1990_s24]] }
 0x4f5   : >> { %1870 = vrot.lane.b32.xlu0 %v1868_v34, %s4124_s23  ;;  %v1877_v45 = vmul.f32 %v5219_v38, %v1876_v44  ;;  %v1932_v46 = vstv %s1931_s5  ;;  %s2018_s11 = sadd.s32 405, %s5200_s26  ;;  %s2028_s25 = sld [smem:[#allocation2 + %s2027_s7]] }
 0x4f6   : >> { %v1923_v47 = vstv %s1922_s19  ;;  %v1933_v4 = vmul.f32 %v5219_v38, %v1932_v46  ;;  %s2066_s0 = sadd.s32 464, %s5200_s26  ;;  %s2019_s5 = sld [smem:[#allocation2 + %s2018_s11]] }
 0x4f7   : >> { %1907 = vrot.lane.b32.xlu1 %v1905_v42, %s4124_s23  ;;  %v1973_v48 = vstv %s5225_s28  ;;  %v1924_v50 = vmul.f32 %v5219_v38, %v1923_v47  ;;  %s2057_s6 = sadd.s32 408, %s5200_s26  ;;  %s2067_s19 = sld [smem:[#allocation2 + %s2066_s0]] }
 0x4f8   : >> { %v1964_v51 = vstv %s5228_s29  ;;  %v1974_v52 = vmul.f32 %v5242_v41, %v1973_v48  ;;  %s2094_s14 = sadd.s32 466, %s5200_s26  ;;  %s2058_s28 = sld [smem:[#allocation2 + %s2057_s6]] }
 0x4f9   : >> { %1879 = vrot.lane.b32.xlu0 %v1877_v45, %s4124_s23  ;;  %v2001_v53 = vstv %s2000_s9  ;;  %v1965_v55 = vmul.f32 %v5242_v41, %v1964_v51  ;;  %s2085_s21 = sadd.s32 410, %s5200_s26  ;;  %s2095_s29 = sld [smem:[#allocation2 + %s2094_s14]]  ;;  %v5349_v51 = vld [vmem:[%s5213_s2] sm:$0x1f] }
 0x4fa   : >> { %v1992_v56 = vstv %s1991_s30  ;;  %v2002_v58 = vmul.f32 %v5242_v41, %v2001_v53  ;;  %s2122_s8 = sadd.s32 468, %s5200_s26  ;;  %s2086_s24 = sld [smem:[#allocation2 + %s2085_s21]] }
 0x4fb   : >> { %1935 = vrot.lane.b32.xlu1 %v1933_v4, %s4124_s23  ;;  %v2029_v59 = vstv %s2028_s25  ;;  %v1993_v60 = vmul.f32 %v5242_v41, %v1992_v56  ;;  %s2113_s9 = sadd.s32 412, %s5200_s26  ;;  %s2123_s7 = sld [smem:[#allocation2 + %s2122_s8]] }
 0x4fc   : >> { %v2020_v18 = vstv %s2019_s5  ;;  %v2030_v62 = vmul.f32 %v5242_v41, %v2029_v59  ;;  %s2161_s30 = sadd.s32 471, %s5200_s26  ;;  %s2114_s11 = sld [smem:[#allocation2 + %s2113_s9]] }
 0x4fd   : >> { %1926 = vrot.lane.b32.xlu0 %v1924_v50, %s4124_s23  ;;  %v2068_v61 = vstv %s2067_s19  ;;  %v2021_v63 = vmul.f32 %v5242_v41, %v2020_v18  ;;  %s2152_s25 = sadd.s32 415, %s5200_s26  ;;  %s2162_s0 = sld [smem:[#allocation2 + %s2161_s30]] }
 0x4fe   : >> { %v2059_v2 = vstv %s2058_s28  ;;  %v2069_v57 = vmul.f32 %v5265_v1, %v2068_v61  ;;  %s2189_s5 = sadd.s32 473, %s5200_s26  ;;  %s2153_s6 = sld [smem:[#allocation2 + %s2152_s25]] }
 0x4ff   : >> { %1976 = vrot.lane.b32.xlu1 %v1974_v52, %s4124_s23  ;;  %v2096_v3 = vstv %s2095_s29  ;;  %v2060_v25 = vmul.f32 %v5265_v1, %v2059_v2  ;;  %s2180_s19 = sadd.s32 417, %s5200_s26  ;;  %s2190_s14 = sld [smem:[#allocation2 + %s2189_s5]] }
 0x500   : >> { %v2087_v5 = vstv %s2086_s24  ;;  %v2097_v7 = vmul.f32 %v5265_v1, %v2096_v3  ;;  %s2217_s28 = sadd.s32 475, %s5200_s26  ;;  %s2181_s21 = sld [smem:[#allocation2 + %s2180_s19]] }
 0x501   : >> { %1967 = vrot.lane.b32.xlu0 %v1965_v55, %s4124_s23  ;;  %v2124_v8 = vstv %s2123_s7  ;;  %v2088_v9 = vmul.f32 %v5265_v1, %v2087_v5  ;;  %s2208_s29 = sadd.s32 419, %s5200_s26  ;;  %s2218_s8 = sld [smem:[#allocation2 + %s2217_s28]] }
 0x502   : >> { %v2115_v10 = vstv %s2114_s11  ;;  %v2125_v11 = vmul.f32 %v5265_v1, %v2124_v8  ;;  %s2258_s24 = sadd.s32 478, %s5200_s26  ;;  %s2209_s9 = sld [smem:[#allocation2 + %s2208_s29]] }
 0x503   : >> { %2004 = vrot.lane.b32.xlu1 %v2002_v58, %s4124_s23  ;;  %v2163_v13 = vstv %s2162_s0  ;;  %v2116_v15 = vmul.f32 %v5265_v1, %v2115_v10  ;;  %s2249_s7 = sadd.s32 422, %s5200_s26  ;;  %s2259_s30 = sld [smem:[#allocation2 + %s2258_s24]] }
 0x504   : >> { %v2154_v16 = vstv %s2153_s6  ;;  %v2164_v17 = vmul.f32 %v5286_v6, %v2163_v13  ;;  %s2286_s11 = sadd.s32 480, %s5200_s26  ;;  %s2250_s25 = sld [smem:[#allocation2 + %s2249_s7]] }
 0x505   : >> { %1995 = vrot.lane.b32.xlu0 %v1993_v60, %s4124_s23  ;;  %v2191_v0 = vstv %s2190_s14  ;;  %v2155_v20 = vmul.f32 %v5286_v6, %v2154_v16  ;;  %s2277_s0 = sadd.s32 424, %s5200_s26  ;;  %s2287_s5 = sld [smem:[#allocation2 + %s2286_s11]] }
 0x506   : >> { %v2182_v22 = vstv %s2181_s21  ;;  %v2192_v19 = vmul.f32 %v5286_v6, %v2191_v0  ;;  %s2314_s6 = sadd.s32 482, %s5200_s26  ;;  %s2278_s19 = sld [smem:[#allocation2 + %s2277_s0]] }
 0x507   : >> { %2032 = vrot.lane.b32.xlu1 %v2030_v62, %s4124_s23  ;;  %v2219_v21 = vstv %s2218_s8  ;;  %v2183_v23 = vmul.f32 %v5286_v6, %v2182_v22  ;;  %s2305_s14 = sadd.s32 426, %s5200_s26  ;;  %s2315_s28 = sld [smem:[#allocation2 + %s2314_s6]] }
 0x508   : >> { %v2210_v14 = vstv %s2209_s9  ;;  %v2220_v24 = vmul.f32 %v5286_v6, %v2219_v21  ;;  %s2355_s21 = sadd.s32 485, %s5200_s26  ;;  %s2306_s29 = sld [smem:[#allocation2 + %s2305_s14]] }
 0x509   : >> { %2023 = vrot.lane.b32.xlu0 %v2021_v63, %s4124_s23  ;;  %v2260_v26 = vstv %s2259_s30  ;;  %v2211_v28 = vmul.f32 %v5286_v6, %v2210_v14  ;;  %s2346_s8 = sadd.s32 429, %s5200_s26  ;;  %s2356_s24 = sld [smem:[#allocation2 + %s2355_s21]] }
 0x50a   : >> { %v2251_v29 = vstv %s2250_s25  ;;  %v2261_v30 = vmul.f32 %v2260_v26, %v5307_v54  ;;  %s2383_s9 = sadd.s32 487, %s5200_s26  ;;  %s2347_s7 = sld [smem:[#allocation2 + %s2346_s8]] }
 0x50b   : >> { %2071 = vrot.lane.b32.xlu1 %v2069_v57, %s4124_s23  ;;  %v2288_v31 = vstv %s2287_s5  ;;  %v2252_v49 = vmul.f32 %v2251_v29, %v5307_v54  ;;  %s2374_s30 = sadd.s32 431, %s5200_s26  ;;  %s2384_s11 = sld [smem:[#allocation2 + %s2383_s9]]  ;;  %v5370_v57 = vld [vmem:[%s5213_s2 + $0x28] sm:$0x1f] }
 0x50c   : >> { %v2279_v32 = vstv %s2278_s19  ;;  %v2289_v27 = vmul.f32 %v2288_v31, %v5307_v54  ;;  %s2411_s25 = sadd.s32 489, %s5200_s26  ;;  %s2375_s0 = sld [smem:[#allocation2 + %s2374_s30]] }
 0x50d   : >> { %2062 = vrot.lane.b32.xlu0 %v2060_v25, %s4124_s23  ;;  %v2316_v33 = vstv %s2315_s28  ;;  %v2280_v35 = vmul.f32 %v2279_v32, %v5307_v54  ;;  %s2402_s5 = sadd.s32 433, %s5200_s26  ;;  %s2412_s6 = sld [smem:[#allocation2 + %s2411_s25]] }
 0x50e   : >> { %v2307_v36 = vstv %s2306_s29  ;;  %v2317_v37 = vmul.f32 %v2316_v33, %v5307_v54  ;;  %s2450_s19 = sadd.s32 492, %s5200_s26  ;;  %s2403_s14 = sld [smem:[#allocation2 + %s2402_s5]] }
 0x50f   : >> { %2099 = vrot.lane.b32.xlu1 %v2097_v7, %s4124_s23  ;;  %v2357_v40 = vstv %s2356_s24  ;;  %v2308_v12 = vmul.f32 %v2307_v36, %v5307_v54  ;;  %s2441_s28 = sadd.s32 436, %s5200_s26  ;;  %s2451_s21 = sld [smem:[#allocation2 + %s2450_s19]] }
 0x510   : >> { %v2348_v34 = vstv %s2347_s7  ;;  %v2358_v43 = vmul.f32 %v5328_v39, %v2357_v40  ;;  %s2478_s29 = sadd.s32 494, %s5200_s26  ;;  %s2442_s8 = sld [smem:[#allocation2 + %s2441_s28]] }
 0x511   : >> { %2090 = vrot.lane.b32.xlu0 %v2088_v9, %s4124_s23  ;;  %v2385_v42 = vstv %s2384_s11  ;;  %v2349_v44 = vmul.f32 %v5328_v39, %v2348_v34  ;;  %s2469_s24 = sadd.s32 438, %s5200_s26  ;;  %s2479_s9 = sld [smem:[#allocation2 + %s2478_s29]] }
 0x512   : >> { %v2376_v45 = vstv %s2375_s0  ;;  %v2386_v46 = vmul.f32 %v5328_v39, %v2385_v42  ;;  %s2506_s7 = sadd.s32 496, %s5200_s26  ;;  %s2470_s30 = sld [smem:[#allocation2 + %s2469_s24]] }
 0x513   : >> { %2127 = vrot.lane.b32.xlu1 %v2125_v11, %s4124_s23  ;;  %v2413_v47 = vstv %s2412_s6  ;;  %v2377_v4 = vmul.f32 %v5328_v39, %v2376_v45  ;;  %s2497_s11 = sadd.s32 440, %s5200_s26  ;;  %s2507_s25 = sld [smem:[#allocation2 + %s2506_s7]] }
 0x514   : >> { %v2404_v48 = vstv %s2403_s14  ;;  %v2414_v50 = vmul.f32 %v5328_v39, %v2413_v47  ;;  %s2545_s0 = sadd.s32 499, %s5200_s26  ;;  %s2498_s5 = sld [smem:[#allocation2 + %s2497_s11]] }
 0x515   : >> { %2118 = vrot.lane.b32.xlu0 %v2116_v15, %s4124_s23  ;;  %v2452_v52 = vstv %s2451_s21  ;;  %v2405_v53 = vmul.f32 %v5328_v39, %v2404_v48  ;;  %s2536_s6 = sadd.s32 443, %s5200_s26  ;;  %s2546_s19 = sld [smem:[#allocation2 + %s2545_s0]] }
 0x516   : >> { %v2443_v55 = vstv %s2442_s8  ;;  %v2453_v56 = vmul.f32 %v2452_v52, %v5349_v51  ;;  %s2573_s14 = sadd.s32 501, %s5200_s26  ;;  %s2537_s28 = sld [smem:[#allocation2 + %s2536_s6]] }
 0x517   : >> { %2166 = vrot.lane.b32.xlu1 %v2164_v17, %s4124_s23  ;;  %v2480_v58 = vstv %s2479_s9  ;;  %v2444_v59 = vmul.f32 %v2443_v55, %v5349_v51  ;;  %s2564_s21 = sadd.s32 445, %s5200_s26  ;;  %s2574_s29 = sld [smem:[#allocation2 + %s2573_s14]] }
 0x518   : >> { %v2471_v60 = vstv %s2470_s30  ;;  %v2481_v18 = vmul.f32 %v2480_v58, %v5349_v51  ;;  %s2601_s8 = sadd.s32 503, %s5200_s26  ;;  %s2565_s24 = sld [smem:[#allocation2 + %s2564_s21]] }
 0x519   : >> { %2157 = vrot.lane.b32.xlu0 %v2155_v20, %s4124_s23  ;;  %v2508_v62 = vstv %s2507_s25  ;;  %v2472_v61 = vmul.f32 %v2471_v60, %v5349_v51  ;;  %s2592_s9 = sadd.s32 447, %s5200_s26  ;;  %s2602_s7 = sld [smem:[#allocation2 + %s2601_s8]] }
 0x51a   : >> { %v2499_v63 = vstv %s2498_s5  ;;  %v2509_v2 = vmul.f32 %v2508_v62, %v5349_v51  ;;  %s2593_s30 = sld [smem:[#allocation2 + %s2592_s9]]  ;;  %s1855_s11 = sadd.s32 393, %s5200_s26 }
 0x51b   : >> { %2194 = vrot.lane.b32.xlu1 %v2192_v19, %s4124_s23  ;;  %v2547_v3 = vstv %s2546_s19  ;;  %v2500_v25 = vmul.f32 %v2499_v63, %v5349_v51  ;;  %s1860_s25 = sadd.s32 449, %s5200_s26  ;;  %s5421_s5 = sld [smem:[#allocation2 + %s1855_s11]] }
 0x51c   : >> { %v2538_v5 = vstv %s2537_s28  ;;  %v2548_v7 = vmul.f32 %v5370_v57, %v2547_v3  ;;  %s1888_s6 = sadd.s32 451, %s5200_s26  ;;  %s5424_s19 = sld [smem:[#allocation2 + %s1860_s25]] }
 0x51d   : >> { %2185 = vrot.lane.b32.xlu0 %v2183_v23, %s4124_s23  ;;  %v2575_v8 = vstv %s2574_s29  ;;  %v2539_v9 = vmul.f32 %v5370_v57, %v2538_v5  ;;  %s1916_s14 = sadd.s32 453, %s5200_s26  ;;  %s1911_s28 = sadd.s32 397, %s5200_s26 }
 0x51e   : >> { %v2566_v10 = vstv %s2565_s24  ;;  %v2576_v11 = vmul.f32 %v5370_v57, %v2575_v8  ;;  %s1957_s21 = sadd.s32 456, %s5200_s26  ;;  %s5431_s29 = sld [smem:[#allocation2 + %s1888_s6]] }
 0x51f   : >> { %2222 = vrot.lane.b32.xlu1 %v2220_v24, %s4124_s23  ;;  %v2603_v13 = vstv %s2602_s7  ;;  %v2567_v15 = vmul.f32 %v5370_v57, %v2566_v10  ;;  %s1952_s8 = sadd.s32 400, %s5200_s26  ;;  %s5436_s24 = sld [smem:[#allocation2 + %s1916_s14]] }
 0x520   : >> { %v2594_v16 = vstv %s2593_s30  ;;  %v2604_v17 = vmul.f32 %v5370_v57, %v2603_v13  ;;  %s1985_s9 = sadd.s32 458, %s5200_s26  ;;  %s5439_s7 = sld [smem:[#allocation2 + %s1911_s28]] }
 0x521   : >> { %2213 = vrot.lane.b32.xlu0 %v2211_v28, %s4124_s23  ;;  %v2595_v0 = vmul.f32 %v5370_v57, %v2594_v16  ;;  %s5441_s30 = sld [smem:[#allocation2 + %s1957_s21]]  ;;  %s1980_s11 = sadd.s32 402, %s5200_s26 }
 0x522   : >> { %s5448_s25 = sld [smem:[#allocation2 + %s1985_s9]]  ;;  %s2052_s6 = sadd.s32 463, %s5200_s26 }
 0x523   : >> { %2263 = vrot.lane.b32.xlu1 %v2261_v30, %s4124_s23  ;;  %s2013_s14 = sadd.s32 460, %s5200_s26  ;;  %s2008_s3 = sadd.s32 404, %s5200_s26 }
 0x524   : >> { %s5456_s28 = sld [smem:[#allocation2 + %s1980_s11]]  ;;  %s2047_s21 = sadd.s32 407, %s5200_s26 }
 0x525   : >> { %2254 = vrot.lane.b32.xlu0 %v2252_v49, %s4124_s23  ;;  %s2080_s9 = sadd.s32 465, %s5200_s26  ;;  %s5465_s27 = sld [smem:[#allocation2 + %s2013_s14]] }
 0x526   : >> { %s5467_s20 = sld [smem:[#allocation2 + %s2008_s3]]  ;;  %s2075_s11 = sadd.s32 409, %s5200_s26 }
 0x527   : >> { %2291 = vrot.lane.b32.xlu1 %v2289_v27, %s4124_s23  ;;  %s2108_s3 = sadd.s32 467, %s5200_s26  ;;  %s5488_s14 = sld [smem:[#allocation2 + %s2075_s11]] }
 0x529   : >> { %2282 = vrot.lane.b32.xlu0 %v2280_v35, %s4124_s23 }
 0x52b   : >> { %2319 = vrot.lane.b32.xlu1 %v2317_v37, %s4124_s23  ;;  %v1862_v37 = vstv %s5424_s19  ;;  %s5473_s19 = sld [smem:[#allocation2 + %s2047_s21]]  ;;  %s2175_s21 = sadd.s32 472, %s5200_s26  ;;  %v2015_v8 = vstv %s5465_s27 }
 0x52c   : >> { %v1863_v42 = vmul.f32 %v5219_v38, %v1862_v37  ;;  %s5518_s11 = sld [smem:[#allocation2 + %s2175_s21]]  ;;  %v2010_v13 = vstv %s5467_s20  ;;  %s2198_s27 = sadd.s32 418, %s5200_s26 }
 0x52d   : >> { %2310 = vrot.lane.b32.xlu0 %v2308_v12, %s4124_s23  ;;  %v1857_v12 = vstv %s5421_s5  ;;  %s2147_s5 = sadd.s32 470, %s5200_s26  ;;  %s2272_s20 = sadd.s32 479, %s5200_s26  ;;  %v2077_v37 = vstv %s5488_s14 }
 0x52e   : >> { %v1858_v47 = vmul.f32 %v5219_v38, %v1857_v12  ;;  %s5560_s14 = sld [smem:[#allocation2 + %s2198_s27]]  ;;  %s2436_s27 = sadd.s32 491, %s5200_s26 }
 0x52f   : >> { %2360 = vrot.lane.b32.xlu1 %v2358_v43, %s4124_s23  ;;  %v1890_v43 = vstv %s5431_s29  ;;  %s2142_s29 = sadd.s32 414, %s5200_s26  ;;  %s5562_s21 = sld [smem:[#allocation2 + %s2272_s20]] }
 0x530   : >> { %s2397_s20 = sadd.s32 488, %s5200_s26 }
 0x531   : >> { %2351 = vrot.lane.b32.xlu0 %v2349_v44, %s4124_s23  ;;  %v1959_v44 = vstv %s5441_s30  ;;  %s2103_s30 = sadd.s32 411, %s5200_s26 }
 0x532   : >> { %v1960_v55 = vmul.f32 %v5242_v41, %v1959_v44  ;;  %v2011_v44 = vmul.f32 %v5242_v41, %v2010_v13 }
 0x533   : >> { %2388 = vrot.lane.b32.xlu1 %v2386_v46, %s4124_s23 }
 0x535   : >> { %2379 = vrot.lane.b32.xlu0 %v2377_v4, %s4124_s23  ;;  %v1891_v4 = vmul.f32 %v5219_v38, %v1890_v43 }
 0x537   : >> { %2416 = vrot.lane.b32.xlu1 %v2414_v50, %s4124_s23 }
 0x539   : >> { %2407 = vrot.lane.b32.xlu0 %v2405_v53, %s4124_s23  ;;  %v1918_v53 = vstv %s5436_s24  ;;  %s2170_s24 = sadd.s32 416, %s5200_s26 }
 0x53b   : >> { %2455 = vrot.lane.b32.xlu1 %v2453_v56, %s4124_s23  ;;  %v1987_v56 = vstv %s5448_s25  ;;  %s2244_s25 = sadd.s32 477, %s5200_s26 }
 0x53c   : >> { %v1988_v3 = vmul.f32 %v5242_v41, %v1987_v56 }
 0x53d   : >> { %2446 = vrot.lane.b32.xlu0 %v2444_v59, %s4124_s23  ;;  %v1913_v59 = vstv %s5439_s7  ;;  %s5516_s7 = sld [smem:[#allocation2 + %s2103_s30]]  ;;  %s2341_s30 = sadd.s32 484, %s5200_s26 }
 0x53e   : >> { %v1914_v10 = vmul.f32 %v5219_v38, %v1913_v59 }
 0x53f   : >> { %2483 = vrot.lane.b32.xlu1 %v2481_v18, %s4124_s23 }
 0x541   : >> { %2474 = vrot.lane.b32.xlu0 %v2472_v61, %s4124_s23  ;;  %v1982_v61 = vstv %s5456_s28  ;;  %s2203_s28 = sadd.s32 474, %s5200_s26 }
 0x543   : >> { %2511 = vrot.lane.b32.xlu1 %v2509_v2, %s4124_s23  ;;  %v1919_v2 = vmul.f32 %v5219_v38, %v1918_v53 }
 0x545   : >> { %2502 = vrot.lane.b32.xlu0 %v2500_v25, %s4124_s23 }
 0x547   : >> { %2550 = vrot.lane.b32.xlu1 %v2548_v7, %s4124_s23 }
 0x549   : >> { %2541 = vrot.lane.b32.xlu0 %v2539_v9, %s4124_s23  ;;  %v2049_v9 = vstv %s5473_s19  ;;  %s5545_s19 = sld [smem:[#allocation2 + %s2203_s28]]  ;;  %s2369_s28 = sadd.s32 486, %s5200_s26 }
 0x54b   : >> { %2578 = vrot.lane.b32.xlu1 %v2576_v11, %s4124_s23  ;;  %v1983_v11 = vmul.f32 %v5242_v41, %v1982_v61 }
 0x54d   : >> { %2569 = vrot.lane.b32.xlu0 %v2567_v15, %s4124_s23 }
 0x54f   : >> { %2606 = vrot.lane.b32.xlu1 %v2604_v17, %s4124_s23 }
 0x551   : >> { %2597 = vrot.lane.b32.xlu0 %v2595_v0, %s4124_s23  ;;  %s1883_s23 = sadd.s32 395, %s5200_s26 }
 0x552   : >> { %s5417_s0 = sld [smem:[#allocation2 + %s1883_s23]] }
 0x553   : >> { %s5445_s23 = sld [smem:[#allocation2 + %s1952_s8]] }
 0x554   : >> { %s5461_s8 = sld [smem:[#allocation2 + %s2052_s6]] }
 0x555   : >> { %s5477_s6 = sld [smem:[#allocation2 + %s2080_s9]] }
 0x556   : >> { %s5504_s9 = sld [smem:[#allocation2 + %s2142_s29]] }
 0x558   : >> { %v1885_v46 = vstv %s5417_s0  ;;  %s5497_s0 = sld [smem:[#allocation2 + %s2147_s5]] }
 0x559   : >> { %v1954_v48 = vstv %s5445_s23  ;;  %v1886_v58 = vmul.f32 %v5219_v38, %v1885_v46  ;;  %s5502_s23 = sld [smem:[#allocation2 + %s2108_s3]] }
 0x55a   : >> { %v1955_v62 = vmul.f32 %v5242_v41, %v1954_v48  ;;  %v2054_v63 = vstv %s5461_s8  ;;  %s2239_s8 = sadd.s32 421, %s5200_s26  ;;  %s5531_s5 = sld [smem:[#allocation2 + %s2170_s24]] }
 0x55b   : >> { %v2055_v15 = vmul.f32 %v5265_v1, %v2054_v63  ;;  %s5533_s3 = sld [smem:[#allocation2 + %s2244_s25]]  ;;  %v2082_v38 = vstv %s5477_s6  ;;  %s2267_s6 = sadd.s32 423, %s5200_s26 }
 0x55c   : >> { %s5547_s29 = sld [smem:[#allocation2 + %s2239_s8]]  ;;  %v2083_v46 = vmul.f32 %v5265_v1, %v2082_v38  ;;  %s2336_s24 = sadd.s32 428, %s5200_s26 }
 0x55d   : >> { %s2295_s25 = sadd.s32 425, %s5200_s26  ;;  %s2364_s8 = sadd.s32 430, %s5200_s26 }
 0x562   : >> { %v2241_v13 = vstv %s5547_s29  ;;  %s5620_s29 = sld [smem:[#allocation2 + %s2436_s27]]  ;;  %s2487_s27 = sadd.s32 439, %s5200_s26 }
 0x565   : >> { %v5388_v20 = vpop.permute.xlu1 %1898 }
 0x566   : >> { %v1901_v17 = vadd.f32 %v5388_v20, %v1886_v58  ;;  %v2177_v58 = vstv %s5518_s11  ;;  %s5592_s11 = sld [smem:[#allocation2 + %s2336_s24]]  ;;  %s2459_s24 = sadd.s32 437, %s5200_s26 }
 0x567   : >> { %v5390_v22 = vpop.permute.xlu0 %1870 }
 0x568   : >> { %v1873_v18 = vadd.f32 %v5390_v22, %v1858_v47  ;;  %v2110_v47 = vstv %s5502_s23  ;;  %s5574_s23 = sld [smem:[#allocation2 + %s2267_s6]]  ;;  %s2431_s6 = sadd.s32 435, %s5200_s26 }
 0x569   : >> { %v5392_v19 = vpop.permute.xlu1 %1907  ;;  %v2111_v61 = vmul.f32 %v5265_v1, %v2110_v47 }
 0x56a   : >> { %v1910_v5 = vadd.f32 %v5392_v19, %v1891_v4  ;;  %v1956_v22 = vadd.f32 %v1955_v62, %v1873_v18  ;;  %v2016_v19 = vmul.f32 %v5242_v41, %v2015_v8  ;;  %v2144_v4 = vstv %s5504_s9  ;;  %s5578_s9 = sld [smem:[#allocation2 + %s2341_s30]]  ;;  %s2392_s30 = sadd.s32 432, %s5200_s26 }
 0x56b   : >> { %v5394_v21 = vpop.permute.xlu0 %1879  ;;  %v2078_v41 = vmul.f32 %v5265_v1, %v2077_v37  ;;  %v2145_v63 = vmul.f32 %v5286_v6, %v2144_v4 }
 0x56c   : >> { %v1882_v52 = vadd.f32 %v5394_v21, %v1863_v42  ;;  %v2050_v21 = vmul.f32 %v5265_v1, %v2049_v9  ;;  %v1989_v43 = vadd.f32 %v1988_v3, %v1910_v5  ;;  %v2149_v42 = vstv %s5497_s0  ;;  %s2300_s0 = sadd.s32 481, %s5200_s26 }
 0x56d   : >> { %v5396_v23 = vpop.permute.xlu1 %1935  ;;  %v2150_v56 = vmul.f32 %v5286_v6, %v2149_v42  ;;  %v2246_v3 = vstv %s5533_s3  ;;  %s5606_s3 = sld [smem:[#allocation2 + %s2369_s28]]  ;;  %s2492_s28 = sadd.s32 495, %s5200_s26 }
 0x56e   : >> { %v1961_v7 = vadd.f32 %v1960_v55, %v1882_v52  ;;  %v1984_v52 = vadd.f32 %v1983_v11, %v1901_v17  ;;  %v2105_v55 = vstv %s5516_s7  ;;  %s5588_s7 = sld [smem:[#allocation2 + %s2300_s0]]  ;;  %v2205_v11 = vstv %s5545_s19  ;;  %s2464_s0 = sadd.s32 493, %s5200_s26 }
 0x56f   : >> { %v5398_v14 = vpop.permute.xlu0 %1926  ;;  %v2106_v9 = vmul.f32 %v5265_v1, %v2105_v55  ;;  %v2247_v38 = vmul.f32 %v2246_v3, %v5307_v54  ;;  %s5618_s19 = sld [smem:[#allocation2 + %s2364_s8]]  ;;  %v2269_v42 = vstv %s5574_s23  ;;  %s2526_s8 = sadd.s32 442, %s5200_s26 }
 0x570   : >> { %s5646_s23 = sld [smem:[#allocation2 + %s2392_s30]]  ;;  %s2587_s30 = sadd.s32 502, %s5200_s26 }
 0x571   : >> { %v5400_v24 = vpop.permute.xlu1 %1976 }
 0x572   : >> { %v1979_v0 = vadd.f32 %v5400_v24, %v1961_v7  ;;  %v1938_v24 = vadd.f32 %v5396_v23, %v1919_v2  ;;  %v2172_v2 = vstv %s5531_s5  ;;  %s5602_s5 = sld [smem:[#allocation2 + %s2295_s25]]  ;;  %s2531_s25 = sadd.s32 498, %s5200_s26 }
 0x573   : >> { %v5402_v26 = vpop.permute.xlu0 %1967  ;;  %v2173_v1 = vmul.f32 %v5286_v6, %v2172_v2 }
 0x574   : >> { %v1970_v12 = vadd.f32 %v5402_v26, %v1956_v22  ;;  %v1929_v26 = vadd.f32 %v5398_v14, %v1914_v10  ;;  %v2056_v53 = vadd.f32 %v2055_v15, %v1979_v0  ;;  %v2178_v10 = vmul.f32 %v5286_v6, %v2177_v58 }
 0x575   : >> { %v5404_v28 = vpop.permute.xlu1 %2004  ;;  %v2200_v22 = vstv %s5560_s14  ;;  %s5632_s14 = sld [smem:[#allocation2 + %s2397_s20]]  ;;  %v2366_v3 = vstv %s5618_s19 }
 0x576   : >> { %v2007_v48 = vadd.f32 %v5404_v28, %v1989_v43  ;;  %v2017_v28 = vadd.f32 %v2016_v19, %v1938_v24  ;;  %v2051_v62 = vadd.f32 %v2050_v21, %v1970_v12  ;;  %v2274_v19 = vstv %s5562_s21  ;;  %s5634_s21 = sld [smem:[#allocation2 + %s2431_s6]]  ;;  %s2554_s6 = sadd.s32 444, %s5200_s26 }
 0x577   : >> { %v5406_v29 = vpop.permute.xlu0 %1995  ;;  %v2206_v12 = vmul.f32 %v5286_v6, %v2205_v11  ;;  %v2242_v43 = vmul.f32 %v2241_v13, %v5307_v54  ;;  %s5676_s20 = sld [smem:[#allocation2 + %s2526_s8]]  ;;  %s1947_s8 = sadd.s32 455, %s5200_s26 }
 0x578   : >> { %v1998_v14 = vadd.f32 %v5406_v29, %v1984_v52  ;;  %v2084_v8 = vadd.f32 %v2083_v46, %v2007_v48  ;;  %v2275_v48 = vmul.f32 %v2274_v19, %v5307_v54  ;;  %v2302_v52 = vstv %s5588_s7  ;;  %s5660_s7 = sld [smem:[#allocation2 + %s2459_s24]] }
 0x579   : >> { %v5408_v30 = vpop.permute.xlu1 %2032  ;;  %v2297_v58 = vstv %s5602_s5  ;;  %s2559_s5 = sadd.s32 500, %s5200_s26  ;;  %s5685_s19 = sld [smem:[#allocation2 + %s2487_s27]] }
 0x57a   : >> { %v2035_v29 = vadd.f32 %v5408_v30, %v2017_v28  ;;  %v2079_v17 = vadd.f32 %v2078_v41, %v1998_v14  ;;  %v2371_v28 = vstv %s5606_s3  ;;  %s5674_s3 = sld [smem:[#allocation2 + %s2492_s28]]  ;;  %s1842_s28 = sadd.s32 448, %s5200_s26 }
 0x57b   : >> { %v5410_v31 = vpop.permute.xlu0 %2023  ;;  %v2399_v11 = vstv %s5632_s14  ;;  %s5704_s14 = sld [smem:[#allocation2 + %s2587_s30]]  ;;  %s2137_s30 = sadd.s32 469, %s5200_s26 }
 0x57c   : >> { %s1948_s27 = sld [smem:[#allocation2 + %s1947_s8]] }
 0x57d   : >> { %v5414_v49 = vpop.permute.xlu1 %2071 }
 0x57e   : >> { %v2074_v18 = vadd.f32 %v5414_v49, %v2056_v53  ;;  %v2012_v49 = vadd.f32 %v2011_v44, %v1929_v26  ;;  %v2343_v44 = vstv %s5578_s9  ;;  %v2201_v26 = vmul.f32 %v5286_v6, %v2200_v22  ;;  %s5648_s9 = sld [smem:[#allocation2 + %s2464_s0]] }
 0x57f   : >> { %v5419_v32 = vpop.permute.xlu0 %2062  ;;  %v2338_v53 = vstv %s5592_s11  ;;  %v2270_v6 = vmul.f32 %v2269_v42, %v5307_v54  ;;  %v2344_v14 = vmul.f32 %v5328_v39, %v2343_v44  ;;  %s5662_s11 = sld [smem:[#allocation2 + %s2531_s25]]  ;;  %s4125_s25 = smov 5  }
 0x580   : >> { %v2065_v7 = vadd.f32 %v5419_v32, %v2051_v62  ;;  %v2026_v30 = vadd.f32 %v5410_v31, %v2012_v49  ;;  %v2151_v0 = vadd.f32 %v2150_v56, %v2074_v18  ;;  %v2339_v2 = vmul.f32 %v5328_v39, %v2338_v53  ;;  %s5696_s0 = sld [smem:[#allocation2 + %s2554_s6]] }
 0x581   : >> { %v5427_v27 = vpop.permute.xlu1 %2099  ;;  %v2438_v49 = vstv %s5620_s29  ;;  %s5687_s29 = sld [smem:[#allocation2 + %s2559_s5]]  ;;  %s2042_s5 = sadd.s32 462, %s5200_s26 }
 0x582   : >> { %v2102_v32 = vadd.f32 %v5427_v27, %v2084_v8  ;;  %v2112_v27 = vadd.f32 %v2111_v61, %v2035_v29  ;;  %v2146_v24 = vadd.f32 %v2145_v63, %v2065_v7  ;;  %v2303_v63 = vmul.f32 %v2302_v52, %v5307_v54 }
 0x583   : >> { %v5434_v33 = vpop.permute.xlu0 %2090  ;;  %v2439_v22 = vmul.f32 %v2438_v49, %v5349_v51 }
 0x584   : >> { %v2093_v31 = vadd.f32 %v5434_v33, %v2079_v17  ;;  %v2179_v4 = vadd.f32 %v2178_v10, %v2102_v32  ;;  %v2372_v10 = vmul.f32 %v5328_v39, %v2371_v28  ;;  %v2466_v19 = vstv %s5648_s9  ;;  %s4127_s9 = smov 17  }
 0x585   : >> { %v5443_v35 = vpop.permute.xlu1 %2127  ;;  %v2533_v42 = vstv %s5662_s11  ;;  %s1851_s11 = sld [smem:[#allocation2 + %s1842_s28]]  ;;  %s2331_s28 = sadd.s32 483, %s5200_s26 }
 0x586   : >> { %v2130_v33 = vadd.f32 %v5443_v35, %v2112_v27  ;;  %v2174_v55 = vadd.f32 %v2173_v1, %v2093_v31  ;;  %v2394_v1 = vstv %s5646_s23  ;;  %s4126_s23 = smov 11  }
 0x587   : >> { %v5451_v36 = vpop.permute.xlu0 %2118 }
 0x589   : >> { %v5459_v40 = vpop.permute.xlu1 %2166 }
 0x58a   : >> { %v2169_v37 = vadd.f32 %v5459_v40, %v2151_v0  ;;  %v2107_v40 = vadd.f32 %v2106_v9, %v2026_v30  ;;  %v2298_v9 = vmul.f32 %v2297_v58, %v5307_v54  ;;  %v2433_v30 = vstv %s5634_s21  ;;  %s2582_s21 = sadd.s32 446, %s5200_s26 }
 0x58b   : >> { %v5469_v34 = vpop.permute.xlu0 %2157  ;;  %v2367_v0 = vmul.f32 %v5328_v39, %v2366_v3  ;;  %s5719_s24 = sld [smem:[#allocation2 + %s2582_s21]] }
 0x58c   : >> { %v2160_v47 = vadd.f32 %v5469_v34, %v2146_v24  ;;  %v2121_v35 = vadd.f32 %v5451_v36, %v2107_v40  ;;  %v2248_v56 = vadd.f32 %v2247_v38, %v2169_v37  ;;  %v2400_v37 = vmul.f32 %v5328_v39, %v2399_v11  ;;  %s2138_s21 = sld [smem:[#allocation2 + %s2137_s30]] }
 0x58d   : >> { %v5480_v45 = vpop.permute.xlu1 %2194  ;;  %v2434_v24 = vmul.f32 %v2433_v30, %v5349_v51  ;;  %v2395_v40 = vmul.f32 %v5328_v39, %v2394_v1 }
 0x58e   : >> { %v2197_v34 = vadd.f32 %v5480_v45, %v2179_v4  ;;  %v2207_v45 = vadd.f32 %v2206_v12, %v2130_v33  ;;  %v2243_v61 = vadd.f32 %v2242_v43, %v2160_v47  ;;  %v2461_v43 = vstv %s5660_s7  ;;  %s1942_s7 = sadd.s32 399, %s5200_s26 }
 0x58f   : >> { %v5491_v50 = vpop.permute.xlu0 %2185  ;;  %v2467_v47 = vmul.f32 %v2466_v19, %v5349_v51  ;;  %s1943_s6 = sld [smem:[#allocation2 + %s1942_s7]]  ;;  %s2326_s7 = sadd.s32 427, %s5200_s26 }
 0x590   : >> { %v2188_v36 = vadd.f32 %v5491_v50, %v2174_v55  ;;  %v2276_v8 = vadd.f32 %v2275_v48, %v2197_v34  ;;  %v2528_v48 = vstv %s5676_s20  ;;  %v2462_v34 = vmul.f32 %v2461_v43, %v5349_v51 }
 0x591   : >> { %v5506_v60 = vpop.permute.xlu1 %2222  ;;  %v2489_v55 = vstv %s5685_s19  ;;  %v2584_v1 = vstv %s5719_s24  ;;  %s2037_s19 = sadd.s32 406, %s5200_s26  ;;  %s2234_s24 = sadd.s32 476, %s5200_s26 }
 0x592   : >> { %v2225_v50 = vadd.f32 %v5506_v60, %v2207_v45  ;;  %v2529_v45 = vmul.f32 %v5370_v57, %v2528_v48  ;;  %v2490_v49 = vmul.f32 %v2489_v55, %v5349_v51  ;;  %v3954_v48 = vld [vmem:[%s5213_s2 + $0x31] sm:$0x1f] }
 0x593   : >> { %v5520_v25 = vpop.permute.xlu0 %2213 }
 0x595   : >> { %v5535_v16 = vpop.permute.xlu1 %2263 }
 0x596   : >> { %v2266_v62 = vadd.f32 %v5535_v16, %v2248_v56  ;;  %v2202_v16 = vadd.f32 %v2201_v26, %v2121_v35  ;;  %v2494_v26 = vstv %s5674_s3  ;;  %v2534_v56 = vmul.f32 %v5370_v57, %v2533_v42  ;;  %s6404_s3 = sadd.s32 392, %s5200_s26 }
 0x597   : >> { %v5549_v20 = vpop.permute.xlu0 %2254  ;;  %s1847_s20 = sld [smem:[#allocation2 + %s6404_s3]]  ;;  %s2421_s3 = sadd.s32 434, %s5200_s26 }
 0x598   : >> { %v2257_v7 = vadd.f32 %v5549_v20, %v2243_v61  ;;  %v2216_v60 = vadd.f32 %v5520_v25, %v2202_v16  ;;  %v2271_v20 = vadd.f32 %v2270_v6, %v2188_v36  ;;  %v2345_v17 = vadd.f32 %v2344_v14, %v2266_v62 }
 0x599   : >> { %v5564_v23 = vpop.permute.xlu1 %2291  ;;  %v2304_v25 = vadd.f32 %v2303_v63, %v2225_v50  ;;  %v2561_v6 = vstv %s5687_s29  ;;  %v2556_v62 = vstv %s5696_s0  ;;  %v2589_v16 = vstv %s5704_s14  ;;  %s2043_s29 = sld [smem:[#allocation2 + %s2042_s5]]  ;;  %s2132_s14 = sadd.s32 413, %s5200_s26 }
 0x59a   : >> { %v2294_v32 = vadd.f32 %v5564_v23, %v2276_v8  ;;  %v2340_v27 = vadd.f32 %v2339_v2, %v2257_v7  ;;  %v2299_v33 = vadd.f32 %v2298_v9, %v2216_v60  ;;  %v2557_v30 = vmul.f32 %v5370_v57, %v2556_v62  ;;  %s2038_s0 = sld [smem:[#allocation2 + %s2037_s19]] }
 0x59b   : >> { %v5576_v59 = vpop.permute.xlu0 %2282  ;;  %s2327_s5 = sld [smem:[#allocation2 + %s2326_s7]] }
 0x59c   : >> { %v2285_v31 = vadd.f32 %v5576_v59, %v2271_v20  ;;  %s2422_s19 = sld [smem:[#allocation2 + %s2421_s3]] }
 0x59d   : >> { %v5590_v5 = vpop.permute.xlu1 %2319 }
 0x59e   : >> { %v2322_v44 = vadd.f32 %v5590_v5, %v2304_v25  ;;  %v2368_v5 = vadd.f32 %v2367_v0, %v2285_v31  ;;  %v2590_v0 = vmul.f32 %v5370_v57, %v2589_v16  ;;  %v3958_v16 = vld [vmem:[%s5213_s2 + $0x1] sm:$0x1f] }
 0x59f   : >> { %v5604_v15 = vpop.permute.xlu0 %2310 }
 0x5a0   : >> { %v2313_v52 = vadd.f32 %v5604_v15, %v2299_v33  ;;  %v2401_v14 = vadd.f32 %v2400_v37, %v2322_v44  ;;  %v2585_v37 = vmul.f32 %v5370_v57, %v2584_v1  ;;  %v2039_v55 = vstv %s2038_s0 }
 0x5a1   : >> { %v5616_v21 = vpop.permute.xlu1 %2360 }
 0x5a2   : >> { %v2363_v23 = vadd.f32 %v5616_v21, %v2345_v17  ;;  %v2373_v21 = vadd.f32 %v2372_v10, %v2294_v32  ;;  %v2396_v63 = vadd.f32 %v2395_v40, %v2313_v52  ;;  %v1852_v40 = vstv %s1851_s11  ;;  %s2332_s11 = sld [smem:[#allocation2 + %s2331_s28]] }
 0x5a3   : >> { %v5630_v46 = vpop.permute.xlu0 %2351 }
 0x5a4   : >> { %v2354_v59 = vadd.f32 %v5630_v46, %v2340_v27  ;;  %v2440_v35 = vadd.f32 %v2439_v22, %v2363_v23 }
 0x5a5   : >> { %v5644_v41 = vpop.permute.xlu1 %2388 }
 0x5a6   : >> { %v2391_v53 = vadd.f32 %v5644_v41, %v2373_v21  ;;  %v2435_v15 = vadd.f32 %v2434_v24, %v2354_v59  ;;  %v2495_v41 = vmul.f32 %v2494_v26, %v5349_v51  ;;  %v1944_v26 = vstv %s1943_s6  ;;  %s2521_s6 = sadd.s32 497, %s5200_s26 }
 0x5a7   : >> { %v5658_v18 = vpop.permute.xlu0 %2379  ;;  %s2522_s30 = sld [smem:[#allocation2 + %s2521_s6]] }
 0x5a8   : >> { %v2382_v58 = vadd.f32 %v5658_v18, %v2368_v5  ;;  %v2468_v3 = vadd.f32 %v2467_v47, %v2391_v53  ;;  %v2562_v18 = vmul.f32 %v5370_v57, %v2561_v6  ;;  %v1949_v47 = vstv %s1948_s27  ;;  %v3955_v53 = vld [vmem:[%s5213_s2 + $0x9] sm:$0x1f]  ;;  %s2426_s27 = sadd.s32 490, %s5200_s26 }
 0x5a9   : >> { %v5671_v29 = vpop.permute.xlu1 %2416  ;;  %v1950_v52 = vmul.f32 %v3954_v48, %v1949_v47  ;;  %v1853_v5 = vmul.f32 %v3955_v53, %v1852_v40 }
 0x5aa   : >> { %v2419_v61 = vadd.f32 %v5671_v29, %v2401_v14  ;;  %v2463_v9 = vadd.f32 %v2462_v34, %v2382_v58  ;;  %v1945_v34 = vmul.f32 %v3954_v48, %v1944_v26  ;;  %v2139_v14 = vstv %s2138_s21  ;;  %s2628_s21 = sld [smem:[#allocation4 + %s4249_s10]] }
 0x5ab   : >> { %v2408_v13 = vpop.permute.xlu0 %2407  ;;  %v1951_v58 = vadd.f32 %v1950_v52, %v1853_v5 }
 0x5ac   : >> { %v2410_v7 = vadd.f32 %v2408_v13, %v2396_v63  ;;  %v2496_v32 = vadd.f32 %v2495_v41, %v2419_v61 }
 0x5ad   : >> { %v2456_v38 = vpop.permute.xlu1 %2455 }
 0x5ae   : >> { %v2458_v28 = vadd.f32 %v2456_v38, %v2440_v35  ;;  %v2491_v38 = vadd.f32 %v2490_v49, %v2410_v7  ;;  %v2044_v35 = vstv %s2043_s29  ;;  %s2516_s29 = sadd.s32 441, %s5200_s26 }
 0x5af   : >> { %v2447_v12 = vpop.permute.xlu0 %2446  ;;  %s2517_s0 = sld [smem:[#allocation2 + %s2516_s29]] }
 0x5b0   : >> { %v2449_v2 = vadd.f32 %v2447_v12, %v2435_v15  ;;  %v2535_v10 = vadd.f32 %v2534_v56, %v2458_v28  ;;  %v3956_v56 = vld [vmem:[%s5213_s2 + $0x8] sm:$0x1f] }
 0x5b1   : >> { %v2484_v4 = vpop.permute.xlu1 %2483  ;;  %v2045_v6 = vmul.f32 %v3956_v56, %v2044_v35  ;;  %v2040_v28 = vmul.f32 %v3956_v56, %v2039_v55 }
 0x5b2   : >> { %v2486_v8 = vadd.f32 %v2484_v4, %v2468_v3  ;;  %v2530_v20 = vadd.f32 %v2529_v45, %v2449_v2  ;;  %v1848_v4 = vstv %s1847_s20  ;;  %s2427_s20 = sld [smem:[#allocation2 + %s2426_s27]] }
 0x5b3   : >> { %v2475_v46 = vpop.permute.xlu0 %2474  ;;  %v2046_v62 = vadd.f32 %v2045_v6, %v1951_v58 }
 0x5b4   : >> { %v2477_v60 = vadd.f32 %v2475_v46, %v2463_v9  ;;  %v2563_v13 = vadd.f32 %v2562_v18, %v2486_v8  ;;  %v1849_v46 = vmul.f32 %v3955_v53, %v1848_v4  ;;  %v2333_v18 = vstv %s2332_s11 }
 0x5b5   : >> { %v2512_v36 = vpop.permute.xlu1 %2511  ;;  %v2328_v9 = vstv %s2327_s5 }
 0x5b6   : >> { %v2514_v22 = vadd.f32 %v2512_v36, %v2496_v32  ;;  %v2558_v27 = vadd.f32 %v2557_v30, %v2477_v60  ;;  %v1946_v15 = vadd.f32 %v1945_v34, %v1849_v46  ;;  %v3957_v36 = vld [vmem:[%s5213_s2 + $0x30] sm:$0x1f]  ;;  %v2329_v60 = vmul.f32 %v5328_v39, %v2328_v9 }
 0x5b7   : >> { %v2503_v50 = vpop.permute.xlu0 %2502  ;;  %v2140_v45 = vmul.f32 %v3957_v36, %v2139_v14 }
 0x5b8   : >> { %v2505_v25 = vadd.f32 %v2503_v50, %v2491_v38  ;;  %v2591_v43 = vadd.f32 %v2590_v0, %v2514_v22  ;;  %v2041_v2 = vadd.f32 %v2040_v28, %v1946_v15  ;;  %v2428_v30 = vstv %s2427_s20 }
 0x5b9   : >> { %v2551_v11 = vpop.permute.xlu1 %2550  ;;  %v2141_v50 = vadd.f32 %v2140_v45, %v2046_v62  ;;  %v2518_v22 = vstv %s2517_s0 }
 0x5ba   : >> { %v2553_v29 = vadd.f32 %v2551_v11, %v2535_v10  ;;  %v2586_v33 = vadd.f32 %v2585_v37, %v2505_v25  ;;  %v2334_v10 = vmul.f32 %v5328_v39, %v2333_v18 }
 0x5bb   : >> { %v2542_v17 = vpop.permute.xlu0 %2541 }
 0x5bc   : >> { %v2544_v19 = vadd.f32 %v2542_v17, %v2530_v20  ;;  %2635 = vrot.lane.b32.xlu1 %v2553_v29, %s4125_s25  ;;  %v2423_v29 = vstv %s2422_s19  ;;  %v2523_v17 = vstv %s2522_s30 }
 0x5bd   : >> { %v2579_v31 = vpop.permute.xlu1 %2578  ;;  %v2424_v0 = vmul.f32 %v2423_v29, %v5349_v51  ;;  %v2524_v38 = vmul.f32 %v5370_v57, %v2523_v17 }
 0x5be   : >> { %2611 = vrot.lane.b32.xlu0 %v2544_v19, %s4125_s25  ;;  %v2581_v23 = vadd.f32 %v2579_v31, %v2563_v13  ;;  %s5743_s25 = sld [smem:[#allocation2 + %s2132_s14]]  ;;  %s2649_s14 = sadd.s32 1, %s4249_s10  ;;  %v2519_v31 = vmul.f32 %v5370_v57, %v2518_v22 }
 0x5bf   : >> { %v2570_v24 = vpop.permute.xlu0 %2569  ;;  %s2650_s2 = sld [smem:[#allocation4 + %s2649_s14]] }
 0x5c0   : >> { %v2572_v12 = vadd.f32 %v2570_v24, %v2558_v27  ;;  %2639 = vrot.lane.b32.xlu1 %v2581_v23, %s4126_s23 }
 0x5c1   : >> { %v2607_v42 = vpop.permute.xlu1 %2606 }
 0x5c2   : >> { %2615 = vrot.lane.b32.xlu0 %v2572_v12, %s4126_s23  ;;  %v2609_v44 = vadd.f32 %v2607_v42, %v2591_v43  ;;  %s2229_s23 = sadd.s32 420, %s5200_s26 }
 0x5c3   : >> { %v2598_v59 = vpop.permute.xlu0 %2597  ;;  %s2230_s8 = sld [smem:[#allocation2 + %s2229_s23]] }
 0x5c4   : >> { %v2600_v21 = vadd.f32 %v2598_v59, %v2586_v33  ;;  %2643 = vrot.lane.b32.xlu1 %v2609_v44, %s4127_s9  ;;  %v2134_v41 = vstv %s5743_s25  ;;  %v2629_v33 = vstv %s2628_s21 }
 0x5c5   : >> { %v2135_v63 = vmul.f32 %v3957_v36, %v2134_v41  ;;  %v2651_v12 = vstv %s2650_s2 }
 0x5c6   : >> { %2619 = vrot.lane.b32.xlu0 %v2600_v21, %s4127_s9  ;;  %s2235_s9 = sld [smem:[#allocation2 + %s2234_s24]]  ;;  %s6405_s24 = sshll.u32 %s4100_s22, 3 }
 0x5c7   : >> { %v2136_v8 = vadd.f32 %v2135_v63, %v2041_v2  ;;  %s2631_s25 = scalar_lea.vmem %s4262_s1, %s6405_s24  ;;  %s1841_s22 = sadd.s32 1, %s4100_s22  }
 0x5c8   : >> { %p1838_p12 = scmp.ge.s32.totalorder %s1841_s22, 4  }
 0x5c9   : >> { %v2231_v3 = vstv %s2230_s8 }
 0x5ca   : >> { %v2232_v7 = vmul.f32 %v3958_v16, %v2231_v3 }
 0x5cc   : >> { %v2236_v61 = vstv %s2235_s9  ;;  %v2233_v32 = vadd.f32 %v2232_v7, %v2136_v8 }
 0x5cd   : >> { %v2237_v49 = vmul.f32 %v2236_v61, %v5307_v54  ;;  %v2429_v54 = vmul.f32 %v2428_v30, %v5349_v51 }
 0x5ce   : >> { %v2330_v1 = vadd.f32 %v2329_v60, %v2233_v32 }
 0x5cf   : >> { %v2238_v11 = vadd.f32 %v2237_v49, %v2141_v50 }
 0x5d0   : >> { %v2425_v39 = vadd.f32 %v2424_v0, %v2330_v1 }
 0x5d1   : >> { %v2335_v20 = vadd.f32 %v2334_v10, %v2238_v11 }
 0x5d2   : >> { %v2520_v37 = vadd.f32 %v2519_v31, %v2425_v39 }
 0x5d3   : >> { %v2430_v19 = vadd.f32 %v2429_v54, %v2335_v20 }
 0x5d5   : >> { %v2525_v23 = vadd.f32 %v2524_v38, %v2430_v19 }
 0x62e   : >> { %v2636_v13 = vpop.permute.xlu1 %2635 }
 0x62f   : >> { %v2646_v24 = vsel %vm2622_vm0, %v2525_v23, %v2636_v13 }
 0x630   : >> { %v2612_v25 = vpop.permute.xlu0 %2611 }
 0x631   : >> { %v2623_v44 = vsel %vm2622_vm0, %v2520_v37, %v2612_v25 }
 0x632   : >> { %v2640_v27 = vpop.permute.xlu1 %2639 }
 0x633   : >> { %v2647_v43 = vsel %vm2624_vm1, %v2646_v24, %v2640_v27 }
 0x634   : >> { %v2616_v51 = vpop.permute.xlu0 %2615 }
 0x635   : >> { %v2625_v59 = vsel %vm2624_vm1, %v2623_v44, %v2616_v51 }
 0x636   : >> { %v2644_v42 = vpop.permute.xlu1 %2643  ;;  %1840 = sbr.rel (!%p1838_p12) target bundleno = 1257 (0x4e9), region = 211 }
 0x637   : >> { %v2648_v57 = vsel %vm2626_vm2, %v2647_v43, %v2644_v42 }
 0x638   : >> { %v2652_v21 = vadd.f32 %v2651_v12, %v2648_v57  ;;  %v2620_v40 = vpop.permute.xlu0 %2619 }
 0x639   : >> { %v2627_v47 = vsel %vm2626_vm2, %v2625_v59, %v2620_v40 }
 0x63a   : >> { %3785 = vst.msk [vmem:[%s2631_s25 + $0x20] sm:$0x1f] %vm2632_vm3, %v2652_v21  ;;  %v2630_v4 = vadd.f32 %v2629_v33, %v2627_v47 }
 0x63c   : >> { %2633 = vst.msk [vmem:[%s2631_s25] sm:$0x1f] %vm2632_vm3, %v2630_v4 }
 0x63d PF: > { %p3786_p13 = scmp.ne.s32.totalorder %s4056_s12, 5 }
 0x63e   : > { %s5775_s23 = smul.u32 (!%p3786_p13), 112, %s4060_s13  ;;  %s5778_s28 = smov (!%p3786_p13), 0  }
 0x63f   : > { %2659 = sbr.rel (%p3786_p13) target bundleno = 1946 (0x79a), region = 99 }
 0x640   : > { %s2661_s9 = sadd.s32 (!%p3786_p13), 616, %s5775_s23 }
 0x646 LB: >> { %s2719_s12 = sadd.s32 620, %s5775_s23  ;;  %s3787_s13 = sshll.u32 %s4104_s28, 3  ;;  %vm3448_vm4 = vcmask 48128   ;;  %vm3450_vm5 = vcmask 97280   ;;  %vm3452_vm6 = vcmask 146432   ;;  %vm3458_vm7 = vcmask 192512   ;;  %s4104_s28 = sphi %s5778_s28, %s2667_s28  }
 0x647   : >> { %s2720_s26 = sld [smem:[#allocation2 + %s2719_s12]]  ;;  %s5788_s22 = scalar_lea.vmem %s4257_s4, %s3787_s13 }
 0x648   : >> { %s2691_s8 = sadd.s32 618, %s5775_s23  ;;  %s2728_s11 = sadd.s32 676, %s5775_s23  ;;  %v5794_v26 = vld [vmem:[%s5788_s22 + $0x9] sm:$0x1f]  ;;  %v5817_v14 = vld [vmem:[%s5788_s22 + $0x31] sm:$0x1f] }
 0x649   : >> { %s2692_s7 = sld [smem:[#allocation2 + %s2691_s8]]  ;;  %s2700_s5 = sadd.s32 674, %s5775_s23  ;;  %v5840_v18 = vld [vmem:[%s5788_s22 + $0x8] sm:$0x1f]  ;;  %v5861_v17 = vld [vmem:[%s5788_s22 + $0x30] sm:$0x1f] }
 0x64a   : >> { %s2729_s27 = sld [smem:[#allocation2 + %s2728_s11]]  ;;  %s2756_s20 = sadd.s32 678, %s5775_s23  ;;  %v5882_v51 = vld [vmem:[%s5788_s22 + $0x1] sm:$0x1f] }
 0x64b   : >> { %s2701_s3 = sld [smem:[#allocation2 + %s2700_s5]]  ;;  %s2747_s19 = sadd.s32 622, %s5775_s23 }
 0x64c   : >> { %s2757_s6 = sld [smem:[#allocation2 + %s2756_s20]]  ;;  %s2797_s30 = sadd.s32 681, %s5775_s23 }
 0x64d   : >> { %v2721_v48 = vstv %s2720_s26  ;;  %s2748_s29 = sld [smem:[#allocation2 + %s2747_s19]]  ;;  %s2788_s14 = sadd.s32 625, %s5775_s23 }
 0x64e   : >> { %v2722_v52 = vmul.f32 %v5794_v26, %v2721_v48  ;;  %s5800_s0 = sld [smem:[#allocation2 + %s2797_s30]]  ;;  %s2825_s21 = sadd.s32 683, %s5775_s23  ;;  %v5903_v48 = vld [vmem:[%s5788_s22 + $0x29] sm:$0x1f] }
 0x64f   : >> { %v2693_v53 = vstv %s2692_s7  ;;  %s5803_s2 = sld [smem:[#allocation2 + %s2788_s14]]  ;;  %s4128_s24 = smov 1  }
 0x650   : >> { %2724 = vrot.lane.b32.xlu1 %v2722_v52, %s4128_s24  ;;  %v2694_v5 = vmul.f32 %v5794_v26, %v2693_v53  ;;  %v2730_v35 = vstv %s2729_s27  ;;  %s2816_s25 = sadd.s32 627, %s5775_s23  ;;  %s2826_s12 = sld [smem:[#allocation2 + %s2825_s21]] }
 0x651   : >> { %v2731_v34 = vmul.f32 %v5794_v26, %v2730_v35  ;;  %v2702_v46 = vstv %s2701_s3  ;;  %s2853_s26 = sadd.s32 685, %s5775_s23  ;;  %s2817_s8 = sld [smem:[#allocation2 + %s2816_s25]] }
 0x652   : >> { %2696 = vrot.lane.b32.xlu0 %v2694_v5, %s4128_s24  ;;  %v2703_v55 = vmul.f32 %v5794_v26, %v2702_v46  ;;  %v2758_v56 = vstv %s2757_s6  ;;  %s2844_s7 = sadd.s32 629, %s5775_s23  ;;  %s2854_s11 = sld [smem:[#allocation2 + %s2853_s26]] }
 0x653   : >> { %v2749_v6 = vstv %s2748_s29  ;;  %v2759_v58 = vmul.f32 %v5794_v26, %v2758_v56  ;;  %s2892_s27 = sadd.s32 688, %s5775_s23  ;;  %s2845_s5 = sld [smem:[#allocation2 + %s2844_s7]] }
 0x654   : >> { %2733 = vrot.lane.b32.xlu1 %v2731_v34, %s4128_s24  ;;  %v2799_v28 = vstv %s5800_s0  ;;  %v2750_v15 = vmul.f32 %v5794_v26, %v2749_v6  ;;  %s2883_s3 = sadd.s32 632, %s5775_s23  ;;  %s2893_s20 = sld [smem:[#allocation2 + %s2892_s27]] }
 0x655   : >> { %v2790_v41 = vstv %s5803_s2  ;;  %v2800_v36 = vmul.f32 %v5817_v14, %v2799_v28  ;;  %s2920_s6 = sadd.s32 690, %s5775_s23  ;;  %s2884_s19 = sld [smem:[#allocation2 + %s2883_s3]] }
 0x656   : >> { %2705 = vrot.lane.b32.xlu0 %v2703_v55, %s4128_s24  ;;  %v2827_v45 = vstv %s2826_s12  ;;  %v2791_v62 = vmul.f32 %v5817_v14, %v2790_v41  ;;  %s2911_s29 = sadd.s32 634, %s5775_s23  ;;  %s2921_s30 = sld [smem:[#allocation2 + %s2920_s6]]  ;;  %v5924_v41 = vld [vmem:[%s5788_s22] sm:$0x1f] }
 0x657   : >> { %v2818_v61 = vstv %s2817_s8  ;;  %v2828_v63 = vmul.f32 %v5817_v14, %v2827_v45  ;;  %s2948_s0 = sadd.s32 692, %s5775_s23  ;;  %s2912_s14 = sld [smem:[#allocation2 + %s2911_s29]] }
 0x658   : >> { %2761 = vrot.lane.b32.xlu1 %v2759_v58, %s4128_s24  ;;  %v2855_v2 = vstv %s2854_s11  ;;  %v2819_v3 = vmul.f32 %v5817_v14, %v2818_v61  ;;  %s2939_s2 = sadd.s32 636, %s5775_s23  ;;  %s2949_s21 = sld [smem:[#allocation2 + %s2948_s0]] }
 0x659   : >> { %v2846_v49 = vstv %s2845_s5  ;;  %v2856_v50 = vmul.f32 %v5817_v14, %v2855_v2  ;;  %s2987_s25 = sadd.s32 695, %s5775_s23  ;;  %s2940_s12 = sld [smem:[#allocation2 + %s2939_s2]] }
 0x65a   : >> { %2752 = vrot.lane.b32.xlu0 %v2750_v15, %s4128_s24  ;;  %v2894_v16 = vstv %s2893_s20  ;;  %v2847_v7 = vmul.f32 %v5817_v14, %v2846_v49  ;;  %s2978_s26 = sadd.s32 639, %s5775_s23  ;;  %s2988_s8 = sld [smem:[#allocation2 + %s2987_s25]] }
 0x65b   : >> { %v2885_v8 = vstv %s2884_s19  ;;  %v2895_v9 = vmul.f32 %v5840_v18, %v2894_v16  ;;  %s3015_s7 = sadd.s32 697, %s5775_s23  ;;  %s2979_s11 = sld [smem:[#allocation2 + %s2978_s26]] }
 0x65c   : >> { %2802 = vrot.lane.b32.xlu1 %v2800_v36, %s4128_s24  ;;  %v2922_v10 = vstv %s2921_s30  ;;  %v2886_v11 = vmul.f32 %v5840_v18, %v2885_v8  ;;  %s3006_s27 = sadd.s32 641, %s5775_s23  ;;  %s3016_s5 = sld [smem:[#allocation2 + %s3015_s7]] }
 0x65d   : >> { %v2913_v30 = vstv %s2912_s14  ;;  %v2923_v60 = vmul.f32 %v5840_v18, %v2922_v10  ;;  %s3043_s3 = sadd.s32 699, %s5775_s23  ;;  %s3007_s20 = sld [smem:[#allocation2 + %s3006_s27]] }
 0x65e   : >> { %2793 = vrot.lane.b32.xlu0 %v2791_v62, %s4128_s24  ;;  %v2950_v32 = vstv %s2949_s21  ;;  %v2914_v29 = vmul.f32 %v5840_v18, %v2913_v30  ;;  %s3034_s6 = sadd.s32 643, %s5775_s23  ;;  %s3044_s19 = sld [smem:[#allocation2 + %s3043_s3]] }
 0x65f   : >> { %v2941_v54 = vstv %s2940_s12  ;;  %v2951_v20 = vmul.f32 %v5840_v18, %v2950_v32  ;;  %s3084_s29 = sadd.s32 702, %s5775_s23  ;;  %s3035_s30 = sld [smem:[#allocation2 + %s3034_s6]] }
 0x660   : >> { %2830 = vrot.lane.b32.xlu1 %v2828_v63, %s4128_s24  ;;  %v2989_v0 = vstv %s2988_s8  ;;  %v2942_v1 = vmul.f32 %v5840_v18, %v2941_v54  ;;  %s3075_s0 = sadd.s32 646, %s5775_s23  ;;  %s3085_s14 = sld [smem:[#allocation2 + %s3084_s29]] }
 0x661   : >> { %v2980_v22 = vstv %s2979_s11  ;;  %v2990_v38 = vmul.f32 %v5861_v17, %v2989_v0  ;;  %s3112_s2 = sadd.s32 704, %s5775_s23  ;;  %s3076_s21 = sld [smem:[#allocation2 + %s3075_s0]] }
 0x662   : >> { %2821 = vrot.lane.b32.xlu0 %v2819_v3, %s4128_s24  ;;  %v3017_v19 = vstv %s3016_s5  ;;  %v2981_v13 = vmul.f32 %v5861_v17, %v2980_v22  ;;  %s3103_s25 = sadd.s32 648, %s5775_s23  ;;  %s3113_s12 = sld [smem:[#allocation2 + %s3112_s2]] }
 0x663   : >> { %v3008_v31 = vstv %s3007_s20  ;;  %v3018_v39 = vmul.f32 %v5861_v17, %v3017_v19  ;;  %s3140_s26 = sadd.s32 706, %s5775_s23  ;;  %s3104_s8 = sld [smem:[#allocation2 + %s3103_s25]] }
 0x664   : >> { %2858 = vrot.lane.b32.xlu1 %v2856_v50, %s4128_s24  ;;  %v3045_v25 = vstv %s3044_s19  ;;  %v3009_v23 = vmul.f32 %v5861_v17, %v3008_v31  ;;  %s3131_s7 = sadd.s32 650, %s5775_s23  ;;  %s3141_s11 = sld [smem:[#allocation2 + %s3140_s26]] }
 0x665   : >> { %v3036_v27 = vstv %s3035_s30  ;;  %v3046_v37 = vmul.f32 %v5861_v17, %v3045_v25  ;;  %s3181_s27 = sadd.s32 709, %s5775_s23  ;;  %s3132_s5 = sld [smem:[#allocation2 + %s3131_s7]] }
 0x666   : >> { %2849 = vrot.lane.b32.xlu0 %v2847_v7, %s4128_s24  ;;  %v3086_v24 = vstv %s3085_s14  ;;  %v3037_v12 = vmul.f32 %v5861_v17, %v3036_v27  ;;  %s3172_s3 = sadd.s32 653, %s5775_s23  ;;  %s3182_s20 = sld [smem:[#allocation2 + %s3181_s27]] }
 0x667   : >> { %v3077_v43 = vstv %s3076_s21  ;;  %v3087_v42 = vmul.f32 %v3086_v24, %v5882_v51  ;;  %s3209_s6 = sadd.s32 711, %s5775_s23  ;;  %s3173_s19 = sld [smem:[#allocation2 + %s3172_s3]] }
 0x668   : >> { %2897 = vrot.lane.b32.xlu1 %v2895_v9, %s4128_s24  ;;  %v3114_v44 = vstv %s3113_s12  ;;  %v3078_v57 = vmul.f32 %v3077_v43, %v5882_v51  ;;  %s3200_s29 = sadd.s32 655, %s5775_s23  ;;  %s3210_s30 = sld [smem:[#allocation2 + %s3209_s6]]  ;;  %v5945_v9 = vld [vmem:[%s5788_s22 + $0x28] sm:$0x1f] }
 0x669   : >> { %v3105_v33 = vstv %s3104_s8  ;;  %v3115_v59 = vmul.f32 %v3114_v44, %v5882_v51  ;;  %s3237_s0 = sadd.s32 713, %s5775_s23  ;;  %s3201_s14 = sld [smem:[#allocation2 + %s3200_s29]] }
 0x66a   : >> { %2888 = vrot.lane.b32.xlu0 %v2886_v11, %s4128_s24  ;;  %v3142_v21 = vstv %s3141_s11  ;;  %v3106_v40 = vmul.f32 %v3105_v33, %v5882_v51  ;;  %s3228_s2 = sadd.s32 657, %s5775_s23  ;;  %s3238_s21 = sld [smem:[#allocation2 + %s3237_s0]] }
 0x66b   : >> { %v3133_v47 = vstv %s3132_s5  ;;  %v3143_v4 = vmul.f32 %v3142_v21, %v5882_v51  ;;  %s3276_s25 = sadd.s32 716, %s5775_s23  ;;  %s3229_s12 = sld [smem:[#allocation2 + %s3228_s2]] }
 0x66c   : >> { %2925 = vrot.lane.b32.xlu1 %v2923_v60, %s4128_s24  ;;  %v3183_v52 = vstv %s3182_s20  ;;  %v3134_v53 = vmul.f32 %v3133_v47, %v5882_v51  ;;  %s3267_s26 = sadd.s32 660, %s5775_s23  ;;  %s3277_s8 = sld [smem:[#allocation2 + %s3276_s25]] }
 0x66d   : >> { %v3174_v5 = vstv %s3173_s19  ;;  %v3184_v35 = vmul.f32 %v5903_v48, %v3183_v52  ;;  %s3304_s7 = sadd.s32 718, %s5775_s23  ;;  %s3268_s11 = sld [smem:[#allocation2 + %s3267_s26]] }
 0x66e   : >> { %2916 = vrot.lane.b32.xlu0 %v2914_v29, %s4128_s24  ;;  %v3211_v34 = vstv %s3210_s30  ;;  %v3175_v46 = vmul.f32 %v5903_v48, %v3174_v5  ;;  %s3295_s27 = sadd.s32 662, %s5775_s23  ;;  %s3305_s5 = sld [smem:[#allocation2 + %s3304_s7]] }
 0x66f   : >> { %v3202_v55 = vstv %s3201_s14  ;;  %v3212_v56 = vmul.f32 %v5903_v48, %v3211_v34  ;;  %s3332_s3 = sadd.s32 720, %s5775_s23  ;;  %s3296_s20 = sld [smem:[#allocation2 + %s3295_s27]] }
 0x670   : >> { %2953 = vrot.lane.b32.xlu1 %v2951_v20, %s4128_s24  ;;  %v3239_v6 = vstv %s3238_s21  ;;  %v3203_v58 = vmul.f32 %v5903_v48, %v3202_v55  ;;  %s3323_s6 = sadd.s32 664, %s5775_s23  ;;  %s3333_s19 = sld [smem:[#allocation2 + %s3332_s3]] }
 0x671   : >> { %v3230_v28 = vstv %s3229_s12  ;;  %v3240_v15 = vmul.f32 %v5903_v48, %v3239_v6  ;;  %s3371_s29 = sadd.s32 723, %s5775_s23  ;;  %s3324_s30 = sld [smem:[#allocation2 + %s3323_s6]] }
 0x672   : >> { %2944 = vrot.lane.b32.xlu0 %v2942_v1, %s4128_s24  ;;  %v3278_v36 = vstv %s3277_s8  ;;  %v3231_v45 = vmul.f32 %v5903_v48, %v3230_v28  ;;  %s3362_s0 = sadd.s32 667, %s5775_s23  ;;  %s3372_s14 = sld [smem:[#allocation2 + %s3371_s29]] }
 0x673   : >> { %v3269_v62 = vstv %s3268_s11  ;;  %v3279_v61 = vmul.f32 %v3278_v36, %v5924_v41  ;;  %s3399_s2 = sadd.s32 725, %s5775_s23  ;;  %s3363_s21 = sld [smem:[#allocation2 + %s3362_s0]] }
 0x674   : >> { %2992 = vrot.lane.b32.xlu1 %v2990_v38, %s4128_s24  ;;  %v3306_v63 = vstv %s3305_s5  ;;  %v3270_v2 = vmul.f32 %v3269_v62, %v5924_v41  ;;  %s3390_s25 = sadd.s32 669, %s5775_s23  ;;  %s3400_s12 = sld [smem:[#allocation2 + %s3399_s2]] }
 0x675   : >> { %v3297_v3 = vstv %s3296_s20  ;;  %v3307_v49 = vmul.f32 %v3306_v63, %v5924_v41  ;;  %s3427_s26 = sadd.s32 727, %s5775_s23  ;;  %s3391_s8 = sld [smem:[#allocation2 + %s3390_s25]] }
 0x676   : >> { %2983 = vrot.lane.b32.xlu0 %v2981_v13, %s4128_s24  ;;  %v3334_v50 = vstv %s3333_s19  ;;  %v3298_v16 = vmul.f32 %v3297_v3, %v5924_v41  ;;  %s3418_s7 = sadd.s32 671, %s5775_s23  ;;  %s3428_s11 = sld [smem:[#allocation2 + %s3427_s26]] }
 0x677   : >> { %v3325_v7 = vstv %s3324_s30  ;;  %v3335_v8 = vmul.f32 %v3334_v50, %v5924_v41  ;;  %s3419_s27 = sld [smem:[#allocation2 + %s3418_s7]]  ;;  %s2681_s5 = sadd.s32 617, %s5775_s23 }
 0x678   : >> { %3020 = vrot.lane.b32.xlu1 %v3018_v39, %s4128_s24  ;;  %v3373_v10 = vstv %s3372_s14  ;;  %v3326_v11 = vmul.f32 %v3325_v7, %v5924_v41  ;;  %s2686_s3 = sadd.s32 673, %s5775_s23  ;;  %s5996_s6 = sld [smem:[#allocation2 + %s2681_s5]] }
 0x679   : >> { %v3364_v30 = vstv %s3363_s21  ;;  %v3374_v60 = vmul.f32 %v5945_v9, %v3373_v10  ;;  %s2714_s19 = sadd.s32 675, %s5775_s23  ;;  %s5999_s29 = sld [smem:[#allocation2 + %s2686_s3]] }
 0x67a   : >> { %3011 = vrot.lane.b32.xlu0 %v3009_v23, %s4128_s24  ;;  %v3401_v32 = vstv %s3400_s12  ;;  %v3365_v29 = vmul.f32 %v5945_v9, %v3364_v30  ;;  %s2742_s30 = sadd.s32 677, %s5775_s23  ;;  %s2737_s0 = sadd.s32 621, %s5775_s23 }
 0x67b   : >> { %v3392_v54 = vstv %s3391_s8  ;;  %v3402_v20 = vmul.f32 %v5945_v9, %v3401_v32  ;;  %s2783_s14 = sadd.s32 680, %s5775_s23  ;;  %s6006_s2 = sld [smem:[#allocation2 + %s2714_s19]] }
 0x67c   : >> { %3048 = vrot.lane.b32.xlu1 %v3046_v37, %s4128_s24  ;;  %v3429_v0 = vstv %s3428_s11  ;;  %v3393_v1 = vmul.f32 %v5945_v9, %v3392_v54  ;;  %s2778_s21 = sadd.s32 624, %s5775_s23  ;;  %s6011_s25 = sld [smem:[#allocation2 + %s2742_s30]] }
 0x67d   : >> { %v3420_v22 = vstv %s3419_s27  ;;  %v3430_v38 = vmul.f32 %v5945_v9, %v3429_v0  ;;  %s2811_s12 = sadd.s32 682, %s5775_s23  ;;  %s6014_s26 = sld [smem:[#allocation2 + %s2737_s0]] }
 0x67e   : >> { %3039 = vrot.lane.b32.xlu0 %v3037_v12, %s4128_s24  ;;  %v3421_v19 = vmul.f32 %v5945_v9, %v3420_v22  ;;  %s6016_s8 = sld [smem:[#allocation2 + %s2783_s14]]  ;;  %s2806_s11 = sadd.s32 626, %s5775_s23 }
 0x67f   : >> { %s6020_s7 = sld [smem:[#allocation2 + %s2778_s21]]  ;;  %s2839_s5 = sadd.s32 684, %s5775_s23 }
 0x680   : >> { %3089 = vrot.lane.b32.xlu1 %v3087_v42, %s4128_s24  ;;  %s6023_s27 = sld [smem:[#allocation2 + %s2811_s12]]  ;;  %s2834_s3 = sadd.s32 628, %s5775_s23 }
 0x681   : >> { %s6031_s19 = sld [smem:[#allocation2 + %s2806_s11]]  ;;  %s2873_s30 = sadd.s32 631, %s5775_s23 }
 0x682   : >> { %3080 = vrot.lane.b32.xlu0 %v3078_v57, %s4128_s24  ;;  %s2906_s14 = sadd.s32 689, %s5775_s23  ;;  %s6040_s21 = sld [smem:[#allocation2 + %s2839_s5]] }
 0x683   : >> { %s6042_s12 = sld [smem:[#allocation2 + %s2834_s3]]  ;;  %s2901_s11 = sadd.s32 633, %s5775_s23 }
 0x684   : >> { %3117 = vrot.lane.b32.xlu1 %v3115_v59, %s4128_s24  ;;  %s2934_s5 = sadd.s32 691, %s5775_s23  ;;  %s6063_s3 = sld [smem:[#allocation2 + %s2901_s11]] }
 0x685   : >> { %v2780_v28 = vstv %s6020_s7  ;;  %s6077_s7 = sld [smem:[#allocation2 + %s2934_s5]]  ;;  %s2667_s28 = sadd.s32 1, %s4104_s28  }
 0x686   : >> { %3108 = vrot.lane.b32.xlu0 %v3106_v40, %s4128_s24  ;;  %v2781_v50 = vmul.f32 %v5817_v14, %v2780_v28  ;;  %p2664_p4 = scmp.ge.s32.totalorder %s2667_s28, 4  }
 0x688   : >> { %3145 = vrot.lane.b32.xlu1 %v3143_v4, %s4128_s24  ;;  %v2688_v4 = vstv %s5999_s29  ;;  %s6048_s29 = sld [smem:[#allocation2 + %s2873_s30]]  ;;  %s3001_s30 = sadd.s32 696, %s5775_s23  ;;  %v2841_v32 = vstv %s6040_s21 }
 0x689   : >> { %v2689_v34 = vmul.f32 %v5794_v26, %v2688_v4  ;;  %s6093_s11 = sld [smem:[#allocation2 + %s3001_s30]]  ;;  %v2836_v0 = vstv %s6042_s12  ;;  %s3024_s21 = sadd.s32 642, %s5775_s23 }
 0x68a   : >> { %3136 = vrot.lane.b32.xlu0 %v3134_v53, %s4128_s24  ;;  %v2683_v53 = vstv %s5996_s6  ;;  %s2973_s6 = sadd.s32 694, %s5775_s23  ;;  %s3098_s12 = sadd.s32 703, %s5775_s23  ;;  %v2903_v4 = vstv %s6063_s3 }
 0x68b   : >> { %v2684_v6 = vmul.f32 %v5794_v26, %v2683_v53  ;;  %s6135_s3 = sld [smem:[#allocation2 + %s3024_s21]]  ;;  %s3262_s21 = sadd.s32 715, %s5775_s23 }
 0x68c   : >> { %3186 = vrot.lane.b32.xlu1 %v3184_v35, %s4128_s24  ;;  %v2716_v35 = vstv %s6006_s2  ;;  %s2968_s2 = sadd.s32 638, %s5775_s23  ;;  %s6137_s30 = sld [smem:[#allocation2 + %s3098_s12]] }
 0x68d   : >> { %s3223_s12 = sadd.s32 712, %s5775_s23 }
 0x68e   : >> { %3177 = vrot.lane.b32.xlu0 %v3175_v46, %s4128_s24  ;;  %v2785_v46 = vstv %s6016_s8  ;;  %s2929_s8 = sadd.s32 635, %s5775_s23 }
 0x68f   : >> { %v2786_v62 = vmul.f32 %v5817_v14, %v2785_v46  ;;  %v2837_v46 = vmul.f32 %v5817_v14, %v2836_v0 }
 0x690   : >> { %3214 = vrot.lane.b32.xlu1 %v3212_v56, %s4128_s24 }
 0x692   : >> { %3205 = vrot.lane.b32.xlu0 %v3203_v58, %s4128_s24  ;;  %v2717_v58 = vmul.f32 %v5794_v26, %v2716_v35 }
 0x694   : >> { %3242 = vrot.lane.b32.xlu1 %v3240_v15, %s4128_s24 }
 0x696   : >> { %3233 = vrot.lane.b32.xlu0 %v3231_v45, %s4128_s24  ;;  %v2744_v45 = vstv %s6011_s25  ;;  %s2996_s25 = sadd.s32 640, %s5775_s23 }
 0x698   : >> { %3281 = vrot.lane.b32.xlu1 %v3279_v61, %s4128_s24  ;;  %v2813_v61 = vstv %s6023_s27  ;;  %s3070_s27 = sadd.s32 701, %s5775_s23 }
 0x699   : >> { %v2814_v10 = vmul.f32 %v5817_v14, %v2813_v61  ;;  %s6108_s5 = sld [smem:[#allocation2 + %s3070_s27]]  ;;  %s3121_s27 = sadd.s32 649, %s5775_s23 }
 0x69a   : >> { %3272 = vrot.lane.b32.xlu0 %v3270_v2, %s4128_s24  ;;  %v2739_v2 = vstv %s6014_s26  ;;  %s6091_s26 = sld [smem:[#allocation2 + %s2929_s8]]  ;;  %s3167_s8 = sadd.s32 708, %s5775_s23 }
 0x69b   : >> { %v2740_v54 = vmul.f32 %v5794_v26, %v2739_v2 }
 0x69c   : >> { %3309 = vrot.lane.b32.xlu1 %v3307_v49, %s4128_s24 }
 0x69e   : >> { %3300 = vrot.lane.b32.xlu0 %v3298_v16, %s4128_s24  ;;  %v2808_v16 = vstv %s6031_s19  ;;  %s3029_s19 = sadd.s32 698, %s5775_s23 }
 0x6a0   : >> { %3337 = vrot.lane.b32.xlu1 %v3335_v8, %s4128_s24  ;;  %v2745_v8 = vmul.f32 %v5794_v26, %v2744_v45 }
 0x6a2   : >> { %3328 = vrot.lane.b32.xlu0 %v3326_v11, %s4128_s24 }
 0x6a4   : >> { %3376 = vrot.lane.b32.xlu1 %v3374_v60, %s4128_s24 }
 0x6a6   : >> { %3367 = vrot.lane.b32.xlu0 %v3365_v29, %s4128_s24  ;;  %v2875_v29 = vstv %s6048_s29  ;;  %s6120_s29 = sld [smem:[#allocation2 + %s3029_s19]]  ;;  %s3195_s19 = sadd.s32 710, %s5775_s23 }
 0x6a8   : >> { %3404 = vrot.lane.b32.xlu1 %v3402_v20, %s4128_s24  ;;  %v2809_v20 = vmul.f32 %v5817_v14, %v2808_v16 }
 0x6aa   : >> { %3395 = vrot.lane.b32.xlu0 %v3393_v1, %s4128_s24 }
 0x6ac   : >> { %3432 = vrot.lane.b32.xlu1 %v3430_v38, %s4128_s24 }
 0x6ae   : >> { %3423 = vrot.lane.b32.xlu0 %v3421_v19, %s4128_s24  ;;  %s2709_s24 = sadd.s32 619, %s5775_s23 }
 0x6af   : >> { %s5992_s20 = sld [smem:[#allocation2 + %s2709_s24]]  ;;  %s2878_s24 = sadd.s32 687, %s5775_s23 }
 0x6b0   : >> { %s6036_s0 = sld [smem:[#allocation2 + %s2878_s24]] }
 0x6b1   : >> { %s6052_s24 = sld [smem:[#allocation2 + %s2906_s14]] }
 0x6b2   : >> { %s6079_s14 = sld [smem:[#allocation2 + %s2968_s2]] }
 0x6b5   : >> { %v2711_v56 = vstv %s5992_s20  ;;  %s6072_s20 = sld [smem:[#allocation2 + %s2973_s6]] }
 0x6b6   : >> { %v2712_v63 = vmul.f32 %v5794_v26, %v2711_v56  ;;  %v2880_v7 = vstv %s6036_s0  ;;  %s3065_s0 = sadd.s32 645, %s5775_s23  ;;  %s6106_s6 = sld [smem:[#allocation2 + %s2996_s25]] }
 0x6b7   : >> { %v2881_v1 = vmul.f32 %v5840_v18, %v2880_v7  ;;  %v2908_v26 = vstv %s6052_s24  ;;  %s6122_s2 = sld [smem:[#allocation2 + %s3065_s0]]  ;;  %s3093_s24 = sadd.s32 647, %s5775_s23 }
 0x6b8   : >> { %v2909_v56 = vmul.f32 %v5840_v18, %v2908_v26  ;;  %s3162_s25 = sadd.s32 652, %s5775_s23  ;;  %s3190_s0 = sadd.s32 654, %s5775_s23 }
 0x6bd   : >> { %v3067_v0 = vstv %s6122_s2  ;;  %s6195_s2 = sld [smem:[#allocation2 + %s3262_s21]]  ;;  %s3313_s21 = sadd.s32 663, %s5775_s23 }
 0x6c2   : >> { %v5963_v13 = vpop.permute.xlu1 %2724 }
 0x6c3   : >> { %v2727_v38 = vadd.f32 %v5963_v13, %v2712_v63  ;;  %v3003_v63 = vstv %s6093_s11  ;;  %s6167_s11 = sld [smem:[#allocation2 + %s3162_s25]]  ;;  %s3285_s25 = sadd.s32 661, %s5775_s23 }
 0x6c4   : >> { %v5965_v31 = vpop.permute.xlu0 %2696 }
 0x6c5   : >> { %v2699_v49 = vadd.f32 %v5965_v31, %v2684_v6  ;;  %v2936_v6 = vstv %s6077_s7  ;;  %s6149_s7 = sld [smem:[#allocation2 + %s3093_s24]]  ;;  %s3257_s24 = sadd.s32 659, %s5775_s23 }
 0x6c6   : >> { %v5967_v39 = vpop.permute.xlu1 %2733  ;;  %v2937_v16 = vmul.f32 %v5840_v18, %v2936_v6 }
 0x6c7   : >> { %v2736_v30 = vadd.f32 %v5967_v39, %v2717_v58  ;;  %v2782_v31 = vadd.f32 %v2781_v50, %v2699_v49  ;;  %v2842_v39 = vmul.f32 %v5817_v14, %v2841_v32  ;;  %v2970_v58 = vstv %s6079_s14  ;;  %s6153_s14 = sld [smem:[#allocation2 + %s3167_s8]]  ;;  %s3218_s8 = sadd.s32 656, %s5775_s23 }
 0x6c8   : >> { %v5969_v25 = vpop.permute.xlu0 %2705  ;;  %v2904_v14 = vmul.f32 %v5840_v18, %v2903_v4  ;;  %v2971_v7 = vmul.f32 %v5861_v17, %v2970_v58 }
 0x6c9   : >> { %v2708_v36 = vadd.f32 %v5969_v25, %v2689_v34  ;;  %v2876_v25 = vmul.f32 %v5840_v18, %v2875_v29  ;;  %v2815_v35 = vadd.f32 %v2814_v10, %v2736_v30  ;;  %v2975_v34 = vstv %s6072_s20  ;;  %s3126_s20 = sadd.s32 705, %s5775_s23 }
 0x6ca   : >> { %v5971_v23 = vpop.permute.xlu1 %2761  ;;  %v2976_v61 = vmul.f32 %v5861_v17, %v2975_v34  ;;  %v3072_v10 = vstv %s6108_s5  ;;  %s6181_s5 = sld [smem:[#allocation2 + %s3195_s19]]  ;;  %s3318_s19 = sadd.s32 719, %s5775_s23 }
 0x6cb   : >> { %v2787_v60 = vadd.f32 %v2786_v62, %v2708_v36  ;;  %v2810_v36 = vadd.f32 %v2809_v20, %v2727_v38  ;;  %v2931_v62 = vstv %s6091_s26  ;;  %s6163_s26 = sld [smem:[#allocation2 + %s3126_s20]]  ;;  %v3031_v20 = vstv %s6120_s29  ;;  %s3290_s20 = sadd.s32 717, %s5775_s23 }
 0x6cc   : >> { %v5973_v27 = vpop.permute.xlu0 %2752  ;;  %v2932_v29 = vmul.f32 %v5840_v18, %v2931_v62  ;;  %v3073_v26 = vmul.f32 %v3072_v10, %v5882_v51  ;;  %s6193_s29 = sld [smem:[#allocation2 + %s3190_s0]]  ;;  %v3095_v34 = vstv %s6149_s7  ;;  %s3352_s0 = sadd.s32 666, %s5775_s23 }
 0x6cd   : >> { %s6221_s7 = sld [smem:[#allocation2 + %s3218_s8]]  ;;  %s3413_s8 = sadd.s32 726, %s5775_s23 }
 0x6ce   : >> { %v5975_v37 = vpop.permute.xlu1 %2802 }
 0x6cf   : >> { %v2805_v19 = vadd.f32 %v5975_v37, %v2787_v60  ;;  %v2764_v37 = vadd.f32 %v5971_v23, %v2745_v8  ;;  %v2998_v8 = vstv %s6106_s6  ;;  %s6177_s6 = sld [smem:[#allocation2 + %s3121_s27]]  ;;  %s3357_s27 = sadd.s32 722, %s5775_s23 }
 0x6d0   : >> { %v5977_v24 = vpop.permute.xlu0 %2793  ;;  %v2999_v18 = vmul.f32 %v5861_v17, %v2998_v8 }
 0x6d1   : >> { %v2796_v53 = vadd.f32 %v5977_v24, %v2782_v31  ;;  %v2755_v24 = vadd.f32 %v5973_v27, %v2740_v54  ;;  %v2882_v45 = vadd.f32 %v2881_v1, %v2805_v19  ;;  %v3004_v54 = vmul.f32 %v5861_v17, %v3003_v63 }
 0x6d2   : >> { %v5979_v12 = vpop.permute.xlu1 %2830  ;;  %v3026_v31 = vstv %s6135_s3  ;;  %s6207_s3 = sld [smem:[#allocation2 + %s3223_s12]]  ;;  %v3192_v10 = vstv %s6193_s29 }
 0x6d3   : >> { %v2833_v28 = vadd.f32 %v5979_v12, %v2815_v35  ;;  %v2843_v12 = vadd.f32 %v2842_v39, %v2764_v37  ;;  %v2877_v50 = vadd.f32 %v2876_v25, %v2796_v53  ;;  %v3100_v39 = vstv %s6137_s30  ;;  %s6209_s30 = sld [smem:[#allocation2 + %s3257_s24]]  ;;  %s3380_s24 = sadd.s32 668, %s5775_s23 }
 0x6d4   : >> { %v5981_v43 = vpop.permute.xlu0 %2821  ;;  %v3032_v53 = vmul.f32 %v5861_v17, %v3031_v20  ;;  %v3068_v35 = vmul.f32 %v3067_v0, %v5882_v51  ;;  %s6251_s12 = sld [smem:[#allocation2 + %s3352_s0]]  ;;  %s2773_s0 = sadd.s32 679, %s5775_s23 }
 0x6d5   : >> { %v2824_v27 = vadd.f32 %v5981_v43, %v2810_v36  ;;  %v2910_v32 = vadd.f32 %v2909_v56, %v2833_v28  ;;  %v3101_v28 = vmul.f32 %v3100_v39, %v5882_v51  ;;  %v3128_v36 = vstv %s6163_s26  ;;  %s6235_s26 = sld [smem:[#allocation2 + %s3285_s25]] }
 0x6d6   : >> { %v5983_v42 = vpop.permute.xlu1 %2858  ;;  %v3123_v63 = vstv %s6177_s6  ;;  %s3385_s6 = sadd.s32 724, %s5775_s23  ;;  %s6260_s29 = sld [smem:[#allocation2 + %s3313_s21]] }
 0x6d7   : >> { %v2861_v43 = vadd.f32 %v5983_v42, %v2843_v12  ;;  %v2905_v38 = vadd.f32 %v2904_v14, %v2824_v27  ;;  %v3197_v12 = vstv %s6181_s5  ;;  %s6249_s5 = sld [smem:[#allocation2 + %s3318_s19]]  ;;  %s2668_s19 = sadd.s32 672, %s5775_s23 }
 0x6d8   : >> { %v5985_v44 = vpop.permute.xlu0 %2849  ;;  %v3225_v20 = vstv %s6207_s3  ;;  %s6279_s3 = sld [smem:[#allocation2 + %s3413_s8]] }
 0x6d9   : >> { %s2774_s21 = sld [smem:[#allocation2 + %s2773_s0]]  ;;  %s3152_s0 = sadd.s32 651, %s5775_s23 }
 0x6da   : >> { %v5989_v57 = vpop.permute.xlu1 %2897 }
 0x6db   : >> { %v2900_v49 = vadd.f32 %v5989_v57, %v2882_v45  ;;  %v2838_v57 = vadd.f32 %v2837_v46, %v2755_v24  ;;  %v3169_v46 = vstv %s6153_s14  ;;  %v3027_v24 = vmul.f32 %v5861_v17, %v3026_v31  ;;  %s6223_s14 = sld [smem:[#allocation2 + %s3290_s20]] }
 0x6dc   : >> { %v5994_v33 = vpop.permute.xlu0 %2888  ;;  %v3164_v45 = vstv %s6167_s11  ;;  %v3096_v17 = vmul.f32 %v3095_v34, %v5882_v51  ;;  %v3170_v27 = vmul.f32 %v5903_v48, %v3169_v46  ;;  %s6237_s11 = sld [smem:[#allocation2 + %s3357_s27]]  ;;  %s4129_s27 = smov 5  }
 0x6dd   : >> { %v2891_v60 = vadd.f32 %v5994_v33, %v2877_v50  ;;  %v2852_v42 = vadd.f32 %v5985_v44, %v2838_v57  ;;  %v2977_v19 = vadd.f32 %v2976_v61, %v2900_v49  ;;  %v3165_v8 = vmul.f32 %v5903_v48, %v3164_v45  ;;  %s6271_s20 = sld [smem:[#allocation2 + %s3380_s24]]  ;;  %s2863_s24 = sadd.s32 630, %s5775_s23 }
 0x6de   : >> { %v6002_v59 = vpop.permute.xlu1 %2925  ;;  %v3264_v57 = vstv %s6195_s2  ;;  %s6262_s2 = sld [smem:[#allocation2 + %s3385_s6]]  ;;  %s2868_s6 = sadd.s32 686, %s5775_s23 }
 0x6df   : >> { %v2928_v33 = vadd.f32 %v6002_v59, %v2910_v32  ;;  %v2938_v59 = vadd.f32 %v2937_v16, %v2861_v43  ;;  %v2972_v37 = vadd.f32 %v2971_v7, %v2891_v60  ;;  %v3129_v7 = vmul.f32 %v3128_v36, %v5882_v51  ;;  %s2864_s8 = sld [smem:[#allocation2 + %s2863_s24]] }
 0x6e0   : >> { %v6009_v21 = vpop.permute.xlu0 %2916  ;;  %v3265_v31 = vmul.f32 %v3264_v57, %v5924_v41 }
 0x6e1   : >> { %v2919_v44 = vadd.f32 %v6009_v21, %v2905_v38  ;;  %v3005_v58 = vadd.f32 %v3004_v54, %v2928_v33  ;;  %v3198_v54 = vmul.f32 %v5903_v48, %v3197_v12  ;;  %v3292_v39 = vstv %s6223_s14  ;;  %s4131_s14 = smov 17  }
 0x6e2   : >> { %v6018_v40 = vpop.permute.xlu1 %2953  ;;  %v3359_v34 = vstv %s6237_s11  ;;  %s2677_s11 = sld [smem:[#allocation2 + %s2668_s19]] }
 0x6e3   : >> { %v2956_v21 = vadd.f32 %v6018_v40, %v2938_v59  ;;  %v3000_v62 = vadd.f32 %v2999_v18, %v2919_v44  ;;  %v3220_v18 = vstv %s6221_s7  ;;  %s4130_s7 = smov 11  }
 0x6e4   : >> { %v6026_v47 = vpop.permute.xlu0 %2944 }
 0x6e6   : >> { %v6034_v52 = vpop.permute.xlu1 %2992 }
 0x6e7   : >> { %v2995_v4 = vadd.f32 %v6034_v52, %v2977_v19  ;;  %v2933_v52 = vadd.f32 %v2932_v29, %v2852_v42  ;;  %v3124_v29 = vmul.f32 %v3123_v63, %v5882_v51  ;;  %v3259_v42 = vstv %s6209_s30  ;;  %s3408_s30 = sadd.s32 670, %s5775_s23 }
 0x6e8   : >> { %v6044_v5 = vpop.permute.xlu0 %2983  ;;  %v3193_v19 = vmul.f32 %v5903_v48, %v3192_v10  ;;  %s6294_s25 = sld [smem:[#allocation2 + %s3408_s30]]  ;;  %s3060_s30 = sadd.s32 700, %s5775_s23 }
 0x6e9   : >> { %v2986_v6 = vadd.f32 %v6044_v5, %v2972_v37  ;;  %v2947_v40 = vadd.f32 %v6026_v47, %v2933_v52  ;;  %v3074_v61 = vadd.f32 %v3073_v26, %v2995_v4  ;;  %v3226_v4 = vmul.f32 %v5903_v48, %v3225_v20 }
 0x6ea   : >> { %v6055_v55 = vpop.permute.xlu1 %3020  ;;  %v3260_v37 = vmul.f32 %v3259_v42, %v5924_v41  ;;  %v3221_v52 = vmul.f32 %v5903_v48, %v3220_v18 }
 0x6eb   : >> { %v3023_v5 = vadd.f32 %v6055_v55, %v3005_v58  ;;  %v3033_v55 = vadd.f32 %v3032_v53, %v2956_v21  ;;  %v3069_v16 = vadd.f32 %v3068_v35, %v2986_v6  ;;  %v3287_v35 = vstv %s6235_s26  ;;  %s2768_s26 = sadd.s32 623, %s5775_s23 }
 0x6ec   : >> { %v6066_v15 = vpop.permute.xlu0 %3011  ;;  %v3293_v6 = vmul.f32 %v3292_v39, %v5924_v41 }
 0x6ed   : >> { %v3014_v47 = vadd.f32 %v6066_v15, %v3000_v62  ;;  %v3102_v32 = vadd.f32 %v3101_v28, %v3023_v5  ;;  %v3354_v28 = vstv %s6251_s12  ;;  %v3288_v5 = vmul.f32 %v3287_v35, %v5924_v41  ;;  %s2769_s12 = sld [smem:[#allocation2 + %s2768_s26]] }
 0x6ee   : >> { %v6081_v3 = vpop.permute.xlu1 %3048  ;;  %v3315_v62 = vstv %s6260_s29  ;;  %v3410_v18 = vstv %s6294_s25  ;;  %s2869_s29 = sld [smem:[#allocation2 + %s2868_s6]]  ;;  %s3247_s6 = sadd.s32 658, %s5775_s23 }
 0x6ef   : >> { %v3051_v15 = vadd.f32 %v6081_v3, %v3033_v55  ;;  %v3355_v55 = vmul.f32 %v5945_v9, %v3354_v28  ;;  %v3316_v57 = vmul.f32 %v3315_v62, %v5924_v41  ;;  %v3959_v28 = vld [vmem:[%s5788_s22 + $0x31] sm:$0x1f]  ;;  %v2865_v62 = vstv %s2864_s8  ;;  %s3248_s24 = sld [smem:[#allocation2 + %s3247_s6]] }
 0x6f0   : >> { %v6095_v11 = vpop.permute.xlu0 %3039 }
 0x6f2   : >> { %v6110_v22 = vpop.permute.xlu1 %3089 }
 0x6f3   : >> { %v3092_v50 = vadd.f32 %v6110_v22, %v3074_v61  ;;  %v3028_v22 = vadd.f32 %v3027_v24, %v2947_v40  ;;  %v3320_v24 = vstv %s6249_s5  ;;  %v3360_v61 = vmul.f32 %v5945_v9, %v3359_v34  ;;  %s2673_s5 = sld [smem:[#allocation2 + %s2661_s9]] }
 0x6f4   : >> { %v6124_v13 = vpop.permute.xlu0 %3080 }
 0x6f5   : >> { %v3083_v60 = vadd.f32 %v6124_v13, %v3069_v16  ;;  %v3042_v3 = vadd.f32 %v6095_v11, %v3028_v22  ;;  %v3097_v13 = vadd.f32 %v3096_v17, %v3014_v47  ;;  %v3171_v38 = vadd.f32 %v3170_v27, %v3092_v50 }
 0x6f6   : >> { %v6139_v23 = vpop.permute.xlu1 %3117  ;;  %v3130_v11 = vadd.f32 %v3129_v7, %v3051_v15  ;;  %v3387_v17 = vstv %s6262_s2  ;;  %v3382_v50 = vstv %s6271_s20  ;;  %v3415_v22 = vstv %s6279_s3  ;;  %s2963_s2 = sadd.s32 693, %s5775_s23  ;;  %s2958_s20 = sadd.s32 637, %s5775_s23 }
 0x6f7   : >> { %v3120_v33 = vadd.f32 %v6139_v23, %v3102_v32  ;;  %v3166_v59 = vadd.f32 %v3165_v8, %v3083_v60  ;;  %v3125_v21 = vadd.f32 %v3124_v29, %v3042_v3  ;;  %v3383_v42 = vmul.f32 %v5945_v9, %v3382_v50  ;;  %s2964_s3 = sld [smem:[#allocation2 + %s2963_s2]] }
 0x6f8   : >> { %v6151_v2 = vpop.permute.xlu0 %3108  ;;  %s6318_s25 = sld [smem:[#allocation2 + %s2958_s20]]  ;;  %s3475_s20 = sadd.s32 1, %s4249_s10 }
 0x6f9   : >> { %v3111_v44 = vadd.f32 %v6151_v2, %v3097_v13 }
 0x6fa   : >> { %v6165_v30 = vpop.permute.xlu1 %3145 }
 0x6fb   : >> { %v3148_v46 = vadd.f32 %v6165_v30, %v3130_v11  ;;  %v3194_v30 = vadd.f32 %v3193_v19, %v3111_v44  ;;  %v3416_v19 = vmul.f32 %v5945_v9, %v3415_v22  ;;  %v3963_v22 = vld [vmem:[%s5788_s22 + $0x1] sm:$0x1f] }
 0x6fc   : >> { %v6179_v1 = vpop.permute.xlu0 %3136 }
 0x6fd   : >> { %v3139_v36 = vadd.f32 %v6179_v1, %v3125_v21  ;;  %v3227_v27 = vadd.f32 %v3226_v4, %v3148_v46  ;;  %v3411_v4 = vmul.f32 %v5945_v9, %v3410_v18 }
 0x6fe   : >> { %v6191_v25 = vpop.permute.xlu1 %3186 }
 0x6ff   : >> { %v3189_v23 = vadd.f32 %v6191_v25, %v3171_v38  ;;  %v3199_v25 = vadd.f32 %v3198_v54, %v3120_v33  ;;  %v3222_v7 = vadd.f32 %v3221_v52, %v3139_v36  ;;  %v2678_v52 = vstv %s2677_s11  ;;  %s3252_s11 = sadd.s32 714, %s5775_s23 }
 0x700   : >> { %v6205_v56 = vpop.permute.xlu0 %3177 }
 0x701   : >> { %v3180_v2 = vadd.f32 %v6205_v56, %v3166_v59  ;;  %v3266_v40 = vadd.f32 %v3265_v31, %v3189_v23 }
 0x702   : >> { %v6219_v14 = vpop.permute.xlu1 %3214 }
 0x703   : >> { %v3217_v45 = vadd.f32 %v6219_v14, %v3199_v25  ;;  %v3261_v1 = vadd.f32 %v3260_v37, %v3180_v2  ;;  %v3321_v14 = vmul.f32 %v3320_v24, %v5924_v41  ;;  %v2770_v24 = vstv %s2769_s12  ;;  %s3347_s12 = sadd.s32 721, %s5775_s23 }
 0x704   : >> { %v6233_v49 = vpop.permute.xlu0 %3205  ;;  %s3348_s2 = sld [smem:[#allocation2 + %s3347_s12]] }
 0x705   : >> { %v3208_v63 = vadd.f32 %v6233_v49, %v3194_v30  ;;  %v3294_v10 = vadd.f32 %v3293_v6, %v3217_v45  ;;  %v3388_v49 = vmul.f32 %v5945_v9, %v3387_v17  ;;  %v2775_v6 = vstv %s2774_s21  ;;  %v3960_v45 = vld [vmem:[%s5788_s22 + $0x9] sm:$0x1f]  ;;  %s3153_s21 = sld [smem:[#allocation2 + %s3152_s0]] }
 0x706   : >> { %v6246_v43 = vpop.permute.xlu1 %3242  ;;  %v2776_v36 = vmul.f32 %v3959_v28, %v2775_v6  ;;  %v2679_v30 = vmul.f32 %v3960_v45, %v2678_v52 }
 0x707   : >> { %v3245_v16 = vadd.f32 %v6246_v43, %v3227_v27  ;;  %v3289_v29 = vadd.f32 %v3288_v5, %v3208_v63  ;;  %v2771_v5 = vmul.f32 %v3959_v28, %v2770_v24  ;;  %v2965_v27 = vstv %s2964_s3  ;;  %s3454_s3 = sld [smem:[#allocation4 + %s4249_s10]] }
 0x708   : >> { %v3234_v0 = vpop.permute.xlu0 %3233  ;;  %v2777_v63 = vadd.f32 %v2776_v36, %v2679_v30 }
 0x709   : >> { %v3236_v60 = vadd.f32 %v3234_v0, %v3222_v7  ;;  %v3322_v33 = vadd.f32 %v3321_v14, %v3245_v16  ;;  %v2960_v14 = vstv %s6318_s25 }
 0x70a   : >> { %v3282_v26 = vpop.permute.xlu1 %3281 }
 0x70b   : >> { %v3284_v12 = vadd.f32 %v3282_v26, %v3266_v40  ;;  %v3317_v26 = vadd.f32 %v3316_v57, %v3236_v60  ;;  %v2870_v40 = vstv %s2869_s29  ;;  %s3342_s29 = sadd.s32 665, %s5775_s23 }
 0x70c   : >> { %v3273_v53 = vpop.permute.xlu0 %3272  ;;  %s3343_s8 = sld [smem:[#allocation2 + %s3342_s29]] }
 0x70d   : >> { %v3275_v8 = vadd.f32 %v3273_v53, %v3261_v1  ;;  %v3361_v54 = vadd.f32 %v3360_v61, %v3284_v12  ;;  %v3961_v61 = vld [vmem:[%s5788_s22 + $0x8] sm:$0x1f] }
 0x70e   : >> { %v3310_v58 = vpop.permute.xlu1 %3309  ;;  %v2871_v17 = vmul.f32 %v3961_v61, %v2870_v40  ;;  %v2866_v12 = vmul.f32 %v3961_v61, %v2865_v62 }
 0x70f   : >> { %v3312_v32 = vadd.f32 %v3310_v58, %v3294_v10  ;;  %v3356_v13 = vadd.f32 %v3355_v55, %v3275_v8  ;;  %v2674_v58 = vstv %s2673_s5  ;;  %s3253_s5 = sld [smem:[#allocation2 + %s3252_s11]] }
 0x710   : >> { %v3301_v56 = vpop.permute.xlu0 %3300  ;;  %v2872_v50 = vadd.f32 %v2871_v17, %v2777_v63 }
 0x711   : >> { %v3303_v3 = vadd.f32 %v3301_v56, %v3289_v29  ;;  %v3389_v0 = vadd.f32 %v3388_v49, %v3312_v32  ;;  %v2675_v56 = vmul.f32 %v3960_v45, %v2674_v58  ;;  %v3154_v29 = vstv %s3153_s21 }
 0x712   : >> { %v3338_v47 = vpop.permute.xlu1 %3337 }
 0x713   : >> { %v3340_v31 = vadd.f32 %v3338_v47, %v3322_v33  ;;  %v3384_v59 = vadd.f32 %v3383_v42, %v3303_v3  ;;  %v2772_v1 = vadd.f32 %v2771_v5, %v2675_v56  ;;  %v3962_v47 = vld [vmem:[%s5788_s22 + $0x30] sm:$0x1f]  ;;  %v3155_v3 = vmul.f32 %v5903_v48, %v3154_v29  ;;  %s3476_s22 = sld [smem:[#allocation4 + %s3475_s20]] }
 0x714   : >> { %v3329_v15 = vpop.permute.xlu0 %3328  ;;  %v2966_v55 = vmul.f32 %v3962_v47, %v2965_v27  ;;  %v2961_v7 = vmul.f32 %v3962_v47, %v2960_v14 }
 0x715   : >> { %v3331_v11 = vadd.f32 %v3329_v15, %v3317_v26  ;;  %v3417_v35 = vadd.f32 %v3416_v19, %v3340_v31  ;;  %v2867_v8 = vadd.f32 %v2866_v12, %v2772_v1  ;;  %v3254_v42 = vstv %s3253_s5 }
 0x716   : >> { %v3377_v20 = vpop.permute.xlu1 %3376  ;;  %v2967_v15 = vadd.f32 %v2966_v55, %v2872_v50  ;;  %v3344_v31 = vstv %s3343_s8 }
 0x717   : >> { %v3379_v43 = vadd.f32 %v3377_v20, %v3361_v54  ;;  %v3412_v21 = vadd.f32 %v3411_v4, %v3331_v11  ;;  %v2962_v32 = vadd.f32 %v2961_v7, %v2867_v8 }
 0x718   : >> { %v3368_v38 = vpop.permute.xlu0 %3367 }
 0x719   : >> { %v3370_v39 = vadd.f32 %v3368_v38, %v3356_v13  ;;  %3461 = vrot.lane.b32.xlu1 %v3379_v43, %s4129_s27  ;;  %v3249_v43 = vstv %s3248_s24  ;;  %v3349_v38 = vstv %s3348_s2 }
 0x71a   : >> { %v3405_v44 = vpop.permute.xlu1 %3404  ;;  %v3250_v19 = vmul.f32 %v3249_v43, %v5924_v41  ;;  %v3350_v26 = vmul.f32 %v5945_v9, %v3349_v38 }
 0x71b   : >> { %3437 = vrot.lane.b32.xlu0 %v3370_v39, %s4129_s27  ;;  %v3407_v23 = vadd.f32 %v3405_v44, %v3389_v0  ;;  %s3055_s27 = sadd.s32 644, %s5775_s23  ;;  %v3345_v44 = vmul.f32 %v5945_v9, %v3344_v31 }
 0x71c   : >> { %v3396_v37 = vpop.permute.xlu0 %3395  ;;  %s3056_s19 = sld [smem:[#allocation2 + %s3055_s27]] }
 0x71d   : >> { %v3398_v53 = vadd.f32 %v3396_v37, %v3384_v59  ;;  %3465 = vrot.lane.b32.xlu1 %v3407_v23, %s4130_s7 }
 0x71e   : >> { %v3433_v34 = vpop.permute.xlu1 %3432 }
 0x71f   : >> { %3441 = vrot.lane.b32.xlu0 %v3398_v53, %s4130_s7  ;;  %v3435_v46 = vadd.f32 %v3433_v34, %v3417_v35  ;;  %s3061_s7 = sld [smem:[#allocation2 + %s3060_s30]]  ;;  %v3477_v53 = vstv %s3476_s22  ;;  %s3457_s30 = scalar_lea.vmem %s4262_s1, %s3787_s13 }
 0x720   : >> { %v3424_v2 = vpop.permute.xlu0 %3423 }
 0x721   : >> { %v3426_v25 = vadd.f32 %v3424_v2, %v3412_v21  ;;  %3469 = vrot.lane.b32.xlu1 %v3435_v46, %s4131_s14  ;;  %v3455_v21 = vstv %s3454_s3 }
 0x722   : >> { %v3057_v10 = vstv %s3056_s19 }
 0x723   : >> { %3445 = vrot.lane.b32.xlu0 %v3426_v25, %s4131_s14  ;;  %s3157_s14 = sadd.s32 707, %s5775_s23  ;;  %v3058_v60 = vmul.f32 %v3963_v22, %v3057_v10 }
 0x724   : >> { %s3158_s26 = sld [smem:[#allocation2 + %s3157_s14]] }
 0x725   : >> { %v3062_v16 = vstv %s3061_s7  ;;  %v3059_v33 = vadd.f32 %v3058_v60, %v2962_v32 }
 0x726   : >> { %v3063_v57 = vmul.f32 %v3062_v16, %v5882_v51  ;;  %v3255_v51 = vmul.f32 %v3254_v42, %v5924_v41 }
 0x727   : >> { %v3156_v18 = vadd.f32 %v3155_v3, %v3059_v33 }
 0x728   : >> { %v3064_v20 = vadd.f32 %v3063_v57, %v2967_v15 }
 0x72a   : >> { %v3159_v49 = vstv %s3158_s26 }
 0x72b   : >> { %v3160_v54 = vmul.f32 %v5903_v48, %v3159_v49  ;;  %v3251_v48 = vadd.f32 %v3250_v19, %v3156_v18 }
 0x72d   : >> { %v3161_v13 = vadd.f32 %v3160_v54, %v3064_v20  ;;  %v3346_v4 = vadd.f32 %v3345_v44, %v3251_v48 }
 0x72f   : >> { %v3256_v39 = vadd.f32 %v3255_v51, %v3161_v13 }
 0x731   : >> { %v3351_v23 = vadd.f32 %v3350_v26, %v3256_v39 }
 0x78b   : >> { %v3462_v0 = vpop.permute.xlu1 %3461 }
 0x78c   : >> { %v3472_v37 = vsel %vm3448_vm4, %v3351_v23, %v3462_v0 }
 0x78d   : >> { %v3438_v11 = vpop.permute.xlu0 %3437 }
 0x78e   : >> { %v3449_v46 = vsel %vm3448_vm4, %v3346_v4, %v3438_v11 }
 0x78f   : >> { %v3466_v59 = vpop.permute.xlu1 %3465 }
 0x790   : >> { %v3473_v35 = vsel %vm3450_vm5, %v3472_v37, %v3466_v59 }
 0x791   : >> { %v3442_v41 = vpop.permute.xlu0 %3441 }
 0x792   : >> { %v3451_v2 = vsel %vm3450_vm5, %v3449_v46, %v3442_v41 }
 0x793   : >> { %v3470_v34 = vpop.permute.xlu1 %3469  ;;  %2666 = sbr.rel (!%p2664_p4) target bundleno = 1606 (0x646), region = 222 }
 0x794   : >> { %v3474_v9 = vsel %vm3452_vm6, %v3473_v35, %v3470_v34 }
 0x795   : >> { %v3478_v25 = vadd.f32 %v3477_v53, %v3474_v9  ;;  %v3446_v52 = vpop.permute.xlu0 %3445 }
 0x796   : >> { %v3453_v6 = vsel %vm3452_vm6, %v3451_v2, %v3446_v52 }
 0x797   : >> { %3798 = vst.msk [vmem:[%s3457_s30 + $0x20] sm:$0x1f] %vm3458_vm7, %v3478_v25  ;;  %v3456_v58 = vadd.f32 %v3455_v21, %v3453_v6 }
 0x799   : >> { %3459 = vst.msk [vmem:[%s3457_s30] sm:$0x1f] %vm3458_vm7, %v3456_v58 }
 0x79a PF: > { %s15_s18 = sadd.s32 1, %s4080_s18   ;;  %s6406_s25 = sld [smem:[#allocation8_spill]] }
 0x79b   : > { %p12_p5 = scmp.ge.s32.totalorder %s15_s18, 26   ;;  %s6407_s27 = sld [smem:[#allocation9_spill]] }
 0x79c   : > { %s6408_s7 = sld [smem:[#allocation10_spill]]  ;;  %s6409_s12 = smov %s4068_s15 }
 0x79d   : > { %s6410_s13 = smov %s4072_s16  ;;  %s6411_s14 = smov %s4076_s17 }
 0x79e   :  { %14 = sbr.rel (!%p12_p5) target bundleno = 10 (0xa), region = 233 }
 0x7a0   : > { %s6412_s15 = smov %s6406_s25 }
 0x7a1   : > { %s6413_s16 = smov %s6407_s27 }
 0x7a2   : > { %s6414_s17 = smov %s6408_s7 }
 0x7a5   :  { %3519 = vsyncpa [#allocation3], 1 }
 0x7a6   :  { %3521 = vsyncpa [#allocation3 + $0x1], 1 }
 0x7a7   :  { %3522 = vsyncpa [#allocation5], 1 }

</bundles_post_ra>
